<compile_context>
chip_gen: v5e
topology: v5e:2x2
jax: 0.10.0
libtpu: 0.0.40
codegen_flags: <defaults>
</compile_context>

<pallas_src>
import functools

import jax
import jax.numpy as jnp
import numpy as np
from jax.experimental import pallas as pl
from jax.experimental.pallas import tpu as pltpu

_BN_EPS = 1e-5   # PyTorch BatchNorm2d default
_LANES = 128


def _round_up(x, m):
    return (x + m - 1) // m * m


# --------------------------------------------------------------------------
# Fused residual-block kernel (BN batch elements per grid step)
# --------------------------------------------------------------------------
def _residual_block_kernel(xph_ref, w1_ref, b1_ref, w2_ref, b2_ref, *rest,
                           stride, Ho, Wo, Cp, Cop, BN, has_shortcut):
    """conv3x3(s)+bn1+relu -> conv3x3(1)+bn2 -> (+shortcut) -> relu.

    xph_ref : (BN*s*s, Hp//s, Wp//s, Cp)  phase-decomposed zero-padded input
    w1_ref  : (9, Cp, Cop)                conv1 weights (BN1 scale folded in)
    b1_ref  : (1, Cop)  f32               folded BN1 bias
    w2_ref  : (9, Cop, Cop)               conv2 weights (BN2 scale folded in)
    b2_ref  : (1, Cop)  f32               folded BN2 bias
    rest    : [wsc_ref (Cp,Cop), bsc_ref (1,Cop)]?, o_ref (BN,Ho,Wo,Cop),
              hpad_scr (BN, Ho+2, Wo+2, Cop) VMEM scratch (compute dtype)
    """
    if has_shortcut:
        wsc_ref, bsc_ref, o_ref, hpad_scr = rest
    else:
        o_ref, hpad_scr = rest

    s = stride
    ss = s * s
    M = BN * Ho * Wo
    cdtype = hpad_scr.dtype

    def tap(kh, kw):
        # phase[a, b][i, j, :] == xpad[s*i + a, s*j + b, :]
        ph = (kh % s) * s + (kw % s)
        i0, j0 = kh // s, kw // s
        slabs = [
            xph_ref[b * ss + ph, i0:i0 + Ho, j0:j0 + Wo, :].reshape(Ho * Wo, Cp)
            for b in range(BN)
        ]
        return slabs[0] if BN == 1 else jnp.concatenate(slabs, axis=0)

    # ---- conv1 (3x3, stride s) + bn1 + relu: 9 accumulated MXU dots --------
    h = jnp.zeros((M, Cop), jnp.float32) + b1_ref[...]
    x_center = None
    for kh in range(3):
        for kw in range(3):
            a = tap(kh, kw)                                  # (M, Cp)
            if kh == 1 and kw == 1:
                x_center = a                                 # == 1x1-conv input
            h = h + jnp.dot(a, w1_ref[3 * kh + kw],
                            preferred_element_type=jnp.float32)
    h = jnp.maximum(h, 0.0)

    # ---- shortcut (1x1 conv stride s + bn, or identity) --------------------
    if has_shortcut:
        sc = jnp.dot(x_center, wsc_ref[...],
                     preferred_element_type=jnp.float32) + bsc_ref[...]
    else:
        sc = x_center.astype(jnp.float32)   # identity: stride==1, Cin==Cout

    # ---- zero-pad h in VMEM scratch for conv2 (borders only, every step) ---
    hpad_scr[:, 1:Ho + 1, 1:Wo + 1, :] = (
        h.reshape(BN, Ho, Wo, Cop).astype(cdtype))
    zrow = jnp.zeros((BN, 1, Wo + 2, Cop), cdtype)
    zcol = jnp.zeros((BN, Ho + 2, 1, Cop), cdtype)
    hpad_scr[:, 0:1, :, :] = zrow
    hpad_scr[:, Ho + 1:Ho + 2, :, :] = zrow
    hpad_scr[:, :, 0:1, :] = zcol
    hpad_scr[:, :, Wo + 1:Wo + 2, :] = zcol

    # ---- conv2 (3x3, stride 1) + bn2: 9 accumulated MXU dots ---------------
    out = jnp.zeros((M, Cop), jnp.float32) + b2_ref[...]
    for kh in range(3):
        for kw in range(3):
            slabs = [
                hpad_scr[b, kh:kh + Ho, kw:kw + Wo, :].reshape(Ho * Wo, Cop)
                for b in range(BN)
            ]
            a2 = slabs[0] if BN == 1 else jnp.concatenate(slabs, axis=0)
            out = out + jnp.dot(a2, w2_ref[3 * kh + kw],
                                preferred_element_type=jnp.float32)

    # ---- residual add + final relu + lane-dense store ----------------------
    out = jnp.maximum(out + sc, 0.0)
    o_ref[...] = out.reshape(BN, Ho, Wo, Cop).astype(o_ref.dtype)


# --------------------------------------------------------------------------
# Wrapper
# --------------------------------------------------------------------------
def _fold_bn(gamma, beta, mean, var, eps=_BN_EPS):
    scale = gamma / jnp.sqrt(var + eps)
    return scale, beta - mean * scale


def _phase_decompose(x, stride, pad=1):
    """Zero-pad and space-to-depth so strided taps become contiguous slices."""
    N, H, W, C = x.shape
    Hp, Wp = H + 2 * pad, W + 2 * pad
    assert Hp % stride == 0 and Wp % stride == 0, "H/W must be stride-friendly"
    xpad = jnp.pad(x, ((0, 0), (pad, pad), (pad, pad), (0, 0)))
    xph = xpad.reshape(N, Hp // stride, stride, Wp // stride, stride, C)
    xph = xph.transpose(0, 2, 4, 1, 3, 5)      # (N, s, s, Hp/s, Wp/s, C)
    return xph.reshape(N * stride * stride, Hp // stride, Wp // stride, C)


def _pick_batch_block(N, Ho, Wo, target_rows=512, cap=8):
    """Smallest divisor of N whose flattened M = BN*Ho*Wo reaches target_rows."""
    bn = 1
    for cand in range(1, min(N, cap) + 1):
        if N % cand == 0:
            bn = cand
            if cand * Ho * Wo >= target_rows:
                break
    return bn


def residual_block_forward(params, x_nhwc, *, compute_dtype=jnp.bfloat16,
                           out_dtype=None):
    """x_nhwc: (N, H, W, Cin) -> (N, Ho, Wo, Cout). Eval-mode BatchNorm."""
    stride = params["stride"]
    assert stride in (1, 2), "TODO(synk): only stride 1 and 2 implemented"
    pad = 1
    N, H, W, Cin = x_nhwc.shape
    Cout = params["w1"].shape[-1]
    Ho = (H + 2 * pad - 3) // stride + 1
    Wo = (W + 2 * pad - 3) // stride + 1
    has_sc = params["has_shortcut"]
    if not has_sc:
        assert stride == 1 and Cin == Cout, "identity shortcut shape mismatch"
    # out_dtype=jnp.bfloat16 halves HBM writeback if the consumer accepts it.
    out_dtype = x_nhwc.dtype if out_dtype is None else out_dtype

    # Lane-dense channel padding (multiples of 128 lanes).
    Cp = _round_up(Cin, _LANES)
    Cop = _round_up(Cout, _LANES)
    if not has_sc:
        assert Cp == Cop

    # Fold BN scale into conv weights (eval-mode BN); pad channels; cast for MXU.
    s1, b1 = _fold_bn(*params["bn1"])
    s2, b2 = _fold_bn(*params["bn2"])
    w1 = jnp.pad(params["w1"] * s1,
                 ((0, 0), (0, 0), (0, Cp - Cin), (0, Cop - Cout)))
    w2 = jnp.pad(params["w2"] * s2,
                 ((0, 0), (0, 0), (0, Cop - Cout), (0, Cop - Cout)))
    w1 = w1.reshape(9, Cp, Cop).astype(compute_dtype)
    w2 = w2.reshape(9, Cop, Cop).astype(compute_dtype)
    b1r = jnp.pad(b1, (0, Cop - Cout)).reshape(1, Cop).astype(jnp.float32)
    b2r = jnp.pad(b2, (0, Cop - Cout)).reshape(1, Cop).astype(jnp.float32)

    # Input: pad channels, cast, zero-pad + phase-decompose (stride-contiguous).
    # TODO(synk): drop this HBM round trip via in-kernel pl.ds(..., stride=2).
    xp = jnp.pad(x_nhwc, ((0, 0), (0, 0), (0, 0), (0, Cp - Cin)))
    xph = _phase_decompose(xp.astype(compute_dtype), stride, pad)
    ss = stride * stride
    Hps, Wps = xph.shape[1], xph.shape[2]

    BN = _pick_batch_block(N, Ho, Wo)

    def run(single_buffer_weights):
        wkwargs = ({"pipeline_mode": pl.Buffered(1)}
                   if single_buffer_weights else {})
        in_specs = [
            pl.BlockSpec((BN * ss, Hps, Wps, Cp), lambda n: (n, 0, 0, 0)),
            pl.BlockSpec((9, Cp, Cop), lambda n: (0, 0, 0), **wkwargs),
            pl.BlockSpec((1, Cop), lambda n: (0, 0), **wkwargs),
            pl.BlockSpec((9, Cop, Cop), lambda n: (0, 0, 0), **wkwargs),
            pl.BlockSpec((1, Cop), lambda n: (0, 0), **wkwargs),
        ]
        args = [xph, w1, b1r, w2, b2r]
        if has_sc:
            ssc, bsc = _fold_bn(*params["bnsc"])
            wsc = jnp.pad(params["wsc"] * ssc, ((0, Cp - Cin), (0, Cop - Cout)))
            bscr = jnp.pad(bsc, (0, Cop - Cout)).reshape(1, Cop)
            in_specs += [pl.BlockSpec((Cp, Cop), lambda n: (0, 0), **wkwargs),
                         pl.BlockSpec((1, Cop), lambda n: (0, 0), **wkwargs)]
            args += [wsc.astype(compute_dtype), bscr.astype(jnp.float32)]

        kernel = functools.partial(
            _residual_block_kernel, stride=stride, Ho=Ho, Wo=Wo,
            Cp=Cp, Cop=Cop, BN=BN, has_shortcut=has_sc)

        # Advisory cost estimate + explicit VMEM budget.
        bpe = jnp.dtype(compute_dtype).itemsize
        obpe = jnp.dtype(out_dtype).itemsize
        flops = 2 * N * Ho * Wo * (9 * Cp * Cop + 9 * Cop * Cop
                                   + (Cp * Cop if has_sc else 0))
        bytes_accessed = int(
            xph.size * bpe
            + sum(int(a.size) * jnp.dtype(a.dtype).itemsize for a in args[1:])
            + N * Ho * Wo * Cop * obpe)
        block_bytes = (BN * ss * Hps * Wps * Cp * bpe            # input block
                       + BN * Ho * Wo * Cop * obpe               # output block
                       + BN * (Ho + 2) * (Wo + 2) * Cop * bpe    # hpad scratch
                       + (9 * Cp + 9 * Cop + Cp + 3) * Cop * 4)  # weights/bias
        vmem_limit = int(min(100 * 2**20, max(32 * 2**20, 6 * block_bytes)))

        return pl.pallas_call(
            kernel,
            out_shape=jax.ShapeDtypeStruct((N, Ho, Wo, Cop), out_dtype),
            grid_spec=pltpu.PrefetchScalarGridSpec(
                num_scalar_prefetch=0,
                grid=(N // BN,),
                in_specs=in_specs,
                out_specs=pl.BlockSpec((BN, Ho, Wo, Cop),
                                       lambda n: (n, 0, 0, 0)),
                scratch_shapes=[
                    pltpu.VMEM((BN, Ho + 2, Wo + 2, Cop), compute_dtype)],
            ),
            compiler_params=pltpu.CompilerParams(
                dimension_semantics=("parallel",),
                vmem_limit_bytes=vmem_limit),
            cost_estimate=pl.CostEstimate(
                flops=int(flops), transcendentals=0,
                bytes_accessed=bytes_accessed),
        )(*args)

    try:
        out_p = run(single_buffer_weights=True)
    except Exception:
        # pipeline_mode=pl.Buffered(1) not supported on this jax; default bufs.
        out_p = run(single_buffer_weights=False)

    return out_p[..., :Cout]


def encoder_block_forward(params, x_nhwc, **kwargs):
    """EncoderBlock.forward == ResidualBlock.forward."""
    return residual_block_forward(params, x_nhwc, **kwargs)


# --------------------------------------------------------------------------
# Parameters (eval-mode BN running stats)
# --------------------------------------------------------------------------
def init_residual_block(key, in_channels, out_channels, stride=2):
    ks = jax.random.split(key, 16)

    def bn_params(k0, k1, k2, k3, c):
        gamma = jax.random.uniform(k0, (c,), jnp.float32, 0.5, 1.5)
        beta = 0.1 * jax.random.normal(k1, (c,), jnp.float32)
        mean = 0.1 * jax.random.normal(k2, (c,), jnp.float32)
        var = jax.random.uniform(k3, (c,), jnp.float32, 0.5, 1.5)
        return gamma, beta, mean, var

    p = {
        "stride": stride,
        "w1": 0.1 * jax.random.normal(ks[0], (3, 3, in_channels, out_channels), jnp.float32),
        "bn1": bn_params(ks[1], ks[2], ks[3], ks[4], out_channels),
        "w2": 0.1 * jax.random.normal(ks[5], (3, 3, out_channels, out_channels), jnp.float32),
        "bn2": bn_params(ks[6], ks[7], ks[8], ks[9], out_channels),
        "has_shortcut": (stride != 1 or in_channels != out_channels),
    }
    if p["has_shortcut"]:
        p["wsc"] = 0.1 * jax.random.normal(ks[10], (in_channels, out_channels), jnp.float32)
        p["bnsc"] = bn_params(ks[11], ks[12], ks[13], ks[14], out_channels)
    return p


# --------------------------------------------------------------------------
# Pure-JAX reference (eval-mode BN)
# --------------------------------------------------------------------------
def reference_forward(params, x_nhwc):
    s = params["stride"]
    dn = ("NHWC", "HWIO", "NHWC")

    def conv3(x, w, st):
        return jax.lax.conv_general_dilated(x, w, (st, st), ((1, 1), (1, 1)),
                                            dimension_numbers=dn)

    def conv1(x, w, st):
        return jax.lax.conv_general_dilated(x, w[None, None], (st, st),
                                            ((0, 0), (0, 0)), dimension_numbers=dn)

    def bn(y, prm):
        gamma, beta, mean, var = prm
        return (y - mean) / jnp.sqrt(var + _BN_EPS) * gamma + beta

    h = jax.nn.relu(bn(conv3(x_nhwc, params["w1"], s), params["bn1"]))
    h2 = bn(conv3(h, params["w2"], 1), params["bn2"])
    if params["has_shortcut"]:
        sc = bn(conv1(x_nhwc, params["wsc"], s), params["bnsc"])
    else:
        sc = x_nhwc
    return jax.nn.relu(h2 + sc)


# --------------------------------------------------------------------------
if __name__ == "__main__":
    N, Cin, H, W = 2, 4, 16, 16
    Cout = 8

    key = jax.random.PRNGKey(0)
    kx, kp, kp2 = jax.random.split(key, 3)

    # PyTorch-style NCHW input -> NHWC for the kernels.
    x_nchw = jax.random.normal(kx, (N, Cin, H, W), jnp.float32)
    x_nhwc = jnp.transpose(x_nchw, (0, 2, 3, 1))

    # EncoderBlock default: stride=2 downsampling, 1x1-conv + BN shortcut.
    params = init_residual_block(kp, Cin, Cout, stride=2)
    ref = reference_forward(params, x_nhwc)

    # Exact-math check (f32 MXU operands).
    out_f32 = jax.block_until_ready(
        encoder_block_forward(params, x_nhwc, compute_dtype=jnp.float32))
    np.testing.assert_allclose(np.asarray(out_f32), np.asarray(ref),
                               rtol=2e-4, atol=2e-4)

    # Fast path: bf16 MXU operands, f32 accumulation / epilogue.
    out_bf16 = jax.block_until_ready(encoder_block_forward(params, x_nhwc))
    np.testing.assert_allclose(np.asarray(out_bf16), np.asarray(ref),
                               rtol=5e-2, atol=3e-2)

    # Stride=1 identity-shortcut path of ResidualBlock.
    params_id = init_residual_block(kp2, Cout, Cout, stride=1)
    x2_nhwc = jnp.transpose(
        jax.random.normal(kx, (N, Cout, H, W), jnp.float32), (0, 2, 3, 1))
    ref2 = reference_forward(params_id, x2_nhwc)
    out2_f32 = jax.block_until_ready(
        residual_block_forward(params_id, x2_nhwc, compute_dtype=jnp.float32))
    np.testing.assert_allclose(np.asarray(out2_f32), np.asarray(ref2),
                               rtol=2e-4, atol=2e-4)
    out2 = jax.block_until_ready(residual_block_forward(params_id, x2_nhwc))
    np.testing.assert_allclose(np.asarray(out2), np.asarray(ref2),
                               rtol=5e-2, atol=3e-2)

    # NCHW view of the result, matching PyTorch convention (if needed).
    _ = jnp.transpose(out_bf16, (0, 3, 1, 2))

    print("KERNEL_OK")
</pallas_src>

<mosaic_0001>
module attributes {stable_mosaic.version = 11 : i64} {
  func.func @_residual_block_kernel(%arg0: i32, %arg1: memref<8x9x9x128xf32, #tpu.memory_space<vmem>>, %arg2: memref<9x128x128xf32, #tpu.memory_space<vmem>>, %arg3: memref<1x128xf32, #tpu.memory_space<vmem>>, %arg4: memref<9x128x128xf32, #tpu.memory_space<vmem>>, %arg5: memref<1x128xf32, #tpu.memory_space<vmem>>, %arg6: memref<128x128xf32, #tpu.memory_space<vmem>>, %arg7: memref<1x128xf32, #tpu.memory_space<vmem>>, %arg8: memref<2x8x8x128xf32, #tpu.memory_space<vmem>>, %arg9: memref<2x10x10x128xf32, #tpu.memory_space<vmem>>) attributes {dimension_semantics = [#tpu.dimension_semantics<parallel>], iteration_bounds = array<i64: 1>, scalar_prefetch = 0 : i64, scratch_operands = 1 : i64, tpu.core_type = #tpu.core_type<tc>, window_params = [{transform_indices = @transform_0, window_bounds = array<i64: 8, 9, 9, 128>}, {pipeline_mode = #tpu.pipeline_mode<synchronous>, transform_indices = @transform_1, window_bounds = array<i64: 9, 128, 128>}, {pipeline_mode = #tpu.pipeline_mode<synchronous>, transform_indices = @transform_2, window_bounds = array<i64: 1, 128>}, {pipeline_mode = #tpu.pipeline_mode<synchronous>, transform_indices = @transform_3, window_bounds = array<i64: 9, 128, 128>}, {pipeline_mode = #tpu.pipeline_mode<synchronous>, transform_indices = @transform_4, window_bounds = array<i64: 1, 128>}, {pipeline_mode = #tpu.pipeline_mode<synchronous>, transform_indices = @transform_5, window_bounds = array<i64: 128, 128>}, {pipeline_mode = #tpu.pipeline_mode<synchronous>, transform_indices = @transform_6, window_bounds = array<i64: 1, 128>}, {transform_indices = @transform_7, window_bounds = array<i64: 2, 8, 8, 128>}]} {
    %cst = arith.constant 0.000000e+00 : f32
    %0 = vector.broadcast %cst : f32 to vector<128x128xf32>
    %c0 = arith.constant 0 : index
    %c0_0 = arith.constant 0 : index
    %1 = vector.load %arg3[%c0, %c0_0] : memref<1x128xf32, #tpu.memory_space<vmem>>, vector<1x128xf32>
    %2 = vector.broadcast %1 : vector<1x128xf32> to vector<128x128xf32>
    %3 = arith.addf %0, %2 : vector<128x128xf32>
    %c0_1 = arith.constant 0 : index
    %c0_2 = arith.constant 0 : index
    %c0_3 = arith.constant 0 : index
    %c0_4 = arith.constant 0 : index
    %4 = vector.load %arg1[%c0_1, %c0_2, %c0_3, %c0_4] : memref<8x9x9x128xf32, #tpu.memory_space<vmem>>, vector<1x8x8x128xf32>
    %5 = vector.shape_cast %4 : vector<1x8x8x128xf32> to vector<8x8x128xf32>
    %6 = vector.shape_cast %5 : vector<8x8x128xf32> to vector<64x128xf32>
    %c4 = arith.constant 4 : index
    %c0_5 = arith.constant 0 : index
    %c0_6 = arith.constant 0 : index
    %c0_7 = arith.constant 0 : index
    %7 = vector.load %arg1[%c4, %c0_5, %c0_6, %c0_7] : memref<8x9x9x128xf32, #tpu.memory_space<vmem>>, vector<1x8x8x128xf32>
    %8 = vector.shape_cast %7 : vector<1x8x8x128xf32> to vector<8x8x128xf32>
    %9 = vector.shape_cast %8 : vector<8x8x128xf32> to vector<64x128xf32>
    %10 = tpu.concatenate %6, %9 in 0 : vector<64x128xf32>, vector<64x128xf32> -> vector<128x128xf32>
    %c0_8 = arith.constant 0 : index
    %c0_9 = arith.constant 0 : index
    %c0_10 = arith.constant 0 : index
    %11 = vector.load %arg2[%c0_8, %c0_9, %c0_10] : memref<9x128x128xf32, #tpu.memory_space<vmem>>, vector<1x128x128xf32>
    %12 = vector.shape_cast %11 : vector<1x128x128xf32> to vector<128x128xf32>
    %cst_11 = arith.constant dense<0.000000e+00> : vector<128x128xf32>
    %13 = tpu.matmul %10, %12, %cst_11 {dimension_numbers = #tpu.dot_dimension_numbers<[1], [0], [0], [1], [0, 0, 1, 1], [], []>} : vector<128x128xf32>, vector<128x128xf32>, vector<128x128xf32> -> vector<128x128xf32>
    %14 = arith.addf %3, %13 : vector<128x128xf32>
    %c1 = arith.constant 1 : index
    %c0_12 = arith.constant 0 : index
    %c0_13 = arith.constant 0 : index
    %c0_14 = arith.constant 0 : index
    %15 = vector.load %arg1[%c1, %c0_12, %c0_13, %c0_14] : memref<8x9x9x128xf32, #tpu.memory_space<vmem>>, vector<1x8x8x128xf32>
    %16 = vector.shape_cast %15 : vector<1x8x8x128xf32> to vector<8x8x128xf32>
    %17 = vector.shape_cast %16 : vector<8x8x128xf32> to vector<64x128xf32>
    %c5 = arith.constant 5 : index
    %c0_15 = arith.constant 0 : index
    %c0_16 = arith.constant 0 : index
    %c0_17 = arith.constant 0 : index
    %18 = vector.load %arg1[%c5, %c0_15, %c0_16, %c0_17] : memref<8x9x9x128xf32, #tpu.memory_space<vmem>>, vector<1x8x8x128xf32>
    %19 = vector.shape_cast %18 : vector<1x8x8x128xf32> to vector<8x8x128xf32>
    %20 = vector.shape_cast %19 : vector<8x8x128xf32> to vector<64x128xf32>
    %21 = tpu.concatenate %17, %20 in 0 : vector<64x128xf32>, vector<64x128xf32> -> vector<128x128xf32>
    %c1_18 = arith.constant 1 : index
    %c0_19 = arith.constant 0 : index
    %c0_20 = arith.constant 0 : index
    %22 = vector.load %arg2[%c1_18, %c0_19, %c0_20] : memref<9x128x128xf32, #tpu.memory_space<vmem>>, vector<1x128x128xf32>
    %23 = vector.shape_cast %22 : vector<1x128x128xf32> to vector<128x128xf32>
    %cst_21 = arith.constant dense<0.000000e+00> : vector<128x128xf32>
    %24 = tpu.matmul %21, %23, %cst_21 {dimension_numbers = #tpu.dot_dimension_numbers<[1], [0], [0], [1], [0, 0, 1, 1], [], []>} : vector<128x128xf32>, vector<128x128xf32>, vector<128x128xf32> -> vector<128x128xf32>
    %25 = arith.addf %14, %24 : vector<128x128xf32>
    %c0_22 = arith.constant 0 : index
    %c0_23 = arith.constant 0 : index
    %c1_24 = arith.constant 1 : index
    %c0_25 = arith.constant 0 : index
    %26 = vector.load %arg1[%c0_22, %c0_23, %c1_24, %c0_25] : memref<8x9x9x128xf32, #tpu.memory_space<vmem>>, vector<1x8x8x128xf32>
    %27 = vector.shape_cast %26 : vector<1x8x8x128xf32> to vector<8x8x128xf32>
    %28 = vector.shape_cast %27 : vector<8x8x128xf32> to vector<64x128xf32>
    %c4_26 = arith.constant 4 : index
    %c0_27 = arith.constant 0 : index
    %c1_28 = arith.constant 1 : index
    %c0_29 = arith.constant 0 : index
    %29 = vector.load %arg1[%c4_26, %c0_27, %c1_28, %c0_29] : memref<8x9x9x128xf32, #tpu.memory_space<vmem>>, vector<1x8x8x128xf32>
    %30 = vector.shape_cast %29 : vector<1x8x8x128xf32> to vector<8x8x128xf32>
    %31 = vector.shape_cast %30 : vector<8x8x128xf32> to vector<64x128xf32>
    %32 = tpu.concatenate %28, %31 in 0 : vector<64x128xf32>, vector<64x128xf32> -> vector<128x128xf32>
    %c2 = arith.constant 2 : index
    %c0_30 = arith.constant 0 : index
    %c0_31 = arith.constant 0 : index
    %33 = vector.load %arg2[%c2, %c0_30, %c0_31] : memref<9x128x128xf32, #tpu.memory_space<vmem>>, vector<1x128x128xf32>
    %34 = vector.shape_cast %33 : vector<1x128x128xf32> to vector<128x128xf32>
    %cst_32 = arith.constant dense<0.000000e+00> : vector<128x128xf32>
    %35 = tpu.matmul %32, %34, %cst_32 {dimension_numbers = #tpu.dot_dimension_numbers<[1], [0], [0], [1], [0, 0, 1, 1], [], []>} : vector<128x128xf32>, vector<128x128xf32>, vector<128x128xf32> -> vector<128x128xf32>
    %36 = arith.addf %25, %35 : vector<128x128xf32>
    %c2_33 = arith.constant 2 : index
    %c0_34 = arith.constant 0 : index
    %c0_35 = arith.constant 0 : index
    %c0_36 = arith.constant 0 : index
    %37 = vector.load %arg1[%c2_33, %c0_34, %c0_35, %c0_36] : memref<8x9x9x128xf32, #tpu.memory_space<vmem>>, vector<1x8x8x128xf32>
    %38 = vector.shape_cast %37 : vector<1x8x8x128xf32> to vector<8x8x128xf32>
    %39 = vector.shape_cast %38 : vector<8x8x128xf32> to vector<64x128xf32>
    %c6 = arith.constant 6 : index
    %c0_37 = arith.constant 0 : index
    %c0_38 = arith.constant 0 : index
    %c0_39 = arith.constant 0 : index
    %40 = vector.load %arg1[%c6, %c0_37, %c0_38, %c0_39] : memref<8x9x9x128xf32, #tpu.memory_space<vmem>>, vector<1x8x8x128xf32>
    %41 = vector.shape_cast %40 : vector<1x8x8x128xf32> to vector<8x8x128xf32>
    %42 = vector.shape_cast %41 : vector<8x8x128xf32> to vector<64x128xf32>
    %43 = tpu.concatenate %39, %42 in 0 : vector<64x128xf32>, vector<64x128xf32> -> vector<128x128xf32>
    %c3 = arith.constant 3 : index
    %c0_40 = arith.constant 0 : index
    %c0_41 = arith.constant 0 : index
    %44 = vector.load %arg2[%c3, %c0_40, %c0_41] : memref<9x128x128xf32, #tpu.memory_space<vmem>>, vector<1x128x128xf32>
    %45 = vector.shape_cast %44 : vector<1x128x128xf32> to vector<128x128xf32>
    %cst_42 = arith.constant dense<0.000000e+00> : vector<128x128xf32>
    %46 = tpu.matmul %43, %45, %cst_42 {dimension_numbers = #tpu.dot_dimension_numbers<[1], [0], [0], [1], [0, 0, 1, 1], [], []>} : vector<128x128xf32>, vector<128x128xf32>, vector<128x128xf32> -> vector<128x128xf32>
    %47 = arith.addf %36, %46 : vector<128x128xf32>
    %c3_43 = arith.constant 3 : index
    %c0_44 = arith.constant 0 : index
    %c0_45 = arith.constant 0 : index
    %c0_46 = arith.constant 0 : index
    %48 = vector.load %arg1[%c3_43, %c0_44, %c0_45, %c0_46] : memref<8x9x9x128xf32, #tpu.memory_space<vmem>>, vector<1x8x8x128xf32>
    %49 = vector.shape_cast %48 : vector<1x8x8x128xf32> to vector<8x8x128xf32>
    %50 = vector.shape_cast %49 : vector<8x8x128xf32> to vector<64x128xf32>
    %c7 = arith.constant 7 : index
    %c0_47 = arith.constant 0 : index
    %c0_48 = arith.constant 0 : index
    %c0_49 = arith.constant 0 : index
    %51 = vector.load %arg1[%c7, %c0_47, %c0_48, %c0_49] : memref<8x9x9x128xf32, #tpu.memory_space<vmem>>, vector<1x8x8x128xf32>
    %52 = vector.shape_cast %51 : vector<1x8x8x128xf32> to vector<8x8x128xf32>
    %53 = vector.shape_cast %52 : vector<8x8x128xf32> to vector<64x128xf32>
    %54 = tpu.concatenate %50, %53 in 0 : vector<64x128xf32>, vector<64x128xf32> -> vector<128x128xf32>
    %c4_50 = arith.constant 4 : index
    %c0_51 = arith.constant 0 : index
    %c0_52 = arith.constant 0 : index
    %55 = vector.load %arg2[%c4_50, %c0_51, %c0_52] : memref<9x128x128xf32, #tpu.memory_space<vmem>>, vector<1x128x128xf32>
    %56 = vector.shape_cast %55 : vector<1x128x128xf32> to vector<128x128xf32>
    %cst_53 = arith.constant dense<0.000000e+00> : vector<128x128xf32>
    %57 = tpu.matmul %54, %56, %cst_53 {dimension_numbers = #tpu.dot_dimension_numbers<[1], [0], [0], [1], [0, 0, 1, 1], [], []>} : vector<128x128xf32>, vector<128x128xf32>, vector<128x128xf32> -> vector<128x128xf32>
    %58 = arith.addf %47, %57 : vector<128x128xf32>
    %c2_54 = arith.constant 2 : index
    %c0_55 = arith.constant 0 : index
    %c1_56 = arith.constant 1 : index
    %c0_57 = arith.constant 0 : index
    %59 = vector.load %arg1[%c2_54, %c0_55, %c1_56, %c0_57] : memref<8x9x9x128xf32, #tpu.memory_space<vmem>>, vector<1x8x8x128xf32>
    %60 = vector.shape_cast %59 : vector<1x8x8x128xf32> to vector<8x8x128xf32>
    %61 = vector.shape_cast %60 : vector<8x8x128xf32> to vector<64x128xf32>
    %c6_58 = arith.constant 6 : index
    %c0_59 = arith.constant 0 : index
    %c1_60 = arith.constant 1 : index
    %c0_61 = arith.constant 0 : index
    %62 = vector.load %arg1[%c6_58, %c0_59, %c1_60, %c0_61] : memref<8x9x9x128xf32, #tpu.memory_space<vmem>>, vector<1x8x8x128xf32>
    %63 = vector.shape_cast %62 : vector<1x8x8x128xf32> to vector<8x8x128xf32>
    %64 = vector.shape_cast %63 : vector<8x8x128xf32> to vector<64x128xf32>
    %65 = tpu.concatenate %61, %64 in 0 : vector<64x128xf32>, vector<64x128xf32> -> vector<128x128xf32>
    %c5_62 = arith.constant 5 : index
    %c0_63 = arith.constant 0 : index
    %c0_64 = arith.constant 0 : index
    %66 = vector.load %arg2[%c5_62, %c0_63, %c0_64] : memref<9x128x128xf32, #tpu.memory_space<vmem>>, vector<1x128x128xf32>
    %67 = vector.shape_cast %66 : vector<1x128x128xf32> to vector<128x128xf32>
    %cst_65 = arith.constant dense<0.000000e+00> : vector<128x128xf32>
    %68 = tpu.matmul %65, %67, %cst_65 {dimension_numbers = #tpu.dot_dimension_numbers<[1], [0], [0], [1], [0, 0, 1, 1], [], []>} : vector<128x128xf32>, vector<128x128xf32>, vector<128x128xf32> -> vector<128x128xf32>
    %69 = arith.addf %58, %68 : vector<128x128xf32>
    %c0_66 = arith.constant 0 : index
    %c1_67 = arith.constant 1 : index
    %c0_68 = arith.constant 0 : index
    %c0_69 = arith.constant 0 : index
    %70 = vector.load %arg1[%c0_66, %c1_67, %c0_68, %c0_69] : memref<8x9x9x128xf32, #tpu.memory_space<vmem>>, vector<1x8x8x128xf32>
    %71 = vector.shape_cast %70 : vector<1x8x8x128xf32> to vector<8x8x128xf32>
    %72 = vector.shape_cast %71 : vector<8x8x128xf32> to vector<64x128xf32>
    %c4_70 = arith.constant 4 : index
    %c1_71 = arith.constant 1 : index
    %c0_72 = arith.constant 0 : index
    %c0_73 = arith.constant 0 : index
    %73 = vector.load %arg1[%c4_70, %c1_71, %c0_72, %c0_73] : memref<8x9x9x128xf32, #tpu.memory_space<vmem>>, vector<1x8x8x128xf32>
    %74 = vector.shape_cast %73 : vector<1x8x8x128xf32> to vector<8x8x128xf32>
    %75 = vector.shape_cast %74 : vector<8x8x128xf32> to vector<64x128xf32>
    %76 = tpu.concatenate %72, %75 in 0 : vector<64x128xf32>, vector<64x128xf32> -> vector<128x128xf32>
    %c6_74 = arith.constant 6 : index
    %c0_75 = arith.constant 0 : index
    %c0_76 = arith.constant 0 : index
    %77 = vector.load %arg2[%c6_74, %c0_75, %c0_76] : memref<9x128x128xf32, #tpu.memory_space<vmem>>, vector<1x128x128xf32>
    %78 = vector.shape_cast %77 : vector<1x128x128xf32> to vector<128x128xf32>
    %cst_77 = arith.constant dense<0.000000e+00> : vector<128x128xf32>
    %79 = tpu.matmul %76, %78, %cst_77 {dimension_numbers = #tpu.dot_dimension_numbers<[1], [0], [0], [1], [0, 0, 1, 1], [], []>} : vector<128x128xf32>, vector<128x128xf32>, vector<128x128xf32> -> vector<128x128xf32>
    %80 = arith.addf %69, %79 : vector<128x128xf32>
    %c1_78 = arith.constant 1 : index
    %c1_79 = arith.constant 1 : index
    %c0_80 = arith.constant 0 : index
    %c0_81 = arith.constant 0 : index
    %81 = vector.load %arg1[%c1_78, %c1_79, %c0_80, %c0_81] : memref<8x9x9x128xf32, #tpu.memory_space<vmem>>, vector<1x8x8x128xf32>
    %82 = vector.shape_cast %81 : vector<1x8x8x128xf32> to vector<8x8x128xf32>
    %83 = vector.shape_cast %82 : vector<8x8x128xf32> to vector<64x128xf32>
    %c5_82 = arith.constant 5 : index
    %c1_83 = arith.constant 1 : index
    %c0_84 = arith.constant 0 : index
    %c0_85 = arith.constant 0 : index
    %84 = vector.load %arg1[%c5_82, %c1_83, %c0_84, %c0_85] : memref<8x9x9x128xf32, #tpu.memory_space<vmem>>, vector<1x8x8x128xf32>
    %85 = vector.shape_cast %84 : vector<1x8x8x128xf32> to vector<8x8x128xf32>
    %86 = vector.shape_cast %85 : vector<8x8x128xf32> to vector<64x128xf32>
    %87 = tpu.concatenate %83, %86 in 0 : vector<64x128xf32>, vector<64x128xf32> -> vector<128x128xf32>
    %c7_86 = arith.constant 7 : index
    %c0_87 = arith.constant 0 : index
    %c0_88 = arith.constant 0 : index
    %88 = vector.load %arg2[%c7_86, %c0_87, %c0_88] : memref<9x128x128xf32, #tpu.memory_space<vmem>>, vector<1x128x128xf32>
    %89 = vector.shape_cast %88 : vector<1x128x128xf32> to vector<128x128xf32>
    %cst_89 = arith.constant dense<0.000000e+00> : vector<128x128xf32>
    %90 = tpu.matmul %87, %89, %cst_89 {dimension_numbers = #tpu.dot_dimension_numbers<[1], [0], [0], [1], [0, 0, 1, 1], [], []>} : vector<128x128xf32>, vector<128x128xf32>, vector<128x128xf32> -> vector<128x128xf32>
    %91 = arith.addf %80, %90 : vector<128x128xf32>
    %c0_90 = arith.constant 0 : index
    %c1_91 = arith.constant 1 : index
    %c1_92 = arith.constant 1 : index
    %c0_93 = arith.constant 0 : index
    %92 = vector.load %arg1[%c0_90, %c1_91, %c1_92, %c0_93] : memref<8x9x9x128xf32, #tpu.memory_space<vmem>>, vector<1x8x8x128xf32>
    %93 = vector.shape_cast %92 : vector<1x8x8x128xf32> to vector<8x8x128xf32>
    %94 = vector.shape_cast %93 : vector<8x8x128xf32> to vector<64x128xf32>
    %c4_94 = arith.constant 4 : index
    %c1_95 = arith.constant 1 : index
    %c1_96 = arith.constant 1 : index
    %c0_97 = arith.constant 0 : index
    %95 = vector.load %arg1[%c4_94, %c1_95, %c1_96, %c0_97] : memref<8x9x9x128xf32, #tpu.memory_space<vmem>>, vector<1x8x8x128xf32>
    %96 = vector.shape_cast %95 : vector<1x8x8x128xf32> to vector<8x8x128xf32>
    %97 = vector.shape_cast %96 : vector<8x8x128xf32> to vector<64x128xf32>
    %98 = tpu.concatenate %94, %97 in 0 : vector<64x128xf32>, vector<64x128xf32> -> vector<128x128xf32>
    %c8 = arith.constant 8 : index
    %c0_98 = arith.constant 0 : index
    %c0_99 = arith.constant 0 : index
    %99 = vector.load %arg2[%c8, %c0_98, %c0_99] : memref<9x128x128xf32, #tpu.memory_space<vmem>>, vector<1x128x128xf32>
    %100 = vector.shape_cast %99 : vector<1x128x128xf32> to vector<128x128xf32>
    %cst_100 = arith.constant dense<0.000000e+00> : vector<128x128xf32>
    %101 = tpu.matmul %98, %100, %cst_100 {dimension_numbers = #tpu.dot_dimension_numbers<[1], [0], [0], [1], [0, 0, 1, 1], [], []>} : vector<128x128xf32>, vector<128x128xf32>, vector<128x128xf32> -> vector<128x128xf32>
    %102 = arith.addf %91, %101 : vector<128x128xf32>
    %cst_101 = arith.constant 0.000000e+00 : f32
    %103 = vector.broadcast %cst_101 : f32 to vector<128x128xf32>
    %104 = arith.maximumf %102, %103 : vector<128x128xf32>
    %c0_102 = arith.constant 0 : index
    %c0_103 = arith.constant 0 : index
    %105 = vector.load %arg6[%c0_102, %c0_103] : memref<128x128xf32, #tpu.memory_space<vmem>>, vector<128x128xf32>
    %cst_104 = arith.constant dense<0.000000e+00> : vector<128x128xf32>
    %106 = tpu.matmul %54, %105, %cst_104 {dimension_numbers = #tpu.dot_dimension_numbers<[1], [0], [0], [1], [0, 0, 1, 1], [], []>} : vector<128x128xf32>, vector<128x128xf32>, vector<128x128xf32> -> vector<128x128xf32>
    %c0_105 = arith.constant 0 : index
    %c0_106 = arith.constant 0 : index
    %107 = vector.load %arg7[%c0_105, %c0_106] : memref<1x128xf32, #tpu.memory_space<vmem>>, vector<1x128xf32>
    %108 = vector.broadcast %107 : vector<1x128xf32> to vector<128x128xf32>
    %109 = arith.addf %106, %108 : vector<128x128xf32>
    %110 = vector.shape_cast %104 : vector<128x128xf32> to vector<2x8x8x128xf32>
    %c0_107 = arith.constant 0 : index
    %c1_108 = arith.constant 1 : index
    %c1_109 = arith.constant 1 : index
    %c0_110 = arith.constant 0 : index
    %111 = vector.load %arg9[%c0_107, %c1_108, %c1_109, %c0_110] : memref<2x10x10x128xf32, #tpu.memory_space<vmem>>, vector<2x8x8x128xf32>
    tpu.vector_store %arg9[%c0_107, %c1_108, %c1_109, %c0_110], %110 {strides = array<i32>} : memref<2x10x10x128xf32, #tpu.memory_space<vmem>>, vector<2x8x8x128xf32>,
    %cst_111 = arith.constant 0.000000e+00 : f32
    %112 = vector.broadcast %cst_111 : f32 to vector<2x1x10x128xf32>
    %cst_112 = arith.constant 0.000000e+00 : f32
    %113 = vector.broadcast %cst_112 : f32 to vector<2x10x1x128xf32>
    %c0_113 = arith.constant 0 : index
    %c0_114 = arith.constant 0 : index
    %c0_115 = arith.constant 0 : index
    %c0_116 = arith.constant 0 : index
    %114 = vector.load %arg9[%c0_113, %c0_114, %c0_115, %c0_116] : memref<2x10x10x128xf32, #tpu.memory_space<vmem>>, vector<2x1x10x128xf32>
    tpu.vector_store %arg9[%c0_113, %c0_114, %c0_115, %c0_116], %112 {strides = array<i32>} : memref<2x10x10x128xf32, #tpu.memory_space<vmem>>, vector<2x1x10x128xf32>,
    %c0_117 = arith.constant 0 : index
    %c9 = arith.constant 9 : index
    %c0_118 = arith.constant 0 : index
    %c0_119 = arith.constant 0 : index
    %115 = vector.load %arg9[%c0_117, %c9, %c0_118, %c0_119] : memref<2x10x10x128xf32, #tpu.memory_space<vmem>>, vector<2x1x10x128xf32>
    tpu.vector_store %arg9[%c0_117, %c9, %c0_118, %c0_119], %112 {strides = array<i32>} : memref<2x10x10x128xf32, #tpu.memory_space<vmem>>, vector<2x1x10x128xf32>,
    %c0_120 = arith.constant 0 : index
    %c0_121 = arith.constant 0 : index
    %c0_122 = arith.constant 0 : index
    %c0_123 = arith.constant 0 : index
    %116 = vector.load %arg9[%c0_120, %c0_121, %c0_122, %c0_123] : memref<2x10x10x128xf32, #tpu.memory_space<vmem>>, vector<2x10x1x128xf32>
    tpu.vector_store %arg9[%c0_120, %c0_121, %c0_122, %c0_123], %113 {strides = array<i32>} : memref<2x10x10x128xf32, #tpu.memory_space<vmem>>, vector<2x10x1x128xf32>,
    %c0_124 = arith.constant 0 : index
    %c0_125 = arith.constant 0 : index
    %c9_126 = arith.constant 9 : index
    %c0_127 = arith.constant 0 : index
    %117 = vector.load %arg9[%c0_124, %c0_125, %c9_126, %c0_127] : memref<2x10x10x128xf32, #tpu.memory_space<vmem>>, vector<2x10x1x128xf32>
    tpu.vector_store %arg9[%c0_124, %c0_125, %c9_126, %c0_127], %113 {strides = array<i32>} : memref<2x10x10x128xf32, #tpu.memory_space<vmem>>, vector<2x10x1x128xf32>,
    %cst_128 = arith.constant 0.000000e+00 : f32
    %118 = vector.broadcast %cst_128 : f32 to vector<128x128xf32>
    %c0_129 = arith.constant 0 : index
    %c0_130 = arith.constant 0 : index
    %119 = vector.load %arg5[%c0_129, %c0_130] : memref<1x128xf32, #tpu.memory_space<vmem>>, vector<1x128xf32>
    %120 = vector.broadcast %119 : vector<1x128xf32> to vector<128x128xf32>
    %121 = arith.addf %118, %120 : vector<128x128xf32>
    %c0_131 = arith.constant 0 : index
    %c0_132 = arith.constant 0 : index
    %c0_133 = arith.constant 0 : index
    %c0_134 = arith.constant 0 : index
    %122 = vector.load %arg9[%c0_131, %c0_132, %c0_133, %c0_134] : memref<2x10x10x128xf32, #tpu.memory_space<vmem>>, vector<1x8x8x128xf32>
    %123 = vector.shape_cast %122 : vector<1x8x8x128xf32> to vector<8x8x128xf32>
    %124 = vector.shape_cast %123 : vector<8x8x128xf32> to vector<64x128xf32>
    %c1_135 = arith.constant 1 : index
    %c0_136 = arith.constant 0 : index
    %c0_137 = arith.constant 0 : index
    %c0_138 = arith.constant 0 : index
    %125 = vector.load %arg9[%c1_135, %c0_136, %c0_137, %c0_138] : memref<2x10x10x128xf32, #tpu.memory_space<vmem>>, vector<1x8x8x128xf32>
    %126 = vector.shape_cast %125 : vector<1x8x8x128xf32> to vector<8x8x128xf32>
    %127 = vector.shape_cast %126 : vector<8x8x128xf32> to vector<64x128xf32>
    %128 = tpu.concatenate %124, %127 in 0 : vector<64x128xf32>, vector<64x128xf32> -> vector<128x128xf32>
    %c0_139 = arith.constant 0 : index
    %c0_140 = arith.constant 0 : index
    %c0_141 = arith.constant 0 : index
    %129 = vector.load %arg4[%c0_139, %c0_140, %c0_141] : memref<9x128x128xf32, #tpu.memory_space<vmem>>, vector<1x128x128xf32>
    %130 = vector.shape_cast %129 : vector<1x128x128xf32> to vector<128x128xf32>
    %cst_142 = arith.constant dense<0.000000e+00> : vector<128x128xf32>
    %131 = tpu.matmul %128, %130, %cst_142 {dimension_numbers = #tpu.dot_dimension_numbers<[1], [0], [0], [1], [0, 0, 1, 1], [], []>} : vector<128x128xf32>, vector<128x128xf32>, vector<128x128xf32> -> vector<128x128xf32>
    %132 = arith.addf %121, %131 : vector<128x128xf32>
    %c0_143 = arith.constant 0 : index
    %c0_144 = arith.constant 0 : index
    %c1_145 = arith.constant 1 : index
    %c0_146 = arith.constant 0 : index
    %133 = vector.load %arg9[%c0_143, %c0_144, %c1_145, %c0_146] : memref<2x10x10x128xf32, #tpu.memory_space<vmem>>, vector<1x8x8x128xf32>
    %134 = vector.shape_cast %133 : vector<1x8x8x128xf32> to vector<8x8x128xf32>
    %135 = vector.shape_cast %134 : vector<8x8x128xf32> to vector<64x128xf32>
    %c1_147 = arith.constant 1 : index
    %c0_148 = arith.constant 0 : index
    %c1_149 = arith.constant 1 : index
    %c0_150 = arith.constant 0 : index
    %136 = vector.load %arg9[%c1_147, %c0_148, %c1_149, %c0_150] : memref<2x10x10x128xf32, #tpu.memory_space<vmem>>, vector<1x8x8x128xf32>
    %137 = vector.shape_cast %136 : vector<1x8x8x128xf32> to vector<8x8x128xf32>
    %138 = vector.shape_cast %137 : vector<8x8x128xf32> to vector<64x128xf32>
    %139 = tpu.concatenate %135, %138 in 0 : vector<64x128xf32>, vector<64x128xf32> -> vector<128x128xf32>
    %c1_151 = arith.constant 1 : index
    %c0_152 = arith.constant 0 : index
    %c0_153 = arith.constant 0 : index
    %140 = vector.load %arg4[%c1_151, %c0_152, %c0_153] : memref<9x128x128xf32, #tpu.memory_space<vmem>>, vector<1x128x128xf32>
    %141 = vector.shape_cast %140 : vector<1x128x128xf32> to vector<128x128xf32>
    %cst_154 = arith.constant dense<0.000000e+00> : vector<128x128xf32>
    %142 = tpu.matmul %139, %141, %cst_154 {dimension_numbers = #tpu.dot_dimension_numbers<[1], [0], [0], [1], [0, 0, 1, 1], [], []>} : vector<128x128xf32>, vector<128x128xf32>, vector<128x128xf32> -> vector<128x128xf32>
    %143 = arith.addf %132, %142 : vector<128x128xf32>
    %c0_155 = arith.constant 0 : index
    %c0_156 = arith.constant 0 : index
    %c2_157 = arith.constant 2 : index
    %c0_158 = arith.constant 0 : index
    %144 = vector.load %arg9[%c0_155, %c0_156, %c2_157, %c0_158] : memref<2x10x10x128xf32, #tpu.memory_space<vmem>>, vector<1x8x8x128xf32>
    %145 = vector.shape_cast %144 : vector<1x8x8x128xf32> to vector<8x8x128xf32>
    %146 = vector.shape_cast %145 : vector<8x8x128xf32> to vector<64x128xf32>
    %c1_159 = arith.constant 1 : index
    %c0_160 = arith.constant 0 : index
    %c2_161 = arith.constant 2 : index
    %c0_162 = arith.constant 0 : index
    %147 = vector.load %arg9[%c1_159, %c0_160, %c2_161, %c0_162] : memref<2x10x10x128xf32, #tpu.memory_space<vmem>>, vector<1x8x8x128xf32>
    %148 = vector.shape_cast %147 : vector<1x8x8x128xf32> to vector<8x8x128xf32>
    %149 = vector.shape_cast %148 : vector<8x8x128xf32> to vector<64x128xf32>
    %150 = tpu.concatenate %146, %149 in 0 : vector<64x128xf32>, vector<64x128xf32> -> vector<128x128xf32>
    %c2_163 = arith.constant 2 : index
    %c0_164 = arith.constant 0 : index
    %c0_165 = arith.constant 0 : index
    %151 = vector.load %arg4[%c2_163, %c0_164, %c0_165] : memref<9x128x128xf32, #tpu.memory_space<vmem>>, vector<1x128x128xf32>
    %152 = vector.shape_cast %151 : vector<1x128x128xf32> to vector<128x128xf32>
    %cst_166 = arith.constant dense<0.000000e+00> : vector<128x128xf32>
    %153 = tpu.matmul %150, %152, %cst_166 {dimension_numbers = #tpu.dot_dimension_numbers<[1], [0], [0], [1], [0, 0, 1, 1], [], []>} : vector<128x128xf32>, vector<128x128xf32>, vector<128x128xf32> -> vector<128x128xf32>
    %154 = arith.addf %143, %153 : vector<128x128xf32>
    %c0_167 = arith.constant 0 : index
    %c1_168 = arith.constant 1 : index
    %c0_169 = arith.constant 0 : index
    %c0_170 = arith.constant 0 : index
    %155 = vector.load %arg9[%c0_167, %c1_168, %c0_169, %c0_170] : memref<2x10x10x128xf32, #tpu.memory_space<vmem>>, vector<1x8x8x128xf32>
    %156 = vector.shape_cast %155 : vector<1x8x8x128xf32> to vector<8x8x128xf32>
    %157 = vector.shape_cast %156 : vector<8x8x128xf32> to vector<64x128xf32>
    %c1_171 = arith.constant 1 : index
    %c1_172 = arith.constant 1 : index
    %c0_173 = arith.constant 0 : index
    %c0_174 = arith.constant 0 : index
    %158 = vector.load %arg9[%c1_171, %c1_172, %c0_173, %c0_174] : memref<2x10x10x128xf32, #tpu.memory_space<vmem>>, vector<1x8x8x128xf32>
    %159 = vector.shape_cast %158 : vector<1x8x8x128xf32> to vector<8x8x128xf32>
    %160 = vector.shape_cast %159 : vector<8x8x128xf32> to vector<64x128xf32>
    %161 = tpu.concatenate %157, %160 in 0 : vector<64x128xf32>, vector<64x128xf32> -> vector<128x128xf32>
    %c3_175 = arith.constant 3 : index
    %c0_176 = arith.constant 0 : index
    %c0_177 = arith.constant 0 : index
    %162 = vector.load %arg4[%c3_175, %c0_176, %c0_177] : memref<9x128x128xf32, #tpu.memory_space<vmem>>, vector<1x128x128xf32>
    %163 = vector.shape_cast %162 : vector<1x128x128xf32> to vector<128x128xf32>
    %cst_178 = arith.constant dense<0.000000e+00> : vector<128x128xf32>
    %164 = tpu.matmul %161, %163, %cst_178 {dimension_numbers = #tpu.dot_dimension_numbers<[1], [0], [0], [1], [0, 0, 1, 1], [], []>} : vector<128x128xf32>, vector<128x128xf32>, vector<128x128xf32> -> vector<128x128xf32>
    %165 = arith.addf %154, %164 : vector<128x128xf32>
    %c0_179 = arith.constant 0 : index
    %c1_180 = arith.constant 1 : index
    %c1_181 = arith.constant 1 : index
    %c0_182 = arith.constant 0 : index
    %166 = vector.load %arg9[%c0_179, %c1_180, %c1_181, %c0_182] : memref<2x10x10x128xf32, #tpu.memory_space<vmem>>, vector<1x8x8x128xf32>
    %167 = vector.shape_cast %166 : vector<1x8x8x128xf32> to vector<8x8x128xf32>
    %168 = vector.shape_cast %167 : vector<8x8x128xf32> to vector<64x128xf32>
    %c1_183 = arith.constant 1 : index
    %c1_184 = arith.constant 1 : index
    %c1_185 = arith.constant 1 : index
    %c0_186 = arith.constant 0 : index
    %169 = vector.load %arg9[%c1_183, %c1_184, %c1_185, %c0_186] : memref<2x10x10x128xf32, #tpu.memory_space<vmem>>, vector<1x8x8x128xf32>
    %170 = vector.shape_cast %169 : vector<1x8x8x128xf32> to vector<8x8x128xf32>
    %171 = vector.shape_cast %170 : vector<8x8x128xf32> to vector<64x128xf32>
    %172 = tpu.concatenate %168, %171 in 0 : vector<64x128xf32>, vector<64x128xf32> -> vector<128x128xf32>
    %c4_187 = arith.constant 4 : index
    %c0_188 = arith.constant 0 : index
    %c0_189 = arith.constant 0 : index
    %173 = vector.load %arg4[%c4_187, %c0_188, %c0_189] : memref<9x128x128xf32, #tpu.memory_space<vmem>>, vector<1x128x128xf32>
    %174 = vector.shape_cast %173 : vector<1x128x128xf32> to vector<128x128xf32>
    %cst_190 = arith.constant dense<0.000000e+00> : vector<128x128xf32>
    %175 = tpu.matmul %172, %174, %cst_190 {dimension_numbers = #tpu.dot_dimension_numbers<[1], [0], [0], [1], [0, 0, 1, 1], [], []>} : vector<128x128xf32>, vector<128x128xf32>, vector<128x128xf32> -> vector<128x128xf32>
    %176 = arith.addf %165, %175 : vector<128x128xf32>
    %c0_191 = arith.constant 0 : index
    %c1_192 = arith.constant 1 : index
    %c2_193 = arith.constant 2 : index
    %c0_194 = arith.constant 0 : index
    %177 = vector.load %arg9[%c0_191, %c1_192, %c2_193, %c0_194] : memref<2x10x10x128xf32, #tpu.memory_space<vmem>>, vector<1x8x8x128xf32>
    %178 = vector.shape_cast %177 : vector<1x8x8x128xf32> to vector<8x8x128xf32>
    %179 = vector.shape_cast %178 : vector<8x8x128xf32> to vector<64x128xf32>
    %c1_195 = arith.constant 1 : index
    %c1_196 = arith.constant 1 : index
    %c2_197 = arith.constant 2 : index
    %c0_198 = arith.constant 0 : index
    %180 = vector.load %arg9[%c1_195, %c1_196, %c2_197, %c0_198] : memref<2x10x10x128xf32, #tpu.memory_space<vmem>>, vector<1x8x8x128xf32>
    %181 = vector.shape_cast %180 : vector<1x8x8x128xf32> to vector<8x8x128xf32>
    %182 = vector.shape_cast %181 : vector<8x8x128xf32> to vector<64x128xf32>
    %183 = tpu.concatenate %179, %182 in 0 : vector<64x128xf32>, vector<64x128xf32> -> vector<128x128xf32>
    %c5_199 = arith.constant 5 : index
    %c0_200 = arith.constant 0 : index
    %c0_201 = arith.constant 0 : index
    %184 = vector.load %arg4[%c5_199, %c0_200, %c0_201] : memref<9x128x128xf32, #tpu.memory_space<vmem>>, vector<1x128x128xf32>
    %185 = vector.shape_cast %184 : vector<1x128x128xf32> to vector<128x128xf32>
    %cst_202 = arith.constant dense<0.000000e+00> : vector<128x128xf32>
    %186 = tpu.matmul %183, %185, %cst_202 {dimension_numbers = #tpu.dot_dimension_numbers<[1], [0], [0], [1], [0, 0, 1, 1], [], []>} : vector<128x128xf32>, vector<128x128xf32>, vector<128x128xf32> -> vector<128x128xf32>
    %187 = arith.addf %176, %186 : vector<128x128xf32>
    %c0_203 = arith.constant 0 : index
    %c2_204 = arith.constant 2 : index
    %c0_205 = arith.constant 0 : index
    %c0_206 = arith.constant 0 : index
    %188 = vector.load %arg9[%c0_203, %c2_204, %c0_205, %c0_206] : memref<2x10x10x128xf32, #tpu.memory_space<vmem>>, vector<1x8x8x128xf32>
    %189 = vector.shape_cast %188 : vector<1x8x8x128xf32> to vector<8x8x128xf32>
    %190 = vector.shape_cast %189 : vector<8x8x128xf32> to vector<64x128xf32>
    %c1_207 = arith.constant 1 : index
    %c2_208 = arith.constant 2 : index
    %c0_209 = arith.constant 0 : index
    %c0_210 = arith.constant 0 : index
    %191 = vector.load %arg9[%c1_207, %c2_208, %c0_209, %c0_210] : memref<2x10x10x128xf32, #tpu.memory_space<vmem>>, vector<1x8x8x128xf32>
    %192 = vector.shape_cast %191 : vector<1x8x8x128xf32> to vector<8x8x128xf32>
    %193 = vector.shape_cast %192 : vector<8x8x128xf32> to vector<64x128xf32>
    %194 = tpu.concatenate %190, %193 in 0 : vector<64x128xf32>, vector<64x128xf32> -> vector<128x128xf32>
    %c6_211 = arith.constant 6 : index
    %c0_212 = arith.constant 0 : index
    %c0_213 = arith.constant 0 : index
    %195 = vector.load %arg4[%c6_211, %c0_212, %c0_213] : memref<9x128x128xf32, #tpu.memory_space<vmem>>, vector<1x128x128xf32>
    %196 = vector.shape_cast %195 : vector<1x128x128xf32> to vector<128x128xf32>
    %cst_214 = arith.constant dense<0.000000e+00> : vector<128x128xf32>
    %197 = tpu.matmul %194, %196, %cst_214 {dimension_numbers = #tpu.dot_dimension_numbers<[1], [0], [0], [1], [0, 0, 1, 1], [], []>} : vector<128x128xf32>, vector<128x128xf32>, vector<128x128xf32> -> vector<128x128xf32>
    %198 = arith.addf %187, %197 : vector<128x128xf32>
    %c0_215 = arith.constant 0 : index
    %c2_216 = arith.constant 2 : index
    %c1_217 = arith.constant 1 : index
    %c0_218 = arith.constant 0 : index
    %199 = vector.load %arg9[%c0_215, %c2_216, %c1_217, %c0_218] : memref<2x10x10x128xf32, #tpu.memory_space<vmem>>, vector<1x8x8x128xf32>
    %200 = vector.shape_cast %199 : vector<1x8x8x128xf32> to vector<8x8x128xf32>
    %201 = vector.shape_cast %200 : vector<8x8x128xf32> to vector<64x128xf32>
    %c1_219 = arith.constant 1 : index
    %c2_220 = arith.constant 2 : index
    %c1_221 = arith.constant 1 : index
    %c0_222 = arith.constant 0 : index
    %202 = vector.load %arg9[%c1_219, %c2_220, %c1_221, %c0_222] : memref<2x10x10x128xf32, #tpu.memory_space<vmem>>, vector<1x8x8x128xf32>
    %203 = vector.shape_cast %202 : vector<1x8x8x128xf32> to vector<8x8x128xf32>
    %204 = vector.shape_cast %203 : vector<8x8x128xf32> to vector<64x128xf32>
    %205 = tpu.concatenate %201, %204 in 0 : vector<64x128xf32>, vector<64x128xf32> -> vector<128x128xf32>
    %c7_223 = arith.constant 7 : index
    %c0_224 = arith.constant 0 : index
    %c0_225 = arith.constant 0 : index
    %206 = vector.load %arg4[%c7_223, %c0_224, %c0_225] : memref<9x128x128xf32, #tpu.memory_space<vmem>>, vector<1x128x128xf32>
    %207 = vector.shape_cast %206 : vector<1x128x128xf32> to vector<128x128xf32>
    %cst_226 = arith.constant dense<0.000000e+00> : vector<128x128xf32>
    %208 = tpu.matmul %205, %207, %cst_226 {dimension_numbers = #tpu.dot_dimension_numbers<[1], [0], [0], [1], [0, 0, 1, 1], [], []>} : vector<128x128xf32>, vector<128x128xf32>, vector<128x128xf32> -> vector<128x128xf32>
    %209 = arith.addf %198, %208 : vector<128x128xf32>
    %c0_227 = arith.constant 0 : index
    %c2_228 = arith.constant 2 : index
    %c2_229 = arith.constant 2 : index
    %c0_230 = arith.constant 0 : index
    %210 = vector.load %arg9[%c0_227, %c2_228, %c2_229, %c0_230] : memref<2x10x10x128xf32, #tpu.memory_space<vmem>>, vector<1x8x8x128xf32>
    %211 = vector.shape_cast %210 : vector<1x8x8x128xf32> to vector<8x8x128xf32>
    %212 = vector.shape_cast %211 : vector<8x8x128xf32> to vector<64x128xf32>
    %c1_231 = arith.constant 1 : index
    %c2_232 = arith.constant 2 : index
    %c2_233 = arith.constant 2 : index
    %c0_234 = arith.constant 0 : index
    %213 = vector.load %arg9[%c1_231, %c2_232, %c2_233, %c0_234] : memref<2x10x10x128xf32, #tpu.memory_space<vmem>>, vector<1x8x8x128xf32>
    %214 = vector.shape_cast %213 : vector<1x8x8x128xf32> to vector<8x8x128xf32>
    %215 = vector.shape_cast %214 : vector<8x8x128xf32> to vector<64x128xf32>
    %216 = tpu.concatenate %212, %215 in 0 : vector<64x128xf32>, vector<64x128xf32> -> vector<128x128xf32>
    %c8_235 = arith.constant 8 : index
    %c0_236 = arith.constant 0 : index
    %c0_237 = arith.constant 0 : index
    %217 = vector.load %arg4[%c8_235, %c0_236, %c0_237] : memref<9x128x128xf32, #tpu.memory_space<vmem>>, vector<1x128x128xf32>
    %218 = vector.shape_cast %217 : vector<1x128x128xf32> to vector<128x128xf32>
    %cst_238 = arith.constant dense<0.000000e+00> : vector<128x128xf32>
    %219 = tpu.matmul %216, %218, %cst_238 {dimension_numbers = #tpu.dot_dimension_numbers<[1], [0], [0], [1], [0, 0, 1, 1], [], []>} : vector<128x128xf32>, vector<128x128xf32>, vector<128x128xf32> -> vector<128x128xf32>
    %220 = arith.addf %209, %219 : vector<128x128xf32>
    %221 = arith.addf %220, %109 : vector<128x128xf32>
    %cst_239 = arith.constant 0.000000e+00 : f32
    %222 = vector.broadcast %cst_239 : f32 to vector<128x128xf32>
    %223 = arith.maximumf %221, %222 : vector<128x128xf32>
    %224 = vector.shape_cast %223 : vector<128x128xf32> to vector<2x8x8x128xf32>
    %c0_240 = arith.constant 0 : index
    %c0_241 = arith.constant 0 : index
    %c0_242 = arith.constant 0 : index
    %c0_243 = arith.constant 0 : index
    %225 = vector.load %arg8[%c0_240, %c0_241, %c0_242, %c0_243] : memref<2x8x8x128xf32, #tpu.memory_space<vmem>>, vector<2x8x8x128xf32>
    tpu.vector_store %arg8[%c0_240, %c0_241, %c0_242, %c0_243], %224 {strides = array<i32>} : memref<2x8x8x128xf32, #tpu.memory_space<vmem>>, vector<2x8x8x128xf32>,
    return
  }
  func.func @transform_0(%arg0: i32) -> (i32, i32, i32, i32) {
    %c0_i32 = arith.constant 0 : i32
    %c0_i32_0 = arith.constant 0 : i32
    %c0_i32_1 = arith.constant 0 : i32
    %c0_i32_2 = arith.constant 0 : i32
    return %arg0, %c0_i32, %c0_i32_0, %c0_i32_1 : i32, i32, i32, i32
  }
  func.func @transform_1(%arg0: i32) -> (i32, i32, i32) {
    %c0_i32 = arith.constant 0 : i32
    %c0_i32_0 = arith.constant 0 : i32
    %c0_i32_1 = arith.constant 0 : i32
    %c0_i32_2 = arith.constant 0 : i32
    return %c0_i32, %c0_i32_0, %c0_i32_1 : i32, i32, i32
  }
  func.func @transform_2(%arg0: i32) -> (i32, i32) {
    %c0_i32 = arith.constant 0 : i32
    %c0_i32_0 = arith.constant 0 : i32
    %c0_i32_1 = arith.constant 0 : i32
    return %c0_i32, %c0_i32_0 : i32, i32
  }
  func.func @transform_3(%arg0: i32) -> (i32, i32, i32) {
    %c0_i32 = arith.constant 0 : i32
    %c0_i32_0 = arith.constant 0 : i32
    %c0_i32_1 = arith.constant 0 : i32
    %c0_i32_2 = arith.constant 0 : i32
    return %c0_i32, %c0_i32_0, %c0_i32_1 : i32, i32, i32
  }
  func.func @transform_4(%arg0: i32) -> (i32, i32) {
    %c0_i32 = arith.constant 0 : i32
    %c0_i32_0 = arith.constant 0 : i32
    %c0_i32_1 = arith.constant 0 : i32
    return %c0_i32, %c0_i32_0 : i32, i32
  }
  func.func @transform_5(%arg0: i32) -> (i32, i32) {
    %c0_i32 = arith.constant 0 : i32
    %c0_i32_0 = arith.constant 0 : i32
    %c0_i32_1 = arith.constant 0 : i32
    return %c0_i32, %c0_i32_0 : i32, i32
  }
  func.func @transform_6(%arg0: i32) -> (i32, i32) {
    %c0_i32 = arith.constant 0 : i32
    %c0_i32_0 = arith.constant 0 : i32
    %c0_i32_1 = arith.constant 0 : i32
    return %c0_i32, %c0_i32_0 : i32, i32
  }
  func.func @transform_7(%arg0: i32) -> (i32, i32, i32, i32) {
    %c0_i32 = arith.constant 0 : i32
    %c0_i32_0 = arith.constant 0 : i32
    %c0_i32_1 = arith.constant 0 : i32
    %c0_i32_2 = arith.constant 0 : i32
    return %arg0, %c0_i32, %c0_i32_0, %c0_i32_1 : i32, i32, i32, i32
  }
}

module attributes {stable_mosaic.version = 11 : i64} {
  func.func @_residual_block_kernel(%arg0: i32, %arg1: memref<8x9x9x128xf32, #tpu.memory_space<vmem>>, %arg2: memref<9x128x128xf32, #tpu.memory_space<vmem>>, %arg3: memref<1x128xf32, #tpu.memory_space<vmem>>, %arg4: memref<9x128x128xf32, #tpu.memory_space<vmem>>, %arg5: memref<1x128xf32, #tpu.memory_space<vmem>>, %arg6: memref<128x128xf32, #tpu.memory_space<vmem>>, %arg7: memref<1x128xf32, #tpu.memory_space<vmem>>, %arg8: memref<2x8x8x128xf32, #tpu.memory_space<vmem>>, %arg9: memref<2x10x10x128xf32, #tpu.memory_space<vmem>>) attributes {dimension_semantics = [#tpu.dimension_semantics<parallel>], iteration_bounds = array<i64: 1>, scalar_prefetch = 0 : i64, scratch_operands = 1 : i64, tpu.core_type = #tpu.core_type<tc>, window_params = [{transform_indices = @transform_0, window_bounds = array<i64: 8, 9, 9, 128>}, {pipeline_mode = #tpu.pipeline_mode<synchronous>, transform_indices = @transform_1, window_bounds = array<i64: 9, 128, 128>}, {pipeline_mode = #tpu.pipeline_mode<synchronous>, transform_indices = @transform_2, window_bounds = array<i64: 1, 128>}, {pipeline_mode = #tpu.pipeline_mode<synchronous>, transform_indices = @transform_3, window_bounds = array<i64: 9, 128, 128>}, {pipeline_mode = #tpu.pipeline_mode<synchronous>, transform_indices = @transform_4, window_bounds = array<i64: 1, 128>}, {pipeline_mode = #tpu.pipeline_mode<synchronous>, transform_indices = @transform_5, window_bounds = array<i64: 128, 128>}, {pipeline_mode = #tpu.pipeline_mode<synchronous>, transform_indices = @transform_6, window_bounds = array<i64: 1, 128>}, {transform_indices = @transform_7, window_bounds = array<i64: 2, 8, 8, 128>}]} {
    %cst = arith.constant 0.000000e+00 : f32
    %0 = vector.broadcast %cst : f32 to vector<128x128xf32>
    %c0 = arith.constant 0 : index
    %c0_0 = arith.constant 0 : index
    %1 = vector.load %arg3[%c0, %c0_0] : memref<1x128xf32, #tpu.memory_space<vmem>>, vector<1x128xf32>
    %2 = vector.broadcast %1 : vector<1x128xf32> to vector<128x128xf32>
    %3 = arith.addf %0, %2 : vector<128x128xf32>
    %c0_1 = arith.constant 0 : index
    %c0_2 = arith.constant 0 : index
    %c0_3 = arith.constant 0 : index
    %c0_4 = arith.constant 0 : index
    %4 = vector.load %arg1[%c0_1, %c0_2, %c0_3, %c0_4] : memref<8x9x9x128xf32, #tpu.memory_space<vmem>>, vector<1x8x8x128xf32>
    %5 = vector.shape_cast %4 : vector<1x8x8x128xf32> to vector<8x8x128xf32>
    %6 = vector.shape_cast %5 : vector<8x8x128xf32> to vector<64x128xf32>
    %c4 = arith.constant 4 : index
    %c0_5 = arith.constant 0 : index
    %c0_6 = arith.constant 0 : index
    %c0_7 = arith.constant 0 : index
    %7 = vector.load %arg1[%c4, %c0_5, %c0_6, %c0_7] : memref<8x9x9x128xf32, #tpu.memory_space<vmem>>, vector<1x8x8x128xf32>
    %8 = vector.shape_cast %7 : vector<1x8x8x128xf32> to vector<8x8x128xf32>
    %9 = vector.shape_cast %8 : vector<8x8x128xf32> to vector<64x128xf32>
    %10 = tpu.concatenate %6, %9 in 0 : vector<64x128xf32>, vector<64x128xf32> -> vector<128x128xf32>
    %c0_8 = arith.constant 0 : index
    %c0_9 = arith.constant 0 : index
    %c0_10 = arith.constant 0 : index
    %11 = vector.load %arg2[%c0_8, %c0_9, %c0_10] : memref<9x128x128xf32, #tpu.memory_space<vmem>>, vector<1x128x128xf32>
    %12 = vector.shape_cast %11 : vector<1x128x128xf32> to vector<128x128xf32>
    %cst_11 = arith.constant dense<0.000000e+00> : vector<128x128xf32>
    %13 = tpu.matmul %10, %12, %cst_11 {dimension_numbers = #tpu.dot_dimension_numbers<[1], [0], [0], [1], [0, 0, 1, 1], [], []>} : vector<128x128xf32>, vector<128x128xf32>, vector<128x128xf32> -> vector<128x128xf32>
    %14 = arith.addf %3, %13 : vector<128x128xf32>
    %c1 = arith.constant 1 : index
    %c0_12 = arith.constant 0 : index
    %c0_13 = arith.constant 0 : index
    %c0_14 = arith.constant 0 : index
    %15 = vector.load %arg1[%c1, %c0_12, %c0_13, %c0_14] : memref<8x9x9x128xf32, #tpu.memory_space<vmem>>, vector<1x8x8x128xf32>
    %16 = vector.shape_cast %15 : vector<1x8x8x128xf32> to vector<8x8x128xf32>
    %17 = vector.shape_cast %16 : vector<8x8x128xf32> to vector<64x128xf32>
    %c5 = arith.constant 5 : index
    %c0_15 = arith.constant 0 : index
    %c0_16 = arith.constant 0 : index
    %c0_17 = arith.constant 0 : index
    %18 = vector.load %arg1[%c5, %c0_15, %c0_16, %c0_17] : memref<8x9x9x128xf32, #tpu.memory_space<vmem>>, vector<1x8x8x128xf32>
    %19 = vector.shape_cast %18 : vector<1x8x8x128xf32> to vector<8x8x128xf32>
    %20 = vector.shape_cast %19 : vector<8x8x128xf32> to vector<64x128xf32>
    %21 = tpu.concatenate %17, %20 in 0 : vector<64x128xf32>, vector<64x128xf32> -> vector<128x128xf32>
    %c1_18 = arith.constant 1 : index
    %c0_19 = arith.constant 0 : index
    %c0_20 = arith.constant 0 : index
    %22 = vector.load %arg2[%c1_18, %c0_19, %c0_20] : memref<9x128x128xf32, #tpu.memory_space<vmem>>, vector<1x128x128xf32>
    %23 = vector.shape_cast %22 : vector<1x128x128xf32> to vector<128x128xf32>
    %cst_21 = arith.constant dense<0.000000e+00> : vector<128x128xf32>
    %24 = tpu.matmul %21, %23, %cst_21 {dimension_numbers = #tpu.dot_dimension_numbers<[1], [0], [0], [1], [0, 0, 1, 1], [], []>} : vector<128x128xf32>, vector<128x128xf32>, vector<128x128xf32> -> vector<128x128xf32>
    %25 = arith.addf %14, %24 : vector<128x128xf32>
    %c0_22 = arith.constant 0 : index
    %c0_23 = arith.constant 0 : index
    %c1_24 = arith.constant 1 : index
    %c0_25 = arith.constant 0 : index
    %26 = vector.load %arg1[%c0_22, %c0_23, %c1_24, %c0_25] : memref<8x9x9x128xf32, #tpu.memory_space<vmem>>, vector<1x8x8x128xf32>
    %27 = vector.shape_cast %26 : vector<1x8x8x128xf32> to vector<8x8x128xf32>
    %28 = vector.shape_cast %27 : vector<8x8x128xf32> to vector<64x128xf32>
    %c4_26 = arith.constant 4 : index
    %c0_27 = arith.constant 0 : index
    %c1_28 = arith.constant 1 : index
    %c0_29 = arith.constant 0 : index
    %29 = vector.load %arg1[%c4_26, %c0_27, %c1_28, %c0_29] : memref<8x9x9x128xf32, #tpu.memory_space<vmem>>, vector<1x8x8x128xf32>
    %30 = vector.shape_cast %29 : vector<1x8x8x128xf32> to vector<8x8x128xf32>
    %31 = vector.shape_cast %30 : vector<8x8x128xf32> to vector<64x128xf32>
    %32 = tpu.concatenate %28, %31 in 0 : vector<64x128xf32>, vector<64x128xf32> -> vector<128x128xf32>
    %c2 = arith.constant 2 : index
    %c0_30 = arith.constant 0 : index
    %c0_31 = arith.constant 0 : index
    %33 = vector.load %arg2[%c2, %c0_30, %c0_31] : memref<9x128x128xf32, #tpu.memory_space<vmem>>, vector<1x128x128xf32>
    %34 = vector.shape_cast %33 : vector<1x128x128xf32> to vector<128x128xf32>
    %cst_32 = arith.constant dense<0.000000e+00> : vector<128x128xf32>
    %35 = tpu.matmul %32, %34, %cst_32 {dimension_numbers = #tpu.dot_dimension_numbers<[1], [0], [0], [1], [0, 0, 1, 1], [], []>} : vector<128x128xf32>, vector<128x128xf32>, vector<128x128xf32> -> vector<128x128xf32>
    %36 = arith.addf %25, %35 : vector<128x128xf32>
    %c2_33 = arith.constant 2 : index
    %c0_34 = arith.constant 0 : index
    %c0_35 = arith.constant 0 : index
    %c0_36 = arith.constant 0 : index
    %37 = vector.load %arg1[%c2_33, %c0_34, %c0_35, %c0_36] : memref<8x9x9x128xf32, #tpu.memory_space<vmem>>, vector<1x8x8x128xf32>
    %38 = vector.shape_cast %37 : vector<1x8x8x128xf32> to vector<8x8x128xf32>
    %39 = vector.shape_cast %38 : vector<8x8x128xf32> to vector<64x128xf32>
    %c6 = arith.constant 6 : index
    %c0_37 = arith.constant 0 : index
    %c0_38 = arith.constant 0 : index
    %c0_39 = arith.constant 0 : index
    %40 = vector.load %arg1[%c6, %c0_37, %c0_38, %c0_39] : memref<8x9x9x128xf32, #tpu.memory_space<vmem>>, vector<1x8x8x128xf32>
    %41 = vector.shape_cast %40 : vector<1x8x8x128xf32> to vector<8x8x128xf32>
    %42 = vector.shape_cast %41 : vector<8x8x128xf32> to vector<64x128xf32>
    %43 = tpu.concatenate %39, %42 in 0 : vector<64x128xf32>, vector<64x128xf32> -> vector<128x128xf32>
    %c3 = arith.constant 3 : index
    %c0_40 = arith.constant 0 : index
    %c0_41 = arith.constant 0 : index
    %44 = vector.load %arg2[%c3, %c0_40, %c0_41] : memref<9x128x128xf32, #tpu.memory_space<vmem>>, vector<1x128x128xf32>
    %45 = vector.shape_cast %44 : vector<1x128x128xf32> to vector<128x128xf32>
    %cst_42 = arith.constant dense<0.000000e+00> : vector<128x128xf32>
    %46 = tpu.matmul %43, %45, %cst_42 {dimension_numbers = #tpu.dot_dimension_numbers<[1], [0], [0], [1], [0, 0, 1, 1], [], []>} : vector<128x128xf32>, vector<128x128xf32>, vector<128x128xf32> -> vector<128x128xf32>
    %47 = arith.addf %36, %46 : vector<128x128xf32>
    %c3_43 = arith.constant 3 : index
    %c0_44 = arith.constant 0 : index
    %c0_45 = arith.constant 0 : index
    %c0_46 = arith.constant 0 : index
    %48 = vector.load %arg1[%c3_43, %c0_44, %c0_45, %c0_46] : memref<8x9x9x128xf32, #tpu.memory_space<vmem>>, vector<1x8x8x128xf32>
    %49 = vector.shape_cast %48 : vector<1x8x8x128xf32> to vector<8x8x128xf32>
    %50 = vector.shape_cast %49 : vector<8x8x128xf32> to vector<64x128xf32>
    %c7 = arith.constant 7 : index
    %c0_47 = arith.constant 0 : index
    %c0_48 = arith.constant 0 : index
    %c0_49 = arith.constant 0 : index
    %51 = vector.load %arg1[%c7, %c0_47, %c0_48, %c0_49] : memref<8x9x9x128xf32, #tpu.memory_space<vmem>>, vector<1x8x8x128xf32>
    %52 = vector.shape_cast %51 : vector<1x8x8x128xf32> to vector<8x8x128xf32>
    %53 = vector.shape_cast %52 : vector<8x8x128xf32> to vector<64x128xf32>
    %54 = tpu.concatenate %50, %53 in 0 : vector<64x128xf32>, vector<64x128xf32> -> vector<128x128xf32>
    %c4_50 = arith.constant 4 : index
    %c0_51 = arith.constant 0 : index
    %c0_52 = arith.constant 0 : index
    %55 = vector.load %arg2[%c4_50, %c0_51, %c0_52] : memref<9x128x128xf32, #tpu.memory_space<vmem>>, vector<1x128x128xf32>
    %56 = vector.shape_cast %55 : vector<1x128x128xf32> to vector<128x128xf32>
    %cst_53 = arith.constant dense<0.000000e+00> : vector<128x128xf32>
    %57 = tpu.matmul %54, %56, %cst_53 {dimension_numbers = #tpu.dot_dimension_numbers<[1], [0], [0], [1], [0, 0, 1, 1], [], []>} : vector<128x128xf32>, vector<128x128xf32>, vector<128x128xf32> -> vector<128x128xf32>
    %58 = arith.addf %47, %57 : vector<128x128xf32>
    %c2_54 = arith.constant 2 : index
    %c0_55 = arith.constant 0 : index
    %c1_56 = arith.constant 1 : index
    %c0_57 = arith.constant 0 : index
    %59 = vector.load %arg1[%c2_54, %c0_55, %c1_56, %c0_57] : memref<8x9x9x128xf32, #tpu.memory_space<vmem>>, vector<1x8x8x128xf32>
    %60 = vector.shape_cast %59 : vector<1x8x8x128xf32> to vector<8x8x128xf32>
    %61 = vector.shape_cast %60 : vector<8x8x128xf32> to vector<64x128xf32>
    %c6_58 = arith.constant 6 : index
    %c0_59 = arith.constant 0 : index
    %c1_60 = arith.constant 1 : index
    %c0_61 = arith.constant 0 : index
    %62 = vector.load %arg1[%c6_58, %c0_59, %c1_60, %c0_61] : memref<8x9x9x128xf32, #tpu.memory_space<vmem>>, vector<1x8x8x128xf32>
    %63 = vector.shape_cast %62 : vector<1x8x8x128xf32> to vector<8x8x128xf32>
    %64 = vector.shape_cast %63 : vector<8x8x128xf32> to vector<64x128xf32>
    %65 = tpu.concatenate %61, %64 in 0 : vector<64x128xf32>, vector<64x128xf32> -> vector<128x128xf32>
    %c5_62 = arith.constant 5 : index
    %c0_63 = arith.constant 0 : index
    %c0_64 = arith.constant 0 : index
    %66 = vector.load %arg2[%c5_62, %c0_63, %c0_64] : memref<9x128x128xf32, #tpu.memory_space<vmem>>, vector<1x128x128xf32>
    %67 = vector.shape_cast %66 : vector<1x128x128xf32> to vector<128x128xf32>
    %cst_65 = arith.constant dense<0.000000e+00> : vector<128x128xf32>
    %68 = tpu.matmul %65, %67, %cst_65 {dimension_numbers = #tpu.dot_dimension_numbers<[1], [0], [0], [1], [0, 0, 1, 1], [], []>} : vector<128x128xf32>, vector<128x128xf32>, vector<128x128xf32> -> vector<128x128xf32>
    %69 = arith.addf %58, %68 : vector<128x128xf32>
    %c0_66 = arith.constant 0 : index
    %c1_67 = arith.constant 1 : index
    %c0_68 = arith.constant 0 : index
    %c0_69 = arith.constant 0 : index
    %70 = vector.load %arg1[%c0_66, %c1_67, %c0_68, %c0_69] : memref<8x9x9x128xf32, #tpu.memory_space<vmem>>, vector<1x8x8x128xf32>
    %71 = vector.shape_cast %70 : vector<1x8x8x128xf32> to vector<8x8x128xf32>
    %72 = vector.shape_cast %71 : vector<8x8x128xf32> to vector<64x128xf32>
    %c4_70 = arith.constant 4 : index
    %c1_71 = arith.constant 1 : index
    %c0_72 = arith.constant 0 : index
    %c0_73 = arith.constant 0 : index
    %73 = vector.load %arg1[%c4_70, %c1_71, %c0_72, %c0_73] : memref<8x9x9x128xf32, #tpu.memory_space<vmem>>, vector<1x8x8x128xf32>
    %74 = vector.shape_cast %73 : vector<1x8x8x128xf32> to vector<8x8x128xf32>
    %75 = vector.shape_cast %74 : vector<8x8x128xf32> to vector<64x128xf32>
    %76 = tpu.concatenate %72, %75 in 0 : vector<64x128xf32>, vector<64x128xf32> -> vector<128x128xf32>
    %c6_74 = arith.constant 6 : index
    %c0_75 = arith.constant 0 : index
    %c0_76 = arith.constant 0 : index
    %77 = vector.load %arg2[%c6_74, %c0_75, %c0_76] : memref<9x128x128xf32, #tpu.memory_space<vmem>>, vector<1x128x128xf32>
    %78 = vector.shape_cast %77 : vector<1x128x128xf32> to vector<128x128xf32>
    %cst_77 = arith.constant dense<0.000000e+00> : vector<128x128xf32>
    %79 = tpu.matmul %76, %78, %cst_77 {dimension_numbers = #tpu.dot_dimension_numbers<[1], [0], [0], [1], [0, 0, 1, 1], [], []>} : vector<128x128xf32>, vector<128x128xf32>, vector<128x128xf32> -> vector<128x128xf32>
    %80 = arith.addf %69, %79 : vector<128x128xf32>
    %c1_78 = arith.constant 1 : index
    %c1_79 = arith.constant 1 : index
    %c0_80 = arith.constant 0 : index
    %c0_81 = arith.constant 0 : index
    %81 = vector.load %arg1[%c1_78, %c1_79, %c0_80, %c0_81] : memref<8x9x9x128xf32, #tpu.memory_space<vmem>>, vector<1x8x8x128xf32>
    %82 = vector.shape_cast %81 : vector<1x8x8x128xf32> to vector<8x8x128xf32>
    %83 = vector.shape_cast %82 : vector<8x8x128xf32> to vector<64x128xf32>
    %c5_82 = arith.constant 5 : index
    %c1_83 = arith.constant 1 : index
    %c0_84 = arith.constant 0 : index
    %c0_85 = arith.constant 0 : index
    %84 = vector.load %arg1[%c5_82, %c1_83, %c0_84, %c0_85] : memref<8x9x9x128xf32, #tpu.memory_space<vmem>>, vector<1x8x8x128xf32>
    %85 = vector.shape_cast %84 : vector<1x8x8x128xf32> to vector<8x8x128xf32>
    %86 = vector.shape_cast %85 : vector<8x8x128xf32> to vector<64x128xf32>
    %87 = tpu.concatenate %83, %86 in 0 : vector<64x128xf32>, vector<64x128xf32> -> vector<128x128xf32>
    %c7_86 = arith.constant 7 : index
    %c0_87 = arith.constant 0 : index
    %c0_88 = arith.constant 0 : index
    %88 = vector.load %arg2[%c7_86, %c0_87, %c0_88] : memref<9x128x128xf32, #tpu.memory_space<vmem>>, vector<1x128x128xf32>
    %89 = vector.shape_cast %88 : vector<1x128x128xf32> to vector<128x128xf32>
    %cst_89 = arith.constant dense<0.000000e+00> : vector<128x128xf32>
    %90 = tpu.matmul %87, %89, %cst_89 {dimension_numbers = #tpu.dot_dimension_numbers<[1], [0], [0], [1], [0, 0, 1, 1], [], []>} : vector<128x128xf32>, vector<128x128xf32>, vector<128x128xf32> -> vector<128x128xf32>
    %91 = arith.addf %80, %90 : vector<128x128xf32>
    %c0_90 = arith.constant 0 : index
    %c1_91 = arith.constant 1 : index
    %c1_92 = arith.constant 1 : index
    %c0_93 = arith.constant 0 : index
    %92 = vector.load %arg1[%c0_90, %c1_91, %c1_92, %c0_93] : memref<8x9x9x128xf32, #tpu.memory_space<vmem>>, vector<1x8x8x128xf32>
    %93 = vector.shape_cast %92 : vector<1x8x8x128xf32> to vector<8x8x128xf32>
    %94 = vector.shape_cast %93 : vector<8x8x128xf32> to vector<64x128xf32>
    %c4_94 = arith.constant 4 : index
    %c1_95 = arith.constant 1 : index
    %c1_96 = arith.constant 1 : index
    %c0_97 = arith.constant 0 : index
    %95 = vector.load %arg1[%c4_94, %c1_95, %c1_96, %c0_97] : memref<8x9x9x128xf32, #tpu.memory_space<vmem>>, vector<1x8x8x128xf32>
    %96 = vector.shape_cast %95 : vector<1x8x8x128xf32> to vector<8x8x128xf32>
    %97 = vector.shape_cast %96 : vector<8x8x128xf32> to vector<64x128xf32>
    %98 = tpu.concatenate %94, %97 in 0 : vector<64x128xf32>, vector<64x128xf32> -> vector<128x128xf32>
    %c8 = arith.constant 8 : index
    %c0_98 = arith.constant 0 : index
    %c0_99 = arith.constant 0 : index
    %99 = vector.load %arg2[%c8, %c0_98, %c0_99] : memref<9x128x128xf32, #tpu.memory_space<vmem>>, vector<1x128x128xf32>
    %100 = vector.shape_cast %99 : vector<1x128x128xf32> to vector<128x128xf32>
    %cst_100 = arith.constant dense<0.000000e+00> : vector<128x128xf32>
    %101 = tpu.matmul %98, %100, %cst_100 {dimension_numbers = #tpu.dot_dimension_numbers<[1], [0], [0], [1], [0, 0, 1, 1], [], []>} : vector<128x128xf32>, vector<128x128xf32>, vector<128x128xf32> -> vector<128x128xf32>
    %102 = arith.addf %91, %101 : vector<128x128xf32>
    %cst_101 = arith.constant 0.000000e+00 : f32
    %103 = vector.broadcast %cst_101 : f32 to vector<128x128xf32>
    %104 = arith.maximumf %102, %103 : vector<128x128xf32>
    %c0_102 = arith.constant 0 : index
    %c0_103 = arith.constant 0 : index
    %105 = vector.load %arg6[%c0_102, %c0_103] : memref<128x128xf32, #tpu.memory_space<vmem>>, vector<128x128xf32>
    %cst_104 = arith.constant dense<0.000000e+00> : vector<128x128xf32>
    %106 = tpu.matmul %54, %105, %cst_104 {dimension_numbers = #tpu.dot_dimension_numbers<[1], [0], [0], [1], [0, 0, 1, 1], [], []>} : vector<128x128xf32>, vector<128x128xf32>, vector<128x128xf32> -> vector<128x128xf32>
    %c0_105 = arith.constant 0 : index
    %c0_106 = arith.constant 0 : index
    %107 = vector.load %arg7[%c0_105, %c0_106] : memref<1x128xf32, #tpu.memory_space<vmem>>, vector<1x128xf32>
    %108 = vector.broadcast %107 : vector<1x128xf32> to vector<128x128xf32>
    %109 = arith.addf %106, %108 : vector<128x128xf32>
    %110 = vector.shape_cast %104 : vector<128x128xf32> to vector<2x8x8x128xf32>
    %c0_107 = arith.constant 0 : index
    %c1_108 = arith.constant 1 : index
    %c1_109 = arith.constant 1 : index
    %c0_110 = arith.constant 0 : index
    %111 = vector.load %arg9[%c0_107, %c1_108, %c1_109, %c0_110] : memref<2x10x10x128xf32, #tpu.memory_space<vmem>>, vector<2x8x8x128xf32>
    tpu.vector_store %arg9[%c0_107, %c1_108, %c1_109, %c0_110], %110 {strides = array<i32>} : memref<2x10x10x128xf32, #tpu.memory_space<vmem>>, vector<2x8x8x128xf32>,
    %cst_111 = arith.constant 0.000000e+00 : f32
    %112 = vector.broadcast %cst_111 : f32 to vector<2x1x10x128xf32>
    %cst_112 = arith.constant 0.000000e+00 : f32
    %113 = vector.broadcast %cst_112 : f32 to vector<2x10x1x128xf32>
    %c0_113 = arith.constant 0 : index
    %c0_114 = arith.constant 0 : index
    %c0_115 = arith.constant 0 : index
    %c0_116 = arith.constant 0 : index
    %114 = vector.load %arg9[%c0_113, %c0_114, %c0_115, %c0_116] : memref<2x10x10x128xf32, #tpu.memory_space<vmem>>, vector<2x1x10x128xf32>
    tpu.vector_store %arg9[%c0_113, %c0_114, %c0_115, %c0_116], %112 {strides = array<i32>} : memref<2x10x10x128xf32, #tpu.memory_space<vmem>>, vector<2x1x10x128xf32>,
    %c0_117 = arith.constant 0 : index
    %c9 = arith.constant 9 : index
    %c0_118 = arith.constant 0 : index
    %c0_119 = arith.constant 0 : index
    %115 = vector.load %arg9[%c0_117, %c9, %c0_118, %c0_119] : memref<2x10x10x128xf32, #tpu.memory_space<vmem>>, vector<2x1x10x128xf32>
    tpu.vector_store %arg9[%c0_117, %c9, %c0_118, %c0_119], %112 {strides = array<i32>} : memref<2x10x10x128xf32, #tpu.memory_space<vmem>>, vector<2x1x10x128xf32>,
    %c0_120 = arith.constant 0 : index
    %c0_121 = arith.constant 0 : index
    %c0_122 = arith.constant 0 : index
    %c0_123 = arith.constant 0 : index
    %116 = vector.load %arg9[%c0_120, %c0_121, %c0_122, %c0_123] : memref<2x10x10x128xf32, #tpu.memory_space<vmem>>, vector<2x10x1x128xf32>
    tpu.vector_store %arg9[%c0_120, %c0_121, %c0_122, %c0_123], %113 {strides = array<i32>} : memref<2x10x10x128xf32, #tpu.memory_space<vmem>>, vector<2x10x1x128xf32>,
    %c0_124 = arith.constant 0 : index
    %c0_125 = arith.constant 0 : index
    %c9_126 = arith.constant 9 : index
    %c0_127 = arith.constant 0 : index
    %117 = vector.load %arg9[%c0_124, %c0_125, %c9_126, %c0_127] : memref<2x10x10x128xf32, #tpu.memory_space<vmem>>, vector<2x10x1x128xf32>
    tpu.vector_store %arg9[%c0_124, %c0_125, %c9_126, %c0_127], %113 {strides = array<i32>} : memref<2x10x10x128xf32, #tpu.memory_space<vmem>>, vector<2x10x1x128xf32>,
    %cst_128 = arith.constant 0.000000e+00 : f32
    %118 = vector.broadcast %cst_128 : f32 to vector<128x128xf32>
    %c0_129 = arith.constant 0 : index
    %c0_130 = arith.constant 0 : index
    %119 = vector.load %arg5[%c0_129, %c0_130] : memref<1x128xf32, #tpu.memory_space<vmem>>, vector<1x128xf32>
    %120 = vector.broadcast %119 : vector<1x128xf32> to vector<128x128xf32>
    %121 = arith.addf %118, %120 : vector<128x128xf32>
    %c0_131 = arith.constant 0 : index
    %c0_132 = arith.constant 0 : index
    %c0_133 = arith.constant 0 : index
    %c0_134 = arith.constant 0 : index
    %122 = vector.load %arg9[%c0_131, %c0_132, %c0_133, %c0_134] : memref<2x10x10x128xf32, #tpu.memory_space<vmem>>, vector<1x8x8x128xf32>
    %123 = vector.shape_cast %122 : vector<1x8x8x128xf32> to vector<8x8x128xf32>
    %124 = vector.shape_cast %123 : vector<8x8x128xf32> to vector<64x128xf32>
    %c1_135 = arith.constant 1 : index
    %c0_136 = arith.constant 0 : index
    %c0_137 = arith.constant 0 : index
    %c0_138 = arith.constant 0 : index
    %125 = vector.load %arg9[%c1_135, %c0_136, %c0_137, %c0_138] : memref<2x10x10x128xf32, #tpu.memory_space<vmem>>, vector<1x8x8x128xf32>
    %126 = vector.shape_cast %125 : vector<1x8x8x128xf32> to vector<8x8x128xf32>
    %127 = vector.shape_cast %126 : vector<8x8x128xf32> to vector<64x128xf32>
    %128 = tpu.concatenate %124, %127 in 0 : vector<64x128xf32>, vector<64x128xf32> -> vector<128x128xf32>
    %c0_139 = arith.constant 0 : index
    %c0_140 = arith.constant 0 : index
    %c0_141 = arith.constant 0 : index
    %129 = vector.load %arg4[%c0_139, %c0_140, %c0_141] : memref<9x128x128xf32, #tpu.memory_space<vmem>>, vector<1x128x128xf32>
    %130 = vector.shape_cast %129 : vector<1x128x128xf32> to vector<128x128xf32>
    %cst_142 = arith.constant dense<0.000000e+00> : vector<128x128xf32>
    %131 = tpu.matmul %128, %130, %cst_142 {dimension_numbers = #tpu.dot_dimension_numbers<[1], [0], [0], [1], [0, 0, 1, 1], [], []>} : vector<128x128xf32>, vector<128x128xf32>, vector<128x128xf32> -> vector<128x128xf32>
    %132 = arith.addf %121, %131 : vector<128x128xf32>
    %c0_143 = arith.constant 0 : index
    %c0_144 = arith.constant 0 : index
    %c1_145 = arith.constant 1 : index
    %c0_146 = arith.constant 0 : index
    %133 = vector.load %arg9[%c0_143, %c0_144, %c1_145, %c0_146] : memref<2x10x10x128xf32, #tpu.memory_space<vmem>>, vector<1x8x8x128xf32>
    %134 = vector.shape_cast %133 : vector<1x8x8x128xf32> to vector<8x8x128xf32>
    %135 = vector.shape_cast %134 : vector<8x8x128xf32> to vector<64x128xf32>
    %c1_147 = arith.constant 1 : index
    %c0_148 = arith.constant 0 : index
    %c1_149 = arith.constant 1 : index
    %c0_150 = arith.constant 0 : index
    %136 = vector.load %arg9[%c1_147, %c0_148, %c1_149, %c0_150] : memref<2x10x10x128xf32, #tpu.memory_space<vmem>>, vector<1x8x8x128xf32>
    %137 = vector.shape_cast %136 : vector<1x8x8x128xf32> to vector<8x8x128xf32>
    %138 = vector.shape_cast %137 : vector<8x8x128xf32> to vector<64x128xf32>
    %139 = tpu.concatenate %135, %138 in 0 : vector<64x128xf32>, vector<64x128xf32> -> vector<128x128xf32>
    %c1_151 = arith.constant 1 : index
    %c0_152 = arith.constant 0 : index
    %c0_153 = arith.constant 0 : index
    %140 = vector.load %arg4[%c1_151, %c0_152, %c0_153] : memref<9x128x128xf32, #tpu.memory_space<vmem>>, vector<1x128x128xf32>
    %141 = vector.shape_cast %140 : vector<1x128x128xf32> to vector<128x128xf32>
    %cst_154 = arith.constant dense<0.000000e+00> : vector<128x128xf32>
    %142 = tpu.matmul %139, %141, %cst_154 {dimension_numbers = #tpu.dot_dimension_numbers<[1], [0], [0], [1], [0, 0, 1, 1], [], []>} : vector<128x128xf32>, vector<128x128xf32>, vector<128x128xf32> -> vector<128x128xf32>
    %143 = arith.addf %132, %142 : vector<128x128xf32>
    %c0_155 = arith.constant 0 : index
    %c0_156 = arith.constant 0 : index
    %c2_157 = arith.constant 2 : index
    %c0_158 = arith.constant 0 : index
    %144 = vector.load %arg9[%c0_155, %c0_156, %c2_157, %c0_158] : memref<2x10x10x128xf32, #tpu.memory_space<vmem>>, vector<1x8x8x128xf32>
    %145 = vector.shape_cast %144 : vector<1x8x8x128xf32> to vector<8x8x128xf32>
    %146 = vector.shape_cast %145 : vector<8x8x128xf32> to vector<64x128xf32>
    %c1_159 = arith.constant 1 : index
    %c0_160 = arith.constant 0 : index
    %c2_161 = arith.constant 2 : index
    %c0_162 = arith.constant 0 : index
    %147 = vector.load %arg9[%c1_159, %c0_160, %c2_161, %c0_162] : memref<2x10x10x128xf32, #tpu.memory_space<vmem>>, vector<1x8x8x128xf32>
    %148 = vector.shape_cast %147 : vector<1x8x8x128xf32> to vector<8x8x128xf32>
    %149 = vector.shape_cast %148 : vector<8x8x128xf32> to vector<64x128xf32>
    %150 = tpu.concatenate %146, %149 in 0 : vector<64x128xf32>, vector<64x128xf32> -> vector<128x128xf32>
    %c2_163 = arith.constant 2 : index
    %c0_164 = arith.constant 0 : index
    %c0_165 = arith.constant 0 : index
    %151 = vector.load %arg4[%c2_163, %c0_164, %c0_165] : memref<9x128x128xf32, #tpu.memory_space<vmem>>, vector<1x128x128xf32>
    %152 = vector.shape_cast %151 : vector<1x128x128xf32> to vector<128x128xf32>
    %cst_166 = arith.constant dense<0.000000e+00> : vector<128x128xf32>
    %153 = tpu.matmul %150, %152, %cst_166 {dimension_numbers = #tpu.dot_dimension_numbers<[1], [0], [0], [1], [0, 0, 1, 1], [], []>} : vector<128x128xf32>, vector<128x128xf32>, vector<128x128xf32> -> vector<128x128xf32>
    %154 = arith.addf %143, %153 : vector<128x128xf32>
    %c0_167 = arith.constant 0 : index
    %c1_168 = arith.constant 1 : index
    %c0_169 = arith.constant 0 : index
    %c0_170 = arith.constant 0 : index
    %155 = vector.load %arg9[%c0_167, %c1_168, %c0_169, %c0_170] : memref<2x10x10x128xf32, #tpu.memory_space<vmem>>, vector<1x8x8x128xf32>
    %156 = vector.shape_cast %155 : vector<1x8x8x128xf32> to vector<8x8x128xf32>
    %157 = vector.shape_cast %156 : vector<8x8x128xf32> to vector<64x128xf32>
    %c1_171 = arith.constant 1 : index
    %c1_172 = arith.constant 1 : index
    %c0_173 = arith.constant 0 : index
    %c0_174 = arith.constant 0 : index
    %158 = vector.load %arg9[%c1_171, %c1_172, %c0_173, %c0_174] : memref<2x10x10x128xf32, #tpu.memory_space<vmem>>, vector<1x8x8x128xf32>
    %159 = vector.shape_cast %158 : vector<1x8x8x128xf32> to vector<8x8x128xf32>
    %160 = vector.shape_cast %159 : vector<8x8x128xf32> to vector<64x128xf32>
    %161 = tpu.concatenate %157, %160 in 0 : vector<64x128xf32>, vector<64x128xf32> -> vector<128x128xf32>
    %c3_175 = arith.constant 3 : index
    %c0_176 = arith.constant 0 : index
    %c0_177 = arith.constant 0 : index
    %162 = vector.load %arg4[%c3_175, %c0_176, %c0_177] : memref<9x128x128xf32, #tpu.memory_space<vmem>>, vector<1x128x128xf32>
    %163 = vector.shape_cast %162 : vector<1x128x128xf32> to vector<128x128xf32>
    %cst_178 = arith.constant dense<0.000000e+00> : vector<128x128xf32>
    %164 = tpu.matmul %161, %163, %cst_178 {dimension_numbers = #tpu.dot_dimension_numbers<[1], [0], [0], [1], [0, 0, 1, 1], [], []>} : vector<128x128xf32>, vector<128x128xf32>, vector<128x128xf32> -> vector<128x128xf32>
    %165 = arith.addf %154, %164 : vector<128x128xf32>
    %c0_179 = arith.constant 0 : index
    %c1_180 = arith.constant 1 : index
    %c1_181 = arith.constant 1 : index
    %c0_182 = arith.constant 0 : index
    %166 = vector.load %arg9[%c0_179, %c1_180, %c1_181, %c0_182] : memref<2x10x10x128xf32, #tpu.memory_space<vmem>>, vector<1x8x8x128xf32>
    %167 = vector.shape_cast %166 : vector<1x8x8x128xf32> to vector<8x8x128xf32>
    %168 = vector.shape_cast %167 : vector<8x8x128xf32> to vector<64x128xf32>
    %c1_183 = arith.constant 1 : index
    %c1_184 = arith.constant 1 : index
    %c1_185 = arith.constant 1 : index
    %c0_186 = arith.constant 0 : index
    %169 = vector.load %arg9[%c1_183, %c1_184, %c1_185, %c0_186] : memref<2x10x10x128xf32, #tpu.memory_space<vmem>>, vector<1x8x8x128xf32>
    %170 = vector.shape_cast %169 : vector<1x8x8x128xf32> to vector<8x8x128xf32>
    %171 = vector.shape_cast %170 : vector<8x8x128xf32> to vector<64x128xf32>
    %172 = tpu.concatenate %168, %171 in 0 : vector<64x128xf32>, vector<64x128xf32> -> vector<128x128xf32>
    %c4_187 = arith.constant 4 : index
    %c0_188 = arith.constant 0 : index
    %c0_189 = arith.constant 0 : index
    %173 = vector.load %arg4[%c4_187, %c0_188, %c0_189] : memref<9x128x128xf32, #tpu.memory_space<vmem>>, vector<1x128x128xf32>
    %174 = vector.shape_cast %173 : vector<1x128x128xf32> to vector<128x128xf32>
    %cst_190 = arith.constant dense<0.000000e+00> : vector<128x128xf32>
    %175 = tpu.matmul %172, %174, %cst_190 {dimension_numbers = #tpu.dot_dimension_numbers<[1], [0], [0], [1], [0, 0, 1, 1], [], []>} : vector<128x128xf32>, vector<128x128xf32>, vector<128x128xf32> -> vector<128x128xf32>
    %176 = arith.addf %165, %175 : vector<128x128xf32>
    %c0_191 = arith.constant 0 : index
    %c1_192 = arith.constant 1 : index
    %c2_193 = arith.constant 2 : index
    %c0_194 = arith.constant 0 : index
    %177 = vector.load %arg9[%c0_191, %c1_192, %c2_193, %c0_194] : memref<2x10x10x128xf32, #tpu.memory_space<vmem>>, vector<1x8x8x128xf32>
    %178 = vector.shape_cast %177 : vector<1x8x8x128xf32> to vector<8x8x128xf32>
    %179 = vector.shape_cast %178 : vector<8x8x128xf32> to vector<64x128xf32>
    %c1_195 = arith.constant 1 : index
    %c1_196 = arith.constant 1 : index
    %c2_197 = arith.constant 2 : index
    %c0_198 = arith.constant 0 : index
    %180 = vector.load %arg9[%c1_195, %c1_196, %c2_197, %c0_198] : memref<2x10x10x128xf32, #tpu.memory_space<vmem>>, vector<1x8x8x128xf32>
    %181 = vector.shape_cast %180 : vector<1x8x8x128xf32> to vector<8x8x128xf32>
    %182 = vector.shape_cast %181 : vector<8x8x128xf32> to vector<64x128xf32>
    %183 = tpu.concatenate %179, %182 in 0 : vector<64x128xf32>, vector<64x128xf32> -> vector<128x128xf32>
    %c5_199 = arith.constant 5 : index
    %c0_200 = arith.constant 0 : index
    %c0_201 = arith.constant 0 : index
    %184 = vector.load %arg4[%c5_199, %c0_200, %c0_201] : memref<9x128x128xf32, #tpu.memory_space<vmem>>, vector<1x128x128xf32>
    %185 = vector.shape_cast %184 : vector<1x128x128xf32> to vector<128x128xf32>
    %cst_202 = arith.constant dense<0.000000e+00> : vector<128x128xf32>
    %186 = tpu.matmul %183, %185, %cst_202 {dimension_numbers = #tpu.dot_dimension_numbers<[1], [0], [0], [1], [0, 0, 1, 1], [], []>} : vector<128x128xf32>, vector<128x128xf32>, vector<128x128xf32> -> vector<128x128xf32>
    %187 = arith.addf %176, %186 : vector<128x128xf32>
    %c0_203 = arith.constant 0 : index
    %c2_204 = arith.constant 2 : index
    %c0_205 = arith.constant 0 : index
    %c0_206 = arith.constant 0 : index
    %188 = vector.load %arg9[%c0_203, %c2_204, %c0_205, %c0_206] : memref<2x10x10x128xf32, #tpu.memory_space<vmem>>, vector<1x8x8x128xf32>
    %189 = vector.shape_cast %188 : vector<1x8x8x128xf32> to vector<8x8x128xf32>
    %190 = vector.shape_cast %189 : vector<8x8x128xf32> to vector<64x128xf32>
    %c1_207 = arith.constant 1 : index
    %c2_208 = arith.constant 2 : index
    %c0_209 = arith.constant 0 : index
    %c0_210 = arith.constant 0 : index
    %191 = vector.load %arg9[%c1_207, %c2_208, %c0_209, %c0_210] : memref<2x10x10x128xf32, #tpu.memory_space<vmem>>, vector<1x8x8x128xf32>
    %192 = vector.shape_cast %191 : vector<1x8x8x128xf32> to vector<8x8x128xf32>
    %193 = vector.shape_cast %192 : vector<8x8x128xf32> to vector<64x128xf32>
    %194 = tpu.concatenate %190, %193 in 0 : vector<64x128xf32>, vector<64x128xf32> -> vector<128x128xf32>
    %c6_211 = arith.constant 6 : index
    %c0_212 = arith.constant 0 : index
    %c0_213 = arith.constant 0 : index
    %195 = vector.load %arg4[%c6_211, %c0_212, %c0_213] : memref<9x128x128xf32, #tpu.memory_space<vmem>>, vector<1x128x128xf32>
    %196 = vector.shape_cast %195 : vector<1x128x128xf32> to vector<128x128xf32>
    %cst_214 = arith.constant dense<0.000000e+00> : vector<128x128xf32>
    %197 = tpu.matmul %194, %196, %cst_214 {dimension_numbers = #tpu.dot_dimension_numbers<[1], [0], [0], [1], [0, 0, 1, 1], [], []>} : vector<128x128xf32>, vector<128x128xf32>, vector<128x128xf32> -> vector<128x128xf32>
    %198 = arith.addf %187, %197 : vector<128x128xf32>
    %c0_215 = arith.constant 0 : index
    %c2_216 = arith.constant 2 : index
    %c1_217 = arith.constant 1 : index
    %c0_218 = arith.constant 0 : index
    %199 = vector.load %arg9[%c0_215, %c2_216, %c1_217, %c0_218] : memref<2x10x10x128xf32, #tpu.memory_space<vmem>>, vector<1x8x8x128xf32>
    %200 = vector.shape_cast %199 : vector<1x8x8x128xf32> to vector<8x8x128xf32>
    %201 = vector.shape_cast %200 : vector<8x8x128xf32> to vector<64x128xf32>
    %c1_219 = arith.constant 1 : index
    %c2_220 = arith.constant 2 : index
    %c1_221 = arith.constant 1 : index
    %c0_222 = arith.constant 0 : index
    %202 = vector.load %arg9[%c1_219, %c2_220, %c1_221, %c0_222] : memref<2x10x10x128xf32, #tpu.memory_space<vmem>>, vector<1x8x8x128xf32>
    %203 = vector.shape_cast %202 : vector<1x8x8x128xf32> to vector<8x8x128xf32>
    %204 = vector.shape_cast %203 : vector<8x8x128xf32> to vector<64x128xf32>
    %205 = tpu.concatenate %201, %204 in 0 : vector<64x128xf32>, vector<64x128xf32> -> vector<128x128xf32>
    %c7_223 = arith.constant 7 : index
    %c0_224 = arith.constant 0 : index
    %c0_225 = arith.constant 0 : index
    %206 = vector.load %arg4[%c7_223, %c0_224, %c0_225] : memref<9x128x128xf32, #tpu.memory_space<vmem>>, vector<1x128x128xf32>
    %207 = vector.shape_cast %206 : vector<1x128x128xf32> to vector<128x128xf32>
    %cst_226 = arith.constant dense<0.000000e+00> : vector<128x128xf32>
    %208 = tpu.matmul %205, %207, %cst_226 {dimension_numbers = #tpu.dot_dimension_numbers<[1], [0], [0], [1], [0, 0, 1, 1], [], []>} : vector<128x128xf32>, vector<128x128xf32>, vector<128x128xf32> -> vector<128x128xf32>
    %209 = arith.addf %198, %208 : vector<128x128xf32>
    %c0_227 = arith.constant 0 : index
    %c2_228 = arith.constant 2 : index
    %c2_229 = arith.constant 2 : index
    %c0_230 = arith.constant 0 : index
    %210 = vector.load %arg9[%c0_227, %c2_228, %c2_229, %c0_230] : memref<2x10x10x128xf32, #tpu.memory_space<vmem>>, vector<1x8x8x128xf32>
    %211 = vector.shape_cast %210 : vector<1x8x8x128xf32> to vector<8x8x128xf32>
    %212 = vector.shape_cast %211 : vector<8x8x128xf32> to vector<64x128xf32>
    %c1_231 = arith.constant 1 : index
    %c2_232 = arith.constant 2 : index
    %c2_233 = arith.constant 2 : index
    %c0_234 = arith.constant 0 : index
    %213 = vector.load %arg9[%c1_231, %c2_232, %c2_233, %c0_234] : memref<2x10x10x128xf32, #tpu.memory_space<vmem>>, vector<1x8x8x128xf32>
    %214 = vector.shape_cast %213 : vector<1x8x8x128xf32> to vector<8x8x128xf32>
    %215 = vector.shape_cast %214 : vector<8x8x128xf32> to vector<64x128xf32>
    %216 = tpu.concatenate %212, %215 in 0 : vector<64x128xf32>, vector<64x128xf32> -> vector<128x128xf32>
    %c8_235 = arith.constant 8 : index
    %c0_236 = arith.constant 0 : index
    %c0_237 = arith.constant 0 : index
    %217 = vector.load %arg4[%c8_235, %c0_236, %c0_237] : memref<9x128x128xf32, #tpu.memory_space<vmem>>, vector<1x128x128xf32>
    %218 = vector.shape_cast %217 : vector<1x128x128xf32> to vector<128x128xf32>
    %cst_238 = arith.constant dense<0.000000e+00> : vector<128x128xf32>
    %219 = tpu.matmul %216, %218, %cst_238 {dimension_numbers = #tpu.dot_dimension_numbers<[1], [0], [0], [1], [0, 0, 1, 1], [], []>} : vector<128x128xf32>, vector<128x128xf32>, vector<128x128xf32> -> vector<128x128xf32>
    %220 = arith.addf %209, %219 : vector<128x128xf32>
    %221 = arith.addf %220, %109 : vector<128x128xf32>
    %cst_239 = arith.constant 0.000000e+00 : f32
    %222 = vector.broadcast %cst_239 : f32 to vector<128x128xf32>
    %223 = arith.maximumf %221, %222 : vector<128x128xf32>
    %224 = vector.shape_cast %223 : vector<128x128xf32> to vector<2x8x8x128xf32>
    %c0_240 = arith.constant 0 : index
    %c0_241 = arith.constant 0 : index
    %c0_242 = arith.constant 0 : index
    %c0_243 = arith.constant 0 : index
    %225 = vector.load %arg8[%c0_240, %c0_241, %c0_242, %c0_243] : memref<2x8x8x128xf32, #tpu.memory_space<vmem>>, vector<2x8x8x128xf32>
    tpu.vector_store %arg8[%c0_240, %c0_241, %c0_242, %c0_243], %224 {strides = array<i32>} : memref<2x8x8x128xf32, #tpu.memory_space<vmem>>, vector<2x8x8x128xf32>,
    return
  }
  func.func @transform_0(%arg0: i32) -> (i32, i32, i32, i32) {
    %c0_i32 = arith.constant 0 : i32
    %c0_i32_0 = arith.constant 0 : i32
    %c0_i32_1 = arith.constant 0 : i32
    %c0_i32_2 = arith.constant 0 : i32
    return %arg0, %c0_i32, %c0_i32_0, %c0_i32_1 : i32, i32, i32, i32
  }
  func.func @transform_1(%arg0: i32) -> (i32, i32, i32) {
    %c0_i32 = arith.constant 0 : i32
    %c0_i32_0 = arith.constant 0 : i32
    %c0_i32_1 = arith.constant 0 : i32
    %c0_i32_2 = arith.constant 0 : i32
    return %c0_i32, %c0_i32_0, %c0_i32_1 : i32, i32, i32
  }
  func.func @transform_2(%arg0: i32) -> (i32, i32) {
    %c0_i32 = arith.constant 0 : i32
    %c0_i32_0 = arith.constant 0 : i32
    %c0_i32_1 = arith.constant 0 : i32
    return %c0_i32, %c0_i32_0 : i32, i32
  }
  func.func @transform_3(%arg0: i32) -> (i32, i32, i32) {
    %c0_i32 = arith.constant 0 : i32
    %c0_i32_0 = arith.constant 0 : i32
    %c0_i32_1 = arith.constant 0 : i32
    %c0_i32_2 = arith.constant 0 : i32
    return %c0_i32, %c0_i32_0, %c0_i32_1 : i32, i32, i32
  }
  func.func @transform_4(%arg0: i32) -> (i32, i32) {
    %c0_i32 = arith.constant 0 : i32
    %c0_i32_0 = arith.constant 0 : i32
    %c0_i32_1 = arith.constant 0 : i32
    return %c0_i32, %c0_i32_0 : i32, i32
  }
  func.func @transform_5(%arg0: i32) -> (i32, i32) {
    %c0_i32 = arith.constant 0 : i32
    %c0_i32_0 = arith.constant 0 : i32
    %c0_i32_1 = arith.constant 0 : i32
    return %c0_i32, %c0_i32_0 : i32, i32
  }
  func.func @transform_6(%arg0: i32) -> (i32, i32) {
    %c0_i32 = arith.constant 0 : i32
    %c0_i32_0 = arith.constant 0 : i32
    %c0_i32_1 = arith.constant 0 : i32
    return %c0_i32, %c0_i32_0 : i32, i32
  }
  func.func @transform_7(%arg0: i32) -> (i32, i32, i32, i32) {
    %c0_i32 = arith.constant 0 : i32
    %c0_i32_0 = arith.constant 0 : i32
    %c0_i32_1 = arith.constant 0 : i32
    %c0_i32_2 = arith.constant 0 : i32
    return %arg0, %c0_i32, %c0_i32_0, %c0_i32_1 : i32, i32, i32, i32
  }
}

</mosaic_0001>

<bundles_post_ra>
// kernel: tpu_custom_call.1
= control target key start
LH: loop header
LB: loop body
LE: loop exit
PB: predicated region body
PF: predicated region fallthrough
CT: control target
= control target key end

     0   :  { %12 = vsyncpa [#allocation4], 0  ;;  %s4612_s0 = inlined_call_operand.vmem [shape: f32[8,9,9,128], index: 0, kind: input, shape index: {}]   ;;  %s4613_s1 = inlined_call_operand.vmem [shape: f32[9,128,128], index: 1, kind: input, shape index: {}]   ;;  %s4614_s2 = inlined_call_operand.vmem [shape: f32[1,128], index: 2, kind: input, shape index: {}]   ;;  %s4615_s3 = inlined_call_operand.hbm [shape: f32[9,128,128], index: 3, kind: input, shape index: {}]   ;;  %s4616_s4 = inlined_call_operand.vmem [shape: f32[1,128], index: 4, kind: input, shape index: {}]   ;;  %s4617_s5 = inlined_call_operand.vmem [shape: f32[128,128], index: 5, kind: input, shape index: {}]   ;;  %s4618_s6 = inlined_call_operand.vmem [shape: f32[1,128], index: 6, kind: input, shape index: {}]   ;;  %s4619_s7 = inlined_call_operand.hbm [shape: f32[2,8,8,128], index: 7, kind: output, shape index: {}]  }
   0x1   :  { %13 = vsyncpa [#allocation5], 0  ;;  %s24_s26 = sshll.u32 %s4615_s3, 4  ;;  %s2716_s27 = smov [#allocation3]   ;;  %s25_s26 = int_to_ptr.hbm [resolvable:$true] %s24_s26 }
   0x2   :  { %s26_s28 = sshll.u32 %s2716_s27, 4  ;;  %s2717_s29 = smov 128   ;;  %s27_s28 = int_to_ptr.vmem [resolvable:$true] %s26_s28 }
   0x3   :  { %s2718_s30 = smov 8  }
   0x4   :  { %32 = dma.hbm_to_vmem [thread:$0]  %s25_s26, 18432, %s27_s28, [#allocation4], %s2717_s29, %s2717_s29, %s2718_s30  }
   0x5   :  { %2712 = dma.done.wait [#allocation4], 18432  }
   0x6   :  { %2713 = vsyncadd [#allocation4], 4294948864  ;;  %v80_v0 = vld [vmem:[%s4613_s1 + $0x78] sm:$0xff]  ;;  %v79_v1 = vld [vmem:[%s4613_s1 + $0x70] sm:$0xff]  ;;  %s2339_s17 = sshll.u32 %s4619_s7, 4  ;;  %s2340_s17 = int_to_ptr.hbm [resolvable:$true] %s2339_s17 }
   0x7   :  { %81 = vmatpush.msra.mxu0 %v80_v0  ;;  %2608 = vmatpush.msra.mxu3 %v80_v0  ;;  %v2776_v2 = vld [vmem:[%s4613_s1 + $0x178] sm:$0xff]  ;;  %v2781_v3 = vld [vmem:[%s4613_s1 + $0x170] sm:$0xff]  ;;  %v78_v4 = vld [vmem:[%s4613_s1 + $0x68] sm:$0xff] }
   0x8   :  { %2640 = vmatpush.msra.mxu2 %v2776_v2  ;;  %v2790_v5 = vld [vmem:[%s4613_s1 + $0xf8] sm:$0xff]  ;;  %v2795_v6 = vld [vmem:[%s4613_s1 + $0x168] sm:$0xff]  ;;  %v2800_v7 = vld [vmem:[%s4613_s1 + $0xf0] sm:$0xff] }
   0x9   :  { %82 = vmatpush.msra.mxu0 %v79_v1  ;;  %2609 = vmatpush.msra.mxu3 %v79_v1  ;;  %v77_v8 = vld [vmem:[%s4613_s1 + $0x60] sm:$0xff]  ;;  %v2815_v10 = vld [vmem:[%s4613_s1 + $0xe8] sm:$0xff]  ;;  %v76_v11 = vld [vmem:[%s4613_s1 + $0x58] sm:$0xff] }
   0xa   :  { %2641 = vmatpush.msra.mxu2 %v2781_v3  ;;  %2624 = vmatpush.msra.mxu1 %v2790_v5  ;;  %v2810_v9 = vld [vmem:[%s4613_s1 + $0x160] sm:$0xff]  ;;  %v2825_v12 = vld [vmem:[%s4613_s1 + $0x158] sm:$0xff]  ;;  %v75_v14 = vld [vmem:[%s4613_s1 + $0x50] sm:$0xff] }
   0xb   :  { %83 = vmatpush.msra.mxu0 %v78_v4  ;;  %2610 = vmatpush.msra.mxu3 %v78_v4  ;;  %v2830_v13 = vld [vmem:[%s4613_s1 + $0xe0] sm:$0xff]  ;;  %v2840_v15 = vld [vmem:[%s4613_s1 + $0x150] sm:$0xff]  ;;  %v2845_v16 = vld [vmem:[%s4613_s1 + $0xd8] sm:$0xff] }
   0xc   :  { %2642 = vmatpush.msra.mxu2 %v2795_v6  ;;  %2625 = vmatpush.msra.mxu1 %v2800_v7  ;;  %v74_v17 = vld [vmem:[%s4613_s1 + $0x48] sm:$0xff]  ;;  %v2860_v19 = vld [vmem:[%s4613_s1 + $0xd0] sm:$0xff]  ;;  %v73_v20 = vld [vmem:[%s4613_s1 + $0x40] sm:$0xff] }
   0xd   :  { %84 = vmatpush.msra.mxu0 %v77_v8  ;;  %2611 = vmatpush.msra.mxu3 %v77_v8  ;;  %v2855_v18 = vld [vmem:[%s4613_s1 + $0x148] sm:$0xff]  ;;  %v2870_v21 = vld [vmem:[%s4613_s1 + $0x140] sm:$0xff]  ;;  %v72_v23 = vld [vmem:[%s4613_s1 + $0x38] sm:$0xff] }
   0xe   :  { %2643 = vmatpush.msra.mxu2 %v2810_v9  ;;  %2626 = vmatpush.msra.mxu1 %v2815_v10  ;;  %v2875_v22 = vld [vmem:[%s4613_s1 + $0xc8] sm:$0xff]  ;;  %v2885_v24 = vld [vmem:[%s4613_s1 + $0x138] sm:$0xff]  ;;  %v2890_v25 = vld [vmem:[%s4613_s1 + $0xc0] sm:$0xff] }
   0xf   :  { %85 = vmatpush.msra.mxu0 %v76_v11  ;;  %2612 = vmatpush.msra.mxu3 %v76_v11  ;;  %v71_v26 = vld [vmem:[%s4613_s1 + $0x30] sm:$0xff]  ;;  %v2905_v28 = vld [vmem:[%s4613_s1 + $0xb8] sm:$0xff]  ;;  %v70_v29 = vld [vmem:[%s4613_s1 + $0x28] sm:$0xff] }
  0x10   :  { %2644 = vmatpush.msra.mxu2 %v2825_v12  ;;  %2627 = vmatpush.msra.mxu1 %v2830_v13  ;;  %v2900_v27 = vld [vmem:[%s4613_s1 + $0x130] sm:$0xff]  ;;  %v2915_v30 = vld [vmem:[%s4613_s1 + $0x128] sm:$0xff]  ;;  %v69_v32 = vld [vmem:[%s4613_s1 + $0x20] sm:$0xff] }
  0x11   :  { %86 = vmatpush.msra.mxu0 %v75_v14  ;;  %2613 = vmatpush.msra.mxu3 %v75_v14  ;;  %v2920_v31 = vld [vmem:[%s4613_s1 + $0xb0] sm:$0xff]  ;;  %v2930_v33 = vld [vmem:[%s4613_s1 + $0x120] sm:$0xff]  ;;  %v2935_v34 = vld [vmem:[%s4613_s1 + $0xa8] sm:$0xff] }
  0x12   :  { %2645 = vmatpush.msra.mxu2 %v2840_v15  ;;  %2628 = vmatpush.msra.mxu1 %v2845_v16  ;;  %v68_v35 = vld [vmem:[%s4613_s1 + $0x18] sm:$0xff]  ;;  %v2950_v37 = vld [vmem:[%s4613_s1 + $0xa0] sm:$0xff]  ;;  %v67_v38 = vld [vmem:[%s4613_s1 + $0x10] sm:$0xff] }
  0x13   :  { %87 = vmatpush.msra.mxu0 %v74_v17  ;;  %2614 = vmatpush.msra.mxu3 %v74_v17  ;;  %v2945_v36 = vld [vmem:[%s4613_s1 + $0x118] sm:$0xff]  ;;  %v2960_v39 = vld [vmem:[%s4613_s1 + $0x110] sm:$0xff]  ;;  %v66_v41 = vld [vmem:[%s4613_s1 + $0x8] sm:$0xff] }
  0x14   :  { %2646 = vmatpush.msra.mxu2 %v2855_v18  ;;  %2629 = vmatpush.msra.mxu1 %v2860_v19  ;;  %v2965_v40 = vld [vmem:[%s4613_s1 + $0x98] sm:$0xff]  ;;  %v2975_v42 = vld [vmem:[%s4613_s1 + $0x108] sm:$0xff]  ;;  %v2980_v43 = vld [vmem:[%s4613_s1 + $0x90] sm:$0xff] }
  0x15   :  { %88 = vmatpush.msra.mxu0 %v73_v20  ;;  %2615 = vmatpush.msra.mxu3 %v73_v20  ;;  %v65_v44 = vld [vmem:[%s4613_s1] sm:$0xff]  ;;  %v2447_v47 = vld [vmem:[%s4613_s1 + $0x1f8] sm:$0xff]  ;;  %v3008_v49 = vld [vmem:[%s4613_s1 + $0x88] sm:$0xff] }
  0x16   :  { %2647 = vmatpush.msra.mxu2 %v2870_v21  ;;  %2630 = vmatpush.msra.mxu1 %v2875_v22  ;;  %v48_v45 = vld [vmem:[%s4612_s0] sm:$0xff]  ;;  %v2446_v51 = vld [vmem:[%s4613_s1 + $0x1f0] sm:$0xff]  ;;  %v2445_v54 = vld [vmem:[%s4613_s1 + $0x1e8] sm:$0xff] }
  0x17   :  { %89 = vmatpush.msra.mxu0 %v72_v23  ;;  %2616 = vmatpush.msra.mxu3 %v72_v23  ;;  %v2993_v46 = vld [vmem:[%s4612_s0 + $0x40] sm:$0xff]  ;;  %v2364_v53 = vld [vmem:[%s4612_s0 + $0xd0] sm:$0xff]  ;;  %v2443_v59 = vld [vmem:[%s4613_s1 + $0x1d8] sm:$0xff] }
  0x18   :  { %2648 = vmatpush.msra.mxu2 %v2885_v24  ;;  %2631 = vmatpush.msra.mxu1 %v2890_v25  ;;  %v3003_v48 = vld [vmem:[%s4613_s1 + $0x100] sm:$0xff]  ;;  %v3037_v55 = vld [vmem:[%s4612_s0 + $0x10] sm:$0xff]  ;;  %v2441_v0 = vld [vmem:[%s4613_s1 + $0x1c8] sm:$0xff] }
  0x19   :  { %90 = vmatpush.msra.mxu0 %v71_v26  ;;  %2617 = vmatpush.msra.mxu3 %v71_v26  ;;  %v282_v50 = vld [vmem:[%s4612_s0 + $0x41] sm:$0xff]  ;;  %v3042_v56 = vld [vmem:[%s4612_s0 + $0x50] sm:$0xff] }
  0x1a   :  { %2649 = vmatpush.msra.mxu2 %v2900_v27  ;;  %2632 = vmatpush.msra.mxu1 %v2905_v28  ;;  %v3021_v52 = vld [vmem:[%s4613_s1 + $0x80] sm:$0xff]  ;;  %v283_v58 = vld [vmem:[%s4612_s0 + $0x51] sm:$0xff] }
  0x1b   :  { %91 = vmatpush.msra.mxu0 %v70_v29  ;;  %2618 = vmatpush.msra.mxu3 %v70_v29  ;;  %v2444_v57 = vld [vmem:[%s4613_s1 + $0x1e0] sm:$0xff]  ;;  %v2442_v61 = vld [vmem:[%s4613_s1 + $0x1d0] sm:$0xff]  ;;  %v2541_v29 = vld [vmem:[%s4613_s1 + $0x368] sm:$0xff] }
  0x1c   :  { %2650 = vmatpush.msra.mxu2 %v2915_v30  ;;  %2633 = vmatpush.msra.mxu1 %v2920_v31  ;;  %v2365_v60 = vld [vmem:[%s4612_s0 + $0xe0] sm:$0xff]  ;;  %v3099_v8 = vld [vmem:[%s4612_s0 + $0x30] sm:$0xff] }
  0x1d   :  { %92 = vmatpush.msra.mxu0 %v69_v32  ;;  %2619 = vmatpush.msra.mxu3 %v69_v32  ;;  %v3068_v62 = vld [vmem:[%s4612_s0 + $0x20] sm:$0xff]  ;;  %v2438_v11 = vld [vmem:[%s4613_s1 + $0x1b0] sm:$0xff] }
  0x1e   :  { %2651 = vmatpush.msra.mxu2 %v2930_v33  ;;  %2634 = vmatpush.msra.mxu1 %v2935_v34  ;;  %v3073_v63 = vld [vmem:[%s4612_s0 + $0x60] sm:$0xff]  ;;  %v2368_v23 = vld [vmem:[%s4612_s0 + $0x2d0] sm:$0xff] }
  0x1f   :  { %93 = vmatpush.msra.mxu0 %v68_v35  ;;  %2620 = vmatpush.msra.mxu3 %v68_v35  ;;  %v284_v1 = vld [vmem:[%s4612_s0 + $0x61] sm:$0xff]  ;;  %v3149_v26 = vld [vmem:[%s4612_s0 + $0x250] sm:$0xff] }
  0x20   :  { %2652 = vmatpush.msra.mxu2 %v2945_v36  ;;  %2635 = vmatpush.msra.mxu1 %v2950_v37  ;;  %v2440_v4 = vld [vmem:[%s4613_s1 + $0x1c0] sm:$0xff]  ;;  %v2509_v35 = vld [vmem:[%s4613_s1 + $0x2e8] sm:$0xff] }
  0x21   :  { %94 = vmatpush.msra.mxu0 %v67_v38  ;;  %2621 = vmatpush.msra.mxu3 %v67_v38  ;;  %v2367_v14 = vld [vmem:[%s4612_s0 + $0x100] sm:$0xff]  ;;  %v2539_v38 = vld [vmem:[%s4613_s1 + $0x358] sm:$0xff] }
  0x22   :  { %2653 = vmatpush.msra.mxu2 %v2960_v39  ;;  %2636 = vmatpush.msra.mxu1 %v2965_v40  ;;  %v2352_v17 = vld [vmem:[%s4612_s0 + $0x240] sm:$0xff] }
  0x23   :  { %95 = vmatpush.msra.mxu0 %v66_v41  ;;  %2622 = vmatpush.msra.mxu3 %v66_v41  ;;  %v2392_v20 = vld [vmem:[%s4612_s0 + $0x241] sm:$0xff]  ;;  %v2507_v41 = vld [vmem:[%s4613_s1 + $0x2d8] sm:$0xff] }
  0x24   :  { %2654 = vmatpush.msra.mxu2 %v2975_v42  ;;  %2637 = vmatpush.msra.mxu1 %v2980_v43  ;;  %v2540_v32 = vld [vmem:[%s4613_s1 + $0x360] sm:$0xff] }
  0x25   :  { %96 = vmatpush.msra.mxu0 %v65_v44  ;;  %2623 = vmatpush.msra.mxu3 %v65_v44  ;;  %v2433_v44 = vld [vmem:[%s4613_s1 + $0x188] sm:$0xff] }
  0x26   :  { %97 = vmatmul.f32.vlgmr.msra.gmra.mxu0 %v48_v45  ;;  %109 = vmatmul.f32.vlgmr.msra.gmra.mxu3 %v2993_v46  ;;  %v2506_v45 = vld [vmem:[%s4613_s1 + $0x2d0] sm:$0xff] }
  0x27   :  { %427 = vmatpush.msrb.mxu3 %v2447_v47  ;;  %197 = vmatpush.msrb.mxu0 %v2790_v5  ;;  %v2366_v5 = vld [vmem:[%s4612_s0 + $0xf0] sm:$0xff]  ;;  %v3243_v47 = vld [vmem:[%s4612_s0 + $0xc0] sm:$0xff] }
  0x28   :  { %2655 = vmatpush.msra.mxu2 %v3003_v48  ;;  %2638 = vmatpush.msra.mxu1 %v3008_v49 }
  0x29   :  { %198 = vmatpush.msrb.mxu0 %v2800_v7  ;;  %339 = vmatmul.f32.vlgmr.msra.gmra.mxu2 %v282_v50  ;;  %v2439_v7 = vld [vmem:[%s4613_s1 + $0x1b8] sm:$0xff] }
  0x2a   :  { %428 = vmatpush.msrb.mxu3 %v2446_v51  ;;  %2639 = vmatpush.msra.mxu1 %v3021_v52  ;;  %v2395_v50 = vld [vmem:[%s4612_s0 + $0x271] sm:$0xff]  ;;  %v2504_v51 = vld [vmem:[%s4613_s1 + $0x2c0] sm:$0xff] }
  0x2b   :  { %199 = vmatpush.msrb.mxu0 %v2815_v10  ;;  %225 = vmatmul.f32.vlgmr.msra.gmra.mxu1 %v2364_v53  ;;  %v3104_v10 = vld [vmem:[%s4612_s0 + $0x70] sm:$0xff]  ;;  %v2371_v53 = vld [vmem:[%s4612_s0 + $0x300] sm:$0xff] }
  0x2c   :  { %429 = vmatpush.msrb.mxu3 %v2445_v54  ;;  %v2503_v54 = vld [vmem:[%s4613_s1 + $0x2b8] sm:$0xff] }
  0x2d   :  { %200 = vmatpush.msrb.mxu0 %v2830_v13  ;;  %v285_v13 = vld [vmem:[%s4612_s0 + $0x71] sm:$0xff] }
  0x2e   :  { %100 = vmatmul.f32.gmra.mxu0 %v3037_v55  ;;  %112 = vmatmul.f32.gmra.mxu3 %v3042_v56 }
  0x2f   :  { %201 = vmatpush.msrb.mxu0 %v2845_v16  ;;  %430 = vmatpush.msrb.mxu3 %v2444_v57  ;;  %v2437_v16 = vld [vmem:[%s4613_s1 + $0x1a8] sm:$0xff]  ;;  %v3281_v57 = vld [vmem:[%s4612_s0 + $0x280] sm:$0xff] }
  0x31   :  { %202 = vmatpush.msrb.mxu0 %v2860_v19  ;;  %342 = vmatmul.f32.gmra.mxu2 %v283_v58  ;;  %v2360_v19 = vld [vmem:[%s4612_s0 + $0x90] sm:$0xff]  ;;  %v2479_v58 = vld [vmem:[%s4613_s1 + $0x278] sm:$0xff] }
  0x32   :  { %431 = vmatpush.msrb.mxu3 %v2443_v59  ;;  %v2502_v59 = vld [vmem:[%s4613_s1 + $0x2b0] sm:$0xff] }
  0x33   :  { %203 = vmatpush.msrb.mxu0 %v2875_v22  ;;  %228 = vmatmul.f32.gmra.mxu1 %v2365_v60  ;;  %v2436_v22 = vld [vmem:[%s4613_s1 + $0x1a0] sm:$0xff] }
  0x34   :  { %432 = vmatpush.msrb.mxu3 %v2442_v61  ;;  %v2396_v60 = vld [vmem:[%s4612_s0 + $0x281] sm:$0xff]  ;;  %v2478_v61 = vld [vmem:[%s4613_s1 + $0x270] sm:$0xff] }
  0x35   :  { %204 = vmatpush.msrb.mxu0 %v2890_v25  ;;  %v2543_v25 = vld [vmem:[%s4613_s1 + $0x378] sm:$0xff] }
  0x36   :  { %103 = vmatmul.f32.gmra.mxu0 %v3068_v62  ;;  %115 = vmatmul.f32.gmra.mxu3 %v3073_v63 }
  0x37   :  { %205 = vmatpush.msrb.mxu0 %v2905_v28  ;;  %433 = vmatpush.msrb.mxu3 %v2441_v0  ;;  %v2542_v28 = vld [vmem:[%s4613_s1 + $0x370] sm:$0xff]  ;;  %v2575_v0 = vld [vmem:[%s4613_s1 + $0x3f8] sm:$0xff] }
  0x38   :  { %773 = vmatpush.msrb.mxu2 %v2543_v25  ;;  %v2574_v25 = vld [vmem:[%s4613_s1 + $0x3f0] sm:$0xff] }
  0x39   :  { %206 = vmatpush.msrb.mxu0 %v2920_v31  ;;  %345 = vmatmul.f32.gmra.mxu2 %v284_v1  ;;  %v2369_v31 = vld [vmem:[%s4612_s0 + $0x2e0] sm:$0xff]  ;;  %v2501_v1 = vld [vmem:[%s4613_s1 + $0x2a8] sm:$0xff] }
  0x3a   :  { %434 = vmatpush.msrb.mxu3 %v2440_v4  ;;  %774 = vmatpush.msrb.mxu2 %v2542_v28  ;;  %v2372_v4 = vld [vmem:[%s4612_s0 + $0x310] sm:$0xff]  ;;  %v2373_v28 = vld [vmem:[%s4612_s0 + $0x320] sm:$0xff] }
  0x3b   :  { %207 = vmatpush.msrb.mxu0 %v2935_v34  ;;  %231 = vmatmul.f32.gmra.mxu1 %v2366_v5  ;;  %v2434_v34 = vld [vmem:[%s4613_s1 + $0x190] sm:$0xff]  ;;  %v2477_v5 = vld [vmem:[%s4613_s1 + $0x268] sm:$0xff] }
  0x3c   :  { %435 = vmatpush.msrb.mxu3 %v2439_v7  ;;  %775 = vmatpush.msrb.mxu2 %v2541_v29  ;;  %v2531_v7 = vld [vmem:[%s4613_s1 + $0x318] sm:$0xff]  ;;  %v2528_v29 = vld [vmem:[%s4613_s1 + $0x300] sm:$0xff] }
  0x3d   :  { %208 = vmatpush.msrb.mxu0 %v2950_v37  ;;  %v3200_v37 = vld [vmem:[%s4612_s0 + $0xb0] sm:$0xff] }
  0x3e   :  { %106 = vmatmul.f32.gmra.mxu0 %v3099_v8  ;;  %118 = vmatmul.f32.gmra.mxu3 %v3104_v10 }
  0x3f   :  { %209 = vmatpush.msrb.mxu0 %v2965_v40  ;;  %436 = vmatpush.msrb.mxu3 %v2438_v11  ;;  %v2508_v40 = vld [vmem:[%s4613_s1 + $0x2e0] sm:$0xff] }
  0x40   :  { %776 = vmatpush.msrb.mxu2 %v2540_v32  ;;  %v2500_v11 = vld [vmem:[%s4613_s1 + $0x2a0] sm:$0xff] }
  0x41   :  { %210 = vmatpush.msrb.mxu0 %v2980_v43  ;;  %348 = vmatmul.f32.gmra.mxu2 %v285_v13  ;;  %v2370_v43 = vld [vmem:[%s4612_s0 + $0x2f0] sm:$0xff]  ;;  %v2476_v13 = vld [vmem:[%s4613_s1 + $0x260] sm:$0xff] }
  0x42   :  { %437 = vmatpush.msrb.mxu3 %v2437_v16  ;;  %777 = vmatpush.msrb.mxu2 %v2539_v38  ;;  %v3335_v16 = vld [vmem:[%s4612_s0 + $0x11] sm:$0xff]  ;;  %v3381_v32 = vld [vmem:[%s4612_s0 + $0x2a0] sm:$0xff] }
  0x43   :  { %211 = vmatpush.msrb.mxu0 %v3008_v49  ;;  %234 = vmatmul.f32.gmra.mxu1 %v2367_v14  ;;  %v2536_v49 = vld [vmem:[%s4613_s1 + $0x340] sm:$0xff]  ;;  %v3330_v14 = vld [vmem:[%s4612_s0 + $0x290] sm:$0xff] }
  0x44   :  { %438 = vmatpush.msrb.mxu3 %v2436_v22  ;;  %v2397_v22 = vld [vmem:[%s4612_s0 + $0x291] sm:$0xff]  ;;  %v2496_v38 = vld [vmem:[%s4613_s1 + $0x280] sm:$0xff] }
  0x45   :  { %212 = vmatpush.msrb.mxu0 %v3021_v52  ;;  %v2432_v52 = vld [vmem:[%s4613_s1 + $0x180] sm:$0xff] }
  0x46   :  { %121 = vmatmul.f32.gmra.mxu3 %v2352_v17  ;;  %213 = vmatmul.f32.vlgmr.msrb.gmra.mxu0 %v2360_v19  ;;  %v2475_v17 = vld [vmem:[%s4613_s1 + $0x258] sm:$0xff]  ;;  %v2530_v19 = vld [vmem:[%s4613_s1 + $0x310] sm:$0xff] }
  0x47   :  { %311 = vmatpush.msra.mxu0 %v2776_v2  ;;  %v3154_v2 = vld [vmem:[%s4612_s0 + $0xa0] sm:$0xff] }
  0x49   :  { %312 = vmatpush.msra.mxu0 %v2781_v3  ;;  %351 = vmatmul.f32.gmra.mxu2 %v2392_v20  ;;  %v2393_v3 = vld [vmem:[%s4612_s0 + $0x251] sm:$0xff] }
  0x4a   :  { %v2499_v20 = vld [vmem:[%s4613_s1 + $0x298] sm:$0xff] }
  0x4b   :  { %313 = vmatpush.msra.mxu0 %v2795_v6  ;;  %237 = vmatmul.f32.gmra.mxu1 %v2368_v23  ;;  %v2435_v6 = vld [vmem:[%s4613_s1 + $0x198] sm:$0xff]  ;;  %v2474_v23 = vld [vmem:[%s4613_s1 + $0x250] sm:$0xff] }
  0x4c   :  { %439 = vmatpush.msrb.mxu3 %v2435_v6  ;;  %v2498_v6 = vld [vmem:[%s4613_s1 + $0x290] sm:$0xff] }
  0x4d   :  { %314 = vmatpush.msra.mxu0 %v2810_v9  ;;  %v2511_v9 = vld [vmem:[%s4613_s1 + $0x2f8] sm:$0xff] }
  0x4e   :  { %124 = vmatmul.f32.gmra.mxu3 %v3149_v26  ;;  %216 = vmatmul.f32.gmra.mxu0 %v3154_v2 }
  0x4f   :  { %315 = vmatpush.msra.mxu0 %v2825_v12  ;;  %657 = vmatpush.msrb.mxu1 %v2511_v9  ;;  %v2510_v12 = vld [vmem:[%s4613_s1 + $0x2f0] sm:$0xff]  ;;  %v2473_v9 = vld [vmem:[%s4613_s1 + $0x248] sm:$0xff] }
  0x50   :  { %440 = vmatpush.msrb.mxu3 %v2434_v34  ;;  %v3386_v34 = vld [vmem:[%s4612_s0 + $0x21] sm:$0xff] }
  0x51   :  { %316 = vmatpush.msra.mxu0 %v2840_v15  ;;  %354 = vmatmul.f32.gmra.mxu2 %v2393_v3  ;;  %v3195_v15 = vld [vmem:[%s4612_s0 + $0x260] sm:$0xff]  ;;  %v2529_v3 = vld [vmem:[%s4613_s1 + $0x308] sm:$0xff] }
  0x52   :  { %658 = vmatpush.msrb.mxu1 %v2510_v12  ;;  %441 = vmatpush.msrb.mxu3 %v2433_v44  ;;  %v2472_v12 = vld [vmem:[%s4613_s1 + $0x240] sm:$0xff]  ;;  %v3417_v44 = vld [vmem:[%s4612_s0 + $0x2b0] sm:$0xff] }
  0x53   :  { %317 = vmatpush.msra.mxu0 %v2855_v18  ;;  %240 = vmatmul.f32.gmra.mxu1 %v2369_v31  ;;  %v2394_v18 = vld [vmem:[%s4612_s0 + $0x261] sm:$0xff] }
  0x54   :  { %659 = vmatpush.msrb.mxu1 %v2509_v35  ;;  %442 = vmatpush.msrb.mxu3 %v2432_v52  ;;  %v2497_v31 = vld [vmem:[%s4613_s1 + $0x288] sm:$0xff]  ;;  %v2471_v35 = vld [vmem:[%s4613_s1 + $0x238] sm:$0xff] }
  0x55   :  { %318 = vmatpush.msra.mxu0 %v2870_v21  ;;  %v2538_v21 = vld [vmem:[%s4613_s1 + $0x350] sm:$0xff]  ;;  %v2465_v52 = vld [vmem:[%s4613_s1 + $0x208] sm:$0xff] }
  0x56   :  { %127 = vmatmul.f32.gmra.mxu3 %v3195_v15  ;;  %219 = vmatmul.f32.gmra.mxu0 %v3200_v37 }
  0x57   :  { %319 = vmatpush.msra.mxu0 %v2885_v24  ;;  %660 = vmatpush.msrb.mxu1 %v2508_v40  ;;  %v2537_v24 = vld [vmem:[%s4613_s1 + $0x348] sm:$0xff]  ;;  %v2470_v40 = vld [vmem:[%s4613_s1 + $0x230] sm:$0xff] }
  0x58   :  { %778 = vmatpush.msrb.mxu2 %v2538_v21  ;;  %889 = vmatpush.msra.mxu3 %v2575_v0  ;;  %v2573_v21 = vld [vmem:[%s4613_s1 + $0x3e8] sm:$0xff]  ;;  %v2417_v0 = vld [vmem:[%s4612_s0 + $0x130] sm:$0xff] }
  0x59   :  { %320 = vmatpush.msra.mxu0 %v2900_v27  ;;  %357 = vmatmul.f32.gmra.mxu2 %v2394_v18  ;;  %v3238_v27 = vld [vmem:[%s4612_s0 + $0x270] sm:$0xff]  ;;  %v2398_v18 = vld [vmem:[%s4612_s0 + $0x2a1] sm:$0xff] }
  0x5a   :  { %661 = vmatpush.msrb.mxu1 %v2507_v41  ;;  %779 = vmatpush.msrb.mxu2 %v2537_v24  ;;  %v2374_v41 = vld [vmem:[%s4612_s0 + $0x330] sm:$0xff]  ;;  %v2468_v24 = vld [vmem:[%s4613_s1 + $0x220] sm:$0xff] }
  0x5b   :  { %321 = vmatpush.msra.mxu0 %v2915_v30  ;;  %243 = vmatmul.f32.gmra.mxu1 %v2370_v43  ;;  %v2505_v30 = vld [vmem:[%s4613_s1 + $0x2c8] sm:$0xff] }
  0x5c   :  { %662 = vmatpush.msrb.mxu1 %v2506_v45  ;;  %780 = vmatpush.msrb.mxu2 %v2536_v49  ;;  %v2469_v43 = vld [vmem:[%s4613_s1 + $0x228] sm:$0xff]  ;;  %v3422_v45 = vld [vmem:[%s4612_s0 + $0x31] sm:$0xff] }
  0x5d   :  { %322 = vmatpush.msra.mxu0 %v2930_v33  ;;  %v2535_v33 = vld [vmem:[%s4613_s1 + $0x338] sm:$0xff]  ;;  %890 = vmatpush.msra.mxu3 %v2574_v25  ;;  %v2420_v25 = vld [vmem:[%s4612_s0 + $0x160] sm:$0xff] }
  0x5e   :  { %130 = vmatmul.f32.gmra.mxu3 %v3238_v27  ;;  %222 = vmatmul.f32.gmra.mxu0 %v3243_v47  ;;  %v2467_v49 = vld [vmem:[%s4613_s1 + $0x218] sm:$0xff] }
  0x5f   :  { %323 = vmatpush.msra.mxu0 %v2945_v36  ;;  %663 = vmatpush.msrb.mxu1 %v2505_v30  ;;  %v2534_v36 = vld [vmem:[%s4613_s1 + $0x330] sm:$0xff] }
  0x60   :  { %781 = vmatpush.msrb.mxu2 %v2535_v33  ;;  %891 = vmatpush.msra.mxu3 %v2573_v21  ;;  %v2399_v30 = vld [vmem:[%s4612_s0 + $0x2b1] sm:$0xff]  ;;  %v2572_v33 = vld [vmem:[%s4613_s1 + $0x3e0] sm:$0xff] }
  0x61   :  { %324 = vmatpush.msra.mxu0 %v2960_v39  ;;  %360 = vmatmul.f32.gmra.mxu2 %v2395_v50  ;;  %v278_v39 = vld [vmem:[%s4612_s0 + $0x1] sm:$0xff]  ;;  %v2466_v50 = vld [vmem:[%s4613_s1 + $0x210] sm:$0xff] }
  0x62   :  { %664 = vmatpush.msrb.mxu1 %v2504_v51  ;;  %782 = vmatpush.msrb.mxu2 %v2534_v36  ;;  %v2375_v51 = vld [vmem:[%s4612_s0 + $0x340] sm:$0xff] }
  0x63   :  { %325 = vmatpush.msra.mxu0 %v2975_v42  ;;  %246 = vmatmul.f32.gmra.mxu1 %v2371_v53  ;;  %v2533_v42 = vld [vmem:[%s4613_s1 + $0x328] sm:$0xff]  ;;  %v2464_v53 = vld [vmem:[%s4613_s1 + $0x200] sm:$0xff] }
  0x64   :  { %665 = vmatpush.msrb.mxu1 %v2503_v54  ;;  %783 = vmatpush.msrb.mxu2 %v2533_v42  ;;  %v2416_v36 = vld [vmem:[%s4612_s0 + $0x120] sm:$0xff]  ;;  %v3453_v54 = vld [vmem:[%s4612_s0 + $0x1b0] sm:$0xff]  ;;  %v2571_v42 = vld [vmem:[%s4613_s1 + $0x3d8] sm:$0xff] }
  0x65   :  { %326 = vmatpush.msra.mxu0 %v3003_v48  ;;  %v2532_v48 = vld [vmem:[%s4613_s1 + $0x320] sm:$0xff]  ;;  %892 = vmatpush.msra.mxu3 %v2572_v33 }
  0x66   :  { %133 = vmatmul.f32.gmra.mxu3 %v3281_v57  ;;  %327 = vmatmul.f32.vlgmr.msra.gmra.mxu0 %v278_v39  ;;  %v2607_v39 = vld [vmem:[%s4613_s1 + $0x478] sm:$0xff] }
  0x67   :  { %543 = vmatpush.msrb.mxu0 %v2479_v58  ;;  %666 = vmatpush.msrb.mxu1 %v2502_v59  ;;  %v2606_v58 = vld [vmem:[%s4613_s1 + $0x470] sm:$0xff]  ;;  %v2480_v59 = vld [vmem:[%s4612_s0 + $0x121] sm:$0xff] }
  0x68   :  { %784 = vmatpush.msrb.mxu2 %v2532_v48  ;;  %893 = vmatpush.msra.mxu3 %v2571_v42  ;;  %v3481_v48 = vld [vmem:[%s4612_s0 + $0x1c0] sm:$0xff] }
  0x69   :  { %363 = vmatmul.f32.gmra.mxu2 %v2396_v60  ;;  %544 = vmatpush.msrb.mxu0 %v2478_v61  ;;  %v2605_v60 = vld [vmem:[%s4613_s1 + $0x468] sm:$0xff]  ;;  %v2604_v61 = vld [vmem:[%s4613_s1 + $0x460] sm:$0xff] }
  0x6a   :  { %667 = vmatpush.msrb.mxu1 %v2501_v1  ;;  %785 = vmatpush.msrb.mxu2 %v2531_v7  ;;  %v2603_v1 = vld [vmem:[%s4613_s1 + $0x458] sm:$0xff]  ;;  %v3500_v7 = vld [vmem:[%s4612_s0 + $0x1d0] sm:$0xff] }
  0x6b   :  { %249 = vmatmul.f32.gmra.mxu1 %v2372_v4  ;;  %545 = vmatpush.msrb.mxu0 %v2477_v5  ;;  %v2481_v4 = vld [vmem:[%s4612_s0 + $0x131] sm:$0xff]  ;;  %v2418_v5 = vld [vmem:[%s4612_s0 + $0x140] sm:$0xff] }
  0x6c   :  { %668 = vmatpush.msrb.mxu1 %v2500_v11  ;;  %786 = vmatpush.msrb.mxu2 %v2530_v19  ;;  %v2569_v11 = vld [vmem:[%s4613_s1 + $0x3c8] sm:$0xff]  ;;  %v3519_v19 = vld [vmem:[%s4612_s0 + $0x1e0] sm:$0xff] }
  0x6d   :  { %546 = vmatpush.msrb.mxu0 %v2476_v13  ;;  %v2482_v13 = vld [vmem:[%s4612_s0 + $0x141] sm:$0xff] }
  0x6e   :  { %136 = vmatmul.f32.gmra.mxu3 %v3330_v14  ;;  %330 = vmatmul.f32.gmra.mxu0 %v3335_v16 }
  0x6f   :  { %547 = vmatpush.msrb.mxu0 %v2475_v17  ;;  %669 = vmatpush.msrb.mxu1 %v2499_v20  ;;  %v2419_v17 = vld [vmem:[%s4612_s0 + $0x150] sm:$0xff]  ;;  %v2568_v20 = vld [vmem:[%s4613_s1 + $0x3c0] sm:$0xff] }
  0x70   :  { %787 = vmatpush.msrb.mxu2 %v2529_v3  ;;  %v3540_v3 = vld [vmem:[%s4612_s0 + $0x1f0] sm:$0xff] }
  0x71   :  { %366 = vmatmul.f32.gmra.mxu2 %v2397_v22  ;;  %548 = vmatpush.msrb.mxu0 %v2474_v23  ;;  %v2483_v22 = vld [vmem:[%s4612_s0 + $0x151] sm:$0xff] }
  0x72   :  { %670 = vmatpush.msrb.mxu1 %v2498_v6  ;;  %788 = vmatpush.msrb.mxu2 %v2528_v29  ;;  %v3545_v6 = vld [vmem:[%s4614_s2] ss:$0 sm:$0xff]  ;;  %v2484_v29 = vld [vmem:[%s4612_s0 + $0x161] sm:$0xff] }
  0x73   :  { %252 = vmatmul.f32.gmra.mxu1 %v2373_v28  ;;  %549 = vmatpush.msrb.mxu0 %v2473_v9  ;;  %v2600_v28 = vld [vmem:[%s4613_s1 + $0x440] sm:$0xff] }
  0x74   :  { %671 = vmatpush.msrb.mxu1 %v2497_v31 }
  0x75   :  { %550 = vmatpush.msrb.mxu0 %v2472_v12 }
  0x76   :  { %139 = vmatmul.f32.gmra.mxu3 %v3381_v32  ;;  %333 = vmatmul.f32.gmra.mxu0 %v3386_v34 }
  0x77   :  { %551 = vmatpush.msrb.mxu0 %v2471_v35  ;;  %672 = vmatpush.msrb.mxu1 %v2496_v38  ;;  %v2421_v38 = vld [vmem:[%s4612_s0 + $0x170] sm:$0xff] }
  0x79   :  { %369 = vmatmul.f32.gmra.mxu2 %v2398_v18  ;;  %552 = vmatpush.msrb.mxu0 %v2470_v40  ;;  %v3567_v18 = vld [vmem:[%s4612_s0 + $0x200] sm:$0xff] }
  0x7b   :  { %255 = vmatmul.f32.gmra.mxu1 %v2374_v41  ;;  %553 = vmatpush.msrb.mxu0 %v2469_v43  ;;  %v2599_v43 = vld [vmem:[%s4613_s1 + $0x438] sm:$0xff] }
  0x7d   :  { %554 = vmatpush.msrb.mxu0 %v2468_v24 }
  0x7e   :  { %142 = vmatmul.f32.gmra.mxu3 %v3417_v44  ;;  %336 = vmatmul.f32.gmra.mxu0 %v3422_v45 }
  0x7f   :  { %555 = vmatpush.msrb.mxu0 %v2467_v49  ;;  %v2485_v49 = vld [vmem:[%s4612_s0 + $0x171] sm:$0xff] }
  0x81   :  { %372 = vmatmul.f32.gmra.mxu2 %v2399_v30  ;;  %556 = vmatpush.msrb.mxu0 %v2466_v50 }
  0x83   :  { %258 = vmatmul.f32.gmra.mxu1 %v2375_v51  ;;  %557 = vmatpush.msrb.mxu0 %v2465_v52  ;;  %v2422_v51 = vld [vmem:[%s4612_s0 + $0x180] sm:$0xff]  ;;  %v3591_v52 = vld [vmem:[%s4612_s0 + $0x210] sm:$0xff] }
  0x85   :  { %558 = vmatpush.msrb.mxu0 %v2464_v53 }
  0x86   :  { %443 = vmatmul.f32.vlgmr.msrb.gmra.mxu3 %v2416_v36  ;;  %559 = vmatmul.f32.vlgmr.msrb.gmra.mxu0 %v3453_v54 }
  0x87   :  { %1003 = vmatpush.msra.mxu0 %v2607_v39 }
  0x89   :  { %789 = vmatmul.f32.vlgmr.msrb.gmra.mxu2 %v3037_v55  ;;  %1004 = vmatpush.msra.mxu0 %v2606_v58  ;;  %v2570_v55 = vld [vmem:[%s4613_s1 + $0x3d0] sm:$0xff] }
  0x8a   :  { %894 = vmatpush.msra.mxu3 %v2570_v55  ;;  %v2598_v58 = vld [vmem:[%s4613_s1 + $0x430] sm:$0xff] }
  0x8b   :  { %673 = vmatmul.f32.vlgmr.msrb.gmra.mxu1 %v2480_v59  ;;  %1005 = vmatpush.msra.mxu0 %v2605_v60  ;;  %v2486_v59 = vld [vmem:[%s4612_s0 + $0x181] sm:$0xff]  ;;  %v2423_v55 = vld [vmem:[%s4612_s0 + $0x190] sm:$0xff] }
  0x8c   :  { %895 = vmatpush.msra.mxu3 %v2569_v11 }
  0x8d   :  { %1006 = vmatpush.msra.mxu0 %v2604_v61 }
  0x8e   :  { %446 = vmatmul.f32.gmra.mxu3 %v2417_v0  ;;  %562 = vmatmul.f32.gmra.mxu0 %v3481_v48 }
  0x8f   :  { %1007 = vmatpush.msra.mxu0 %v2603_v1  ;;  %896 = vmatpush.msra.mxu3 %v2568_v20  ;;  %v3615_v1 = vld [vmem:[%s4612_s0 + $0x220] sm:$0xff]  ;;  %v2487_v20 = vld [vmem:[%s4612_s0 + $0x191] sm:$0xff] }
  0x91   :  { %792 = vmatmul.f32.gmra.mxu2 %v3068_v62  ;;  %v2602_v62 = vld [vmem:[%s4613_s1 + $0x450] sm:$0xff] }
  0x92   :  { %1008 = vmatpush.msra.mxu0 %v2602_v62  ;;  %v2564_v62 = vld [vmem:[%s4613_s1 + $0x3a0] sm:$0xff] }
  0x93   :  { %676 = vmatmul.f32.gmra.mxu1 %v2481_v4 }
  0x96   :  { %449 = vmatmul.f32.gmra.mxu3 %v2418_v5  ;;  %565 = vmatmul.f32.gmra.mxu0 %v3500_v7 }
  0x99   :  { %795 = vmatmul.f32.gmra.mxu2 %v3099_v8  ;;  %v2601_v8 = vld [vmem:[%s4613_s1 + $0x448] sm:$0xff] }
  0x9a   :  { %1009 = vmatpush.msra.mxu0 %v2601_v8 }
  0x9b   :  { %679 = vmatmul.f32.gmra.mxu1 %v2482_v13  ;;  %v2597_v13 = vld [vmem:[%s4613_s1 + $0x428] sm:$0xff] }
  0x9c   :  { %1010 = vmatpush.msra.mxu0 %v2600_v28  ;;  %v3641_v28 = vld [vmem:[%s4612_s0 + $0x3f0] sm:$0xff] }
  0x9e   :  { %452 = vmatmul.f32.gmra.mxu3 %v2419_v17  ;;  %568 = vmatmul.f32.gmra.mxu0 %v3519_v19 }
  0x9f   :  { %1011 = vmatpush.msra.mxu0 %v2599_v43 }
  0xa1   :  { %798 = vmatmul.f32.gmra.mxu2 %v2993_v46  ;;  %v2567_v46 = vld [vmem:[%s4613_s1 + $0x3b8] sm:$0xff]  ;;  %1012 = vmatpush.msra.mxu0 %v2598_v58 }
  0xa2   :  { %897 = vmatpush.msra.mxu3 %v2567_v46  ;;  %v2424_v46 = vld [vmem:[%s4612_s0 + $0x360] sm:$0xff] }
  0xa3   :  { %v3532_v23 = vpop.f32.mrf.mxu0  ;;  %682 = vmatmul.f32.gmra.mxu1 %v2483_v22  ;;  %1013 = vmatpush.msra.mxu0 %v2597_v13 }
  0xa6   :  { %455 = vmatmul.f32.gmra.mxu3 %v2420_v25  ;;  %571 = vmatmul.f32.gmra.mxu0 %v3540_v3 }
  0xa8   :  { %v226_v9 = vpop.f32.mrf.mxu1 }
  0xa9   :  { %v110_v31 = vpop.f32.mrf.mxu3  ;;  %801 = vmatmul.f32.gmra.mxu2 %v3042_v56  ;;  %v2566_v56 = vld [vmem:[%s4613_s1 + $0x3b0] sm:$0xff] }
  0xaa   :  { %v150_v12 = vadd.f32 %v3545_v6, %v110_v31  ;;  %898 = vmatpush.msra.mxu3 %v2566_v56 }
  0xab   :  { %v3559_v35 = vpop.f32.mrf.mxu0  ;;  %685 = vmatmul.f32.gmra.mxu1 %v2484_v29 }
  0xac   :  { %v266_v40 = vadd.f32 %v226_v9, %v150_v12  ;;  %v340_v21 = vpop.f32.mrf.mxu2  ;;  %v2563_v12 = vld [vmem:[%s4613_s1 + $0x398] sm:$0xff] }
  0xae   :  { %v3569_v41 = vadd.f32 %v340_v21, %v266_v40  ;;  %458 = vmatmul.f32.gmra.mxu3 %v2421_v38  ;;  %574 = vmatmul.f32.gmra.mxu0 %v3567_v18  ;;  %v2596_v38 = vld [vmem:[%s4613_s1 + $0x420] sm:$0xff] }
  0xaf   :  { %1014 = vmatpush.msra.mxu0 %v2596_v38  ;;  %v2488_v21 = vld [vmem:[%s4612_s0 + $0x361] sm:$0xff] }
  0xb0   :  { %v229_v24 = vpop.f32.mrf.mxu1 }
  0xb1   :  { %v113_v30 = vpop.f32.mrf.mxu3  ;;  %804 = vmatmul.f32.gmra.mxu2 %v3073_v63  ;;  %v2565_v63 = vld [vmem:[%s4613_s1 + $0x3a8] sm:$0xff] }
  0xb2   :  { %v151_v50 = vadd.f32 %v3545_v6, %v113_v30  ;;  %899 = vmatpush.msra.mxu3 %v2565_v63  ;;  %v3665_v30 = vld [vmem:[%s4612_s0 + $0x400] sm:$0xff] }
  0xb3   :  { %v3583_v33 = vpop.f32.mrf.mxu0  ;;  %688 = vmatmul.f32.gmra.mxu1 %v2485_v49  ;;  %v2425_v49 = vld [vmem:[%s4612_s0 + $0x370] sm:$0xff] }
  0xb4   :  { %v267_v53 = vadd.f32 %v229_v24, %v151_v50  ;;  %v343_v36 = vpop.f32.mrf.mxu2  ;;  %900 = vmatpush.msra.mxu3 %v2564_v62 }
  0xb6   :  { %v3593_v39 = vadd.f32 %v343_v36, %v267_v53  ;;  %461 = vmatmul.f32.gmra.mxu3 %v2422_v51  ;;  %577 = vmatmul.f32.gmra.mxu0 %v3591_v52  ;;  %v2595_v51 = vld [vmem:[%s4613_s1 + $0x418] sm:$0xff] }
  0xb7   :  { %901 = vmatpush.msra.mxu3 %v2563_v12  ;;  %1015 = vmatpush.msra.mxu0 %v2595_v51  ;;  %v2489_v36 = vld [vmem:[%s4612_s0 + $0x371] sm:$0xff]  ;;  %v1112_v12 = vld [vmem:[%s4617_s5 + $0x60] sm:$0xff] }
  0xb8   :  { %v232_v42 = vpop.f32.mrf.mxu1  ;;  %v3752_v51 = vld [vmem:[%s4612_s0 + $0x430] sm:$0xff] }
  0xb9   :  { %v116_v60 = vpop.f32.mrf.mxu3  ;;  %807 = vmatmul.f32.gmra.mxu2 %v3104_v10  ;;  %v2519_v10 = vld [vmem:[%s4612_s0 + $0x80] sm:$0xff] }
  0xba   :  { %v152_v61 = vadd.f32 %v3545_v6, %v116_v60  ;;  %v3689_v60 = vld [vmem:[%s4612_s0 + $0x410] sm:$0xff] }
  0xbb   :  { %v3607_v0 = vpop.f32.mrf.mxu0  ;;  %691 = vmatmul.f32.gmra.mxu1 %v2486_v59  ;;  %v2426_v59 = vld [vmem:[%s4612_s0 + $0x380] sm:$0xff] }
  0xbc   :  { %v268_v4 = vadd.f32 %v232_v42, %v152_v61  ;;  %v346_v5 = vpop.f32.mrf.mxu2 }
  0xbe   :  { %v3617_v11 = vadd.f32 %v346_v5, %v268_v4  ;;  %464 = vmatmul.f32.gmra.mxu3 %v2423_v55  ;;  %580 = vmatmul.f32.gmra.mxu0 %v3615_v1  ;;  %v2594_v55 = vld [vmem:[%s4613_s1 + $0x410] sm:$0xff]  ;;  %v2490_v5 = vld [vmem:[%s4612_s0 + $0x381] sm:$0xff] }
  0xbf   :  { %1016 = vmatpush.msra.mxu0 %v2594_v55  ;;  %v1108_v55 = vld [vmem:[%s4617_s5 + $0x40] sm:$0xff] }
  0xc0   :  { %v235_v17 = vpop.f32.mrf.mxu1 }
  0xc1   :  { %v119_v8 = vpop.f32.mrf.mxu3  ;;  %810 = vmatmul.f32.gmra.mxu2 %v2519_v10  ;;  %v1115_v10 = vld [vmem:[%s4617_s5 + $0x78] sm:$0xff] }
  0xc2   :  { %v153_v22 = vadd.f32 %v3545_v6, %v119_v8  ;;  %1120 = vmatpush.msra.mxu1 %v1115_v10  ;;  %v2427_v8 = vld [vmem:[%s4612_s0 + $0x390] sm:$0xff] }
  0xc3   :  { %v3633_v25 = vpop.f32.mrf.mxu0  ;;  %694 = vmatmul.f32.gmra.mxu1 %v2487_v20  ;;  %v2429_v10 = vld [vmem:[%s4612_s0 + $0x3b0] sm:$0xff] }
  0xc4   :  { %v269_v9 = vadd.f32 %v235_v17, %v153_v22  ;;  %v349_v29 = vpop.f32.mrf.mxu2  ;;  %v1114_v17 = vld [vmem:[%s4617_s5 + $0x70] sm:$0xff]  ;;  %v3719_v22 = vld [vmem:[%s4612_s0 + $0x420] sm:$0xff] }
  0xc5   :  { %1121 = vmatpush.msra.mxu1 %v1114_v17  ;;  %v1106_v17 = vld [vmem:[%s4617_s5 + $0x30] sm:$0xff] }
  0xc6   :  { %v3643_v31 = vadd.f32 %v349_v29, %v269_v9  ;;  %467 = vmatmul.f32.gmra.mxu3 %v2424_v46  ;;  %583 = vmatmul.f32.gmra.mxu0 %v3641_v28  ;;  %v1113_v46 = vld [vmem:[%s4617_s5 + $0x68] sm:$0xff]  ;;  %v2560_v9 = vld [vmem:[%s4613_s1 + $0x380] sm:$0xff] }
  0xc7   :  { %v2593_v29 = vld [vmem:[%s4613_s1 + $0x408] sm:$0xff]  ;;  %1122 = vmatpush.msra.mxu1 %v1113_v46  ;;  %v2493_v46 = vld [vmem:[%s4612_s0 + $0x3b1] sm:$0xff] }
  0xc8   :  { %v238_v40 = vpop.f32.mrf.mxu1  ;;  %1017 = vmatpush.msra.mxu0 %v2593_v29 }
  0xc9   :  { %v122_v56 = vpop.f32.mrf.mxu3  ;;  %813 = vmatmul.f32.gmra.mxu2 %v3149_v26  ;;  %v2562_v26 = vld [vmem:[%s4613_s1 + $0x390] sm:$0xff]  ;;  %1123 = vmatpush.msra.mxu1 %v1112_v12  ;;  %v1105_v12 = vld [vmem:[%s4617_s5 + $0x28] sm:$0xff] }
  0xca   :  { %v154_v43 = vadd.f32 %v3545_v6, %v122_v56  ;;  %902 = vmatpush.msra.mxu3 %v2562_v26  ;;  %v1111_v56 = vld [vmem:[%s4617_s5 + $0x58] sm:$0xff]  ;;  %v2428_v26 = vld [vmem:[%s4612_s0 + $0x3a0] sm:$0xff] }
  0xcb   :  { %v3657_v24 = vpop.f32.mrf.mxu0  ;;  %697 = vmatmul.f32.gmra.mxu1 %v2488_v21 }
  0xcc   :  { %v3667_v50 = vadd.f32 %v238_v40, %v154_v43  ;;  %v2491_v40 = vld [vmem:[%s4612_s0 + $0x391] sm:$0xff]  ;;  %1124 = vmatpush.msra.mxu1 %v1111_v56 }
  0xcd   :  { %v3809_v56 = vld [vmem:[%s4612_s0 + $0x450] sm:$0xff] }
  0xce   :  { %470 = vmatmul.f32.gmra.mxu3 %v2425_v49  ;;  %586 = vmatmul.f32.gmra.mxu0 %v3665_v30 }
  0xd0   :  { %v241_v53 = vpop.f32.mrf.mxu1 }
  0xd1   :  { %v125_v63 = vpop.f32.mrf.mxu3  ;;  %816 = vmatmul.f32.gmra.mxu2 %v3195_v15  ;;  %v2561_v15 = vld [vmem:[%s4613_s1 + $0x388] sm:$0xff] }
  0xd2   :  { %v155_v58 = vadd.f32 %v3545_v6, %v125_v63  ;;  %903 = vmatpush.msra.mxu3 %v2561_v15  ;;  %v2592_v63 = vld [vmem:[%s4613_s1 + $0x400] sm:$0xff] }
  0xd3   :  { %v3681_v42 = vpop.f32.mrf.mxu0  ;;  %700 = vmatmul.f32.gmra.mxu1 %v2489_v36  ;;  %v1109_v36 = vld [vmem:[%s4617_s5 + $0x48] sm:$0xff]  ;;  %1018 = vmatpush.msra.mxu0 %v2592_v63  ;;  %v1287_v63 = vld [vmem:[#allocation3 + $0x70] sm:$0xff] }
  0xd4   :  { %v3691_v61 = vadd.f32 %v241_v53, %v155_v58  ;;  %904 = vmatpush.msra.mxu3 %v2560_v9  ;;  %v1110_v53 = vld [vmem:[%s4617_s5 + $0x50] sm:$0xff]  ;;  %v1288_v9 = vld [vmem:[#allocation3 + $0x78] sm:$0xff] }
  0xd5   :  { %1125 = vmatpush.msra.mxu1 %v1110_v53  ;;  %1289 = vmatpush.msra.mxu2 %v1288_v9  ;;  %v2495_v9 = vld [vmem:[%s4612_s0 + $0x3d1] sm:$0xff] }
  0xd6   :  { %473 = vmatmul.f32.gmra.mxu3 %v2426_v59  ;;  %589 = vmatmul.f32.gmra.mxu0 %v3689_v60  ;;  %v2492_v59 = vld [vmem:[%s4612_s0 + $0x3a1] sm:$0xff] }
  0xd7   :  { %1126 = vmatpush.msra.mxu1 %v1109_v36  ;;  %v2494_v36 = vld [vmem:[%s4612_s0 + $0x3c1] sm:$0xff]  ;;  %1290 = vmatpush.msra.mxu2 %v1287_v63 }
  0xd8   :  { %v244_v4 = vpop.f32.mrf.mxu1 }
  0xd9   :  { %v128_v62 = vpop.f32.mrf.mxu3  ;;  %819 = vmatmul.f32.gmra.mxu2 %v3238_v27  ;;  %1127 = vmatpush.msra.mxu1 %v1108_v55 }
  0xda   :  { %v156_v13 = vadd.f32 %v3545_v6, %v128_v62  ;;  %v3782_v62 = vld [vmem:[%s4612_s0 + $0x440] sm:$0xff] }
  0xdb   :  { %v3711_v20 = vpop.f32.mrf.mxu0  ;;  %703 = vmatmul.f32.gmra.mxu1 %v2490_v5 }
  0xdc   :  { %v3721_v27 = vadd.f32 %v244_v4, %v156_v13  ;;  %v1107_v13 = vld [vmem:[%s4617_s5 + $0x38] sm:$0xff] }
  0xdd   :  { %1128 = vmatpush.msra.mxu1 %v1107_v13  ;;  %v1101_v13 = vld [vmem:[%s4617_s5 + $0x8] sm:$0xff] }
  0xde   :  { %476 = vmatmul.f32.gmra.mxu3 %v2427_v8  ;;  %592 = vmatmul.f32.gmra.mxu0 %v3719_v22 }
  0xdf   :  { %1129 = vmatpush.msra.mxu1 %v1106_v17  ;;  %v2527_v17 = vld [vmem:[%s4612_s0 + $0x2c0] sm:$0xff] }
  0xe0   :  { %v247_v38 = vpop.f32.mrf.mxu1 }
  0xe1   :  { %v131_v21 = vpop.f32.mrf.mxu3  ;;  %822 = vmatmul.f32.gmra.mxu2 %v3281_v57  ;;  %1130 = vmatpush.msra.mxu1 %v1105_v12 }
  0xe2   :  { %v157_v43 = vadd.f32 %v3545_v6, %v131_v21  ;;  %v2430_v21 = vld [vmem:[%s4612_s0 + $0x3c0] sm:$0xff] }
  0xe3   :  { %v3744_v49 = vpop.f32.mrf.mxu0  ;;  %706 = vmatmul.f32.gmra.mxu1 %v2491_v40 }
  0xe4   :  { %v3754_v57 = vadd.f32 %v247_v38, %v157_v43  ;;  %v1104_v43 = vld [vmem:[%s4617_s5 + $0x20] sm:$0xff] }
  0xe5   :  { %1131 = vmatpush.msra.mxu1 %v1104_v43  ;;  %v146_v43 = vadd.f32 %v3545_v6, %v3532_v23  ;;  %v147_v23 = vadd.f32 %v3545_v6, %v3559_v35  ;;  %v148_v35 = vadd.f32 %v3545_v6, %v3583_v33  ;;  %v2547_v33 = vld [vmem:[%s4612_s0 + $0xd0] sm:$0xff] }
  0xe6   :  { %479 = vmatmul.f32.gmra.mxu3 %v2428_v26  ;;  %595 = vmatmul.f32.gmra.mxu0 %v3752_v51  ;;  %v1103_v26 = vld [vmem:[%s4617_s5 + $0x18] sm:$0xff] }
  0xe7   :  { %1132 = vmatpush.msra.mxu1 %v1103_v26 }
  0xe8   :  { %v250_v58 = vpop.f32.mrf.mxu1 }
  0xe9   :  { %v134_v15 = vpop.f32.mrf.mxu3  ;;  %825 = vmatmul.f32.gmra.mxu2 %v3330_v14 }
  0xea   :  { %v158_v4 = vadd.f32 %v3545_v6, %v134_v15 }
  0xeb   :  { %v3774_v5 = vpop.f32.mrf.mxu0  ;;  %709 = vmatmul.f32.gmra.mxu1 %v2492_v59  ;;  %v1102_v59 = vld [vmem:[%s4617_s5 + $0x10] sm:$0xff] }
  0xec   :  { %v3784_v14 = vadd.f32 %v250_v58, %v158_v4  ;;  %v2431_v4 = vld [vmem:[%s4612_s0 + $0x3d0] sm:$0xff]  ;;  %1133 = vmatpush.msra.mxu1 %v1102_v59 }
  0xee   :  { %482 = vmatmul.f32.gmra.mxu3 %v2429_v10  ;;  %598 = vmatmul.f32.gmra.mxu0 %v3782_v62  ;;  %v3836_v10 = vld [vmem:[%s4612_s0 + $0x460] sm:$0xff] }
  0xef   :  { %1134 = vmatpush.msra.mxu1 %v1101_v13 }
  0xf0   :  { %v253_v8 = vpop.f32.mrf.mxu1 }
  0xf1   :  { %v137_v29 = vpop.f32.mrf.mxu3  ;;  %828 = vmatmul.f32.gmra.mxu2 %v3381_v32 }
  0xf2   :  { %v159_v38 = vadd.f32 %v3545_v6, %v137_v29  ;;  %v1286_v29 = vld [vmem:[#allocation3 + $0x68] sm:$0xff] }
  0xf3   :  { %v3801_v40 = vpop.f32.mrf.mxu0  ;;  %712 = vmatmul.f32.gmra.mxu1 %v2493_v46  ;;  %1291 = vmatpush.msra.mxu2 %v1286_v29 }
  0xf4   :  { %v3811_v32 = vadd.f32 %v253_v8, %v159_v38  ;;  %v1100_v8 = vld [vmem:[%s4617_s5] sm:$0xff] }
  0xf5   :  { %1135 = vmatpush.msra.mxu1 %v1100_v8 }
  0xf6   :  { %485 = vmatmul.f32.gmra.mxu3 %v2430_v21  ;;  %601 = vmatmul.f32.gmra.mxu0 %v3809_v56 }
  0xf8   :  { %v256_v53 = vpop.f32.mrf.mxu1 }
  0xf9   :  { %v140_v58 = vpop.f32.mrf.mxu3  ;;  %831 = vmatmul.f32.gmra.mxu2 %v3417_v44 }
  0xfa   :  { %v160_v15 = vadd.f32 %v3545_v6, %v140_v58  ;;  %v1285_v58 = vld [vmem:[#allocation3 + $0x60] sm:$0xff] }
  0xfb   :  { %v3828_v55 = vpop.f32.mrf.mxu0  ;;  %715 = vmatmul.f32.gmra.mxu1 %v2494_v36  ;;  %1292 = vmatpush.msra.mxu2 %v1285_v58 }
  0xfc   :  { %v3838_v44 = vadd.f32 %v256_v53, %v160_v15  ;;  %v262_v53 = vadd.f32 %v3633_v25, %v146_v43  ;;  %v1282_v43 = vld [vmem:[#allocation3 + $0x48] sm:$0xff] }
  0xfe   :  { %488 = vmatmul.f32.gmra.mxu3 %v2431_v4  ;;  %604 = vmatmul.f32.gmra.mxu0 %v3836_v10  ;;  %v376_v36 = vadd.f32 %v3744_v49, %v262_v53  ;;  %v1284_v49 = vld [vmem:[#allocation3 + $0x58] sm:$0xff] }
  0xff   :  { %1293 = vmatpush.msra.mxu2 %v1284_v49 }
 0x100   :  { %v259_v46 = vpop.f32.mrf.mxu1 }
 0x101   :  { %v143_v12 = vpop.f32.mrf.mxu3  ;;  %834 = vmatmul.f32.gmra.mxu2 %v2527_v17 }
 0x102   :  { %v161_v38 = vadd.f32 %v3545_v6, %v143_v12 }
 0x103   :  { %718 = vmatmul.f32.gmra.mxu1 %v2495_v9  ;;  %v560_v21 = vpop.f32.mrf.mxu0  ;;  %v3886_v9 = vpop.f32.mrf.mxu2 }
 0x104   :  { %v3856_v26 = vadd.f32 %v259_v46, %v161_v38 }
 0x106   :  { %905 = vmatmul.f32.vlgmr.msra.gmra.mxu3 %v3154_v2  ;;  %1019 = vmatmul.f32.vlgmr.msra.gmra.mxu0 %v3335_v16  ;;  %v263_v2 = vadd.f32 %v3657_v24, %v147_v23  ;;  %v2549_v23 = vld [vmem:[%s4612_s0 + $0xf0] sm:$0xff] }
 0x108   :  { %v3862_v63 = vpop.f32.mrf.mxu1  ;;  %v377_v16 = vadd.f32 %v3774_v5, %v263_v2  ;;  %v1283_v5 = vld [vmem:[#allocation3 + $0x50] sm:$0xff] }
 0x109   :  { %v444_v59 = vpop.f32.mrf.mxu3  ;;  %1294 = vmatpush.msra.mxu2 %v1283_v5 }
 0x10a   :  { %v492_v15 = vadd.f32 %v444_v59, %v376_v36  ;;  %v1281_v59 = vld [vmem:[#allocation3 + $0x40] sm:$0xff] }
 0x10b   :  { %v563_v4 = vpop.f32.mrf.mxu0  ;;  %1136 = vmatmul.f32.vlgmr.msra.gmra.mxu1 %v3453_v54  ;;  %1295 = vmatpush.msra.mxu2 %v1282_v43  ;;  %v3903_v58 = vpop.f32.mrf.mxu2 }
 0x10c   :  { %v3867_v13 = vadd.f32 %v560_v21, %v492_v15 }
 0x10d   :  { %1296 = vmatpush.msra.mxu2 %v1281_v59  ;;  %v1277_v59 = vld [vmem:[#allocation3 + $0x20] sm:$0xff] }
 0x10e   :  { %908 = vmatmul.f32.gmra.mxu3 %v3200_v37  ;;  %1022 = vmatmul.f32.gmra.mxu0 %v3386_v34  ;;  %v264_v37 = vadd.f32 %v3681_v42, %v148_v35  ;;  %v2550_v35 = vld [vmem:[%s4612_s0 + $0x100] sm:$0xff] }
 0x110   :  { %v3873_v25 = vpop.f32.mrf.mxu1  ;;  %v378_v34 = vadd.f32 %v3801_v40, %v264_v37 }
 0x111   :  { %v447_v17 = vpop.f32.mrf.mxu3 }
 0x112   :  { %v493_v8 = vadd.f32 %v447_v17, %v377_v16 }
 0x113   :  { %v566_v54 = vpop.f32.mrf.mxu0  ;;  %1139 = vmatmul.f32.gmra.mxu1 %v3481_v48  ;;  %v3926_v49 = vpop.f32.mrf.mxu2 }
 0x114   :  { %v3878_v46 = vadd.f32 %v563_v4, %v493_v8 }
 0x116   :  { %911 = vmatmul.f32.gmra.mxu3 %v3243_v47  ;;  %1025 = vmatmul.f32.gmra.mxu0 %v3422_v45  ;;  %v2579_v47 = vld [vmem:[%s4612_s0 + $0x41] sm:$0xff]  ;;  %v149_v45 = vadd.f32 %v3545_v6, %v3607_v0  ;;  %v2580_v0 = vld [vmem:[%s4612_s0 + $0x51] sm:$0xff] }
 0x118   :  { %v3884_v24 = vpop.f32.mrf.mxu1  ;;  %v265_v40 = vadd.f32 %v3711_v20, %v149_v45 }
 0x119   :  { %v450_v29 = vpop.f32.mrf.mxu3 }
 0x11a   :  { %v494_v48 = vadd.f32 %v450_v29, %v378_v34  ;;  %v379_v38 = vadd.f32 %v3828_v55, %v265_v40 }
 0x11b   :  { %v569_v12 = vpop.f32.mrf.mxu0  ;;  %1142 = vmatmul.f32.gmra.mxu1 %v3500_v7  ;;  %v2548_v7 = vld [vmem:[%s4612_s0 + $0xe0] sm:$0xff]  ;;  %v3940_v5 = vpop.f32.mrf.mxu2 }
 0x11c   :  { %v3897_v42 = vadd.f32 %v566_v54, %v494_v48 }
 0x11e   :  { %914 = vmatmul.f32.gmra.mxu3 %v2547_v33  ;;  %1028 = vmatmul.f32.gmra.mxu0 %v2579_v47 }
 0x120   :  { %v3901_v21 = vpop.f32.mrf.mxu1 }
 0x121   :  { %v453_v53 = vpop.f32.mrf.mxu3 }
 0x122   :  { %v495_v36 = vadd.f32 %v453_v53, %v379_v38  ;;  %v1278_v38 = vld [vmem:[#allocation3 + $0x28] sm:$0xff] }
 0x123   :  { %v572_v6 = vpop.f32.mrf.mxu0  ;;  %1145 = vmatmul.f32.gmra.mxu1 %v3519_v19  ;;  %v2581_v19 = vld [vmem:[%s4612_s0 + $0x61] sm:$0xff]  ;;  %v3956_v43 = vpop.f32.mrf.mxu2 }
 0x124   :  { %v3912_v20 = vadd.f32 %v569_v12, %v495_v36  ;;  %v2551_v12 = vld [vmem:[%s4612_s0 + $0x110] sm:$0xff]  ;;  %v2552_v36 = vld [vmem:[%s4612_s0 + $0x2e0] sm:$0xff] }
 0x126   :  { %917 = vmatmul.f32.gmra.mxu3 %v2548_v7  ;;  %1031 = vmatmul.f32.gmra.mxu0 %v2580_v0  ;;  %v384_v0 = vadd.f32 %v3886_v9, %v3667_v50  ;;  %v2585_v50 = vld [vmem:[%s4612_s0 + $0x261] sm:$0xff] }
 0x127   :  { %v1400_v9 = vld [vmem:[#allocation3 + $0xe8] sm:$0xff] }
 0x128   :  { %v3914_v55 = vpop.f32.mrf.mxu1 }
 0x129   :  { %v456_v15 = vpop.f32.mrf.mxu3 }
 0x12a   :  { %v496_v4 = vadd.f32 %v456_v15, %v3569_v41  ;;  %v1280_v41 = vld [vmem:[#allocation3 + $0x38] sm:$0xff] }
 0x12b   :  { %v575_v2 = vpop.f32.mrf.mxu0  ;;  %1148 = vmatmul.f32.gmra.mxu1 %v3540_v3  ;;  %1297 = vmatpush.msra.mxu2 %v1280_v41  ;;  %v2582_v3 = vld [vmem:[%s4612_s0 + $0x71] sm:$0xff] }
 0x12c   :  { %v3924_v16 = vadd.f32 %v572_v6, %v496_v4  ;;  %v1402_v15 = vld [vmem:[#allocation3 + $0xf8] sm:$0xff] }
 0x12d   :  { %1403 = vmatpush.msrb.mxu3 %v1402_v15  ;;  %v1631_v15 = vld [vmem:[#allocation3 + $0x1f8] sm:$0xff] }
 0x12e   :  { %920 = vmatmul.f32.gmra.mxu3 %v2549_v23  ;;  %1034 = vmatmul.f32.gmra.mxu0 %v2581_v19  ;;  %v3976_v19 = vpop.f32.mrf.mxu2 }
 0x12f   :  { %1632 = vmatpush.msrb.mxu1 %v1631_v15  ;;  %v2588_v15 = vld [vmem:[%s4612_s0 + $0x291] sm:$0xff] }
 0x130   :  { %v3928_v17 = vpop.f32.mrf.mxu1 }
 0x131   :  { %v459_v8 = vpop.f32.mrf.mxu3 }
 0x132   :  { %v497_v54 = vadd.f32 %v459_v8, %v3593_v39  ;;  %v1279_v39 = vld [vmem:[#allocation3 + $0x30] sm:$0xff]  ;;  %v1399_v8 = vld [vmem:[#allocation3 + $0xe0] sm:$0xff] }
 0x133   :  { %v578_v37 = vpop.f32.mrf.mxu0  ;;  %1151 = vmatmul.f32.gmra.mxu1 %v3567_v18  ;;  %1298 = vmatpush.msra.mxu2 %v1279_v39  ;;  %v2583_v18 = vld [vmem:[%s4612_s0 + $0x81] sm:$0xff]  ;;  %v1398_v39 = vld [vmem:[#allocation3 + $0xd8] sm:$0xff] }
 0x134   :  { %v3938_v34 = vadd.f32 %v575_v2, %v497_v54  ;;  %v1401_v2 = vld [vmem:[#allocation3 + $0xf0] sm:$0xff]  ;;  %v385_v54 = vadd.f32 %v3903_v58, %v3691_v61  ;;  %v1514_v58 = vld [vmem:[#allocation3 + $0x168] sm:$0xff] }
 0x135   :  { %1299 = vmatpush.msra.mxu2 %v1278_v38  ;;  %1404 = vmatpush.msrb.mxu3 %v1401_v2  ;;  %v2586_v61 = vld [vmem:[%s4612_s0 + $0x271] sm:$0xff]  ;;  %v1396_v38 = vld [vmem:[#allocation3 + $0xc8] sm:$0xff] }
 0x136   :  { %923 = vmatmul.f32.gmra.mxu3 %v2550_v35  ;;  %1037 = vmatmul.f32.gmra.mxu0 %v2582_v3  ;;  %v1516_v3 = vld [vmem:[#allocation3 + $0x178] sm:$0xff] }
 0x137   :  { %1300 = vmatpush.msra.mxu2 %v1277_v59  ;;  %1405 = vmatpush.msrb.mxu3 %v1400_v9  ;;  %v1275_v59 = vld [vmem:[#allocation3 + $0x10] sm:$0xff]  ;;  %v1394_v2 = vld [vmem:[#allocation3 + $0xb8] sm:$0xff] }
 0x138   :  { %v3942_v29 = vpop.f32.mrf.mxu1  ;;  %1517 = vmatpush.msrb.mxu0 %v1516_v3  ;;  %v1630_v9 = vld [vmem:[#allocation3 + $0x1f0] sm:$0xff] }
 0x139   :  { %v462_v48 = vpop.f32.mrf.mxu3  ;;  %1406 = vmatpush.msrb.mxu3 %v1399_v8  ;;  %v2555_v8 = vld [vmem:[%s4612_s0 + $0x310] sm:$0xff]  ;;  %1633 = vmatpush.msrb.mxu1 %v1630_v9  ;;  %v1625_v9 = vld [vmem:[#allocation3 + $0x1c8] sm:$0xff] }
 0x13a   :  { %v498_v33 = vadd.f32 %v462_v48, %v3617_v11  ;;  %v1393_v3 = vld [vmem:[#allocation3 + $0xb0] sm:$0xff] }
 0x13b   :  { %v581_v47 = vpop.f32.mrf.mxu0  ;;  %1154 = vmatmul.f32.gmra.mxu1 %v3591_v52  ;;  %v2584_v52 = vld [vmem:[%s4612_s0 + $0x251] sm:$0xff]  ;;  %1407 = vmatpush.msrb.mxu3 %v1398_v39  ;;  %v1509_v39 = vld [vmem:[#allocation3 + $0x140] sm:$0xff] }
 0x13c   :  { %v3952_v45 = vadd.f32 %v578_v37, %v498_v33  ;;  %v1276_v37 = vld [vmem:[#allocation3 + $0x18] sm:$0xff] }
 0x13d   :  { %1301 = vmatpush.msra.mxu2 %v1276_v37  ;;  %v1629_v37 = vld [vmem:[#allocation3 + $0x1e8] sm:$0xff] }
 0x13e   :  { %926 = vmatmul.f32.gmra.mxu3 %v2551_v12  ;;  %1040 = vmatmul.f32.gmra.mxu0 %v2583_v18  ;;  %v1397_v12 = vld [vmem:[#allocation3 + $0xd0] sm:$0xff] }
 0x13f   :  { %1408 = vmatpush.msrb.mxu3 %v1397_v12  ;;  %1302 = vmatpush.msra.mxu2 %v1275_v59  ;;  %v1392_v12 = vld [vmem:[#allocation3 + $0xa8] sm:$0xff]  ;;  %v1507_v59 = vld [vmem:[#allocation3 + $0x130] sm:$0xff] }
 0x140   :  { %v3954_v40 = vpop.f32.mrf.mxu1  ;;  %1634 = vmatpush.msrb.mxu1 %v1629_v37 }
 0x141   :  { %v465_v11 = vpop.f32.mrf.mxu3  ;;  %1409 = vmatpush.msrb.mxu3 %v1396_v38  ;;  %v2719_v38 = vmov 0.0  }
 0x142   :  { %v499_v53 = vadd.f32 %v465_v11, %v3643_v31  ;;  %v4002_v11 = vpop.f32.mrf.mxu2  ;;  %1202 = vst [vmem:[#allocation2] sm:$0xff] %v2719_v38 }
 0x143   :  { %v3962_v7 = vpop.f32.mrf.mxu0  ;;  %1157 = vmatmul.f32.gmra.mxu1 %v3615_v1  ;;  %v2553_v1 = vld [vmem:[%s4612_s0 + $0x2f0] sm:$0xff]  ;;  %1211 = vst [vmem:[#allocation2] sm:$0x1] %v2719_v38 }
 0x144   :  { %v3968_v6 = vadd.f32 %v581_v47, %v499_v53  ;;  %v2554_v47 = vld [vmem:[%s4612_s0 + $0x300] sm:$0xff]  ;;  %1203 = vst [vmem:[#allocation2 + $0x8] sm:$0x3] %v2719_v38 }
 0x145   :  { %v1513_v53 = vld [vmem:[#allocation3 + $0x160] sm:$0xff]  ;;  %1204 = vst [vmem:[#allocation2 + $0xa0] sm:$0xff] %v2719_v38 }
 0x146   :  { %929 = vmatmul.f32.gmra.mxu3 %v2552_v36  ;;  %1043 = vmatmul.f32.gmra.mxu0 %v2584_v52  ;;  %v1395_v36 = vld [vmem:[#allocation3 + $0xc0] sm:$0xff]  ;;  %v386_v52 = vadd.f32 %v3926_v49, %v3721_v27  ;;  %1205 = vst [vmem:[#allocation2 + $0xa8] sm:$0x3] %v2719_v38 }
 0x147   :  { %1410 = vmatpush.msrb.mxu3 %v1395_v36  ;;  %v2587_v49 = vld [vmem:[%s4612_s0 + $0x281] sm:$0xff]  ;;  %v1627_v36 = vld [vmem:[#allocation3 + $0x1d8] sm:$0xff]  ;;  %1207 = vst [vmem:[#allocation2 + $0x90] sm:$0xff] %v2719_v38 }
 0x148   :  { %v3972_v31 = vpop.f32.mrf.mxu1  ;;  %1208 = vst [vmem:[#allocation2 + $0x98] sm:$0x3] %v2719_v38 }
 0x149   :  { %v468_v4 = vpop.f32.mrf.mxu3  ;;  %1411 = vmatpush.msrb.mxu3 %v1394_v2  ;;  %v1506_v2 = vld [vmem:[#allocation3 + $0x128] sm:$0xff]  ;;  %1209 = vst [vmem:[#allocation2 + $0x130] sm:$0xff] %v2719_v38 }
 0x14a   :  { %v3974_v23 = vadd.f32 %v468_v4, %v384_v0  ;;  %1210 = vst [vmem:[#allocation2 + $0x138] sm:$0x3] %v2719_v38 }
 0x14b   :  { %v3981_v41 = vpop.f32.mrf.mxu0  ;;  %1160 = vmatmul.f32.gmra.mxu1 %v3641_v28  ;;  %v1515_v28 = vld [vmem:[#allocation3 + $0x170] sm:$0xff]  ;;  %1412 = vmatpush.msrb.mxu3 %v1393_v3  ;;  %v1273_v3 = vld [vmem:[#allocation3] sm:$0xff]  ;;  %1212 = vst [vmem:[#allocation2 + $0x10] sm:$0x1] %v2719_v38 }
 0x14c   :  { %1518 = vmatpush.msrb.mxu0 %v1515_v28  ;;  %v4019_v28 = vpop.f32.mrf.mxu2  ;;  %1213 = vst [vmem:[#allocation2 + $0x20] sm:$0x1] %v2719_v38 }
 0x14d   :  { %1413 = vmatpush.msrb.mxu3 %v1392_v12  ;;  %v1624_v12 = vld [vmem:[#allocation3 + $0x1c0] sm:$0xff]  ;;  %1214 = vst [vmem:[#allocation2 + $0x30] sm:$0x1] %v2719_v38 }
 0x14e   :  { %932 = vmatmul.f32.gmra.mxu3 %v2553_v1  ;;  %1046 = vmatmul.f32.gmra.mxu0 %v2585_v50  ;;  %v1511_v50 = vld [vmem:[#allocation3 + $0x150] sm:$0xff]  ;;  %1215 = vst [vmem:[#allocation2 + $0x40] sm:$0x1] %v2719_v38 }
 0x14f   :  { %1519 = vmatpush.msrb.mxu0 %v1514_v58  ;;  %v1508_v58 = vld [vmem:[#allocation3 + $0x138] sm:$0xff]  ;;  %1216 = vst [vmem:[#allocation2 + $0x50] sm:$0x1] %v2719_v38 }
 0x150   :  { %v3989_v35 = vpop.f32.mrf.mxu1  ;;  %1217 = vst [vmem:[#allocation2 + $0x60] sm:$0x1] %v2719_v38 }
 0x151   :  { %v471_v48 = vpop.f32.mrf.mxu3  ;;  %1520 = vmatpush.msrb.mxu0 %v1513_v53  ;;  %1218 = vst [vmem:[#allocation2 + $0x70] sm:$0x1] %v2719_v38 }
 0x152   :  { %v3991_v33 = vadd.f32 %v471_v48, %v385_v54  ;;  %v1510_v54 = vld [vmem:[#allocation3 + $0x148] sm:$0xff]  ;;  %v1628_v48 = vld [vmem:[#allocation3 + $0x1e0] sm:$0xff]  ;;  %1219 = vst [vmem:[#allocation2 + $0x80] sm:$0x1] %v2719_v38 }
 0x153   :  { %v3996_v18 = vpop.f32.mrf.mxu0  ;;  %1163 = vmatmul.f32.gmra.mxu1 %v3665_v30  ;;  %v1512_v30 = vld [vmem:[#allocation3 + $0x158] sm:$0xff]  ;;  %1222 = vst [vmem:[#allocation2 + $0xb0] sm:$0x1] %v2719_v38 }
 0x154   :  { %1521 = vmatpush.msrb.mxu0 %v1512_v30  ;;  %1635 = vmatpush.msrb.mxu1 %v1628_v48  ;;  %1223 = vst [vmem:[#allocation2 + $0xc0] sm:$0x1] %v2719_v38 }
 0x155   :  { %1224 = vst [vmem:[#allocation2 + $0xd0] sm:$0x1] %v2719_v38 }
 0x156   :  { %935 = vmatmul.f32.gmra.mxu3 %v2554_v47  ;;  %1049 = vmatmul.f32.gmra.mxu0 %v2586_v61  ;;  %v387_v47 = vadd.f32 %v3940_v5, %v3754_v57  ;;  %v1274_v61 = vld [vmem:[#allocation3 + $0x8] sm:$0xff]  ;;  %v1391_v57 = vld [vmem:[#allocation3 + $0xa0] sm:$0xff]  ;;  %1225 = vst [vmem:[#allocation2 + $0xe0] sm:$0x1] %v2719_v38 }
 0x157   :  { %1522 = vmatpush.msrb.mxu0 %v1511_v50  ;;  %1303 = vmatpush.msra.mxu2 %v1274_v61  ;;  %v2556_v5 = vld [vmem:[%s4612_s0 + $0x320] sm:$0xff]  ;;  %v1390_v50 = vld [vmem:[#allocation3 + $0x98] sm:$0xff]  ;;  %1226 = vst [vmem:[#allocation2 + $0xf0] sm:$0x1] %v2719_v38 }
 0x158   :  { %v4006_v0 = vpop.f32.mrf.mxu1  ;;  %1636 = vmatpush.msrb.mxu1 %v1627_v36  ;;  %1414 = vmatpush.msrb.mxu3 %v1391_v57  ;;  %v1256_v36 = vld [vmem:[#allocation2] sm:$0xff]  ;;  %1227 = vst [vmem:[#allocation2 + $0x100] sm:$0x1] %v2719_v38 }
 0x159   :  { %v474_v4 = vpop.f32.mrf.mxu3  ;;  %1523 = vmatpush.msrb.mxu0 %v1510_v54  ;;  %v388_v54 = vadd.f32 %v3956_v43, %v3784_v14  ;;  %1304 = vmatpush.msra.mxu2 %v1273_v3  ;;  %v2557_v14 = vld [vmem:[%s4612_s0 + $0x330] sm:$0xff]  ;;  %v1387_v57 = vld [vmem:[#allocation3 + $0x80] sm:$0xff]  ;;  %1228 = vst [vmem:[#allocation2 + $0x110] sm:$0x1] %v2719_v38 }
 0x15a   :  { %v4008_v1 = vadd.f32 %v474_v4, %v386_v52  ;;  %v1626_v4 = vld [vmem:[#allocation3 + $0x1d0] sm:$0xff]  ;;  %1415 = vmatpush.msrb.mxu3 %v1390_v50  ;;  %1305 = vmatmul.f32.vlgmr.msra.gmra.mxu2 %v1256_v36  ;;  %v1620_v3 = vld [vmem:[#allocation3 + $0x1a0] sm:$0xff]  ;;  %1229 = vst [vmem:[#allocation2 + $0x120] sm:$0x1] %v2719_v38 }
 0x15b   :  { %v4013_v27 = vpop.f32.mrf.mxu0  ;;  %1166 = vmatmul.f32.gmra.mxu1 %v3689_v60  ;;  %1524 = vmatpush.msrb.mxu0 %v1509_v39  ;;  %v1504_v39 = vld [vmem:[#allocation3 + $0x118] sm:$0xff]  ;;  %1232 = vst [vmem:[#allocation2 + $0x19] sm:$0x1] %v2719_v38  ;;  %v2559_v36 = vld [vmem:[%s4612_s0 + $0x350] sm:$0xff] }
 0x15c   :  { %1637 = vmatpush.msrb.mxu1 %v1626_v4  ;;  %v1502_v4 = vld [vmem:[#allocation3 + $0x108] sm:$0xff]  ;;  %1233 = vst [vmem:[#allocation2 + $0x29] sm:$0x1] %v2719_v38 }
 0x15d   :  { %1525 = vmatpush.msrb.mxu0 %v1508_v58  ;;  %v1503_v58 = vld [vmem:[#allocation3 + $0x110] sm:$0xff]  ;;  %1234 = vst [vmem:[#allocation2 + $0x39] sm:$0x1] %v2719_v38 }
 0x15e   :  { %938 = vmatmul.f32.gmra.mxu3 %v2555_v8  ;;  %1052 = vmatmul.f32.gmra.mxu0 %v2587_v49  ;;  %v1505_v8 = vld [vmem:[#allocation3 + $0x120] sm:$0xff]  ;;  %v4043_v49 = vpop.f32.mrf.mxu2  ;;  %1235 = vst [vmem:[#allocation2 + $0x49] sm:$0x1] %v2719_v38 }
 0x15f   :  { %1526 = vmatpush.msrb.mxu0 %v1507_v59  ;;  %1638 = vmatpush.msrb.mxu1 %v1625_v9  ;;  %v1623_v59 = vld [vmem:[#allocation3 + $0x1b8] sm:$0xff]  ;;  %1236 = vst [vmem:[#allocation2 + $0x59] sm:$0x1] %v2719_v38 }
 0x160   :  { %v4023_v60 = vpop.f32.mrf.mxu1  ;;  %1237 = vst [vmem:[#allocation2 + $0x69] sm:$0x1] %v2719_v38 }
 0x161   :  { %v477_v53 = vpop.f32.mrf.mxu3  ;;  %1527 = vmatpush.msrb.mxu0 %v1506_v2  ;;  %1639 = vmatpush.msrb.mxu1 %v1624_v12  ;;  %v1501_v2 = vld [vmem:[#allocation3 + $0x100] sm:$0xff]  ;;  %1238 = vst [vmem:[#allocation2 + $0x79] sm:$0x1] %v2719_v38 }
 0x162   :  { %v4027_v52 = vadd.f32 %v477_v53, %v387_v47  ;;  %v1388_v47 = vld [vmem:[#allocation3 + $0x88] sm:$0xff]  ;;  %1239 = vst [vmem:[#allocation2 + $0x89] sm:$0x1] %v2719_v38 }
 0x163   :  { %v4033_v30 = vpop.f32.mrf.mxu0  ;;  %1169 = vmatmul.f32.gmra.mxu1 %v3719_v22  ;;  %v1389_v22 = vld [vmem:[#allocation3 + $0x90] sm:$0xff]  ;;  %1528 = vmatpush.msrb.mxu0 %v1505_v8  ;;  %v2589_v53 = vld [vmem:[%s4612_s0 + $0x2a1] sm:$0xff]  ;;  %1242 = vst [vmem:[#allocation2 + $0xb9] sm:$0x1] %v2719_v38 }
 0x164   :  { %1416 = vmatpush.msrb.mxu3 %v1389_v22  ;;  %1640 = vmatpush.msrb.mxu1 %v1623_v59  ;;  %v1621_v8 = vld [vmem:[#allocation3 + $0x1a8] sm:$0xff]  ;;  %1243 = vst [vmem:[#allocation2 + $0xc9] sm:$0x1] %v2719_v38 }
 0x165   :  { %1529 = vmatpush.msrb.mxu0 %v1504_v39  ;;  %v1745_v39 = vld [vmem:[#allocation3 + $0x278] sm:$0xff]  ;;  %v1617_v59 = vld [vmem:[#allocation3 + $0x188] sm:$0xff]  ;;  %1244 = vst [vmem:[#allocation2 + $0xd9] sm:$0x1] %v2719_v38 }
 0x166   :  { %941 = vmatmul.f32.gmra.mxu3 %v2556_v5  ;;  %1055 = vmatmul.f32.gmra.mxu0 %v2588_v15  ;;  %v1622_v5 = vld [vmem:[#allocation3 + $0x1b0] sm:$0xff]  ;;  %v4074_v50 = vpop.f32.mrf.mxu2  ;;  %1245 = vst [vmem:[#allocation2 + $0xe9] sm:$0x1] %v2719_v38 }
 0x167   :  { %1417 = vmatpush.msrb.mxu3 %v1388_v47  ;;  %1530 = vmatpush.msrb.mxu0 %v1503_v58  ;;  %v1618_v58 = vld [vmem:[#allocation3 + $0x190] sm:$0xff]  ;;  %1246 = vst [vmem:[#allocation2 + $0xf9] sm:$0x1] %v2719_v38 }
 0x168   :  { %v4048_v37 = vpop.f32.mrf.mxu1  ;;  %1641 = vmatpush.msrb.mxu1 %v1622_v5  ;;  %1746 = vmatpush.msrb.mxu2 %v1745_v39  ;;  %v1616_v5 = vld [vmem:[#allocation3 + $0x180] sm:$0xff]  ;;  %1247 = vst [vmem:[#allocation2 + $0x109] sm:$0x1] %v2719_v38  ;;  %v723_v39 = vadd.f32 %v3873_v25, %v3878_v46 }
 0x169   :  { %v480_v48 = vpop.f32.mrf.mxu3  ;;  %1418 = vmatpush.msrb.mxu3 %v1387_v57  ;;  %1531 = vmatpush.msrb.mxu0 %v1502_v4  ;;  %v1744_v57 = vld [vmem:[#allocation3 + $0x270] sm:$0xff]  ;;  %1248 = vst [vmem:[#allocation2 + $0x119] sm:$0x1] %v2719_v38 }
 0x16a   :  { %v4052_v61 = vadd.f32 %v480_v48, %v388_v54  ;;  %v2590_v54 = vld [vmem:[%s4612_s0 + $0x2b1] sm:$0xff]  ;;  %1642 = vmatpush.msrb.mxu1 %v1621_v8  ;;  %1747 = vmatpush.msrb.mxu2 %v1744_v57  ;;  %v1370_v8 = vld [vmem:[#allocation2 + $0x1] sm:$0xff]  ;;  %1249 = vst [vmem:[#allocation2 + $0x129] sm:$0x1] %v2719_v38  ;;  %v724_v57 = vadd.f32 %v3884_v24, %v3897_v42 }
 0x16b   :  { %v4058_v43 = vpop.f32.mrf.mxu0  ;;  %1172 = vmatmul.f32.gmra.mxu1 %v3752_v51  ;;  %v389_v51 = vadd.f32 %v3976_v19, %v3811_v32  ;;  %v2558_v32 = vld [vmem:[%s4612_s0 + $0x340] sm:$0xff]  ;;  %1532 = vmatpush.msrb.mxu0 %v1501_v2  ;;  %v1619_v48 = vld [vmem:[#allocation3 + $0x198] sm:$0xff]  ;;  %1220 = vst [vmem:[#allocation2 + $0x90] sm:$0x1] %v2719_v38 }
 0x16c   :  { %1643 = vmatpush.msrb.mxu1 %v1620_v3  ;;  %1221 = vst [vmem:[#allocation2 + $0xa0] sm:$0x1] %v2719_v38 }
 0x16d   :  { %1230 = vst [vmem:[#allocation2 + $0x130] sm:$0x1] %v2719_v38 }
 0x16e   :  { %944 = vmatmul.f32.gmra.mxu3 %v2557_v14  ;;  %1058 = vmatmul.f32.gmra.mxu0 %v2589_v53  ;;  %v4103_v53 = vpop.f32.mrf.mxu2  ;;  %1231 = vst [vmem:[#allocation2 + $0x9] sm:$0x1] %v2719_v38 }
 0x16f   :  { %1644 = vmatpush.msrb.mxu1 %v1619_v48  ;;  %1240 = vst [vmem:[#allocation2 + $0x99] sm:$0x1] %v2719_v38 }
 0x170   :  { %v4071_v15 = vpop.f32.mrf.mxu1  ;;  %1241 = vst [vmem:[#allocation2 + $0xa9] sm:$0x1] %v2719_v38 }
 0x171   :  { %v483_v9 = vpop.f32.mrf.mxu3  ;;  %1645 = vmatpush.msrb.mxu1 %v1618_v58  ;;  %1250 = vst [vmem:[#allocation2 + $0x139] sm:$0x1] %v2719_v38  ;;  %v839_v58 = vadd.f32 %v4074_v50, %v723_v39 }
 0x172   :  { %v4077_v22 = vadd.f32 %v483_v9, %v389_v51 }
 0x173   :  { %v4083_v19 = vpop.f32.mrf.mxu0  ;;  %1175 = vmatmul.f32.gmra.mxu1 %v3782_v62  ;;  %v390_v62 = vadd.f32 %v4002_v11, %v3838_v44  ;;  %v2591_v11 = vld [vmem:[%s4612_s0 + $0x2c1] sm:$0xff] }
 0x174   :  { %1646 = vmatpush.msrb.mxu1 %v1617_v59 }
 0x176   :  { %947 = vmatmul.f32.gmra.mxu3 %v2558_v32  ;;  %1061 = vmatmul.f32.gmra.mxu0 %v2590_v54  ;;  %v799_v32 = vpop.f32.mrf.mxu2 }
 0x177   :  { %1647 = vmatpush.msrb.mxu1 %v1616_v5 }
 0x178   :  { %v4096_v12 = vpop.f32.mrf.mxu1 }
 0x179   :  { %v486_v47 = vpop.f32.mrf.mxu3 }
 0x17a   :  { %v4100_v14 = vadd.f32 %v486_v47, %v390_v62 }
 0x17b   :  { %v4108_v44 = vpop.f32.mrf.mxu0  ;;  %1178 = vmatmul.f32.gmra.mxu1 %v3809_v56  ;;  %v391_v56 = vadd.f32 %v4019_v28, %v3856_v26  ;;  %v722_v26 = vadd.f32 %v3862_v63, %v3867_v13  ;;  %v1743_v28 = vld [vmem:[#allocation3 + $0x268] sm:$0xff] }
 0x17c   :  { %1748 = vmatpush.msrb.mxu2 %v1743_v28 }
 0x17d   :  { %v838_v54 = vadd.f32 %v4043_v49, %v722_v26  ;;  %v1742_v49 = vld [vmem:[#allocation3 + $0x260] sm:$0xff] }
 0x17e   :  { %950 = vmatmul.f32.gmra.mxu3 %v2559_v36  ;;  %1064 = vmatmul.f32.gmra.mxu0 %v2591_v11  ;;  %v802_v47 = vpop.f32.mrf.mxu2  ;;  %v1484_v11 = vld [vmem:[#allocation2 + $0x2] sm:$0xff] }
 0x17f   :  { %1749 = vmatpush.msrb.mxu2 %v1742_v49 }
 0x180   :  { %v4121_v51 = vpop.f32.mrf.mxu1 }
 0x181   :  { %v489_v4 = vpop.f32.mrf.mxu3 }
 0x182   :  { %v4125_v2 = vadd.f32 %v489_v4, %v391_v56  ;;  %v1741_v56 = vld [vmem:[#allocation3 + $0x258] sm:$0xff]  ;;  %v840_v4 = vadd.f32 %v4103_v53, %v724_v57 }
 0x183   :  { %v1020_v9 = vpop.f32.mrf.mxu0  ;;  %1181 = vmatmul.f32.gmra.mxu1 %v3836_v10  ;;  %1750 = vmatpush.msrb.mxu2 %v1741_v56 }
 0x186   :  { %1419 = vmatmul.f32.vlgmr.msrb.gmra.mxu3 %v1370_v8  ;;  %1533 = vmatmul.f32.vlgmr.msrb.gmra.mxu0 %v1484_v11  ;;  %v805_v8 = vpop.f32.mrf.mxu2  ;;  %v1739_v11 = vld [vmem:[#allocation3 + $0x248] sm:$0xff] }
 0x188   :  { %v4138_v10 = vpop.f32.mrf.mxu1 }
 0x189   :  { %v906_v3 = vpop.f32.mrf.mxu3 }
 0x18a   :  { %v954_v63 = vadd.f32 %v906_v3, %v838_v54  ;;  %v725_v54 = vadd.f32 %v3901_v21, %v3912_v20  ;;  %v1740_v3 = vld [vmem:[#allocation3 + $0x250] sm:$0xff] }
 0x18b   :  { %v1023_v13 = vpop.f32.mrf.mxu0  ;;  %1751 = vmatpush.msrb.mxu2 %v1740_v3 }
 0x18c   :  { %v1068_v48 = vadd.f32 %v1020_v9, %v954_v63  ;;  %v841_v39 = vadd.f32 %v799_v32, %v725_v54 }
 0x18d   :  { %1752 = vmatpush.msrb.mxu2 %v1739_v11 }
 0x18e   :  { %v4147_v62 = vmax.f32 %v1068_v48, 0.0 }
 0x190   :  { %1186 = vst [vmem:[#allocation2 + $0x11] sm:$0xff] %v4147_v62  ;;  %1422 = vmatmul.f32.gmra.mxu3 %v4147_v62  ;;  %v4154_v25 = vpop.f32.mrf.mxu1 }
 0x191   :  { %v909_v46 = vpop.f32.mrf.mxu3 }
 0x192   :  { %v955_v36 = vadd.f32 %v909_v46, %v839_v58  ;;  %v808_v58 = vpop.f32.mrf.mxu2 }
 0x193   :  { %v1026_v59 = vpop.f32.mrf.mxu0 }
 0x194   :  { %v1069_v5 = vadd.f32 %v1023_v13, %v955_v36  ;;  %v726_v36 = vadd.f32 %v3914_v55, %v3924_v16 }
 0x196   :  { %v4158_v38 = vmax.f32 %v1069_v5, 0.0  ;;  %v842_v5 = vadd.f32 %v802_v47, %v726_v36  ;;  %v1737_v36 = vld [vmem:[#allocation3 + $0x238] sm:$0xff] }
 0x197   :  { %v1257_v50 = vld [vmem:[#allocation2 + $0x10] sm:$0xff] }
 0x198   :  { %1187 = vst [vmem:[#allocation2 + $0x21] sm:$0xff] %v4158_v38  ;;  %1308 = vmatmul.f32.gmra.mxu2 %v1257_v50  ;;  %1648 = vmatmul.f32.vlgmr.msrb.gmra.mxu1 %v1257_v50  ;;  %v4162_v9 = vpop.f32.mrf.mxu1  ;;  %v4164_v26 = vld [vmem:[#allocation2 + $0x12] sm:$0xff] }
 0x199   :  { %v912_v28 = vpop.f32.mrf.mxu3  ;;  %1425 = vmatmul.f32.gmra.mxu3 %v4158_v38  ;;  %1536 = vmatmul.f32.gmra.mxu0 %v4164_v26 }
 0x19a   :  { %v956_v24 = vadd.f32 %v912_v28, %v840_v4  ;;  %v727_v28 = vadd.f32 %v3928_v17, %v3938_v34 }
 0x19b   :  { %v1029_v42 = vpop.f32.mrf.mxu0 }
 0x19c   :  { %v1070_v53 = vadd.f32 %v1026_v59, %v956_v24  ;;  %v1738_v24 = vld [vmem:[#allocation3 + $0x240] sm:$0xff]  ;;  %v843_v3 = vadd.f32 %v805_v8, %v727_v28 }
 0x19d   :  { %1753 = vmatpush.msrb.mxu2 %v1738_v24  ;;  %v1736_v24 = vld [vmem:[#allocation3 + $0x230] sm:$0xff] }
 0x19e   :  { %v4170_v63 = vmax.f32 %v1070_v53, 0.0 }
 0x19f   :  { %v4172_v13 = vld [vmem:[#allocation2 + $0x20] sm:$0xff]  ;;  %1754 = vmatpush.msrb.mxu2 %v1737_v36 }
 0x1a0   :  { %1188 = vst [vmem:[#allocation2 + $0x31] sm:$0xff] %v4170_v63  ;;  %1311 = vmatmul.f32.gmra.mxu2 %v4172_v13  ;;  %1651 = vmatmul.f32.gmra.mxu1 %v4172_v13  ;;  %v4177_v48 = vpop.f32.mrf.mxu1  ;;  %v4179_v49 = vld [vmem:[#allocation2 + $0x22] sm:$0xff] }
 0x1a1   :  { %v915_v21 = vpop.f32.mrf.mxu3  ;;  %1428 = vmatmul.f32.gmra.mxu3 %v4170_v63  ;;  %1539 = vmatmul.f32.gmra.mxu0 %v4179_v49 }
 0x1a2   :  { %v957_v20 = vadd.f32 %v915_v21, %v841_v39  ;;  %1755 = vmatpush.msrb.mxu2 %v1736_v24  ;;  %v617_v24 = vadd.f32 %v3981_v41, %v3991_v33  ;;  %v1734_v33 = vld [vmem:[#allocation3 + $0x220] sm:$0xff] }
 0x1a3   :  { %v1032_v46 = vpop.f32.mrf.mxu0 }
 0x1a4   :  { %v1071_v32 = vadd.f32 %v1029_v42, %v957_v20  ;;  %v811_v42 = vpop.f32.mrf.mxu2 }
 0x1a6   :  { %v4185_v59 = vmax.f32 %v1071_v32, 0.0 }
 0x1a7   :  { %v4187_v57 = vld [vmem:[#allocation2 + $0x30] sm:$0xff] }
 0x1a8   :  { %1189 = vst [vmem:[#allocation2 + $0x41] sm:$0xff] %v4185_v59  ;;  %1314 = vmatmul.f32.gmra.mxu2 %v4187_v57  ;;  %1654 = vmatmul.f32.gmra.mxu1 %v4187_v57  ;;  %v4192_v56 = vpop.f32.mrf.mxu1  ;;  %v4194_v50 = vld [vmem:[#allocation2 + $0x32] sm:$0xff] }
 0x1a9   :  { %v918_v55 = vpop.f32.mrf.mxu3  ;;  %1431 = vmatmul.f32.gmra.mxu3 %v4185_v59  ;;  %1542 = vmatmul.f32.gmra.mxu0 %v4194_v50 }
 0x1aa   :  { %v958_v16 = vadd.f32 %v918_v55, %v842_v5 }
 0x1ab   :  { %v1035_v4 = vpop.f32.mrf.mxu0 }
 0x1ac   :  { %v1072_v47 = vadd.f32 %v1032_v46, %v958_v16  ;;  %v728_v46 = vadd.f32 %v3942_v29, %v3952_v45  ;;  %v814_v11 = vpop.f32.mrf.mxu2 }
 0x1ae   :  { %v4200_v54 = vmax.f32 %v1072_v47, 0.0  ;;  %v844_v55 = vadd.f32 %v808_v58, %v728_v46  ;;  %v729_v47 = vadd.f32 %v3954_v40, %v3968_v6  ;;  %v616_v46 = vadd.f32 %v3962_v7, %v3974_v23  ;;  %v1735_v23 = vld [vmem:[#allocation3 + $0x228] sm:$0xff] }
 0x1af   :  { %v4202_v53 = vld [vmem:[#allocation2 + $0x40] sm:$0xff]  ;;  %1756 = vmatpush.msrb.mxu2 %v1735_v23 }
 0x1b0   :  { %1190 = vst [vmem:[#allocation2 + $0x51] sm:$0xff] %v4200_v54  ;;  %1317 = vmatmul.f32.gmra.mxu2 %v4202_v53  ;;  %1657 = vmatmul.f32.gmra.mxu1 %v4202_v53  ;;  %v4207_v39 = vpop.f32.mrf.mxu1  ;;  %v4209_v17 = vld [vmem:[#allocation2 + $0x42] sm:$0xff] }
 0x1b1   :  { %4620 = vst [vmem:[#allocation9_spill] sm:$0xff] %v4207_v39  ;;  %v921_v34 = vpop.f32.mrf.mxu3  ;;  %1434 = vmatmul.f32.gmra.mxu3 %v4200_v54  ;;  %1545 = vmatmul.f32.gmra.mxu0 %v4209_v17  ;;  %v2085_v39 = vld [vmem:[#allocation3 + $0x3d8] sm:$0xff] }
 0x1b2   :  { %v959_v21 = vadd.f32 %v921_v34, %v843_v3  ;;  %1757 = vmatpush.msrb.mxu2 %v1734_v33  ;;  %v1855_v33 = vld [vmem:[#allocation3 + $0x2d8] sm:$0xff] }
 0x1b3   :  { %v1038_v20 = vpop.f32.mrf.mxu0 }
 0x1b4   :  { %v1073_v8 = vadd.f32 %v1035_v4, %v959_v21  ;;  %v845_v21 = vadd.f32 %v811_v42, %v729_v47  ;;  %v817_v6 = vpop.f32.mrf.mxu2  ;;  %v730_v42 = vadd.f32 %v3972_v31, %v616_v46 }
 0x1b6   :  { %v4215_v32 = vmax.f32 %v1073_v8, 0.0 }
 0x1b7   :  { %v4217_v5 = vld [vmem:[#allocation2 + $0x50] sm:$0xff] }
 0x1b8   :  { %1191 = vst [vmem:[#allocation2 + $0x61] sm:$0xff] %v4215_v32  ;;  %1320 = vmatmul.f32.gmra.mxu2 %v4217_v5  ;;  %1660 = vmatmul.f32.gmra.mxu1 %v4217_v5  ;;  %v4222_v16 = vpop.f32.mrf.mxu1  ;;  %v4224_v29 = vld [vmem:[#allocation2 + $0x52] sm:$0xff] }
 0x1b9   :  { %4621 = vst [vmem:[#allocation10_spill] sm:$0xff] %v4222_v16  ;;  %v924_v45 = vpop.f32.mrf.mxu3  ;;  %1437 = vmatmul.f32.gmra.mxu3 %v4215_v32  ;;  %1548 = vmatmul.f32.gmra.mxu0 %v4224_v29 }
 0x1ba   :  { %v960_v4 = vadd.f32 %v924_v45, %v844_v55 }
 0x1bb   :  { %v1041_v28 = vpop.f32.mrf.mxu0 }
 0x1bc   :  { %v1074_v58 = vadd.f32 %v1038_v20, %v960_v4  ;;  %v1378_v4 = vld [vmem:[#allocation2 + $0xa1] sm:$0xff] }
 0x1be   :  { %v4230_v3 = vmax.f32 %v1074_v58, 0.0  ;;  %v846_v58 = vadd.f32 %v814_v11, %v730_v42  ;;  %v731_v11 = vadd.f32 %v3989_v35, %v617_v24  ;;  %v1859_v42 = vld [vmem:[#allocation3 + $0x2f8] sm:$0xff]  ;;  %v1492_v24 = vld [vmem:[#allocation2 + $0xa2] sm:$0xff] }
 0x1bf   :  { %v4232_v34 = vld [vmem:[#allocation2 + $0x60] sm:$0xff]  ;;  %1860 = vmatpush.msra.mxu3 %v1859_v42 }
 0x1c0   :  { %1192 = vst [vmem:[#allocation2 + $0x71] sm:$0xff] %v4230_v3  ;;  %1323 = vmatmul.f32.gmra.mxu2 %v4232_v34  ;;  %1663 = vmatmul.f32.gmra.mxu1 %v4232_v34  ;;  %v4239_v40 = vpop.f32.mrf.mxu1  ;;  %v4241_v20 = vld [vmem:[#allocation2 + $0x62] sm:$0xff] }
 0x1c1   :  { %4622 = vst [vmem:[#allocation11_spill] sm:$0xff] %v4239_v40  ;;  %v927_v8 = vpop.f32.mrf.mxu3  ;;  %1440 = vmatmul.f32.gmra.mxu3 %v4230_v3  ;;  %1551 = vmatmul.f32.gmra.mxu0 %v4241_v20 }
 0x1c2   :  { %v961_v36 = vadd.f32 %v927_v8, %v845_v21  ;;  %v820_v8 = vpop.f32.mrf.mxu2 }
 0x1c3   :  { %v1044_v55 = vpop.f32.mrf.mxu0 }
 0x1c4   :  { %v1075_v7 = vadd.f32 %v1041_v28, %v961_v36 }
 0x1c6   :  { %v4246_v45 = vmax.f32 %v1075_v7, 0.0  ;;  %v1265_v7 = vld [vmem:[#allocation2 + $0xa0] sm:$0xff] }
 0x1c7   :  { %v4248_v47 = vld [vmem:[#allocation2 + $0x70] sm:$0xff] }
 0x1c8   :  { %1193 = vst [vmem:[#allocation2 + $0x81] sm:$0xff] %v4246_v45  ;;  %1326 = vmatmul.f32.gmra.mxu2 %v4248_v47  ;;  %1666 = vmatmul.f32.gmra.mxu1 %v4248_v47  ;;  %v4255_v31 = vpop.f32.mrf.mxu1  ;;  %v4257_v28 = vld [vmem:[#allocation2 + $0x72] sm:$0xff] }
 0x1c9   :  { %4623 = vst [vmem:[#allocation12_spill] sm:$0xff] %v4255_v31  ;;  %v930_v21 = vpop.f32.mrf.mxu3  ;;  %1443 = vmatmul.f32.gmra.mxu3 %v1378_v4  ;;  %1554 = vmatmul.f32.gmra.mxu0 %v4257_v28  ;;  %v1858_v31 = vld [vmem:[#allocation3 + $0x2f0] sm:$0xff]  ;;  %v847_v4 = vadd.f32 %v817_v6, %v731_v11  ;;  %v1975_v11 = vld [vmem:[#allocation3 + $0x378] sm:$0xff] }
 0x1ca   :  { %v962_v46 = vadd.f32 %v930_v21, %v846_v58  ;;  %1861 = vmatpush.msra.mxu3 %v1858_v31  ;;  %v618_v58 = vadd.f32 %v3996_v18, %v4008_v1  ;;  %v1733_v1 = vld [vmem:[#allocation3 + $0x218] sm:$0xff]  ;;  %v823_v42 = vpop.f32.mrf.mxu2  ;;  %1976 = vmatpush.msra.mxu0 %v1975_v11 }
 0x1cb   :  { %v1047_v36 = vpop.f32.mrf.mxu0  ;;  %1758 = vmatpush.msrb.mxu2 %v1733_v1  ;;  %v2089_v1 = vld [vmem:[#allocation3 + $0x3f8] sm:$0xff] }
 0x1cc   :  { %v1076_v41 = vadd.f32 %v1044_v55, %v962_v46  ;;  %v1857_v55 = vld [vmem:[#allocation3 + $0x2e8] sm:$0xff]  ;;  %v732_v6 = vadd.f32 %v4006_v0, %v618_v58  ;;  %v619_v0 = vadd.f32 %v4013_v27, %v4027_v52  ;;  %v1852_v27 = vld [vmem:[#allocation3 + $0x2c0] sm:$0xff]  ;;  %2090 = vmatpush.msra.mxu1 %v2089_v1 }
 0x1cd   :  { %1862 = vmatpush.msra.mxu3 %v1857_v55  ;;  %v1973_v58 = vld [vmem:[#allocation3 + $0x368] sm:$0xff] }
 0x1ce   :  { %v4261_v23 = vmax.f32 %v1076_v41, 0.0  ;;  %v1856_v41 = vld [vmem:[#allocation3 + $0x2e0] sm:$0xff]  ;;  %v848_v55 = vadd.f32 %v820_v8, %v732_v6  ;;  %v733_v52 = vadd.f32 %v4023_v60, %v619_v0  ;;  %v1732_v6 = vld [vmem:[#allocation3 + $0x210] sm:$0xff]  ;;  %v1851_v60 = vld [vmem:[#allocation3 + $0x2b8] sm:$0xff] }
 0x1cf   :  { %v4263_v40 = vld [vmem:[#allocation2 + $0x80] sm:$0xff]  ;;  %1863 = vmatpush.msra.mxu3 %v1856_v41  ;;  %1759 = vmatpush.msrb.mxu2 %v1732_v6  ;;  %v1849_v6 = vld [vmem:[#allocation3 + $0x2a8] sm:$0xff] }
 0x1d0   :  { %1194 = vst [vmem:[#allocation2 + $0xb1] sm:$0xff] %v4261_v23  ;;  %1329 = vmatmul.f32.gmra.mxu2 %v1265_v7  ;;  %1669 = vmatmul.f32.gmra.mxu1 %v4263_v40  ;;  %v4269_v35 = vpop.f32.mrf.mxu1  ;;  %v849_v0 = vadd.f32 %v823_v42, %v733_v52 }
 0x1d1   :  { %4624 = vst [vmem:[#allocation13_spill] sm:$0xff] %v4269_v35  ;;  %v933_v21 = vpop.f32.mrf.mxu3  ;;  %1446 = vmatmul.f32.gmra.mxu3 %v4261_v23  ;;  %1557 = vmatmul.f32.gmra.mxu0 %v1492_v24  ;;  %v1974_v35 = vld [vmem:[#allocation3 + $0x370] sm:$0xff]  ;;  %v1972_v24 = vld [vmem:[#allocation3 + $0x360] sm:$0xff] }
 0x1d2   :  { %v963_v46 = vadd.f32 %v933_v21, %v847_v4  ;;  %1864 = vmatpush.msra.mxu3 %v1855_v33  ;;  %1977 = vmatpush.msra.mxu0 %v1974_v35  ;;  %v1854_v4 = vld [vmem:[#allocation3 + $0x2d0] sm:$0xff]  ;;  %v1853_v35 = vld [vmem:[#allocation3 + $0x2c8] sm:$0xff] }
 0x1d3   :  { %v1050_v31 = vpop.f32.mrf.mxu0  ;;  %v1970_v33 = vld [vmem:[#allocation3 + $0x350] sm:$0xff] }
 0x1d4   :  { %v1077_v18 = vadd.f32 %v1047_v36, %v963_v46  ;;  %1978 = vmatpush.msra.mxu0 %v1973_v58  ;;  %1865 = vmatpush.msra.mxu3 %v1854_v4  ;;  %v826_v4 = vpop.f32.mrf.mxu2 }
 0x1d6   :  { %v4273_v7 = vmax.f32 %v1077_v18, 0.0  ;;  %1979 = vmatpush.msra.mxu0 %v1972_v24  ;;  %v1971_v18 = vld [vmem:[#allocation3 + $0x358] sm:$0xff]  ;;  %1866 = vmatpush.msra.mxu3 %v1853_v35  ;;  %v1969_v24 = vld [vmem:[#allocation3 + $0x348] sm:$0xff] }
 0x1d7   :  { %v1266_v16 = vld [vmem:[#allocation2 + $0xb0] sm:$0xff] }
 0x1d8   :  { %1195 = vst [vmem:[#allocation2 + $0xc1] sm:$0xff] %v4273_v7  ;;  %1332 = vmatmul.f32.gmra.mxu2 %v1266_v16  ;;  %1672 = vmatmul.f32.gmra.mxu1 %v1266_v16  ;;  %v4278_v36 = vpop.f32.mrf.mxu1  ;;  %v4280_v21 = vld [vmem:[#allocation2 + $0xb2] sm:$0xff] }
 0x1d9   :  { %4625 = vst [vmem:[#allocation14_spill] sm:$0xff] %v4278_v36  ;;  %v936_v46 = vpop.f32.mrf.mxu3  ;;  %1449 = vmatmul.f32.gmra.mxu3 %v4273_v7  ;;  %1560 = vmatmul.f32.gmra.mxu0 %v4280_v21  ;;  %v1967_v36 = vld [vmem:[#allocation3 + $0x338] sm:$0xff] }
 0x1da   :  { %v964_v41 = vadd.f32 %v936_v46, %v848_v55  ;;  %1980 = vmatpush.msra.mxu0 %v1971_v18  ;;  %v2088_v55 = vld [vmem:[#allocation3 + $0x3f0] sm:$0xff]  ;;  %1867 = vmatpush.msra.mxu3 %v1852_v27  ;;  %v2087_v46 = vld [vmem:[#allocation3 + $0x3e8] sm:$0xff] }
 0x1db   :  { %v1053_v8 = vpop.f32.mrf.mxu0  ;;  %2091 = vmatpush.msra.mxu1 %v2088_v55  ;;  %v1850_v27 = vld [vmem:[#allocation3 + $0x2b0] sm:$0xff] }
 0x1dc   :  { %v1078_v16 = vadd.f32 %v1050_v31, %v964_v41  ;;  %1981 = vmatpush.msra.mxu0 %v1970_v33  ;;  %v620_v31 = vadd.f32 %v4033_v30, %v4052_v61  ;;  %v1968_v30 = vld [vmem:[#allocation3 + $0x340] sm:$0xff]  ;;  %1868 = vmatpush.msra.mxu3 %v1851_v60  ;;  %v1731_v33 = vld [vmem:[#allocation3 + $0x208] sm:$0xff] }
 0x1dd   :  { %v2086_v61 = vld [vmem:[#allocation3 + $0x3e0] sm:$0xff]  ;;  %2092 = vmatpush.msra.mxu1 %v2087_v46  ;;  %1760 = vmatpush.msrb.mxu2 %v1731_v33  ;;  %v1965_v46 = vld [vmem:[#allocation3 + $0x328] sm:$0xff] }
 0x1de   :  { %v4285_v11 = vmax.f32 %v1078_v16, 0.0  ;;  %1982 = vmatpush.msra.mxu0 %v1969_v24  ;;  %v734_v18 = vadd.f32 %v4048_v37, %v620_v31  ;;  %1869 = vmatpush.msra.mxu3 %v1850_v27  ;;  %v2084_v24 = vld [vmem:[#allocation3 + $0x3d0] sm:$0xff]  ;;  %v1848_v37 = vld [vmem:[#allocation3 + $0x2a0] sm:$0xff] }
 0x1df   :  { %v4287_v58 = vld [vmem:[#allocation2 + $0xc0] sm:$0xff]  ;;  %2093 = vmatpush.msra.mxu1 %v2086_v61 }
 0x1e0   :  { %1196 = vst [vmem:[#allocation2 + $0xd1] sm:$0xff] %v4285_v11  ;;  %1335 = vmatmul.f32.gmra.mxu2 %v4287_v58  ;;  %1675 = vmatmul.f32.gmra.mxu1 %v4287_v58  ;;  %v4294_v35 = vld [vmem:[#allocation2 + $0xc2] sm:$0xff]  ;;  %v4297_v42 = vpop.f32.mrf.mxu1  ;;  %v850_v31 = vadd.f32 %v826_v4, %v734_v18 }
 0x1e1   :  { %v939_v41 = vpop.f32.mrf.mxu3  ;;  %1452 = vmatmul.f32.gmra.mxu3 %v4285_v11  ;;  %1563 = vmatmul.f32.gmra.mxu0 %v4294_v35  ;;  %v1964_v4 = vld [vmem:[#allocation3 + $0x320] sm:$0xff] }
 0x1e2   :  { %v965_v16 = vadd.f32 %v939_v41, %v849_v0  ;;  %1983 = vmatpush.msra.mxu0 %v1968_v30  ;;  %v1966_v0 = vld [vmem:[#allocation3 + $0x330] sm:$0xff]  ;;  %1870 = vmatpush.msra.mxu3 %v1849_v6  ;;  %v829_v41 = vpop.f32.mrf.mxu2  ;;  %v1730_v18 = vld [vmem:[#allocation3 + $0x200] sm:$0xff] }
 0x1e3   :  { %v1056_v52 = vpop.f32.mrf.mxu0  ;;  %2094 = vmatpush.msra.mxu1 %v2085_v39  ;;  %v2083_v39 = vld [vmem:[#allocation3 + $0x3c8] sm:$0xff]  ;;  %1761 = vmatpush.msrb.mxu2 %v1730_v18  ;;  %v2078_v18 = vld [vmem:[#allocation3 + $0x3a0] sm:$0xff] }
 0x1e4   :  { %v1079_v1 = vadd.f32 %v1053_v8, %v965_v16  ;;  %1984 = vmatpush.msra.mxu0 %v1967_v36  ;;  %v621_v8 = vadd.f32 %v4058_v43, %v4077_v22  ;;  %1871 = vmatpush.msra.mxu3 %v1848_v37  ;;  %v2082_v43 = vld [vmem:[#allocation3 + $0x3c0] sm:$0xff]  ;;  %v1847_v22 = vld [vmem:[#allocation3 + $0x298] sm:$0xff] }
 0x1e5   :  { %2095 = vmatpush.msra.mxu1 %v2084_v24  ;;  %v2081_v24 = vld [vmem:[#allocation3 + $0x3b8] sm:$0xff] }
 0x1e6   :  { %v4301_v55 = vmax.f32 %v1079_v1, 0.0  ;;  %1985 = vmatpush.msra.mxu0 %v1966_v0  ;;  %v735_v30 = vadd.f32 %v4071_v15, %v621_v8  ;;  %v1963_v1 = vld [vmem:[#allocation3 + $0x318] sm:$0xff]  ;;  %1872 = vmatpush.msra.mxu3 %v1847_v22  ;;  %v1846_v15 = vld [vmem:[#allocation3 + $0x290] sm:$0xff] }
 0x1e7   :  { %v4303_v60 = vld [vmem:[#allocation2 + $0xd0] sm:$0xff]  ;;  %2096 = vmatpush.msra.mxu1 %v2083_v39 }
 0x1e8   :  { %1197 = vst [vmem:[#allocation2 + $0xe1] sm:$0xff] %v4301_v55  ;;  %1338 = vmatmul.f32.gmra.mxu2 %v4303_v60  ;;  %1678 = vmatmul.f32.gmra.mxu1 %v4303_v60  ;;  %v4310_v27 = vld [vmem:[#allocation2 + $0xd2] sm:$0xff]  ;;  %v4315_v6 = vpop.f32.mrf.mxu1  ;;  %v851_v8 = vadd.f32 %v829_v41, %v735_v30  ;;  %v1961_v41 = vld [vmem:[#allocation3 + $0x308] sm:$0xff] }
 0x1e9   :  { %v942_v16 = vpop.f32.mrf.mxu3  ;;  %1455 = vmatmul.f32.gmra.mxu3 %v4301_v55  ;;  %1986 = vmatpush.msra.mxu0 %v1965_v46  ;;  %v2080_v46 = vld [vmem:[#allocation3 + $0x3b0] sm:$0xff] }
 0x1ea   :  { %v966_v36 = vadd.f32 %v942_v16, %v850_v31  ;;  %1566 = vmatmul.f32.gmra.mxu0 %v4310_v27  ;;  %2097 = vmatpush.msra.mxu1 %v2082_v43  ;;  %v1962_v31 = vld [vmem:[#allocation3 + $0x310] sm:$0xff]  ;;  %v2079_v43 = vld [vmem:[#allocation3 + $0x3a8] sm:$0xff] }
 0x1eb   :  { %v1059_v33 = vpop.f32.mrf.mxu0  ;;  %1987 = vmatpush.msra.mxu0 %v1964_v4  ;;  %1873 = vmatpush.msra.mxu3 %v1846_v15 }
 0x1ec   :  { %v1080_v61 = vadd.f32 %v1056_v52, %v966_v36  ;;  %v622_v52 = vadd.f32 %v4083_v19, %v4100_v14  ;;  %2098 = vmatpush.msra.mxu1 %v2081_v24  ;;  %v1845_v36 = vld [vmem:[#allocation3 + $0x288] sm:$0xff]  ;;  %v832_v19 = vpop.f32.mrf.mxu2  ;;  %v1844_v14 = vld [vmem:[#allocation3 + $0x280] sm:$0xff] }
 0x1ed   :  { %1988 = vmatpush.msra.mxu0 %v1963_v1  ;;  %1874 = vmatpush.msra.mxu3 %v1845_v36  ;;  %v2203_v1 = vld [vmem:[#allocation3 + $0x478] sm:$0xff] }
 0x1ee   :  { %v4317_v0 = vmax.f32 %v1080_v61, 0.0  ;;  %2099 = vmatpush.msra.mxu1 %v2080_v46  ;;  %v736_v22 = vadd.f32 %v4096_v12, %v622_v52  ;;  %v1960_v61 = vld [vmem:[#allocation3 + $0x300] sm:$0xff]  ;;  %2204 = vmatpush.msra.mxu2 %v2203_v1  ;;  %v2076_v52 = vld [vmem:[#allocation3 + $0x390] sm:$0xff] }
 0x1ef   :  { %v4319_v37 = vld [vmem:[#allocation2 + $0xe0] sm:$0xff]  ;;  %1989 = vmatpush.msra.mxu0 %v1962_v31  ;;  %1875 = vmatpush.msra.mxu3 %v1844_v14  ;;  %v2077_v31 = vld [vmem:[#allocation3 + $0x398] sm:$0xff] }
 0x1f0   :  { %1198 = vst [vmem:[#allocation2 + $0xf1] sm:$0xff] %v4317_v0  ;;  %1341 = vmatmul.f32.gmra.mxu2 %v4319_v37  ;;  %1681 = vmatmul.f32.gmra.mxu1 %v4319_v37  ;;  %v4326_v16 = vld [vmem:[#allocation2 + $0xe2] sm:$0xff]  ;;  %v4333_v15 = vpop.f32.mrf.mxu1  ;;  %v852_v12 = vadd.f32 %v832_v19, %v736_v22  ;;  %v2202_v19 = vld [vmem:[#allocation3 + $0x470] sm:$0xff] }
 0x1f1   :  { %v945_v39 = vpop.f32.mrf.mxu3  ;;  %1458 = vmatmul.f32.gmra.mxu3 %v4317_v0  ;;  %1990 = vmatpush.msra.mxu0 %v1961_v41  ;;  %4626 = vst [vmem:[#allocation15_spill] sm:$0xff] %v4333_v15  ;;  %v2075_v41 = vld [vmem:[#allocation3 + $0x388] sm:$0xff] }
 0x1f2   :  { %v967_v4 = vadd.f32 %v945_v39, %v851_v8  ;;  %1569 = vmatmul.f32.gmra.mxu0 %v4326_v16  ;;  %2100 = vmatpush.msra.mxu1 %v2079_v43 }
 0x1f3   :  { %v1062_v46 = vpop.f32.mrf.mxu0  ;;  %1991 = vmatpush.msra.mxu0 %v1960_v61  ;;  %2205 = vmatpush.msra.mxu2 %v2202_v19 }
 0x1f4   :  { %v1081_v30 = vadd.f32 %v1059_v33, %v967_v4  ;;  %2101 = vmatpush.msra.mxu1 %v2078_v18  ;;  %v623_v33 = vadd.f32 %v4108_v44, %v4125_v2  ;;  %v2074_v2 = vld [vmem:[#allocation3 + $0x380] sm:$0xff]  ;;  %v835_v14 = vpop.f32.mrf.mxu2 }
 0x1f6   :  { %v4331_v24 = vmax.f32 %v1081_v30, 0.0  ;;  %2102 = vmatpush.msra.mxu1 %v2077_v31  ;;  %v737_v43 = vadd.f32 %v4121_v51, %v623_v33  ;;  %v2201_v33 = vld [vmem:[#allocation3 + $0x468] sm:$0xff] }
 0x1f7   :  { %v4335_v8 = vld [vmem:[#allocation2 + $0xf0] sm:$0xff]  ;;  %2206 = vmatpush.msra.mxu2 %v2201_v33 }
 0x1f8   :  { %1199 = vst [vmem:[#allocation2 + $0x101] sm:$0xff] %v4331_v24  ;;  %1344 = vmatmul.f32.gmra.mxu2 %v4335_v8  ;;  %1684 = vmatmul.f32.gmra.mxu1 %v4335_v8  ;;  %v4342_v39 = vld [vmem:[#allocation2 + $0xf2] sm:$0xff]  ;;  %v853_v61 = vadd.f32 %v835_v14, %v737_v43  ;;  %v4354_v51 = vpop.f32.mrf.mxu1 }
 0x1f9   :  { %v948_v36 = vpop.f32.mrf.mxu3  ;;  %1461 = vmatmul.f32.gmra.mxu3 %v4331_v24  ;;  %2103 = vmatpush.msra.mxu1 %v2076_v52  ;;  %4627 = vst [vmem:[#allocation16_spill] sm:$0xff] %v4354_v51  ;;  %v2197_v51 = vld [vmem:[#allocation3 + $0x448] sm:$0xff] }
 0x1fa   :  { %v968_v4 = vadd.f32 %v948_v36, %v852_v12  ;;  %1572 = vmatmul.f32.gmra.mxu0 %v4342_v39 }
 0x1fb   :  { %2104 = vmatpush.msra.mxu1 %v2075_v41  ;;  %v1065_v31 = vpop.f32.mrf.mxu0 }
 0x1fc   :  { %v1082_v44 = vadd.f32 %v1062_v46, %v968_v4  ;;  %v4382_v14 = vpop.f32.mrf.mxu2 }
 0x1fd   :  { %2105 = vmatpush.msra.mxu1 %v2074_v2 }
 0x1fe   :  { %v4347_v22 = vmax.f32 %v1082_v44, 0.0  ;;  %v2200_v44 = vld [vmem:[#allocation3 + $0x460] sm:$0xff] }
 0x1ff   :  { %v4349_v30 = vld [vmem:[#allocation2 + $0x100] sm:$0xff]  ;;  %2207 = vmatpush.msra.mxu2 %v2200_v44 }
 0x200   :  { %1200 = vst [vmem:[#allocation2 + $0x111] sm:$0xff] %v4347_v22  ;;  %1347 = vmatmul.f32.gmra.mxu2 %v4349_v30  ;;  %1687 = vmatmul.f32.gmra.mxu1 %v4349_v30  ;;  %v4356_v18 = vld [vmem:[#allocation2 + $0x102] sm:$0xff]  ;;  %v4372_v43 = vpop.f32.mrf.mxu1 }
 0x201   :  { %v951_v1 = vpop.f32.mrf.mxu3  ;;  %1464 = vmatmul.f32.gmra.mxu3 %v4347_v22  ;;  %4628 = vst [vmem:[#allocation17_spill] sm:$0xff] %v4372_v43 }
 0x202   :  { %v969_v46 = vadd.f32 %v951_v1, %v853_v61  ;;  %1575 = vmatmul.f32.gmra.mxu0 %v4356_v18  ;;  %v2199_v61 = vld [vmem:[#allocation3 + $0x458] sm:$0xff] }
 0x203   :  { %v4379_v19 = vpop.f32.mrf.mxu0  ;;  %2208 = vmatpush.msra.mxu2 %v2199_v61 }
 0x204   :  { %v1083_v12 = vadd.f32 %v1065_v31, %v969_v46 }
 0x206   :  { %v4360_v52 = vmax.f32 %v1083_v12, 0.0  ;;  %v2198_v12 = vld [vmem:[#allocation3 + $0x450] sm:$0xff] }
 0x207   :  { %v4362_v36 = vld [vmem:[#allocation2 + $0x110] sm:$0xff]  ;;  %2209 = vmatpush.msra.mxu2 %v2198_v12  ;;  %v2196_v12 = vld [vmem:[#allocation3 + $0x440] sm:$0xff] }
 0x208   :  { %1201 = vst [vmem:[#allocation2 + $0x121] sm:$0xff] %v4360_v52  ;;  %1350 = vmatmul.f32.gmra.mxu2 %v4362_v36  ;;  %1690 = vmatmul.f32.gmra.mxu1 %v4362_v36  ;;  %v4367_v4 = vld [vmem:[#allocation2 + $0x112] sm:$0xff] }
 0x209   :  { %1876 = vmatmul.f32.vlgmr.msra.gmra.mxu3 %v4164_v26  ;;  %v4370_v41 = vpop.f32.mrf.mxu3  ;;  %2210 = vmatpush.msra.mxu2 %v2197_v51 }
 0x20a   :  { %1578 = vmatmul.f32.gmra.mxu0 %v4367_v4 }
 0x20b   :  { %2211 = vmatpush.msra.mxu2 %v2196_v12 }
 0x20f   :  { %v4375_v2 = vld [vmem:[#allocation2 + $0x120] sm:$0xff] }
 0x210   :  { %1693 = vmatmul.f32.gmra.mxu1 %v4375_v2  ;;  %1762 = vmatmul.f32.vlgmr.msrb.gmra.mxu2 %v4147_v62  ;;  %v4393_v62 = vld [vmem:[%s4616_s4] ss:$0 sm:$0xff] }
 0x211   :  { %1879 = vmatmul.f32.gmra.mxu3 %v4179_v49 }
 0x212   :  { %1992 = vmatmul.f32.vlgmr.msra.gmra.mxu0 %v4172_v13 }
 0x213   :  { %v1423_v26 = vpop.f32.mrf.mxu3 }
 0x215   :  { %v4385_v1 = vpop.f32.mrf.mxu1 }
 0x216   :  { %v1537_v31 = vpop.f32.mrf.mxu0 }
 0x218   :  { %1765 = vmatmul.f32.gmra.mxu2 %v4158_v38  ;;  %2106 = vmatmul.f32.vlgmr.msra.gmra.mxu1 %v4158_v38 }
 0x219   :  { %1882 = vmatmul.f32.gmra.mxu3 %v4194_v50 }
 0x21a   :  { %1995 = vmatmul.f32.gmra.mxu0 %v4187_v57 }
 0x21b   :  { %v1309_v49 = vpop.f32.mrf.mxu2 }
 0x21c   :  { %v1355_v13 = vadd.f32 %v4393_v62, %v1309_v49  ;;  %v1426_v46 = vpop.f32.mrf.mxu3 }
 0x21d   :  { %v1652_v33 = vpop.f32.mrf.mxu1 }
 0x21e   :  { %v1469_v44 = vadd.f32 %v1423_v26, %v1355_v13  ;;  %v1540_v38 = vpop.f32.mrf.mxu0 }
 0x220   :  { %v1583_v61 = vadd.f32 %v1537_v31, %v1469_v44  ;;  %1768 = vmatmul.f32.gmra.mxu2 %v4170_v63  ;;  %2109 = vmatmul.f32.gmra.mxu1 %v4170_v63 }
 0x221   :  { %1885 = vmatmul.f32.gmra.mxu3 %v4209_v17 }
 0x222   :  { %v4400_v50 = vadd.f32 %v1652_v33, %v1583_v61  ;;  %1998 = vmatmul.f32.gmra.mxu0 %v4202_v53  ;;  %v2195_v61 = vld [vmem:[#allocation3 + $0x438] sm:$0xff] }
 0x223   :  { %v1312_v43 = vpop.f32.mrf.mxu2  ;;  %2212 = vmatpush.msra.mxu2 %v2195_v61 }
 0x224   :  { %v1356_v57 = vadd.f32 %v4393_v62, %v1312_v43  ;;  %v1429_v49 = vpop.f32.mrf.mxu3 }
 0x225   :  { %v1655_v15 = vpop.f32.mrf.mxu1 }
 0x226   :  { %v1470_v26 = vadd.f32 %v1426_v46, %v1356_v57  ;;  %v1543_v63 = vpop.f32.mrf.mxu0 }
 0x228   :  { %v1584_v31 = vadd.f32 %v1540_v38, %v1470_v26  ;;  %1771 = vmatmul.f32.gmra.mxu2 %v4185_v59  ;;  %2112 = vmatmul.f32.gmra.mxu1 %v4185_v59 }
 0x229   :  { %1888 = vmatmul.f32.gmra.mxu3 %v4224_v29 }
 0x22a   :  { %v4407_v17 = vadd.f32 %v1655_v15, %v1584_v31  ;;  %2001 = vmatmul.f32.gmra.mxu0 %v4217_v5 }
 0x22b   :  { %v1315_v13 = vpop.f32.mrf.mxu2 }
 0x22c   :  { %v1357_v53 = vadd.f32 %v4393_v62, %v1315_v13  ;;  %v1432_v43 = vpop.f32.mrf.mxu3 }
 0x22d   :  { %v1658_v33 = vpop.f32.mrf.mxu1 }
 0x22e   :  { %v1471_v51 = vadd.f32 %v1429_v49, %v1357_v53  ;;  %v1546_v59 = vpop.f32.mrf.mxu0 }
 0x230   :  { %v1585_v46 = vadd.f32 %v1543_v63, %v1471_v51  ;;  %1774 = vmatmul.f32.gmra.mxu2 %v4200_v54  ;;  %2115 = vmatmul.f32.gmra.mxu1 %v4200_v54  ;;  %v2194_v63 = vld [vmem:[#allocation3 + $0x430] sm:$0xff] }
 0x231   :  { %1891 = vmatmul.f32.gmra.mxu3 %v4241_v20  ;;  %2213 = vmatpush.msra.mxu2 %v2194_v63 }
 0x232   :  { %v4414_v29 = vadd.f32 %v1658_v33, %v1585_v46  ;;  %2004 = vmatmul.f32.gmra.mxu0 %v4232_v34  ;;  %v2193_v46 = vld [vmem:[#allocation3 + $0x428] sm:$0xff] }
 0x233   :  { %v1318_v15 = vpop.f32.mrf.mxu2  ;;  %2214 = vmatpush.msra.mxu2 %v2193_v46 }
 0x234   :  { %v1358_v5 = vadd.f32 %v4393_v62, %v1318_v15  ;;  %v1435_v44 = vpop.f32.mrf.mxu3 }
 0x235   :  { %v1661_v38 = vpop.f32.mrf.mxu1 }
 0x236   :  { %v1472_v57 = vadd.f32 %v1432_v43, %v1358_v5  ;;  %v1549_v54 = vpop.f32.mrf.mxu0 }
 0x238   :  { %v1586_v49 = vadd.f32 %v1546_v59, %v1472_v57  ;;  %1777 = vmatmul.f32.gmra.mxu2 %v4215_v32  ;;  %2118 = vmatmul.f32.gmra.mxu1 %v4215_v32  ;;  %v4427_v32 = vld [vmem:[#allocation2 + $0x82] sm:$0xff] }
 0x239   :  { %1894 = vmatmul.f32.gmra.mxu3 %v4257_v28 }
 0x23a   :  { %v4421_v20 = vadd.f32 %v1661_v38, %v1586_v49  ;;  %2007 = vmatmul.f32.gmra.mxu0 %v4248_v47  ;;  %v2192_v49 = vld [vmem:[#allocation3 + $0x420] sm:$0xff] }
 0x23b   :  { %v1321_v26 = vpop.f32.mrf.mxu2  ;;  %2215 = vmatpush.msra.mxu2 %v2192_v49 }
 0x23c   :  { %v1359_v34 = vadd.f32 %v4393_v62, %v1321_v26  ;;  %v1438_v31 = vpop.f32.mrf.mxu3  ;;  %v2064_v26 = vld [vmem:[#allocation2 + $0x91] sm:$0xff] }
 0x23d   :  { %v1664_v13 = vpop.f32.mrf.mxu1 }
 0x23e   :  { %v1473_v53 = vadd.f32 %v1435_v44, %v1359_v34  ;;  %v1552_v28 = vpop.f32.mrf.mxu0  ;;  %v1949_v44 = vld [vmem:[#allocation2 + $0x90] sm:$0xff] }
 0x240   :  { %v1587_v43 = vadd.f32 %v1549_v54, %v1473_v53  ;;  %1780 = vmatmul.f32.gmra.mxu2 %v4230_v3  ;;  %2121 = vmatmul.f32.gmra.mxu1 %v4230_v3 }
 0x241   :  { %1897 = vmatmul.f32.gmra.mxu3 %v4427_v32 }
 0x242   :  { %v4430_v12 = vadd.f32 %v1664_v13, %v1587_v43  ;;  %2010 = vmatmul.f32.gmra.mxu0 %v4263_v40  ;;  %v2191_v43 = vld [vmem:[#allocation3 + $0x418] sm:$0xff] }
 0x243   :  { %v1324_v47 = vpop.f32.mrf.mxu2  ;;  %2216 = vmatpush.msra.mxu2 %v2191_v43 }
 0x244   :  { %v1360_v33 = vadd.f32 %v4393_v62, %v1324_v47  ;;  %v1441_v51 = vpop.f32.mrf.mxu3 }
 0x245   :  { %v1667_v59 = vpop.f32.mrf.mxu1 }
 0x246   :  { %v1474_v15 = vadd.f32 %v1438_v31, %v1360_v33  ;;  %v1555_v3 = vpop.f32.mrf.mxu0 }
 0x248   :  { %v1588_v5 = vadd.f32 %v1552_v28, %v1474_v15  ;;  %1783 = vmatmul.f32.gmra.mxu2 %v4246_v45  ;;  %2124 = vmatmul.f32.gmra.mxu1 %v4246_v45 }
 0x249   :  { %1900 = vmatmul.f32.gmra.mxu3 %v4280_v21 }
 0x24a   :  { %v4437_v61 = vadd.f32 %v1667_v59, %v1588_v5  ;;  %2013 = vmatmul.f32.gmra.mxu0 %v1949_v44  ;;  %v2190_v59 = vld [vmem:[#allocation3 + $0x410] sm:$0xff] }
 0x24b   :  { %v1327_v38 = vpop.f32.mrf.mxu2  ;;  %2217 = vmatpush.msra.mxu2 %v2190_v59 }
 0x24c   :  { %v1361_v40 = vadd.f32 %v4393_v62, %v1327_v38  ;;  %v1444_v57 = vpop.f32.mrf.mxu3  ;;  %v2189_v38 = vld [vmem:[#allocation3 + $0x408] sm:$0xff] }
 0x24d   :  { %v1670_v54 = vpop.f32.mrf.mxu1  ;;  %2218 = vmatpush.msra.mxu2 %v2189_v38 }
 0x24e   :  { %v1475_v34 = vadd.f32 %v1441_v51, %v1361_v40  ;;  %v1558_v45 = vpop.f32.mrf.mxu0 }
 0x250   :  { %v1589_v31 = vadd.f32 %v1555_v3, %v1475_v34  ;;  %1786 = vmatmul.f32.gmra.mxu2 %v4261_v23  ;;  %2127 = vmatmul.f32.gmra.mxu1 %v2064_v26  ;;  %v2188_v26 = vld [vmem:[#allocation3 + $0x400] sm:$0xff] }
 0x251   :  { %1903 = vmatmul.f32.gmra.mxu3 %v4294_v35  ;;  %2219 = vmatpush.msra.mxu2 %v2188_v26  ;;  %v2072_v26 = vld [vmem:[#allocation2 + $0x131] sm:$0xff] }
 0x252   :  { %v4442_v21 = vadd.f32 %v1670_v54, %v1589_v31  ;;  %2016 = vmatmul.f32.gmra.mxu0 %v4287_v58 }
 0x253   :  { %v1330_v63 = vpop.f32.mrf.mxu2 }
 0x254   :  { %v1362_v13 = vadd.f32 %v4393_v62, %v1330_v63  ;;  %v1447_v53 = vpop.f32.mrf.mxu3 }
 0x255   :  { %v1673_v28 = vpop.f32.mrf.mxu1 }
 0x256   :  { %v1476_v47 = vadd.f32 %v1444_v57, %v1362_v13  ;;  %v1561_v23 = vpop.f32.mrf.mxu0 }
 0x258   :  { %v1590_v33 = vadd.f32 %v1558_v45, %v1476_v47  ;;  %1789 = vmatmul.f32.gmra.mxu2 %v4273_v7  ;;  %2130 = vmatmul.f32.gmra.mxu1 %v4273_v7 }
 0x259   :  { %1906 = vmatmul.f32.gmra.mxu3 %v4310_v27 }
 0x25a   :  { %v4449_v35 = vadd.f32 %v1673_v28, %v1590_v33  ;;  %2019 = vmatmul.f32.gmra.mxu0 %v4303_v60 }
 0x25b   :  { %v1333_v51 = vpop.f32.mrf.mxu2 }
 0x25c   :  { %v1363_v58 = vadd.f32 %v4393_v62, %v1333_v51  ;;  %v1450_v46 = vpop.f32.mrf.mxu3 }
 0x25d   :  { %v1676_v15 = vpop.f32.mrf.mxu1 }
 0x25e   :  { %v1477_v5 = vadd.f32 %v1447_v53, %v1363_v58  ;;  %v1564_v7 = vpop.f32.mrf.mxu0 }
 0x260   :  { %v1591_v3 = vadd.f32 %v1561_v23, %v1477_v5  ;;  %1792 = vmatmul.f32.gmra.mxu2 %v4285_v11  ;;  %2133 = vmatmul.f32.gmra.mxu1 %v4285_v11 }
 0x261   :  { %1909 = vmatmul.f32.gmra.mxu3 %v4326_v16 }
 0x262   :  { %v4456_v27 = vadd.f32 %v1676_v15, %v1591_v3  ;;  %2022 = vmatmul.f32.gmra.mxu0 %v4319_v37  ;;  %v4483_v15 = vld [vmem:[#allocation2 + $0x122] sm:$0xff] }
 0x263   :  { %v1336_v44 = vpop.f32.mrf.mxu2 }
 0x264   :  { %v1364_v60 = vadd.f32 %v4393_v62, %v1336_v44  ;;  %v1453_v57 = vpop.f32.mrf.mxu3  ;;  %v1354_v44 = vadd.f32 %v4393_v62, %v4382_v14 }
 0x265   :  { %v1679_v40 = vpop.f32.mrf.mxu1 }
 0x266   :  { %v1478_v49 = vadd.f32 %v1450_v46, %v1364_v60 }
 0x267   :  { %v1567_v11 = vpop.f32.mrf.mxu0 }
 0x268   :  { %v1592_v54 = vadd.f32 %v1564_v7, %v1478_v49  ;;  %1795 = vmatmul.f32.gmra.mxu2 %v4301_v55  ;;  %2136 = vmatmul.f32.gmra.mxu1 %v4301_v55 }
 0x269   :  { %1912 = vmatmul.f32.gmra.mxu3 %v4342_v39 }
 0x26a   :  { %v4463_v16 = vadd.f32 %v1679_v40, %v1592_v54  ;;  %2025 = vmatmul.f32.gmra.mxu0 %v4335_v8 }
 0x26b   :  { %v1339_v34 = vpop.f32.mrf.mxu2 }
 0x26c   :  { %v1365_v37 = vadd.f32 %v4393_v62, %v1339_v34  ;;  %v1456_v63 = vpop.f32.mrf.mxu3 }
 0x26d   :  { %v1682_v31 = vpop.f32.mrf.mxu1 }
 0x26e   :  { %v1479_v45 = vadd.f32 %v1453_v57, %v1365_v37  ;;  %v1468_v57 = vadd.f32 %v4370_v41, %v1354_v44 }
 0x26f   :  { %v1570_v55 = vpop.f32.mrf.mxu0 }
 0x270   :  { %v1593_v13 = vadd.f32 %v1567_v11, %v1479_v45  ;;  %1798 = vmatmul.f32.gmra.mxu2 %v4317_v0  ;;  %2139 = vmatmul.f32.gmra.mxu1 %v4317_v0  ;;  %v1582_v14 = vadd.f32 %v4379_v19, %v1468_v57  ;;  %v2173_v19 = vld [vmem:[#allocation2 + $0x42] sm:$0xff] }
 0x271   :  { %1915 = vmatmul.f32.gmra.mxu3 %v4356_v18 }
 0x272   :  { %v4470_v39 = vadd.f32 %v1682_v31, %v1593_v13  ;;  %2028 = vmatmul.f32.gmra.mxu0 %v4349_v30  ;;  %v2171_v31 = vld [vmem:[#allocation2 + $0x22] sm:$0xff] }
 0x273   :  { %v1342_v53 = vpop.f32.mrf.mxu2 }
 0x274   :  { %v1366_v8 = vadd.f32 %v4393_v62, %v1342_v53  ;;  %v1459_v33 = vpop.f32.mrf.mxu3 }
 0x275   :  { %v1685_v43 = vpop.f32.mrf.mxu1 }
 0x276   :  { %v1480_v28 = vadd.f32 %v1456_v63, %v1366_v8  ;;  %v1697_v63 = vadd.f32 %v4385_v1, %v1582_v14 }
 0x277   :  { %v1573_v23 = vpop.f32.mrf.mxu0 }
 0x278   :  { %v1594_v47 = vadd.f32 %v1570_v55, %v1480_v28  ;;  %1801 = vmatmul.f32.gmra.mxu2 %v4331_v24  ;;  %2142 = vmatmul.f32.gmra.mxu1 %v4331_v24 }
 0x279   :  { %1918 = vmatmul.f32.gmra.mxu3 %v4367_v4 }
 0x27a   :  { %v4477_v0 = vadd.f32 %v1685_v43, %v1594_v47  ;;  %2031 = vmatmul.f32.gmra.mxu0 %v4362_v36  ;;  %v2174_v47 = vld [vmem:[#allocation2 + $0x52] sm:$0xff] }
 0x27b   :  { %v1345_v51 = vpop.f32.mrf.mxu2 }
 0x27c   :  { %v1367_v30 = vadd.f32 %v4393_v62, %v1345_v51  ;;  %v1462_v3 = vpop.f32.mrf.mxu3 }
 0x27d   :  { %v1688_v58 = vpop.f32.mrf.mxu1 }
 0x27e   :  { %v1481_v46 = vadd.f32 %v1459_v33, %v1367_v30 }
 0x27f   :  { %v1576_v7 = vpop.f32.mrf.mxu0 }
 0x280   :  { %v1595_v59 = vadd.f32 %v1573_v23, %v1481_v46  ;;  %1804 = vmatmul.f32.gmra.mxu2 %v4347_v22  ;;  %2145 = vmatmul.f32.gmra.mxu1 %v4347_v22  ;;  %v1958_v22 = vld [vmem:[#allocation2 + $0x130] sm:$0xff]  ;;  %v2175_v23 = vld [vmem:[#allocation2 + $0x62] sm:$0xff] }
 0x281   :  { %1921 = vmatmul.f32.gmra.mxu3 %v4483_v15 }
 0x282   :  { %v4486_v24 = vadd.f32 %v1688_v58, %v1595_v59  ;;  %2034 = vmatmul.f32.gmra.mxu0 %v4375_v2 }
 0x283   :  { %v1348_v5 = vpop.f32.mrf.mxu2 }
 0x284   :  { %v1368_v36 = vadd.f32 %v4393_v62, %v1348_v5  ;;  %v1465_v11 = vpop.f32.mrf.mxu3 }
 0x285   :  { %v1691_v38 = vpop.f32.mrf.mxu1 }
 0x286   :  { %v1482_v60 = vadd.f32 %v1462_v3, %v1368_v36 }
 0x287   :  { %v1579_v37 = vpop.f32.mrf.mxu0 }
 0x288   :  { %v1596_v40 = vadd.f32 %v1576_v7, %v1482_v60  ;;  %1807 = vmatmul.f32.gmra.mxu2 %v4360_v52  ;;  %2148 = vmatmul.f32.gmra.mxu1 %v4360_v52 }
 0x28a   :  { %v4495_v49 = vadd.f32 %v1691_v38, %v1596_v40  ;;  %2037 = vmatmul.f32.gmra.mxu0 %v1958_v22 }
 0x28b   :  { %v1351_v54 = vpop.f32.mrf.mxu2 }
 0x28c   :  { %v1369_v2 = vadd.f32 %v4393_v62, %v1351_v54  ;;  %v2172_v62 = vld [vmem:[#allocation2 + $0x32] sm:$0xff]  ;;  %v1877_v40 = vpop.f32.mrf.mxu3 }
 0x28d   :  { %v1694_v52 = vpop.f32.mrf.mxu1 }
 0x28e   :  { %v1483_v34 = vadd.f32 %v1465_v11, %v1369_v2 }
 0x290   :  { %v1597_v45 = vadd.f32 %v1579_v37, %v1483_v34  ;;  %2220 = vmatmul.f32.vlgmr.msra.gmra.mxu2 %v2171_v31  ;;  %2151 = vmatmul.f32.gmra.mxu1 %v2072_v26 }
 0x292   :  { %v4500_v41 = vadd.f32 %v1694_v52, %v1597_v45  ;;  %v2186_v45 = vld [vmem:[#allocation2 + $0x132] sm:$0xff] }
 0x293   :  { %v1763_v13 = vpop.f32.mrf.mxu2 }
 0x294   :  { %v4502_v55 = vadd.f32 %v1763_v13, %v1697_v63  ;;  %v1880_v11 = vpop.f32.mrf.mxu3 }
 0x295   :  { %v2107_v54 = vpop.f32.mrf.mxu1 }
 0x298   :  { %2223 = vmatmul.f32.gmra.mxu2 %v2172_v62 }
 0x29b   :  { %v1766_v53 = vpop.f32.mrf.mxu2 }
 0x29c   :  { %v4505_v8 = vadd.f32 %v1766_v53, %v4400_v50  ;;  %v2176_v50 = vld [vmem:[#allocation2 + $0x72] sm:$0xff]  ;;  %v1883_v37 = vpop.f32.mrf.mxu3 }
 0x29d   :  { %v2110_v34 = vpop.f32.mrf.mxu1 }
 0x2a0   :  { %2226 = vmatmul.f32.gmra.mxu2 %v2173_v19  ;;  %v1926_v19 = vadd.f32 %v1880_v11, %v4505_v8 }
 0x2a3   :  { %v1769_v43 = vpop.f32.mrf.mxu2 }
 0x2a4   :  { %v4508_v28 = vadd.f32 %v1769_v43, %v4407_v17  ;;  %v1886_v52 = vpop.f32.mrf.mxu3 }
 0x2a8   :  { %2229 = vmatmul.f32.gmra.mxu2 %v2174_v47 }
 0x2ab   :  { %v1772_v1 = vpop.f32.mrf.mxu2 }
 0x2ac   :  { %v4511_v33 = vadd.f32 %v1772_v1, %v4414_v29  ;;  %v2178_v29 = vld [vmem:[#allocation2 + $0x92] sm:$0xff]  ;;  %v1889_v43 = vpop.f32.mrf.mxu3 }
 0x2b0   :  { %2232 = vmatmul.f32.gmra.mxu2 %v2175_v23 }
 0x2b3   :  { %v1775_v51 = vpop.f32.mrf.mxu2 }
 0x2b4   :  { %v4514_v30 = vadd.f32 %v1775_v51, %v4421_v20  ;;  %v2179_v20 = vld [vmem:[#allocation2 + $0xc2] sm:$0xff] }
 0x2b8   :  { %2235 = vmatmul.f32.gmra.mxu2 %v2176_v50 }
 0x2bb   :  { %v1778_v58 = vpop.f32.mrf.mxu2 }
 0x2bc   :  { %v4517_v46 = vadd.f32 %v1778_v58, %v4430_v12  ;;  %v2180_v12 = vld [vmem:[#allocation2 + $0xd2] sm:$0xff] }
 0x2c0   :  { %2238 = vmatmul.f32.gmra.mxu2 %v4427_v32 }
 0x2c3   :  { %v1781_v17 = vpop.f32.mrf.mxu2 }
 0x2c4   :  { %v4521_v59 = vadd.f32 %v1781_v17, %v4437_v61  ;;  %v2181_v61 = vld [vmem:[#allocation2 + $0xe2] sm:$0xff]  ;;  %v1927_v17 = vadd.f32 %v1883_v37, %v4508_v28 }
 0x2c8   :  { %2241 = vmatmul.f32.gmra.mxu2 %v2178_v29 }
 0x2cb   :  { %v1784_v5 = vpop.f32.mrf.mxu2 }
 0x2cc   :  { %v4524_v3 = vadd.f32 %v1784_v5, %v4442_v21  ;;  %v2182_v21 = vld [vmem:[#allocation2 + $0xf2] sm:$0xff] }
 0x2d0   :  { %2244 = vmatmul.f32.gmra.mxu2 %v2179_v20 }
 0x2d3   :  { %v1787_v36 = vpop.f32.mrf.mxu2 }
 0x2d4   :  { %v4527_v7 = vadd.f32 %v1787_v36, %v4449_v35  ;;  %v1993_v35 = vpop.f32.mrf.mxu0  ;;  %v1892_v36 = vpop.f32.mrf.mxu3 }
 0x2d8   :  { %2247 = vmatmul.f32.gmra.mxu2 %v2180_v12 }
 0x2db   :  { %v1790_v44 = vpop.f32.mrf.mxu2 }
 0x2dc   :  { %v4530_v32 = vadd.f32 %v1790_v44, %v4456_v27  ;;  %v1895_v11 = vpop.f32.mrf.mxu3 }
 0x2e0   :  { %2250 = vmatmul.f32.gmra.mxu2 %v2181_v61 }
 0x2e3   :  { %v1793_v60 = vpop.f32.mrf.mxu2 }
 0x2e4   :  { %v4533_v38 = vadd.f32 %v1793_v60, %v4463_v16  ;;  %v1996_v16 = vpop.f32.mrf.mxu0 }
 0x2e5   :  { %v2042_v23 = vadd.f32 %v1996_v16, %v1926_v19 }
 0x2e7   :  { %v2156_v58 = vadd.f32 %v2110_v34, %v2042_v23 }
 0x2e8   :  { %2253 = vmatmul.f32.gmra.mxu2 %v2182_v21  ;;  %v1928_v21 = vadd.f32 %v1886_v52, %v4511_v33  ;;  %v1898_v52 = vpop.f32.mrf.mxu3 }
 0x2eb   :  { %v1796_v22 = vpop.f32.mrf.mxu2 }
 0x2ec   :  { %v4536_v57 = vadd.f32 %v1796_v22, %v4470_v39  ;;  %v1999_v39 = vpop.f32.mrf.mxu0 }
 0x2ed   :  { %v2043_v12 = vadd.f32 %v1999_v39, %v1927_v17 }
 0x2f0   :  { %2256 = vmatmul.f32.gmra.mxu2 %v4356_v18 }
 0x2f3   :  { %v1799_v2 = vpop.f32.mrf.mxu2 }
 0x2f4   :  { %v4540_v27 = vadd.f32 %v1799_v2, %v4477_v0  ;;  %v2113_v0 = vpop.f32.mrf.mxu1 }
 0x2f5   :  { %v2157_v60 = vadd.f32 %v2113_v0, %v2043_v12 }
 0x2f8   :  { %2259 = vmatmul.f32.gmra.mxu2 %v4367_v4  ;;  %v1925_v4 = vadd.f32 %v1877_v40, %v4502_v55 }
 0x2fa   :  { %v2041_v62 = vadd.f32 %v1993_v35, %v1925_v4 }
 0x2fb   :  { %v1802_v26 = vpop.f32.mrf.mxu2 }
 0x2fc   :  { %v4544_v14 = vadd.f32 %v1802_v26, %v4486_v24  ;;  %v2002_v24 = vpop.f32.mrf.mxu0  ;;  %v2116_v53 = vpop.f32.mrf.mxu1  ;;  %v1929_v26 = vadd.f32 %v1889_v43, %v4514_v30 }
 0x300   :  { %2262 = vmatmul.f32.gmra.mxu2 %v4483_v15  ;;  %v4557_v15 = vld [vmem:[%s4618_s6] ss:$0 sm:$0xff]  ;;  %s2720_s6 = smov [#allocation6]  }
 0x301   :  { %v1138_v55 = vadd.f32 %v4557_v15, %v4138_v10  ;;  %v1141_v20 = vadd.f32 %v4557_v15, %v4154_v25  ;;  %v1144_v28 = vadd.f32 %v4557_v15, %v4162_v9  ;;  %v1147_v33 = vadd.f32 %v4557_v15, %v4177_v48  ;;  %s2337_s14 = sshll.u32 %s2720_s6, 4  ;;  %s2338_s14 = int_to_ptr.vmem [resolvable:$true] %s2337_s14 }
 0x302   :  { %v1150_v30 = vadd.f32 %v4557_v15, %v4192_v56 }
 0x303   :  { %v1805_v31 = vpop.f32.mrf.mxu2 }
 0x304   :  { %v4548_v18 = vadd.f32 %v1805_v31, %v4495_v49  ;;  %v2155_v49 = vadd.f32 %v2107_v54, %v2041_v62  ;;  %v2005_v51 = vpop.f32.mrf.mxu0  ;;  %v2119_v29 = vpop.f32.mrf.mxu1  ;;  %v2044_v54 = vadd.f32 %v2002_v24, %v1928_v21 }
 0x305   :  { %v2045_v31 = vadd.f32 %v2005_v51, %v1929_v26 }
 0x306   :  { %v2158_v16 = vadd.f32 %v2116_v53, %v2044_v54 }
 0x307   :  { %v2159_v4 = vadd.f32 %v2119_v29, %v2045_v31  ;;  %v4632_v31 = vld [vmem:[#allocation12_spill] sm:$0xff] }
 0x308   :  { %2265 = vmatmul.f32.gmra.mxu2 %v2186_v45 }
 0x30b   :  { %v1808_v63 = vpop.f32.mrf.mxu2 }
 0x30c   :  { %v4552_v13 = vadd.f32 %v1808_v63, %v4500_v41  ;;  %v2008_v10 = vpop.f32.mrf.mxu0  ;;  %v2122_v35 = vpop.f32.mrf.mxu1  ;;  %v1930_v63 = vadd.f32 %v1892_v36, %v4517_v46  ;;  %v4630_v36 = vld [vmem:[#allocation10_spill] sm:$0xff] }
 0x313   :  { %v2221_v47 = vpop.f32.mrf.mxu2 }
 0x314   :  { %v2269_v1 = vadd.f32 %v2221_v47, %v2155_v49  ;;  %v2011_v34 = vpop.f32.mrf.mxu0  ;;  %v2125_v0 = vpop.f32.mrf.mxu1  ;;  %v2046_v49 = vadd.f32 %v2008_v10, %v1930_v63 }
 0x316   :  { %v2285_v41 = vadd.f32 %v2269_v1, %v1138_v55  ;;  %v2160_v47 = vadd.f32 %v2122_v35, %v2046_v49  ;;  %v1931_v55 = vadd.f32 %v1895_v11, %v4521_v59  ;;  %v1901_v1 = vpop.f32.mrf.mxu3  ;;  %v1156_v59 = vadd.f32 %v4557_v15, %v4630_v36  ;;  %v4631_v35 = vld [vmem:[#allocation11_spill] sm:$0xff] }
 0x318   :  { %v2301_v50 = vmax.f32 %v2285_v41, 0.0  ;;  %v4629_v41 = vld [vmem:[#allocation9_spill] sm:$0xff] }
 0x319   :  { %v1153_v46 = vadd.f32 %v4557_v15, %v4629_v41 }
 0x31a   :  { %2317 = vst [vmem:[#allocation6] sm:$0xff] %v2301_v50  ;;  %v2047_v50 = vadd.f32 %v2011_v34, %v1931_v55 }
 0x31b   :  { %v2224_v5 = vpop.f32.mrf.mxu2 }
 0x31c   :  { %v2270_v8 = vadd.f32 %v2224_v5, %v2156_v58  ;;  %v2014_v53 = vpop.f32.mrf.mxu0  ;;  %v2128_v48 = vpop.f32.mrf.mxu1  ;;  %v2161_v29 = vadd.f32 %v2125_v0, %v2047_v50  ;;  %v1932_v5 = vadd.f32 %v1898_v52, %v4524_v3  ;;  %v1159_v3 = vadd.f32 %v4557_v15, %v4631_v35 }
 0x31e   :  { %v2286_v44 = vadd.f32 %v2270_v8, %v1141_v20 }
 0x320   :  { %v2302_v61 = vmax.f32 %v2286_v44, 0.0  ;;  %v1904_v44 = vpop.f32.mrf.mxu3 }
 0x322   :  { %2318 = vst [vmem:[#allocation6 + $0x8] sm:$0xff] %v2302_v61  ;;  %v2048_v61 = vadd.f32 %v2014_v53, %v1932_v5  ;;  %v4633_v53 = vld [vmem:[#allocation13_spill] sm:$0xff] }
 0x323   :  { %v2227_v40 = vpop.f32.mrf.mxu2 }
 0x324   :  { %v2271_v22 = vadd.f32 %v2227_v40, %v2157_v60  ;;  %v2017_v17 = vpop.f32.mrf.mxu0  ;;  %v2131_v20 = vpop.f32.mrf.mxu1  ;;  %v2162_v40 = vadd.f32 %v2128_v48, %v2048_v61 }
 0x326   :  { %v2287_v2 = vadd.f32 %v2271_v22, %v1144_v28  ;;  %v1933_v28 = vadd.f32 %v1901_v1, %v4527_v7  ;;  %v1162_v7 = vadd.f32 %v4557_v15, %v4632_v31 }
 0x328   :  { %v2303_v25 = vmax.f32 %v2287_v2, 0.0  ;;  %v2049_v11 = vadd.f32 %v2017_v17, %v1933_v28 }
 0x32a   :  { %2319 = vst [vmem:[#allocation6 + $0x10] sm:$0xff] %v2303_v25  ;;  %v2163_v34 = vadd.f32 %v2131_v20, %v2049_v11 }
 0x32b   :  { %v2230_v37 = vpop.f32.mrf.mxu2 }
 0x32c   :  { %v2272_v39 = vadd.f32 %v2230_v37, %v2158_v16  ;;  %v2020_v21 = vpop.f32.mrf.mxu0  ;;  %v2134_v2 = vpop.f32.mrf.mxu1  ;;  %v1934_v37 = vadd.f32 %v1904_v44, %v4530_v32  ;;  %v1165_v32 = vadd.f32 %v4557_v15, %v4633_v53 }
 0x32d   :  { %v1907_v16 = vpop.f32.mrf.mxu3 }
 0x32e   :  { %v2288_v45 = vadd.f32 %v2272_v39, %v1147_v33  ;;  %v2050_v0 = vadd.f32 %v2020_v21, %v1934_v37 }
 0x330   :  { %v2304_v9 = vmax.f32 %v2288_v45, 0.0 }
 0x332   :  { %2320 = vst [vmem:[#allocation6 + $0x18] sm:$0xff] %v2304_v9 }
 0x333   :  { %v2233_v24 = vpop.f32.mrf.mxu2 }
 0x334   :  { %v2273_v62 = vadd.f32 %v2233_v24, %v2159_v4  ;;  %v2023_v33 = vpop.f32.mrf.mxu0  ;;  %v2137_v52 = vpop.f32.mrf.mxu1  ;;  %v2164_v24 = vadd.f32 %v2134_v2, %v2050_v0 }
 0x335   :  { %v1910_v63 = vpop.f32.mrf.mxu3 }
 0x336   :  { %v2289_v19 = vadd.f32 %v2273_v62, %v1150_v30  ;;  %v1935_v30 = vadd.f32 %v1907_v16, %v4533_v38 }
 0x338   :  { %v2305_v43 = vmax.f32 %v2289_v19, 0.0 }
 0x33a   :  { %2321 = vst [vmem:[#allocation6 + $0x20] sm:$0xff] %v2305_v43  ;;  %v2051_v43 = vadd.f32 %v2023_v33, %v1935_v30 }
 0x33b   :  { %v2236_v23 = vpop.f32.mrf.mxu2 }
 0x33c   :  { %v2274_v51 = vadd.f32 %v2236_v23, %v2160_v47  ;;  %v2026_v19 = vpop.f32.mrf.mxu0  ;;  %v2140_v55 = vpop.f32.mrf.mxu1  ;;  %v2165_v1 = vadd.f32 %v2137_v52, %v2051_v43  ;;  %v1936_v23 = vadd.f32 %v1910_v63, %v4536_v57  ;;  %v1171_v57 = vadd.f32 %v4557_v15, %v4297_v42 }
 0x33d   :  { %v1913_v41 = vpop.f32.mrf.mxu3 }
 0x33e   :  { %v2290_v58 = vadd.f32 %v2274_v51, %v1153_v46  ;;  %v4634_v51 = vld [vmem:[#allocation14_spill] sm:$0xff]  ;;  %v1937_v20 = vadd.f32 %v1913_v41, %v4540_v27  ;;  %v1174_v27 = vadd.f32 %v4557_v15, %v4315_v6 }
 0x33f   :  { %v1168_v38 = vadd.f32 %v4557_v15, %v4634_v51 }
 0x340   :  { %v2306_v56 = vmax.f32 %v2290_v58, 0.0  ;;  %v2052_v58 = vadd.f32 %v2026_v19, %v1936_v23  ;;  %v4637_v19 = vld [vmem:[#allocation17_spill] sm:$0xff] }
 0x341   :  { %v1183_v43 = vadd.f32 %v4557_v15, %v4637_v19 }
 0x342   :  { %2322 = vst [vmem:[#allocation6 + $0x28] sm:$0xff] %v2306_v56  ;;  %v2166_v5 = vadd.f32 %v2140_v55, %v2052_v58 }
 0x343   :  { %v2239_v8 = vpop.f32.mrf.mxu2 }
 0x344   :  { %v2275_v12 = vadd.f32 %v2239_v8, %v2161_v29  ;;  %v2029_v56 = vpop.f32.mrf.mxu0  ;;  %v2143_v8 = vpop.f32.mrf.mxu1 }
 0x345   :  { %v2053_v44 = vadd.f32 %v2029_v56, %v1937_v20 }
 0x346   :  { %v2291_v10 = vadd.f32 %v2275_v12, %v1156_v59  ;;  %v1916_v12 = vpop.f32.mrf.mxu3 }
 0x347   :  { %v2167_v21 = vadd.f32 %v2143_v8, %v2053_v44 }
 0x348   :  { %v2307_v60 = vmax.f32 %v2291_v10, 0.0 }
 0x34a   :  { %2323 = vst [vmem:[#allocation6 + $0x30] sm:$0xff] %v2307_v60 }
 0x34b   :  { %v2242_v22 = vpop.f32.mrf.mxu2 }
 0x34c   :  { %v2276_v54 = vadd.f32 %v2242_v22, %v2162_v40  ;;  %v2032_v60 = vpop.f32.mrf.mxu0  ;;  %v1938_v40 = vadd.f32 %v1916_v12, %v4544_v14  ;;  %v2146_v35 = vpop.f32.mrf.mxu1 }
 0x34e   :  { %v2292_v25 = vadd.f32 %v2276_v54, %v1159_v3  ;;  %v2054_v3 = vadd.f32 %v2032_v60, %v1938_v40  ;;  %v1919_v2 = vpop.f32.mrf.mxu3 }
 0x350   :  { %v2308_v26 = vmax.f32 %v2292_v25, 0.0  ;;  %v2168_v11 = vadd.f32 %v2146_v35, %v2054_v3  ;;  %v1939_v25 = vadd.f32 %v1919_v2, %v4548_v18 }
 0x352   :  { %2324 = vst [vmem:[#allocation6 + $0x38] sm:$0xff] %v2308_v26 }
 0x353   :  { %v2245_v39 = vpop.f32.mrf.mxu2 }
 0x354   :  { %v2277_v45 = vadd.f32 %v2245_v39, %v2163_v34  ;;  %v2035_v16 = vpop.f32.mrf.mxu0  ;;  %v4635_v34 = vld [vmem:[#allocation15_spill] sm:$0xff]  ;;  %v2149_v31 = vpop.f32.mrf.mxu1 }
 0x355   :  { %v1177_v14 = vadd.f32 %v4557_v15, %v4635_v34  ;;  %v2055_v33 = vadd.f32 %v2035_v16, %v1939_v25 }
 0x356   :  { %v2293_v9 = vadd.f32 %v2277_v45, %v1162_v7  ;;  %v1922_v7 = vpop.f32.mrf.mxu3 }
 0x357   :  { %v2169_v45 = vadd.f32 %v2149_v31, %v2055_v33  ;;  %v1940_v0 = vadd.f32 %v1922_v7, %v4552_v13 }
 0x358   :  { %v2309_v4 = vmax.f32 %v2293_v9, 0.0 }
 0x35a   :  { %2325 = vst [vmem:[#allocation6 + $0x40] sm:$0xff] %v2309_v4  ;;  %v4636_v4 = vld [vmem:[#allocation16_spill] sm:$0xff] }
 0x35b   :  { %v2248_v62 = vpop.f32.mrf.mxu2  ;;  %v1180_v18 = vadd.f32 %v4557_v15, %v4636_v4 }
 0x35c   :  { %v2278_v49 = vadd.f32 %v2248_v62, %v2164_v24  ;;  %v2038_v9 = vpop.f32.mrf.mxu0  ;;  %v2152_v62 = vpop.f32.mrf.mxu1 }
 0x35d   :  { %v2056_v24 = vadd.f32 %v2038_v9, %v1940_v0 }
 0x35e   :  { %v2294_v48 = vadd.f32 %v2278_v49, %v1165_v32 }
 0x35f   :  { %v2170_v32 = vadd.f32 %v2152_v62, %v2056_v24 }
 0x360   :  { %v2310_v47 = vmax.f32 %v2294_v48, 0.0 }
 0x362   :  { %2326 = vst [vmem:[#allocation6 + $0x48] sm:$0xff] %v2310_v47 }
 0x363   :  { %v2251_v46 = vpop.f32.mrf.mxu2 }
 0x364   :  { %v2279_v50 = vadd.f32 %v2251_v46, %v2165_v1 }
 0x366   :  { %v2295_v17 = vadd.f32 %v2279_v50, %v1168_v38 }
 0x368   :  { %v2311_v29 = vmax.f32 %v2295_v17, 0.0 }
 0x36a   :  { %2327 = vst [vmem:[#allocation6 + $0x50] sm:$0xff] %v2311_v29 }
 0x36b   :  { %v2254_v36 = vpop.f32.mrf.mxu2 }
 0x36c   :  { %v2280_v59 = vadd.f32 %v2254_v36, %v2166_v5 }
 0x36e   :  { %v2296_v61 = vadd.f32 %v2280_v59, %v1171_v57 }
 0x370   :  { %v2312_v10 = vmax.f32 %v2296_v61, 0.0 }
 0x372   :  { %2328 = vst [vmem:[#allocation6 + $0x58] sm:$0xff] %v2312_v10 }
 0x373   :  { %v2257_v28 = vpop.f32.mrf.mxu2 }
 0x374   :  { %v2281_v22 = vadd.f32 %v2257_v28, %v2167_v21 }
 0x376   :  { %v2297_v54 = vadd.f32 %v2281_v22, %v1174_v27 }
 0x378   :  { %v2313_v42 = vmax.f32 %v2297_v54, 0.0 }
 0x37a   :  { %2329 = vst [vmem:[#allocation6 + $0x60] sm:$0xff] %v2313_v42 }
 0x37b   :  { %v2260_v26 = vpop.f32.mrf.mxu2 }
 0x37c   :  { %v2282_v37 = vadd.f32 %v2260_v26, %v2168_v11 }
 0x37e   :  { %v2298_v39 = vadd.f32 %v2282_v37, %v1177_v14 }
 0x380   :  { %v2314_v6 = vmax.f32 %v2298_v39, 0.0 }
 0x382   :  { %2330 = vst [vmem:[#allocation6 + $0x68] sm:$0xff] %v2314_v6 }
 0x383   :  { %v2263_v52 = vpop.f32.mrf.mxu2 }
 0x384   :  { %v2283_v63 = vadd.f32 %v2263_v52, %v2169_v45 }
 0x386   :  { %v2299_v30 = vadd.f32 %v2283_v63, %v1180_v18 }
 0x388   :  { %v2315_v53 = vmax.f32 %v2299_v30, 0.0 }
 0x38a   :  { %2331 = vst [vmem:[#allocation6 + $0x70] sm:$0xff] %v2315_v53 }
 0x38b   :  { %v2266_v49 = vpop.f32.mrf.mxu2 }
 0x38c   :  { %v2284_v48 = vadd.f32 %v2266_v49, %v2170_v32 }
 0x38e   :  { %v2300_v13 = vadd.f32 %v2284_v48, %v1183_v43 }
 0x390   :  { %v2316_v47 = vmax.f32 %v2300_v13, 0.0 }
 0x392   :  { %2332 = vst [vmem:[#allocation6 + $0x78] sm:$0xff] %v2316_v47 }
 0x393   :  { %2345 = dma.vmem_to_hbm [thread:$0]  %s2338_s14, 2048, %s2340_s17, [#allocation5], %s2717_s29, %s2717_s29, %s2718_s30  }
 0x394   :  { %2714 = dma.done.wait [#allocation5], 2048  }
 0x395   :  { %2715 = vsyncadd [#allocation5], 4294965248 }
 0x396   :  { %2350 = vsyncpa [#allocation4], 1 }
 0x397   :  { %2351 = vsyncpa [#allocation5], 1 }

// kernel: tpu_custom_call.1
= control target key start
LH: loop header
LB: loop body
LE: loop exit
PB: predicated region body
PF: predicated region fallthrough
CT: control target
= control target key end

     0   :  { %12 = vsyncpa [#allocation4], 0  ;;  %s4612_s0 = inlined_call_operand.vmem [shape: f32[8,9,9,128], index: 0, kind: input, shape index: {}]   ;;  %s4613_s1 = inlined_call_operand.vmem [shape: f32[9,128,128], index: 1, kind: input, shape index: {}]   ;;  %s4614_s2 = inlined_call_operand.vmem [shape: f32[1,128], index: 2, kind: input, shape index: {}]   ;;  %s4615_s3 = inlined_call_operand.hbm [shape: f32[9,128,128], index: 3, kind: input, shape index: {}]   ;;  %s4616_s4 = inlined_call_operand.vmem [shape: f32[1,128], index: 4, kind: input, shape index: {}]   ;;  %s4617_s5 = inlined_call_operand.vmem [shape: f32[128,128], index: 5, kind: input, shape index: {}]   ;;  %s4618_s6 = inlined_call_operand.vmem [shape: f32[1,128], index: 6, kind: input, shape index: {}]   ;;  %s4619_s7 = inlined_call_operand.hbm [shape: f32[2,8,8,128], index: 7, kind: output, shape index: {}]  }
   0x1   :  { %13 = vsyncpa [#allocation5], 0  ;;  %s24_s26 = sshll.u32 %s4615_s3, 4  ;;  %s2716_s27 = smov [#allocation3]   ;;  %s25_s26 = int_to_ptr.hbm [resolvable:$true] %s24_s26 }
   0x2   :  { %s26_s28 = sshll.u32 %s2716_s27, 4  ;;  %s2717_s29 = smov 128   ;;  %s27_s28 = int_to_ptr.vmem [resolvable:$true] %s26_s28 }
   0x3   :  { %s2718_s30 = smov 8  }
   0x4   :  { %32 = dma.hbm_to_vmem [thread:$0]  %s25_s26, 18432, %s27_s28, [#allocation4], %s2717_s29, %s2717_s29, %s2718_s30  }
   0x5   :  { %2712 = dma.done.wait [#allocation4], 18432  }
   0x6   :  { %2713 = vsyncadd [#allocation4], 4294948864  ;;  %v80_v0 = vld [vmem:[%s4613_s1 + $0x78] sm:$0xff]  ;;  %v79_v1 = vld [vmem:[%s4613_s1 + $0x70] sm:$0xff]  ;;  %s2339_s17 = sshll.u32 %s4619_s7, 4  ;;  %s2340_s17 = int_to_ptr.hbm [resolvable:$true] %s2339_s17 }
   0x7   :  { %81 = vmatpush.msra.mxu0 %v80_v0  ;;  %2608 = vmatpush.msra.mxu3 %v80_v0  ;;  %v2776_v2 = vld [vmem:[%s4613_s1 + $0x178] sm:$0xff]  ;;  %v2781_v3 = vld [vmem:[%s4613_s1 + $0x170] sm:$0xff]  ;;  %v78_v4 = vld [vmem:[%s4613_s1 + $0x68] sm:$0xff] }
   0x8   :  { %2640 = vmatpush.msra.mxu2 %v2776_v2  ;;  %v2790_v5 = vld [vmem:[%s4613_s1 + $0xf8] sm:$0xff]  ;;  %v2795_v6 = vld [vmem:[%s4613_s1 + $0x168] sm:$0xff]  ;;  %v2800_v7 = vld [vmem:[%s4613_s1 + $0xf0] sm:$0xff] }
   0x9   :  { %82 = vmatpush.msra.mxu0 %v79_v1  ;;  %2609 = vmatpush.msra.mxu3 %v79_v1  ;;  %v77_v8 = vld [vmem:[%s4613_s1 + $0x60] sm:$0xff]  ;;  %v2815_v10 = vld [vmem:[%s4613_s1 + $0xe8] sm:$0xff]  ;;  %v76_v11 = vld [vmem:[%s4613_s1 + $0x58] sm:$0xff] }
   0xa   :  { %2641 = vmatpush.msra.mxu2 %v2781_v3  ;;  %2624 = vmatpush.msra.mxu1 %v2790_v5  ;;  %v2810_v9 = vld [vmem:[%s4613_s1 + $0x160] sm:$0xff]  ;;  %v2825_v12 = vld [vmem:[%s4613_s1 + $0x158] sm:$0xff]  ;;  %v75_v14 = vld [vmem:[%s4613_s1 + $0x50] sm:$0xff] }
   0xb   :  { %83 = vmatpush.msra.mxu0 %v78_v4  ;;  %2610 = vmatpush.msra.mxu3 %v78_v4  ;;  %v2830_v13 = vld [vmem:[%s4613_s1 + $0xe0] sm:$0xff]  ;;  %v2840_v15 = vld [vmem:[%s4613_s1 + $0x150] sm:$0xff]  ;;  %v2845_v16 = vld [vmem:[%s4613_s1 + $0xd8] sm:$0xff] }
   0xc   :  { %2642 = vmatpush.msra.mxu2 %v2795_v6  ;;  %2625 = vmatpush.msra.mxu1 %v2800_v7  ;;  %v74_v17 = vld [vmem:[%s4613_s1 + $0x48] sm:$0xff]  ;;  %v2860_v19 = vld [vmem:[%s4613_s1 + $0xd0] sm:$0xff]  ;;  %v73_v20 = vld [vmem:[%s4613_s1 + $0x40] sm:$0xff] }
   0xd   :  { %84 = vmatpush.msra.mxu0 %v77_v8  ;;  %2611 = vmatpush.msra.mxu3 %v77_v8  ;;  %v2855_v18 = vld [vmem:[%s4613_s1 + $0x148] sm:$0xff]  ;;  %v2870_v21 = vld [vmem:[%s4613_s1 + $0x140] sm:$0xff]  ;;  %v72_v23 = vld [vmem:[%s4613_s1 + $0x38] sm:$0xff] }
   0xe   :  { %2643 = vmatpush.msra.mxu2 %v2810_v9  ;;  %2626 = vmatpush.msra.mxu1 %v2815_v10  ;;  %v2875_v22 = vld [vmem:[%s4613_s1 + $0xc8] sm:$0xff]  ;;  %v2885_v24 = vld [vmem:[%s4613_s1 + $0x138] sm:$0xff]  ;;  %v2890_v25 = vld [vmem:[%s4613_s1 + $0xc0] sm:$0xff] }
   0xf   :  { %85 = vmatpush.msra.mxu0 %v76_v11  ;;  %2612 = vmatpush.msra.mxu3 %v76_v11  ;;  %v71_v26 = vld [vmem:[%s4613_s1 + $0x30] sm:$0xff]  ;;  %v2905_v28 = vld [vmem:[%s4613_s1 + $0xb8] sm:$0xff]  ;;  %v70_v29 = vld [vmem:[%s4613_s1 + $0x28] sm:$0xff] }
  0x10   :  { %2644 = vmatpush.msra.mxu2 %v2825_v12  ;;  %2627 = vmatpush.msra.mxu1 %v2830_v13  ;;  %v2900_v27 = vld [vmem:[%s4613_s1 + $0x130] sm:$0xff]  ;;  %v2915_v30 = vld [vmem:[%s4613_s1 + $0x128] sm:$0xff]  ;;  %v69_v32 = vld [vmem:[%s4613_s1 + $0x20] sm:$0xff] }
  0x11   :  { %86 = vmatpush.msra.mxu0 %v75_v14  ;;  %2613 = vmatpush.msra.mxu3 %v75_v14  ;;  %v2920_v31 = vld [vmem:[%s4613_s1 + $0xb0] sm:$0xff]  ;;  %v2930_v33 = vld [vmem:[%s4613_s1 + $0x120] sm:$0xff]  ;;  %v2935_v34 = vld [vmem:[%s4613_s1 + $0xa8] sm:$0xff] }
  0x12   :  { %2645 = vmatpush.msra.mxu2 %v2840_v15  ;;  %2628 = vmatpush.msra.mxu1 %v2845_v16  ;;  %v68_v35 = vld [vmem:[%s4613_s1 + $0x18] sm:$0xff]  ;;  %v2950_v37 = vld [vmem:[%s4613_s1 + $0xa0] sm:$0xff]  ;;  %v67_v38 = vld [vmem:[%s4613_s1 + $0x10] sm:$0xff] }
  0x13   :  { %87 = vmatpush.msra.mxu0 %v74_v17  ;;  %2614 = vmatpush.msra.mxu3 %v74_v17  ;;  %v2945_v36 = vld [vmem:[%s4613_s1 + $0x118] sm:$0xff]  ;;  %v2960_v39 = vld [vmem:[%s4613_s1 + $0x110] sm:$0xff]  ;;  %v66_v41 = vld [vmem:[%s4613_s1 + $0x8] sm:$0xff] }
  0x14   :  { %2646 = vmatpush.msra.mxu2 %v2855_v18  ;;  %2629 = vmatpush.msra.mxu1 %v2860_v19  ;;  %v2965_v40 = vld [vmem:[%s4613_s1 + $0x98] sm:$0xff]  ;;  %v2975_v42 = vld [vmem:[%s4613_s1 + $0x108] sm:$0xff]  ;;  %v2980_v43 = vld [vmem:[%s4613_s1 + $0x90] sm:$0xff] }
  0x15   :  { %88 = vmatpush.msra.mxu0 %v73_v20  ;;  %2615 = vmatpush.msra.mxu3 %v73_v20  ;;  %v65_v44 = vld [vmem:[%s4613_s1] sm:$0xff]  ;;  %v2447_v47 = vld [vmem:[%s4613_s1 + $0x1f8] sm:$0xff]  ;;  %v3008_v49 = vld [vmem:[%s4613_s1 + $0x88] sm:$0xff] }
  0x16   :  { %2647 = vmatpush.msra.mxu2 %v2870_v21  ;;  %2630 = vmatpush.msra.mxu1 %v2875_v22  ;;  %v48_v45 = vld [vmem:[%s4612_s0] sm:$0xff]  ;;  %v2446_v51 = vld [vmem:[%s4613_s1 + $0x1f0] sm:$0xff]  ;;  %v2445_v54 = vld [vmem:[%s4613_s1 + $0x1e8] sm:$0xff] }
  0x17   :  { %89 = vmatpush.msra.mxu0 %v72_v23  ;;  %2616 = vmatpush.msra.mxu3 %v72_v23  ;;  %v2993_v46 = vld [vmem:[%s4612_s0 + $0x40] sm:$0xff]  ;;  %v2364_v53 = vld [vmem:[%s4612_s0 + $0xd0] sm:$0xff]  ;;  %v2443_v59 = vld [vmem:[%s4613_s1 + $0x1d8] sm:$0xff] }
  0x18   :  { %2648 = vmatpush.msra.mxu2 %v2885_v24  ;;  %2631 = vmatpush.msra.mxu1 %v2890_v25  ;;  %v3003_v48 = vld [vmem:[%s4613_s1 + $0x100] sm:$0xff]  ;;  %v3037_v55 = vld [vmem:[%s4612_s0 + $0x10] sm:$0xff]  ;;  %v2441_v0 = vld [vmem:[%s4613_s1 + $0x1c8] sm:$0xff] }
  0x19   :  { %90 = vmatpush.msra.mxu0 %v71_v26  ;;  %2617 = vmatpush.msra.mxu3 %v71_v26  ;;  %v282_v50 = vld [vmem:[%s4612_s0 + $0x41] sm:$0xff]  ;;  %v3042_v56 = vld [vmem:[%s4612_s0 + $0x50] sm:$0xff] }
  0x1a   :  { %2649 = vmatpush.msra.mxu2 %v2900_v27  ;;  %2632 = vmatpush.msra.mxu1 %v2905_v28  ;;  %v3021_v52 = vld [vmem:[%s4613_s1 + $0x80] sm:$0xff]  ;;  %v283_v58 = vld [vmem:[%s4612_s0 + $0x51] sm:$0xff] }
  0x1b   :  { %91 = vmatpush.msra.mxu0 %v70_v29  ;;  %2618 = vmatpush.msra.mxu3 %v70_v29  ;;  %v2444_v57 = vld [vmem:[%s4613_s1 + $0x1e0] sm:$0xff]  ;;  %v2442_v61 = vld [vmem:[%s4613_s1 + $0x1d0] sm:$0xff]  ;;  %v2541_v29 = vld [vmem:[%s4613_s1 + $0x368] sm:$0xff] }
  0x1c   :  { %2650 = vmatpush.msra.mxu2 %v2915_v30  ;;  %2633 = vmatpush.msra.mxu1 %v2920_v31  ;;  %v2365_v60 = vld [vmem:[%s4612_s0 + $0xe0] sm:$0xff]  ;;  %v3099_v8 = vld [vmem:[%s4612_s0 + $0x30] sm:$0xff] }
  0x1d   :  { %92 = vmatpush.msra.mxu0 %v69_v32  ;;  %2619 = vmatpush.msra.mxu3 %v69_v32  ;;  %v3068_v62 = vld [vmem:[%s4612_s0 + $0x20] sm:$0xff]  ;;  %v2438_v11 = vld [vmem:[%s4613_s1 + $0x1b0] sm:$0xff] }
  0x1e   :  { %2651 = vmatpush.msra.mxu2 %v2930_v33  ;;  %2634 = vmatpush.msra.mxu1 %v2935_v34  ;;  %v3073_v63 = vld [vmem:[%s4612_s0 + $0x60] sm:$0xff]  ;;  %v2368_v23 = vld [vmem:[%s4612_s0 + $0x2d0] sm:$0xff] }
  0x1f   :  { %93 = vmatpush.msra.mxu0 %v68_v35  ;;  %2620 = vmatpush.msra.mxu3 %v68_v35  ;;  %v284_v1 = vld [vmem:[%s4612_s0 + $0x61] sm:$0xff]  ;;  %v3149_v26 = vld [vmem:[%s4612_s0 + $0x250] sm:$0xff] }
  0x20   :  { %2652 = vmatpush.msra.mxu2 %v2945_v36  ;;  %2635 = vmatpush.msra.mxu1 %v2950_v37  ;;  %v2440_v4 = vld [vmem:[%s4613_s1 + $0x1c0] sm:$0xff]  ;;  %v2509_v35 = vld [vmem:[%s4613_s1 + $0x2e8] sm:$0xff] }
  0x21   :  { %94 = vmatpush.msra.mxu0 %v67_v38  ;;  %2621 = vmatpush.msra.mxu3 %v67_v38  ;;  %v2367_v14 = vld [vmem:[%s4612_s0 + $0x100] sm:$0xff]  ;;  %v2539_v38 = vld [vmem:[%s4613_s1 + $0x358] sm:$0xff] }
  0x22   :  { %2653 = vmatpush.msra.mxu2 %v2960_v39  ;;  %2636 = vmatpush.msra.mxu1 %v2965_v40  ;;  %v2352_v17 = vld [vmem:[%s4612_s0 + $0x240] sm:$0xff] }
  0x23   :  { %95 = vmatpush.msra.mxu0 %v66_v41  ;;  %2622 = vmatpush.msra.mxu3 %v66_v41  ;;  %v2392_v20 = vld [vmem:[%s4612_s0 + $0x241] sm:$0xff]  ;;  %v2507_v41 = vld [vmem:[%s4613_s1 + $0x2d8] sm:$0xff] }
  0x24   :  { %2654 = vmatpush.msra.mxu2 %v2975_v42  ;;  %2637 = vmatpush.msra.mxu1 %v2980_v43  ;;  %v2540_v32 = vld [vmem:[%s4613_s1 + $0x360] sm:$0xff] }
  0x25   :  { %96 = vmatpush.msra.mxu0 %v65_v44  ;;  %2623 = vmatpush.msra.mxu3 %v65_v44  ;;  %v2433_v44 = vld [vmem:[%s4613_s1 + $0x188] sm:$0xff] }
  0x26   :  { %97 = vmatmul.f32.vlgmr.msra.gmra.mxu0 %v48_v45  ;;  %109 = vmatmul.f32.vlgmr.msra.gmra.mxu3 %v2993_v46  ;;  %v2506_v45 = vld [vmem:[%s4613_s1 + $0x2d0] sm:$0xff] }
  0x27   :  { %427 = vmatpush.msrb.mxu3 %v2447_v47  ;;  %197 = vmatpush.msrb.mxu0 %v2790_v5  ;;  %v2366_v5 = vld [vmem:[%s4612_s0 + $0xf0] sm:$0xff]  ;;  %v3243_v47 = vld [vmem:[%s4612_s0 + $0xc0] sm:$0xff] }
  0x28   :  { %2655 = vmatpush.msra.mxu2 %v3003_v48  ;;  %2638 = vmatpush.msra.mxu1 %v3008_v49 }
  0x29   :  { %198 = vmatpush.msrb.mxu0 %v2800_v7  ;;  %339 = vmatmul.f32.vlgmr.msra.gmra.mxu2 %v282_v50  ;;  %v2439_v7 = vld [vmem:[%s4613_s1 + $0x1b8] sm:$0xff] }
  0x2a   :  { %428 = vmatpush.msrb.mxu3 %v2446_v51  ;;  %2639 = vmatpush.msra.mxu1 %v3021_v52  ;;  %v2395_v50 = vld [vmem:[%s4612_s0 + $0x271] sm:$0xff]  ;;  %v2504_v51 = vld [vmem:[%s4613_s1 + $0x2c0] sm:$0xff] }
  0x2b   :  { %199 = vmatpush.msrb.mxu0 %v2815_v10  ;;  %225 = vmatmul.f32.vlgmr.msra.gmra.mxu1 %v2364_v53  ;;  %v3104_v10 = vld [vmem:[%s4612_s0 + $0x70] sm:$0xff]  ;;  %v2371_v53 = vld [vmem:[%s4612_s0 + $0x300] sm:$0xff] }
  0x2c   :  { %429 = vmatpush.msrb.mxu3 %v2445_v54  ;;  %v2503_v54 = vld [vmem:[%s4613_s1 + $0x2b8] sm:$0xff] }
  0x2d   :  { %200 = vmatpush.msrb.mxu0 %v2830_v13  ;;  %v285_v13 = vld [vmem:[%s4612_s0 + $0x71] sm:$0xff] }
  0x2e   :  { %100 = vmatmul.f32.gmra.mxu0 %v3037_v55  ;;  %112 = vmatmul.f32.gmra.mxu3 %v3042_v56 }
  0x2f   :  { %201 = vmatpush.msrb.mxu0 %v2845_v16  ;;  %430 = vmatpush.msrb.mxu3 %v2444_v57  ;;  %v2437_v16 = vld [vmem:[%s4613_s1 + $0x1a8] sm:$0xff]  ;;  %v3281_v57 = vld [vmem:[%s4612_s0 + $0x280] sm:$0xff] }
  0x31   :  { %202 = vmatpush.msrb.mxu0 %v2860_v19  ;;  %342 = vmatmul.f32.gmra.mxu2 %v283_v58  ;;  %v2360_v19 = vld [vmem:[%s4612_s0 + $0x90] sm:$0xff]  ;;  %v2479_v58 = vld [vmem:[%s4613_s1 + $0x278] sm:$0xff] }
  0x32   :  { %431 = vmatpush.msrb.mxu3 %v2443_v59  ;;  %v2502_v59 = vld [vmem:[%s4613_s1 + $0x2b0] sm:$0xff] }
  0x33   :  { %203 = vmatpush.msrb.mxu0 %v2875_v22  ;;  %228 = vmatmul.f32.gmra.mxu1 %v2365_v60  ;;  %v2436_v22 = vld [vmem:[%s4613_s1 + $0x1a0] sm:$0xff] }
  0x34   :  { %432 = vmatpush.msrb.mxu3 %v2442_v61  ;;  %v2396_v60 = vld [vmem:[%s4612_s0 + $0x281] sm:$0xff]  ;;  %v2478_v61 = vld [vmem:[%s4613_s1 + $0x270] sm:$0xff] }
  0x35   :  { %204 = vmatpush.msrb.mxu0 %v2890_v25  ;;  %v2543_v25 = vld [vmem:[%s4613_s1 + $0x378] sm:$0xff] }
  0x36   :  { %103 = vmatmul.f32.gmra.mxu0 %v3068_v62  ;;  %115 = vmatmul.f32.gmra.mxu3 %v3073_v63 }
  0x37   :  { %205 = vmatpush.msrb.mxu0 %v2905_v28  ;;  %433 = vmatpush.msrb.mxu3 %v2441_v0  ;;  %v2542_v28 = vld [vmem:[%s4613_s1 + $0x370] sm:$0xff]  ;;  %v2575_v0 = vld [vmem:[%s4613_s1 + $0x3f8] sm:$0xff] }
  0x38   :  { %773 = vmatpush.msrb.mxu2 %v2543_v25  ;;  %v2574_v25 = vld [vmem:[%s4613_s1 + $0x3f0] sm:$0xff] }
  0x39   :  { %206 = vmatpush.msrb.mxu0 %v2920_v31  ;;  %345 = vmatmul.f32.gmra.mxu2 %v284_v1  ;;  %v2369_v31 = vld [vmem:[%s4612_s0 + $0x2e0] sm:$0xff]  ;;  %v2501_v1 = vld [vmem:[%s4613_s1 + $0x2a8] sm:$0xff] }
  0x3a   :  { %434 = vmatpush.msrb.mxu3 %v2440_v4  ;;  %774 = vmatpush.msrb.mxu2 %v2542_v28  ;;  %v2372_v4 = vld [vmem:[%s4612_s0 + $0x310] sm:$0xff]  ;;  %v2373_v28 = vld [vmem:[%s4612_s0 + $0x320] sm:$0xff] }
  0x3b   :  { %207 = vmatpush.msrb.mxu0 %v2935_v34  ;;  %231 = vmatmul.f32.gmra.mxu1 %v2366_v5  ;;  %v2434_v34 = vld [vmem:[%s4613_s1 + $0x190] sm:$0xff]  ;;  %v2477_v5 = vld [vmem:[%s4613_s1 + $0x268] sm:$0xff] }
  0x3c   :  { %435 = vmatpush.msrb.mxu3 %v2439_v7  ;;  %775 = vmatpush.msrb.mxu2 %v2541_v29  ;;  %v2531_v7 = vld [vmem:[%s4613_s1 + $0x318] sm:$0xff]  ;;  %v2528_v29 = vld [vmem:[%s4613_s1 + $0x300] sm:$0xff] }
  0x3d   :  { %208 = vmatpush.msrb.mxu0 %v2950_v37  ;;  %v3200_v37 = vld [vmem:[%s4612_s0 + $0xb0] sm:$0xff] }
  0x3e   :  { %106 = vmatmul.f32.gmra.mxu0 %v3099_v8  ;;  %118 = vmatmul.f32.gmra.mxu3 %v3104_v10 }
  0x3f   :  { %209 = vmatpush.msrb.mxu0 %v2965_v40  ;;  %436 = vmatpush.msrb.mxu3 %v2438_v11  ;;  %v2508_v40 = vld [vmem:[%s4613_s1 + $0x2e0] sm:$0xff] }
  0x40   :  { %776 = vmatpush.msrb.mxu2 %v2540_v32  ;;  %v2500_v11 = vld [vmem:[%s4613_s1 + $0x2a0] sm:$0xff] }
  0x41   :  { %210 = vmatpush.msrb.mxu0 %v2980_v43  ;;  %348 = vmatmul.f32.gmra.mxu2 %v285_v13  ;;  %v2370_v43 = vld [vmem:[%s4612_s0 + $0x2f0] sm:$0xff]  ;;  %v2476_v13 = vld [vmem:[%s4613_s1 + $0x260] sm:$0xff] }
  0x42   :  { %437 = vmatpush.msrb.mxu3 %v2437_v16  ;;  %777 = vmatpush.msrb.mxu2 %v2539_v38  ;;  %v3335_v16 = vld [vmem:[%s4612_s0 + $0x11] sm:$0xff]  ;;  %v3381_v32 = vld [vmem:[%s4612_s0 + $0x2a0] sm:$0xff] }
  0x43   :  { %211 = vmatpush.msrb.mxu0 %v3008_v49  ;;  %234 = vmatmul.f32.gmra.mxu1 %v2367_v14  ;;  %v2536_v49 = vld [vmem:[%s4613_s1 + $0x340] sm:$0xff]  ;;  %v3330_v14 = vld [vmem:[%s4612_s0 + $0x290] sm:$0xff] }
  0x44   :  { %438 = vmatpush.msrb.mxu3 %v2436_v22  ;;  %v2397_v22 = vld [vmem:[%s4612_s0 + $0x291] sm:$0xff]  ;;  %v2496_v38 = vld [vmem:[%s4613_s1 + $0x280] sm:$0xff] }
  0x45   :  { %212 = vmatpush.msrb.mxu0 %v3021_v52  ;;  %v2432_v52 = vld [vmem:[%s4613_s1 + $0x180] sm:$0xff] }
  0x46   :  { %121 = vmatmul.f32.gmra.mxu3 %v2352_v17  ;;  %213 = vmatmul.f32.vlgmr.msrb.gmra.mxu0 %v2360_v19  ;;  %v2475_v17 = vld [vmem:[%s4613_s1 + $0x258] sm:$0xff]  ;;  %v2530_v19 = vld [vmem:[%s4613_s1 + $0x310] sm:$0xff] }
  0x47   :  { %311 = vmatpush.msra.mxu0 %v2776_v2  ;;  %v3154_v2 = vld [vmem:[%s4612_s0 + $0xa0] sm:$0xff] }
  0x49   :  { %312 = vmatpush.msra.mxu0 %v2781_v3  ;;  %351 = vmatmul.f32.gmra.mxu2 %v2392_v20  ;;  %v2393_v3 = vld [vmem:[%s4612_s0 + $0x251] sm:$0xff] }
  0x4a   :  { %v2499_v20 = vld [vmem:[%s4613_s1 + $0x298] sm:$0xff] }
  0x4b   :  { %313 = vmatpush.msra.mxu0 %v2795_v6  ;;  %237 = vmatmul.f32.gmra.mxu1 %v2368_v23  ;;  %v2435_v6 = vld [vmem:[%s4613_s1 + $0x198] sm:$0xff]  ;;  %v2474_v23 = vld [vmem:[%s4613_s1 + $0x250] sm:$0xff] }
  0x4c   :  { %439 = vmatpush.msrb.mxu3 %v2435_v6  ;;  %v2498_v6 = vld [vmem:[%s4613_s1 + $0x290] sm:$0xff] }
  0x4d   :  { %314 = vmatpush.msra.mxu0 %v2810_v9  ;;  %v2511_v9 = vld [vmem:[%s4613_s1 + $0x2f8] sm:$0xff] }
  0x4e   :  { %124 = vmatmul.f32.gmra.mxu3 %v3149_v26  ;;  %216 = vmatmul.f32.gmra.mxu0 %v3154_v2 }
  0x4f   :  { %315 = vmatpush.msra.mxu0 %v2825_v12  ;;  %657 = vmatpush.msrb.mxu1 %v2511_v9  ;;  %v2510_v12 = vld [vmem:[%s4613_s1 + $0x2f0] sm:$0xff]  ;;  %v2473_v9 = vld [vmem:[%s4613_s1 + $0x248] sm:$0xff] }
  0x50   :  { %440 = vmatpush.msrb.mxu3 %v2434_v34  ;;  %v3386_v34 = vld [vmem:[%s4612_s0 + $0x21] sm:$0xff] }
  0x51   :  { %316 = vmatpush.msra.mxu0 %v2840_v15  ;;  %354 = vmatmul.f32.gmra.mxu2 %v2393_v3  ;;  %v3195_v15 = vld [vmem:[%s4612_s0 + $0x260] sm:$0xff]  ;;  %v2529_v3 = vld [vmem:[%s4613_s1 + $0x308] sm:$0xff] }
  0x52   :  { %658 = vmatpush.msrb.mxu1 %v2510_v12  ;;  %441 = vmatpush.msrb.mxu3 %v2433_v44  ;;  %v2472_v12 = vld [vmem:[%s4613_s1 + $0x240] sm:$0xff]  ;;  %v3417_v44 = vld [vmem:[%s4612_s0 + $0x2b0] sm:$0xff] }
  0x53   :  { %317 = vmatpush.msra.mxu0 %v2855_v18  ;;  %240 = vmatmul.f32.gmra.mxu1 %v2369_v31  ;;  %v2394_v18 = vld [vmem:[%s4612_s0 + $0x261] sm:$0xff] }
  0x54   :  { %659 = vmatpush.msrb.mxu1 %v2509_v35  ;;  %442 = vmatpush.msrb.mxu3 %v2432_v52  ;;  %v2497_v31 = vld [vmem:[%s4613_s1 + $0x288] sm:$0xff]  ;;  %v2471_v35 = vld [vmem:[%s4613_s1 + $0x238] sm:$0xff] }
  0x55   :  { %318 = vmatpush.msra.mxu0 %v2870_v21  ;;  %v2538_v21 = vld [vmem:[%s4613_s1 + $0x350] sm:$0xff]  ;;  %v2465_v52 = vld [vmem:[%s4613_s1 + $0x208] sm:$0xff] }
  0x56   :  { %127 = vmatmul.f32.gmra.mxu3 %v3195_v15  ;;  %219 = vmatmul.f32.gmra.mxu0 %v3200_v37 }
  0x57   :  { %319 = vmatpush.msra.mxu0 %v2885_v24  ;;  %660 = vmatpush.msrb.mxu1 %v2508_v40  ;;  %v2537_v24 = vld [vmem:[%s4613_s1 + $0x348] sm:$0xff]  ;;  %v2470_v40 = vld [vmem:[%s4613_s1 + $0x230] sm:$0xff] }
  0x58   :  { %778 = vmatpush.msrb.mxu2 %v2538_v21  ;;  %889 = vmatpush.msra.mxu3 %v2575_v0  ;;  %v2573_v21 = vld [vmem:[%s4613_s1 + $0x3e8] sm:$0xff]  ;;  %v2417_v0 = vld [vmem:[%s4612_s0 + $0x130] sm:$0xff] }
  0x59   :  { %320 = vmatpush.msra.mxu0 %v2900_v27  ;;  %357 = vmatmul.f32.gmra.mxu2 %v2394_v18  ;;  %v3238_v27 = vld [vmem:[%s4612_s0 + $0x270] sm:$0xff]  ;;  %v2398_v18 = vld [vmem:[%s4612_s0 + $0x2a1] sm:$0xff] }
  0x5a   :  { %661 = vmatpush.msrb.mxu1 %v2507_v41  ;;  %779 = vmatpush.msrb.mxu2 %v2537_v24  ;;  %v2374_v41 = vld [vmem:[%s4612_s0 + $0x330] sm:$0xff]  ;;  %v2468_v24 = vld [vmem:[%s4613_s1 + $0x220] sm:$0xff] }
  0x5b   :  { %321 = vmatpush.msra.mxu0 %v2915_v30  ;;  %243 = vmatmul.f32.gmra.mxu1 %v2370_v43  ;;  %v2505_v30 = vld [vmem:[%s4613_s1 + $0x2c8] sm:$0xff] }
  0x5c   :  { %662 = vmatpush.msrb.mxu1 %v2506_v45  ;;  %780 = vmatpush.msrb.mxu2 %v2536_v49  ;;  %v2469_v43 = vld [vmem:[%s4613_s1 + $0x228] sm:$0xff]  ;;  %v3422_v45 = vld [vmem:[%s4612_s0 + $0x31] sm:$0xff] }
  0x5d   :  { %322 = vmatpush.msra.mxu0 %v2930_v33  ;;  %v2535_v33 = vld [vmem:[%s4613_s1 + $0x338] sm:$0xff]  ;;  %890 = vmatpush.msra.mxu3 %v2574_v25  ;;  %v2420_v25 = vld [vmem:[%s4612_s0 + $0x160] sm:$0xff] }
  0x5e   :  { %130 = vmatmul.f32.gmra.mxu3 %v3238_v27  ;;  %222 = vmatmul.f32.gmra.mxu0 %v3243_v47  ;;  %v2467_v49 = vld [vmem:[%s4613_s1 + $0x218] sm:$0xff] }
  0x5f   :  { %323 = vmatpush.msra.mxu0 %v2945_v36  ;;  %663 = vmatpush.msrb.mxu1 %v2505_v30  ;;  %v2534_v36 = vld [vmem:[%s4613_s1 + $0x330] sm:$0xff] }
  0x60   :  { %781 = vmatpush.msrb.mxu2 %v2535_v33  ;;  %891 = vmatpush.msra.mxu3 %v2573_v21  ;;  %v2399_v30 = vld [vmem:[%s4612_s0 + $0x2b1] sm:$0xff]  ;;  %v2572_v33 = vld [vmem:[%s4613_s1 + $0x3e0] sm:$0xff] }
  0x61   :  { %324 = vmatpush.msra.mxu0 %v2960_v39  ;;  %360 = vmatmul.f32.gmra.mxu2 %v2395_v50  ;;  %v278_v39 = vld [vmem:[%s4612_s0 + $0x1] sm:$0xff]  ;;  %v2466_v50 = vld [vmem:[%s4613_s1 + $0x210] sm:$0xff] }
  0x62   :  { %664 = vmatpush.msrb.mxu1 %v2504_v51  ;;  %782 = vmatpush.msrb.mxu2 %v2534_v36  ;;  %v2375_v51 = vld [vmem:[%s4612_s0 + $0x340] sm:$0xff] }
  0x63   :  { %325 = vmatpush.msra.mxu0 %v2975_v42  ;;  %246 = vmatmul.f32.gmra.mxu1 %v2371_v53  ;;  %v2533_v42 = vld [vmem:[%s4613_s1 + $0x328] sm:$0xff]  ;;  %v2464_v53 = vld [vmem:[%s4613_s1 + $0x200] sm:$0xff] }
  0x64   :  { %665 = vmatpush.msrb.mxu1 %v2503_v54  ;;  %783 = vmatpush.msrb.mxu2 %v2533_v42  ;;  %v2416_v36 = vld [vmem:[%s4612_s0 + $0x120] sm:$0xff]  ;;  %v3453_v54 = vld [vmem:[%s4612_s0 + $0x1b0] sm:$0xff]  ;;  %v2571_v42 = vld [vmem:[%s4613_s1 + $0x3d8] sm:$0xff] }
  0x65   :  { %326 = vmatpush.msra.mxu0 %v3003_v48  ;;  %v2532_v48 = vld [vmem:[%s4613_s1 + $0x320] sm:$0xff]  ;;  %892 = vmatpush.msra.mxu3 %v2572_v33 }
  0x66   :  { %133 = vmatmul.f32.gmra.mxu3 %v3281_v57  ;;  %327 = vmatmul.f32.vlgmr.msra.gmra.mxu0 %v278_v39  ;;  %v2607_v39 = vld [vmem:[%s4613_s1 + $0x478] sm:$0xff] }
  0x67   :  { %543 = vmatpush.msrb.mxu0 %v2479_v58  ;;  %666 = vmatpush.msrb.mxu1 %v2502_v59  ;;  %v2606_v58 = vld [vmem:[%s4613_s1 + $0x470] sm:$0xff]  ;;  %v2480_v59 = vld [vmem:[%s4612_s0 + $0x121] sm:$0xff] }
  0x68   :  { %784 = vmatpush.msrb.mxu2 %v2532_v48  ;;  %893 = vmatpush.msra.mxu3 %v2571_v42  ;;  %v3481_v48 = vld [vmem:[%s4612_s0 + $0x1c0] sm:$0xff] }
  0x69   :  { %363 = vmatmul.f32.gmra.mxu2 %v2396_v60  ;;  %544 = vmatpush.msrb.mxu0 %v2478_v61  ;;  %v2605_v60 = vld [vmem:[%s4613_s1 + $0x468] sm:$0xff]  ;;  %v2604_v61 = vld [vmem:[%s4613_s1 + $0x460] sm:$0xff] }
  0x6a   :  { %667 = vmatpush.msrb.mxu1 %v2501_v1  ;;  %785 = vmatpush.msrb.mxu2 %v2531_v7  ;;  %v2603_v1 = vld [vmem:[%s4613_s1 + $0x458] sm:$0xff]  ;;  %v3500_v7 = vld [vmem:[%s4612_s0 + $0x1d0] sm:$0xff] }
  0x6b   :  { %249 = vmatmul.f32.gmra.mxu1 %v2372_v4  ;;  %545 = vmatpush.msrb.mxu0 %v2477_v5  ;;  %v2481_v4 = vld [vmem:[%s4612_s0 + $0x131] sm:$0xff]  ;;  %v2418_v5 = vld [vmem:[%s4612_s0 + $0x140] sm:$0xff] }
  0x6c   :  { %668 = vmatpush.msrb.mxu1 %v2500_v11  ;;  %786 = vmatpush.msrb.mxu2 %v2530_v19  ;;  %v2569_v11 = vld [vmem:[%s4613_s1 + $0x3c8] sm:$0xff]  ;;  %v3519_v19 = vld [vmem:[%s4612_s0 + $0x1e0] sm:$0xff] }
  0x6d   :  { %546 = vmatpush.msrb.mxu0 %v2476_v13  ;;  %v2482_v13 = vld [vmem:[%s4612_s0 + $0x141] sm:$0xff] }
  0x6e   :  { %136 = vmatmul.f32.gmra.mxu3 %v3330_v14  ;;  %330 = vmatmul.f32.gmra.mxu0 %v3335_v16 }
  0x6f   :  { %547 = vmatpush.msrb.mxu0 %v2475_v17  ;;  %669 = vmatpush.msrb.mxu1 %v2499_v20  ;;  %v2419_v17 = vld [vmem:[%s4612_s0 + $0x150] sm:$0xff]  ;;  %v2568_v20 = vld [vmem:[%s4613_s1 + $0x3c0] sm:$0xff] }
  0x70   :  { %787 = vmatpush.msrb.mxu2 %v2529_v3  ;;  %v3540_v3 = vld [vmem:[%s4612_s0 + $0x1f0] sm:$0xff] }
  0x71   :  { %366 = vmatmul.f32.gmra.mxu2 %v2397_v22  ;;  %548 = vmatpush.msrb.mxu0 %v2474_v23  ;;  %v2483_v22 = vld [vmem:[%s4612_s0 + $0x151] sm:$0xff] }
  0x72   :  { %670 = vmatpush.msrb.mxu1 %v2498_v6  ;;  %788 = vmatpush.msrb.mxu2 %v2528_v29  ;;  %v3545_v6 = vld [vmem:[%s4614_s2] ss:$0 sm:$0xff]  ;;  %v2484_v29 = vld [vmem:[%s4612_s0 + $0x161] sm:$0xff] }
  0x73   :  { %252 = vmatmul.f32.gmra.mxu1 %v2373_v28  ;;  %549 = vmatpush.msrb.mxu0 %v2473_v9  ;;  %v2600_v28 = vld [vmem:[%s4613_s1 + $0x440] sm:$0xff] }
  0x74   :  { %671 = vmatpush.msrb.mxu1 %v2497_v31 }
  0x75   :  { %550 = vmatpush.msrb.mxu0 %v2472_v12 }
  0x76   :  { %139 = vmatmul.f32.gmra.mxu3 %v3381_v32  ;;  %333 = vmatmul.f32.gmra.mxu0 %v3386_v34 }
  0x77   :  { %551 = vmatpush.msrb.mxu0 %v2471_v35  ;;  %672 = vmatpush.msrb.mxu1 %v2496_v38  ;;  %v2421_v38 = vld [vmem:[%s4612_s0 + $0x170] sm:$0xff] }
  0x79   :  { %369 = vmatmul.f32.gmra.mxu2 %v2398_v18  ;;  %552 = vmatpush.msrb.mxu0 %v2470_v40  ;;  %v3567_v18 = vld [vmem:[%s4612_s0 + $0x200] sm:$0xff] }
  0x7b   :  { %255 = vmatmul.f32.gmra.mxu1 %v2374_v41  ;;  %553 = vmatpush.msrb.mxu0 %v2469_v43  ;;  %v2599_v43 = vld [vmem:[%s4613_s1 + $0x438] sm:$0xff] }
  0x7d   :  { %554 = vmatpush.msrb.mxu0 %v2468_v24 }
  0x7e   :  { %142 = vmatmul.f32.gmra.mxu3 %v3417_v44  ;;  %336 = vmatmul.f32.gmra.mxu0 %v3422_v45 }
  0x7f   :  { %555 = vmatpush.msrb.mxu0 %v2467_v49  ;;  %v2485_v49 = vld [vmem:[%s4612_s0 + $0x171] sm:$0xff] }
  0x81   :  { %372 = vmatmul.f32.gmra.mxu2 %v2399_v30  ;;  %556 = vmatpush.msrb.mxu0 %v2466_v50 }
  0x83   :  { %258 = vmatmul.f32.gmra.mxu1 %v2375_v51  ;;  %557 = vmatpush.msrb.mxu0 %v2465_v52  ;;  %v2422_v51 = vld [vmem:[%s4612_s0 + $0x180] sm:$0xff]  ;;  %v3591_v52 = vld [vmem:[%s4612_s0 + $0x210] sm:$0xff] }
  0x85   :  { %558 = vmatpush.msrb.mxu0 %v2464_v53 }
  0x86   :  { %443 = vmatmul.f32.vlgmr.msrb.gmra.mxu3 %v2416_v36  ;;  %559 = vmatmul.f32.vlgmr.msrb.gmra.mxu0 %v3453_v54 }
  0x87   :  { %1003 = vmatpush.msra.mxu0 %v2607_v39 }
  0x89   :  { %789 = vmatmul.f32.vlgmr.msrb.gmra.mxu2 %v3037_v55  ;;  %1004 = vmatpush.msra.mxu0 %v2606_v58  ;;  %v2570_v55 = vld [vmem:[%s4613_s1 + $0x3d0] sm:$0xff] }
  0x8a   :  { %894 = vmatpush.msra.mxu3 %v2570_v55  ;;  %v2598_v58 = vld [vmem:[%s4613_s1 + $0x430] sm:$0xff] }
  0x8b   :  { %673 = vmatmul.f32.vlgmr.msrb.gmra.mxu1 %v2480_v59  ;;  %1005 = vmatpush.msra.mxu0 %v2605_v60  ;;  %v2486_v59 = vld [vmem:[%s4612_s0 + $0x181] sm:$0xff]  ;;  %v2423_v55 = vld [vmem:[%s4612_s0 + $0x190] sm:$0xff] }
  0x8c   :  { %895 = vmatpush.msra.mxu3 %v2569_v11 }
  0x8d   :  { %1006 = vmatpush.msra.mxu0 %v2604_v61 }
  0x8e   :  { %446 = vmatmul.f32.gmra.mxu3 %v2417_v0  ;;  %562 = vmatmul.f32.gmra.mxu0 %v3481_v48 }
  0x8f   :  { %1007 = vmatpush.msra.mxu0 %v2603_v1  ;;  %896 = vmatpush.msra.mxu3 %v2568_v20  ;;  %v3615_v1 = vld [vmem:[%s4612_s0 + $0x220] sm:$0xff]  ;;  %v2487_v20 = vld [vmem:[%s4612_s0 + $0x191] sm:$0xff] }
  0x91   :  { %792 = vmatmul.f32.gmra.mxu2 %v3068_v62  ;;  %v2602_v62 = vld [vmem:[%s4613_s1 + $0x450] sm:$0xff] }
  0x92   :  { %1008 = vmatpush.msra.mxu0 %v2602_v62  ;;  %v2564_v62 = vld [vmem:[%s4613_s1 + $0x3a0] sm:$0xff] }
  0x93   :  { %676 = vmatmul.f32.gmra.mxu1 %v2481_v4 }
  0x96   :  { %449 = vmatmul.f32.gmra.mxu3 %v2418_v5  ;;  %565 = vmatmul.f32.gmra.mxu0 %v3500_v7 }
  0x99   :  { %795 = vmatmul.f32.gmra.mxu2 %v3099_v8  ;;  %v2601_v8 = vld [vmem:[%s4613_s1 + $0x448] sm:$0xff] }
  0x9a   :  { %1009 = vmatpush.msra.mxu0 %v2601_v8 }
  0x9b   :  { %679 = vmatmul.f32.gmra.mxu1 %v2482_v13  ;;  %v2597_v13 = vld [vmem:[%s4613_s1 + $0x428] sm:$0xff] }
  0x9c   :  { %1010 = vmatpush.msra.mxu0 %v2600_v28  ;;  %v3641_v28 = vld [vmem:[%s4612_s0 + $0x3f0] sm:$0xff] }
  0x9e   :  { %452 = vmatmul.f32.gmra.mxu3 %v2419_v17  ;;  %568 = vmatmul.f32.gmra.mxu0 %v3519_v19 }
  0x9f   :  { %1011 = vmatpush.msra.mxu0 %v2599_v43 }
  0xa1   :  { %798 = vmatmul.f32.gmra.mxu2 %v2993_v46  ;;  %v2567_v46 = vld [vmem:[%s4613_s1 + $0x3b8] sm:$0xff]  ;;  %1012 = vmatpush.msra.mxu0 %v2598_v58 }
  0xa2   :  { %897 = vmatpush.msra.mxu3 %v2567_v46  ;;  %v2424_v46 = vld [vmem:[%s4612_s0 + $0x360] sm:$0xff] }
  0xa3   :  { %v3532_v23 = vpop.f32.mrf.mxu0  ;;  %682 = vmatmul.f32.gmra.mxu1 %v2483_v22  ;;  %1013 = vmatpush.msra.mxu0 %v2597_v13 }
  0xa6   :  { %455 = vmatmul.f32.gmra.mxu3 %v2420_v25  ;;  %571 = vmatmul.f32.gmra.mxu0 %v3540_v3 }
  0xa8   :  { %v226_v9 = vpop.f32.mrf.mxu1 }
  0xa9   :  { %v110_v31 = vpop.f32.mrf.mxu3  ;;  %801 = vmatmul.f32.gmra.mxu2 %v3042_v56  ;;  %v2566_v56 = vld [vmem:[%s4613_s1 + $0x3b0] sm:$0xff] }
  0xaa   :  { %v150_v12 = vadd.f32 %v3545_v6, %v110_v31  ;;  %898 = vmatpush.msra.mxu3 %v2566_v56 }
  0xab   :  { %v3559_v35 = vpop.f32.mrf.mxu0  ;;  %685 = vmatmul.f32.gmra.mxu1 %v2484_v29 }
  0xac   :  { %v266_v40 = vadd.f32 %v226_v9, %v150_v12  ;;  %v340_v21 = vpop.f32.mrf.mxu2  ;;  %v2563_v12 = vld [vmem:[%s4613_s1 + $0x398] sm:$0xff] }
  0xae   :  { %v3569_v41 = vadd.f32 %v340_v21, %v266_v40  ;;  %458 = vmatmul.f32.gmra.mxu3 %v2421_v38  ;;  %574 = vmatmul.f32.gmra.mxu0 %v3567_v18  ;;  %v2596_v38 = vld [vmem:[%s4613_s1 + $0x420] sm:$0xff] }
  0xaf   :  { %1014 = vmatpush.msra.mxu0 %v2596_v38  ;;  %v2488_v21 = vld [vmem:[%s4612_s0 + $0x361] sm:$0xff] }
  0xb0   :  { %v229_v24 = vpop.f32.mrf.mxu1 }
  0xb1   :  { %v113_v30 = vpop.f32.mrf.mxu3  ;;  %804 = vmatmul.f32.gmra.mxu2 %v3073_v63  ;;  %v2565_v63 = vld [vmem:[%s4613_s1 + $0x3a8] sm:$0xff] }
  0xb2   :  { %v151_v50 = vadd.f32 %v3545_v6, %v113_v30  ;;  %899 = vmatpush.msra.mxu3 %v2565_v63  ;;  %v3665_v30 = vld [vmem:[%s4612_s0 + $0x400] sm:$0xff] }
  0xb3   :  { %v3583_v33 = vpop.f32.mrf.mxu0  ;;  %688 = vmatmul.f32.gmra.mxu1 %v2485_v49  ;;  %v2425_v49 = vld [vmem:[%s4612_s0 + $0x370] sm:$0xff] }
  0xb4   :  { %v267_v53 = vadd.f32 %v229_v24, %v151_v50  ;;  %v343_v36 = vpop.f32.mrf.mxu2  ;;  %900 = vmatpush.msra.mxu3 %v2564_v62 }
  0xb6   :  { %v3593_v39 = vadd.f32 %v343_v36, %v267_v53  ;;  %461 = vmatmul.f32.gmra.mxu3 %v2422_v51  ;;  %577 = vmatmul.f32.gmra.mxu0 %v3591_v52  ;;  %v2595_v51 = vld [vmem:[%s4613_s1 + $0x418] sm:$0xff] }
  0xb7   :  { %901 = vmatpush.msra.mxu3 %v2563_v12  ;;  %1015 = vmatpush.msra.mxu0 %v2595_v51  ;;  %v2489_v36 = vld [vmem:[%s4612_s0 + $0x371] sm:$0xff]  ;;  %v1112_v12 = vld [vmem:[%s4617_s5 + $0x60] sm:$0xff] }
  0xb8   :  { %v232_v42 = vpop.f32.mrf.mxu1  ;;  %v3752_v51 = vld [vmem:[%s4612_s0 + $0x430] sm:$0xff] }
  0xb9   :  { %v116_v60 = vpop.f32.mrf.mxu3  ;;  %807 = vmatmul.f32.gmra.mxu2 %v3104_v10  ;;  %v2519_v10 = vld [vmem:[%s4612_s0 + $0x80] sm:$0xff] }
  0xba   :  { %v152_v61 = vadd.f32 %v3545_v6, %v116_v60  ;;  %v3689_v60 = vld [vmem:[%s4612_s0 + $0x410] sm:$0xff] }
  0xbb   :  { %v3607_v0 = vpop.f32.mrf.mxu0  ;;  %691 = vmatmul.f32.gmra.mxu1 %v2486_v59  ;;  %v2426_v59 = vld [vmem:[%s4612_s0 + $0x380] sm:$0xff] }
  0xbc   :  { %v268_v4 = vadd.f32 %v232_v42, %v152_v61  ;;  %v346_v5 = vpop.f32.mrf.mxu2 }
  0xbe   :  { %v3617_v11 = vadd.f32 %v346_v5, %v268_v4  ;;  %464 = vmatmul.f32.gmra.mxu3 %v2423_v55  ;;  %580 = vmatmul.f32.gmra.mxu0 %v3615_v1  ;;  %v2594_v55 = vld [vmem:[%s4613_s1 + $0x410] sm:$0xff]  ;;  %v2490_v5 = vld [vmem:[%s4612_s0 + $0x381] sm:$0xff] }
  0xbf   :  { %1016 = vmatpush.msra.mxu0 %v2594_v55  ;;  %v1108_v55 = vld [vmem:[%s4617_s5 + $0x40] sm:$0xff] }
  0xc0   :  { %v235_v17 = vpop.f32.mrf.mxu1 }
  0xc1   :  { %v119_v8 = vpop.f32.mrf.mxu3  ;;  %810 = vmatmul.f32.gmra.mxu2 %v2519_v10  ;;  %v1115_v10 = vld [vmem:[%s4617_s5 + $0x78] sm:$0xff] }
  0xc2   :  { %v153_v22 = vadd.f32 %v3545_v6, %v119_v8  ;;  %1120 = vmatpush.msra.mxu1 %v1115_v10  ;;  %v2427_v8 = vld [vmem:[%s4612_s0 + $0x390] sm:$0xff] }
  0xc3   :  { %v3633_v25 = vpop.f32.mrf.mxu0  ;;  %694 = vmatmul.f32.gmra.mxu1 %v2487_v20  ;;  %v2429_v10 = vld [vmem:[%s4612_s0 + $0x3b0] sm:$0xff] }
  0xc4   :  { %v269_v9 = vadd.f32 %v235_v17, %v153_v22  ;;  %v349_v29 = vpop.f32.mrf.mxu2  ;;  %v1114_v17 = vld [vmem:[%s4617_s5 + $0x70] sm:$0xff]  ;;  %v3719_v22 = vld [vmem:[%s4612_s0 + $0x420] sm:$0xff] }
  0xc5   :  { %1121 = vmatpush.msra.mxu1 %v1114_v17  ;;  %v1106_v17 = vld [vmem:[%s4617_s5 + $0x30] sm:$0xff] }
  0xc6   :  { %v3643_v31 = vadd.f32 %v349_v29, %v269_v9  ;;  %467 = vmatmul.f32.gmra.mxu3 %v2424_v46  ;;  %583 = vmatmul.f32.gmra.mxu0 %v3641_v28  ;;  %v1113_v46 = vld [vmem:[%s4617_s5 + $0x68] sm:$0xff]  ;;  %v2560_v9 = vld [vmem:[%s4613_s1 + $0x380] sm:$0xff] }
  0xc7   :  { %v2593_v29 = vld [vmem:[%s4613_s1 + $0x408] sm:$0xff]  ;;  %1122 = vmatpush.msra.mxu1 %v1113_v46  ;;  %v2493_v46 = vld [vmem:[%s4612_s0 + $0x3b1] sm:$0xff] }
  0xc8   :  { %v238_v40 = vpop.f32.mrf.mxu1  ;;  %1017 = vmatpush.msra.mxu0 %v2593_v29 }
  0xc9   :  { %v122_v56 = vpop.f32.mrf.mxu3  ;;  %813 = vmatmul.f32.gmra.mxu2 %v3149_v26  ;;  %v2562_v26 = vld [vmem:[%s4613_s1 + $0x390] sm:$0xff]  ;;  %1123 = vmatpush.msra.mxu1 %v1112_v12  ;;  %v1105_v12 = vld [vmem:[%s4617_s5 + $0x28] sm:$0xff] }
  0xca   :  { %v154_v43 = vadd.f32 %v3545_v6, %v122_v56  ;;  %902 = vmatpush.msra.mxu3 %v2562_v26  ;;  %v1111_v56 = vld [vmem:[%s4617_s5 + $0x58] sm:$0xff]  ;;  %v2428_v26 = vld [vmem:[%s4612_s0 + $0x3a0] sm:$0xff] }
  0xcb   :  { %v3657_v24 = vpop.f32.mrf.mxu0  ;;  %697 = vmatmul.f32.gmra.mxu1 %v2488_v21 }
  0xcc   :  { %v3667_v50 = vadd.f32 %v238_v40, %v154_v43  ;;  %v2491_v40 = vld [vmem:[%s4612_s0 + $0x391] sm:$0xff]  ;;  %1124 = vmatpush.msra.mxu1 %v1111_v56 }
  0xcd   :  { %v3809_v56 = vld [vmem:[%s4612_s0 + $0x450] sm:$0xff] }
  0xce   :  { %470 = vmatmul.f32.gmra.mxu3 %v2425_v49  ;;  %586 = vmatmul.f32.gmra.mxu0 %v3665_v30 }
  0xd0   :  { %v241_v53 = vpop.f32.mrf.mxu1 }
  0xd1   :  { %v125_v63 = vpop.f32.mrf.mxu3  ;;  %816 = vmatmul.f32.gmra.mxu2 %v3195_v15  ;;  %v2561_v15 = vld [vmem:[%s4613_s1 + $0x388] sm:$0xff] }
  0xd2   :  { %v155_v58 = vadd.f32 %v3545_v6, %v125_v63  ;;  %903 = vmatpush.msra.mxu3 %v2561_v15  ;;  %v2592_v63 = vld [vmem:[%s4613_s1 + $0x400] sm:$0xff] }
  0xd3   :  { %v3681_v42 = vpop.f32.mrf.mxu0  ;;  %700 = vmatmul.f32.gmra.mxu1 %v2489_v36  ;;  %v1109_v36 = vld [vmem:[%s4617_s5 + $0x48] sm:$0xff]  ;;  %1018 = vmatpush.msra.mxu0 %v2592_v63  ;;  %v1287_v63 = vld [vmem:[#allocation3 + $0x70] sm:$0xff] }
  0xd4   :  { %v3691_v61 = vadd.f32 %v241_v53, %v155_v58  ;;  %904 = vmatpush.msra.mxu3 %v2560_v9  ;;  %v1110_v53 = vld [vmem:[%s4617_s5 + $0x50] sm:$0xff]  ;;  %v1288_v9 = vld [vmem:[#allocation3 + $0x78] sm:$0xff] }
  0xd5   :  { %1125 = vmatpush.msra.mxu1 %v1110_v53  ;;  %1289 = vmatpush.msra.mxu2 %v1288_v9  ;;  %v2495_v9 = vld [vmem:[%s4612_s0 + $0x3d1] sm:$0xff] }
  0xd6   :  { %473 = vmatmul.f32.gmra.mxu3 %v2426_v59  ;;  %589 = vmatmul.f32.gmra.mxu0 %v3689_v60  ;;  %v2492_v59 = vld [vmem:[%s4612_s0 + $0x3a1] sm:$0xff] }
  0xd7   :  { %1126 = vmatpush.msra.mxu1 %v1109_v36  ;;  %v2494_v36 = vld [vmem:[%s4612_s0 + $0x3c1] sm:$0xff]  ;;  %1290 = vmatpush.msra.mxu2 %v1287_v63 }
  0xd8   :  { %v244_v4 = vpop.f32.mrf.mxu1 }
  0xd9   :  { %v128_v62 = vpop.f32.mrf.mxu3  ;;  %819 = vmatmul.f32.gmra.mxu2 %v3238_v27  ;;  %1127 = vmatpush.msra.mxu1 %v1108_v55 }
  0xda   :  { %v156_v13 = vadd.f32 %v3545_v6, %v128_v62  ;;  %v3782_v62 = vld [vmem:[%s4612_s0 + $0x440] sm:$0xff] }
  0xdb   :  { %v3711_v20 = vpop.f32.mrf.mxu0  ;;  %703 = vmatmul.f32.gmra.mxu1 %v2490_v5 }
  0xdc   :  { %v3721_v27 = vadd.f32 %v244_v4, %v156_v13  ;;  %v1107_v13 = vld [vmem:[%s4617_s5 + $0x38] sm:$0xff] }
  0xdd   :  { %1128 = vmatpush.msra.mxu1 %v1107_v13  ;;  %v1101_v13 = vld [vmem:[%s4617_s5 + $0x8] sm:$0xff] }
  0xde   :  { %476 = vmatmul.f32.gmra.mxu3 %v2427_v8  ;;  %592 = vmatmul.f32.gmra.mxu0 %v3719_v22 }
  0xdf   :  { %1129 = vmatpush.msra.mxu1 %v1106_v17  ;;  %v2527_v17 = vld [vmem:[%s4612_s0 + $0x2c0] sm:$0xff] }
  0xe0   :  { %v247_v38 = vpop.f32.mrf.mxu1 }
  0xe1   :  { %v131_v21 = vpop.f32.mrf.mxu3  ;;  %822 = vmatmul.f32.gmra.mxu2 %v3281_v57  ;;  %1130 = vmatpush.msra.mxu1 %v1105_v12 }
  0xe2   :  { %v157_v43 = vadd.f32 %v3545_v6, %v131_v21  ;;  %v2430_v21 = vld [vmem:[%s4612_s0 + $0x3c0] sm:$0xff] }
  0xe3   :  { %v3744_v49 = vpop.f32.mrf.mxu0  ;;  %706 = vmatmul.f32.gmra.mxu1 %v2491_v40 }
  0xe4   :  { %v3754_v57 = vadd.f32 %v247_v38, %v157_v43  ;;  %v1104_v43 = vld [vmem:[%s4617_s5 + $0x20] sm:$0xff] }
  0xe5   :  { %1131 = vmatpush.msra.mxu1 %v1104_v43  ;;  %v146_v43 = vadd.f32 %v3545_v6, %v3532_v23  ;;  %v147_v23 = vadd.f32 %v3545_v6, %v3559_v35  ;;  %v148_v35 = vadd.f32 %v3545_v6, %v3583_v33  ;;  %v2547_v33 = vld [vmem:[%s4612_s0 + $0xd0] sm:$0xff] }
  0xe6   :  { %479 = vmatmul.f32.gmra.mxu3 %v2428_v26  ;;  %595 = vmatmul.f32.gmra.mxu0 %v3752_v51  ;;  %v1103_v26 = vld [vmem:[%s4617_s5 + $0x18] sm:$0xff] }
  0xe7   :  { %1132 = vmatpush.msra.mxu1 %v1103_v26 }
  0xe8   :  { %v250_v58 = vpop.f32.mrf.mxu1 }
  0xe9   :  { %v134_v15 = vpop.f32.mrf.mxu3  ;;  %825 = vmatmul.f32.gmra.mxu2 %v3330_v14 }
  0xea   :  { %v158_v4 = vadd.f32 %v3545_v6, %v134_v15 }
  0xeb   :  { %v3774_v5 = vpop.f32.mrf.mxu0  ;;  %709 = vmatmul.f32.gmra.mxu1 %v2492_v59  ;;  %v1102_v59 = vld [vmem:[%s4617_s5 + $0x10] sm:$0xff] }
  0xec   :  { %v3784_v14 = vadd.f32 %v250_v58, %v158_v4  ;;  %v2431_v4 = vld [vmem:[%s4612_s0 + $0x3d0] sm:$0xff]  ;;  %1133 = vmatpush.msra.mxu1 %v1102_v59 }
  0xee   :  { %482 = vmatmul.f32.gmra.mxu3 %v2429_v10  ;;  %598 = vmatmul.f32.gmra.mxu0 %v3782_v62  ;;  %v3836_v10 = vld [vmem:[%s4612_s0 + $0x460] sm:$0xff] }
  0xef   :  { %1134 = vmatpush.msra.mxu1 %v1101_v13 }
  0xf0   :  { %v253_v8 = vpop.f32.mrf.mxu1 }
  0xf1   :  { %v137_v29 = vpop.f32.mrf.mxu3  ;;  %828 = vmatmul.f32.gmra.mxu2 %v3381_v32 }
  0xf2   :  { %v159_v38 = vadd.f32 %v3545_v6, %v137_v29  ;;  %v1286_v29 = vld [vmem:[#allocation3 + $0x68] sm:$0xff] }
  0xf3   :  { %v3801_v40 = vpop.f32.mrf.mxu0  ;;  %712 = vmatmul.f32.gmra.mxu1 %v2493_v46  ;;  %1291 = vmatpush.msra.mxu2 %v1286_v29 }
  0xf4   :  { %v3811_v32 = vadd.f32 %v253_v8, %v159_v38  ;;  %v1100_v8 = vld [vmem:[%s4617_s5] sm:$0xff] }
  0xf5   :  { %1135 = vmatpush.msra.mxu1 %v1100_v8 }
  0xf6   :  { %485 = vmatmul.f32.gmra.mxu3 %v2430_v21  ;;  %601 = vmatmul.f32.gmra.mxu0 %v3809_v56 }
  0xf8   :  { %v256_v53 = vpop.f32.mrf.mxu1 }
  0xf9   :  { %v140_v58 = vpop.f32.mrf.mxu3  ;;  %831 = vmatmul.f32.gmra.mxu2 %v3417_v44 }
  0xfa   :  { %v160_v15 = vadd.f32 %v3545_v6, %v140_v58  ;;  %v1285_v58 = vld [vmem:[#allocation3 + $0x60] sm:$0xff] }
  0xfb   :  { %v3828_v55 = vpop.f32.mrf.mxu0  ;;  %715 = vmatmul.f32.gmra.mxu1 %v2494_v36  ;;  %1292 = vmatpush.msra.mxu2 %v1285_v58 }
  0xfc   :  { %v3838_v44 = vadd.f32 %v256_v53, %v160_v15  ;;  %v262_v53 = vadd.f32 %v3633_v25, %v146_v43  ;;  %v1282_v43 = vld [vmem:[#allocation3 + $0x48] sm:$0xff] }
  0xfe   :  { %488 = vmatmul.f32.gmra.mxu3 %v2431_v4  ;;  %604 = vmatmul.f32.gmra.mxu0 %v3836_v10  ;;  %v376_v36 = vadd.f32 %v3744_v49, %v262_v53  ;;  %v1284_v49 = vld [vmem:[#allocation3 + $0x58] sm:$0xff] }
  0xff   :  { %1293 = vmatpush.msra.mxu2 %v1284_v49 }
 0x100   :  { %v259_v46 = vpop.f32.mrf.mxu1 }
 0x101   :  { %v143_v12 = vpop.f32.mrf.mxu3  ;;  %834 = vmatmul.f32.gmra.mxu2 %v2527_v17 }
 0x102   :  { %v161_v38 = vadd.f32 %v3545_v6, %v143_v12 }
 0x103   :  { %718 = vmatmul.f32.gmra.mxu1 %v2495_v9  ;;  %v560_v21 = vpop.f32.mrf.mxu0  ;;  %v3886_v9 = vpop.f32.mrf.mxu2 }
 0x104   :  { %v3856_v26 = vadd.f32 %v259_v46, %v161_v38 }
 0x106   :  { %905 = vmatmul.f32.vlgmr.msra.gmra.mxu3 %v3154_v2  ;;  %1019 = vmatmul.f32.vlgmr.msra.gmra.mxu0 %v3335_v16  ;;  %v263_v2 = vadd.f32 %v3657_v24, %v147_v23  ;;  %v2549_v23 = vld [vmem:[%s4612_s0 + $0xf0] sm:$0xff] }
 0x108   :  { %v3862_v63 = vpop.f32.mrf.mxu1  ;;  %v377_v16 = vadd.f32 %v3774_v5, %v263_v2  ;;  %v1283_v5 = vld [vmem:[#allocation3 + $0x50] sm:$0xff] }
 0x109   :  { %v444_v59 = vpop.f32.mrf.mxu3  ;;  %1294 = vmatpush.msra.mxu2 %v1283_v5 }
 0x10a   :  { %v492_v15 = vadd.f32 %v444_v59, %v376_v36  ;;  %v1281_v59 = vld [vmem:[#allocation3 + $0x40] sm:$0xff] }
 0x10b   :  { %v563_v4 = vpop.f32.mrf.mxu0  ;;  %1136 = vmatmul.f32.vlgmr.msra.gmra.mxu1 %v3453_v54  ;;  %1295 = vmatpush.msra.mxu2 %v1282_v43  ;;  %v3903_v58 = vpop.f32.mrf.mxu2 }
 0x10c   :  { %v3867_v13 = vadd.f32 %v560_v21, %v492_v15 }
 0x10d   :  { %1296 = vmatpush.msra.mxu2 %v1281_v59  ;;  %v1277_v59 = vld [vmem:[#allocation3 + $0x20] sm:$0xff] }
 0x10e   :  { %908 = vmatmul.f32.gmra.mxu3 %v3200_v37  ;;  %1022 = vmatmul.f32.gmra.mxu0 %v3386_v34  ;;  %v264_v37 = vadd.f32 %v3681_v42, %v148_v35  ;;  %v2550_v35 = vld [vmem:[%s4612_s0 + $0x100] sm:$0xff] }
 0x110   :  { %v3873_v25 = vpop.f32.mrf.mxu1  ;;  %v378_v34 = vadd.f32 %v3801_v40, %v264_v37 }
 0x111   :  { %v447_v17 = vpop.f32.mrf.mxu3 }
 0x112   :  { %v493_v8 = vadd.f32 %v447_v17, %v377_v16 }
 0x113   :  { %v566_v54 = vpop.f32.mrf.mxu0  ;;  %1139 = vmatmul.f32.gmra.mxu1 %v3481_v48  ;;  %v3926_v49 = vpop.f32.mrf.mxu2 }
 0x114   :  { %v3878_v46 = vadd.f32 %v563_v4, %v493_v8 }
 0x116   :  { %911 = vmatmul.f32.gmra.mxu3 %v3243_v47  ;;  %1025 = vmatmul.f32.gmra.mxu0 %v3422_v45  ;;  %v2579_v47 = vld [vmem:[%s4612_s0 + $0x41] sm:$0xff]  ;;  %v149_v45 = vadd.f32 %v3545_v6, %v3607_v0  ;;  %v2580_v0 = vld [vmem:[%s4612_s0 + $0x51] sm:$0xff] }
 0x118   :  { %v3884_v24 = vpop.f32.mrf.mxu1  ;;  %v265_v40 = vadd.f32 %v3711_v20, %v149_v45 }
 0x119   :  { %v450_v29 = vpop.f32.mrf.mxu3 }
 0x11a   :  { %v494_v48 = vadd.f32 %v450_v29, %v378_v34  ;;  %v379_v38 = vadd.f32 %v3828_v55, %v265_v40 }
 0x11b   :  { %v569_v12 = vpop.f32.mrf.mxu0  ;;  %1142 = vmatmul.f32.gmra.mxu1 %v3500_v7  ;;  %v2548_v7 = vld [vmem:[%s4612_s0 + $0xe0] sm:$0xff]  ;;  %v3940_v5 = vpop.f32.mrf.mxu2 }
 0x11c   :  { %v3897_v42 = vadd.f32 %v566_v54, %v494_v48 }
 0x11e   :  { %914 = vmatmul.f32.gmra.mxu3 %v2547_v33  ;;  %1028 = vmatmul.f32.gmra.mxu0 %v2579_v47 }
 0x120   :  { %v3901_v21 = vpop.f32.mrf.mxu1 }
 0x121   :  { %v453_v53 = vpop.f32.mrf.mxu3 }
 0x122   :  { %v495_v36 = vadd.f32 %v453_v53, %v379_v38  ;;  %v1278_v38 = vld [vmem:[#allocation3 + $0x28] sm:$0xff] }
 0x123   :  { %v572_v6 = vpop.f32.mrf.mxu0  ;;  %1145 = vmatmul.f32.gmra.mxu1 %v3519_v19  ;;  %v2581_v19 = vld [vmem:[%s4612_s0 + $0x61] sm:$0xff]  ;;  %v3956_v43 = vpop.f32.mrf.mxu2 }
 0x124   :  { %v3912_v20 = vadd.f32 %v569_v12, %v495_v36  ;;  %v2551_v12 = vld [vmem:[%s4612_s0 + $0x110] sm:$0xff]  ;;  %v2552_v36 = vld [vmem:[%s4612_s0 + $0x2e0] sm:$0xff] }
 0x126   :  { %917 = vmatmul.f32.gmra.mxu3 %v2548_v7  ;;  %1031 = vmatmul.f32.gmra.mxu0 %v2580_v0  ;;  %v384_v0 = vadd.f32 %v3886_v9, %v3667_v50  ;;  %v2585_v50 = vld [vmem:[%s4612_s0 + $0x261] sm:$0xff] }
 0x127   :  { %v1400_v9 = vld [vmem:[#allocation3 + $0xe8] sm:$0xff] }
 0x128   :  { %v3914_v55 = vpop.f32.mrf.mxu1 }
 0x129   :  { %v456_v15 = vpop.f32.mrf.mxu3 }
 0x12a   :  { %v496_v4 = vadd.f32 %v456_v15, %v3569_v41  ;;  %v1280_v41 = vld [vmem:[#allocation3 + $0x38] sm:$0xff] }
 0x12b   :  { %v575_v2 = vpop.f32.mrf.mxu0  ;;  %1148 = vmatmul.f32.gmra.mxu1 %v3540_v3  ;;  %1297 = vmatpush.msra.mxu2 %v1280_v41  ;;  %v2582_v3 = vld [vmem:[%s4612_s0 + $0x71] sm:$0xff] }
 0x12c   :  { %v3924_v16 = vadd.f32 %v572_v6, %v496_v4  ;;  %v1402_v15 = vld [vmem:[#allocation3 + $0xf8] sm:$0xff] }
 0x12d   :  { %1403 = vmatpush.msrb.mxu3 %v1402_v15  ;;  %v1631_v15 = vld [vmem:[#allocation3 + $0x1f8] sm:$0xff] }
 0x12e   :  { %920 = vmatmul.f32.gmra.mxu3 %v2549_v23  ;;  %1034 = vmatmul.f32.gmra.mxu0 %v2581_v19  ;;  %v3976_v19 = vpop.f32.mrf.mxu2 }
 0x12f   :  { %1632 = vmatpush.msrb.mxu1 %v1631_v15  ;;  %v2588_v15 = vld [vmem:[%s4612_s0 + $0x291] sm:$0xff] }
 0x130   :  { %v3928_v17 = vpop.f32.mrf.mxu1 }
 0x131   :  { %v459_v8 = vpop.f32.mrf.mxu3 }
 0x132   :  { %v497_v54 = vadd.f32 %v459_v8, %v3593_v39  ;;  %v1279_v39 = vld [vmem:[#allocation3 + $0x30] sm:$0xff]  ;;  %v1399_v8 = vld [vmem:[#allocation3 + $0xe0] sm:$0xff] }
 0x133   :  { %v578_v37 = vpop.f32.mrf.mxu0  ;;  %1151 = vmatmul.f32.gmra.mxu1 %v3567_v18  ;;  %1298 = vmatpush.msra.mxu2 %v1279_v39  ;;  %v2583_v18 = vld [vmem:[%s4612_s0 + $0x81] sm:$0xff]  ;;  %v1398_v39 = vld [vmem:[#allocation3 + $0xd8] sm:$0xff] }
 0x134   :  { %v3938_v34 = vadd.f32 %v575_v2, %v497_v54  ;;  %v1401_v2 = vld [vmem:[#allocation3 + $0xf0] sm:$0xff]  ;;  %v385_v54 = vadd.f32 %v3903_v58, %v3691_v61  ;;  %v1514_v58 = vld [vmem:[#allocation3 + $0x168] sm:$0xff] }
 0x135   :  { %1299 = vmatpush.msra.mxu2 %v1278_v38  ;;  %1404 = vmatpush.msrb.mxu3 %v1401_v2  ;;  %v2586_v61 = vld [vmem:[%s4612_s0 + $0x271] sm:$0xff]  ;;  %v1396_v38 = vld [vmem:[#allocation3 + $0xc8] sm:$0xff] }
 0x136   :  { %923 = vmatmul.f32.gmra.mxu3 %v2550_v35  ;;  %1037 = vmatmul.f32.gmra.mxu0 %v2582_v3  ;;  %v1516_v3 = vld [vmem:[#allocation3 + $0x178] sm:$0xff] }
 0x137   :  { %1300 = vmatpush.msra.mxu2 %v1277_v59  ;;  %1405 = vmatpush.msrb.mxu3 %v1400_v9  ;;  %v1275_v59 = vld [vmem:[#allocation3 + $0x10] sm:$0xff]  ;;  %v1394_v2 = vld [vmem:[#allocation3 + $0xb8] sm:$0xff] }
 0x138   :  { %v3942_v29 = vpop.f32.mrf.mxu1  ;;  %1517 = vmatpush.msrb.mxu0 %v1516_v3  ;;  %v1630_v9 = vld [vmem:[#allocation3 + $0x1f0] sm:$0xff] }
 0x139   :  { %v462_v48 = vpop.f32.mrf.mxu3  ;;  %1406 = vmatpush.msrb.mxu3 %v1399_v8  ;;  %v2555_v8 = vld [vmem:[%s4612_s0 + $0x310] sm:$0xff]  ;;  %1633 = vmatpush.msrb.mxu1 %v1630_v9  ;;  %v1625_v9 = vld [vmem:[#allocation3 + $0x1c8] sm:$0xff] }
 0x13a   :  { %v498_v33 = vadd.f32 %v462_v48, %v3617_v11  ;;  %v1393_v3 = vld [vmem:[#allocation3 + $0xb0] sm:$0xff] }
 0x13b   :  { %v581_v47 = vpop.f32.mrf.mxu0  ;;  %1154 = vmatmul.f32.gmra.mxu1 %v3591_v52  ;;  %v2584_v52 = vld [vmem:[%s4612_s0 + $0x251] sm:$0xff]  ;;  %1407 = vmatpush.msrb.mxu3 %v1398_v39  ;;  %v1509_v39 = vld [vmem:[#allocation3 + $0x140] sm:$0xff] }
 0x13c   :  { %v3952_v45 = vadd.f32 %v578_v37, %v498_v33  ;;  %v1276_v37 = vld [vmem:[#allocation3 + $0x18] sm:$0xff] }
 0x13d   :  { %1301 = vmatpush.msra.mxu2 %v1276_v37  ;;  %v1629_v37 = vld [vmem:[#allocation3 + $0x1e8] sm:$0xff] }
 0x13e   :  { %926 = vmatmul.f32.gmra.mxu3 %v2551_v12  ;;  %1040 = vmatmul.f32.gmra.mxu0 %v2583_v18  ;;  %v1397_v12 = vld [vmem:[#allocation3 + $0xd0] sm:$0xff] }
 0x13f   :  { %1408 = vmatpush.msrb.mxu3 %v1397_v12  ;;  %1302 = vmatpush.msra.mxu2 %v1275_v59  ;;  %v1392_v12 = vld [vmem:[#allocation3 + $0xa8] sm:$0xff]  ;;  %v1507_v59 = vld [vmem:[#allocation3 + $0x130] sm:$0xff] }
 0x140   :  { %v3954_v40 = vpop.f32.mrf.mxu1  ;;  %1634 = vmatpush.msrb.mxu1 %v1629_v37 }
 0x141   :  { %v465_v11 = vpop.f32.mrf.mxu3  ;;  %1409 = vmatpush.msrb.mxu3 %v1396_v38  ;;  %v2719_v38 = vmov 0.0  }
 0x142   :  { %v499_v53 = vadd.f32 %v465_v11, %v3643_v31  ;;  %v4002_v11 = vpop.f32.mrf.mxu2  ;;  %1202 = vst [vmem:[#allocation2] sm:$0xff] %v2719_v38 }
 0x143   :  { %v3962_v7 = vpop.f32.mrf.mxu0  ;;  %1157 = vmatmul.f32.gmra.mxu1 %v3615_v1  ;;  %v2553_v1 = vld [vmem:[%s4612_s0 + $0x2f0] sm:$0xff]  ;;  %1211 = vst [vmem:[#allocation2] sm:$0x1] %v2719_v38 }
 0x144   :  { %v3968_v6 = vadd.f32 %v581_v47, %v499_v53  ;;  %v2554_v47 = vld [vmem:[%s4612_s0 + $0x300] sm:$0xff]  ;;  %1203 = vst [vmem:[#allocation2 + $0x8] sm:$0x3] %v2719_v38 }
 0x145   :  { %v1513_v53 = vld [vmem:[#allocation3 + $0x160] sm:$0xff]  ;;  %1204 = vst [vmem:[#allocation2 + $0xa0] sm:$0xff] %v2719_v38 }
 0x146   :  { %929 = vmatmul.f32.gmra.mxu3 %v2552_v36  ;;  %1043 = vmatmul.f32.gmra.mxu0 %v2584_v52  ;;  %v1395_v36 = vld [vmem:[#allocation3 + $0xc0] sm:$0xff]  ;;  %v386_v52 = vadd.f32 %v3926_v49, %v3721_v27  ;;  %1205 = vst [vmem:[#allocation2 + $0xa8] sm:$0x3] %v2719_v38 }
 0x147   :  { %1410 = vmatpush.msrb.mxu3 %v1395_v36  ;;  %v2587_v49 = vld [vmem:[%s4612_s0 + $0x281] sm:$0xff]  ;;  %v1627_v36 = vld [vmem:[#allocation3 + $0x1d8] sm:$0xff]  ;;  %1207 = vst [vmem:[#allocation2 + $0x90] sm:$0xff] %v2719_v38 }
 0x148   :  { %v3972_v31 = vpop.f32.mrf.mxu1  ;;  %1208 = vst [vmem:[#allocation2 + $0x98] sm:$0x3] %v2719_v38 }
 0x149   :  { %v468_v4 = vpop.f32.mrf.mxu3  ;;  %1411 = vmatpush.msrb.mxu3 %v1394_v2  ;;  %v1506_v2 = vld [vmem:[#allocation3 + $0x128] sm:$0xff]  ;;  %1209 = vst [vmem:[#allocation2 + $0x130] sm:$0xff] %v2719_v38 }
 0x14a   :  { %v3974_v23 = vadd.f32 %v468_v4, %v384_v0  ;;  %1210 = vst [vmem:[#allocation2 + $0x138] sm:$0x3] %v2719_v38 }
 0x14b   :  { %v3981_v41 = vpop.f32.mrf.mxu0  ;;  %1160 = vmatmul.f32.gmra.mxu1 %v3641_v28  ;;  %v1515_v28 = vld [vmem:[#allocation3 + $0x170] sm:$0xff]  ;;  %1412 = vmatpush.msrb.mxu3 %v1393_v3  ;;  %v1273_v3 = vld [vmem:[#allocation3] sm:$0xff]  ;;  %1212 = vst [vmem:[#allocation2 + $0x10] sm:$0x1] %v2719_v38 }
 0x14c   :  { %1518 = vmatpush.msrb.mxu0 %v1515_v28  ;;  %v4019_v28 = vpop.f32.mrf.mxu2  ;;  %1213 = vst [vmem:[#allocation2 + $0x20] sm:$0x1] %v2719_v38 }
 0x14d   :  { %1413 = vmatpush.msrb.mxu3 %v1392_v12  ;;  %v1624_v12 = vld [vmem:[#allocation3 + $0x1c0] sm:$0xff]  ;;  %1214 = vst [vmem:[#allocation2 + $0x30] sm:$0x1] %v2719_v38 }
 0x14e   :  { %932 = vmatmul.f32.gmra.mxu3 %v2553_v1  ;;  %1046 = vmatmul.f32.gmra.mxu0 %v2585_v50  ;;  %v1511_v50 = vld [vmem:[#allocation3 + $0x150] sm:$0xff]  ;;  %1215 = vst [vmem:[#allocation2 + $0x40] sm:$0x1] %v2719_v38 }
 0x14f   :  { %1519 = vmatpush.msrb.mxu0 %v1514_v58  ;;  %v1508_v58 = vld [vmem:[#allocation3 + $0x138] sm:$0xff]  ;;  %1216 = vst [vmem:[#allocation2 + $0x50] sm:$0x1] %v2719_v38 }
 0x150   :  { %v3989_v35 = vpop.f32.mrf.mxu1  ;;  %1217 = vst [vmem:[#allocation2 + $0x60] sm:$0x1] %v2719_v38 }
 0x151   :  { %v471_v48 = vpop.f32.mrf.mxu3  ;;  %1520 = vmatpush.msrb.mxu0 %v1513_v53  ;;  %1218 = vst [vmem:[#allocation2 + $0x70] sm:$0x1] %v2719_v38 }
 0x152   :  { %v3991_v33 = vadd.f32 %v471_v48, %v385_v54  ;;  %v1510_v54 = vld [vmem:[#allocation3 + $0x148] sm:$0xff]  ;;  %v1628_v48 = vld [vmem:[#allocation3 + $0x1e0] sm:$0xff]  ;;  %1219 = vst [vmem:[#allocation2 + $0x80] sm:$0x1] %v2719_v38 }
 0x153   :  { %v3996_v18 = vpop.f32.mrf.mxu0  ;;  %1163 = vmatmul.f32.gmra.mxu1 %v3665_v30  ;;  %v1512_v30 = vld [vmem:[#allocation3 + $0x158] sm:$0xff]  ;;  %1222 = vst [vmem:[#allocation2 + $0xb0] sm:$0x1] %v2719_v38 }
 0x154   :  { %1521 = vmatpush.msrb.mxu0 %v1512_v30  ;;  %1635 = vmatpush.msrb.mxu1 %v1628_v48  ;;  %1223 = vst [vmem:[#allocation2 + $0xc0] sm:$0x1] %v2719_v38 }
 0x155   :  { %1224 = vst [vmem:[#allocation2 + $0xd0] sm:$0x1] %v2719_v38 }
 0x156   :  { %935 = vmatmul.f32.gmra.mxu3 %v2554_v47  ;;  %1049 = vmatmul.f32.gmra.mxu0 %v2586_v61  ;;  %v387_v47 = vadd.f32 %v3940_v5, %v3754_v57  ;;  %v1274_v61 = vld [vmem:[#allocation3 + $0x8] sm:$0xff]  ;;  %v1391_v57 = vld [vmem:[#allocation3 + $0xa0] sm:$0xff]  ;;  %1225 = vst [vmem:[#allocation2 + $0xe0] sm:$0x1] %v2719_v38 }
 0x157   :  { %1522 = vmatpush.msrb.mxu0 %v1511_v50  ;;  %1303 = vmatpush.msra.mxu2 %v1274_v61  ;;  %v2556_v5 = vld [vmem:[%s4612_s0 + $0x320] sm:$0xff]  ;;  %v1390_v50 = vld [vmem:[#allocation3 + $0x98] sm:$0xff]  ;;  %1226 = vst [vmem:[#allocation2 + $0xf0] sm:$0x1] %v2719_v38 }
 0x158   :  { %v4006_v0 = vpop.f32.mrf.mxu1  ;;  %1636 = vmatpush.msrb.mxu1 %v1627_v36  ;;  %1414 = vmatpush.msrb.mxu3 %v1391_v57  ;;  %v1256_v36 = vld [vmem:[#allocation2] sm:$0xff]  ;;  %1227 = vst [vmem:[#allocation2 + $0x100] sm:$0x1] %v2719_v38 }
 0x159   :  { %v474_v4 = vpop.f32.mrf.mxu3  ;;  %1523 = vmatpush.msrb.mxu0 %v1510_v54  ;;  %v388_v54 = vadd.f32 %v3956_v43, %v3784_v14  ;;  %1304 = vmatpush.msra.mxu2 %v1273_v3  ;;  %v2557_v14 = vld [vmem:[%s4612_s0 + $0x330] sm:$0xff]  ;;  %v1387_v57 = vld [vmem:[#allocation3 + $0x80] sm:$0xff]  ;;  %1228 = vst [vmem:[#allocation2 + $0x110] sm:$0x1] %v2719_v38 }
 0x15a   :  { %v4008_v1 = vadd.f32 %v474_v4, %v386_v52  ;;  %v1626_v4 = vld [vmem:[#allocation3 + $0x1d0] sm:$0xff]  ;;  %1415 = vmatpush.msrb.mxu3 %v1390_v50  ;;  %1305 = vmatmul.f32.vlgmr.msra.gmra.mxu2 %v1256_v36  ;;  %v1620_v3 = vld [vmem:[#allocation3 + $0x1a0] sm:$0xff]  ;;  %1229 = vst [vmem:[#allocation2 + $0x120] sm:$0x1] %v2719_v38 }
 0x15b   :  { %v4013_v27 = vpop.f32.mrf.mxu0  ;;  %1166 = vmatmul.f32.gmra.mxu1 %v3689_v60  ;;  %1524 = vmatpush.msrb.mxu0 %v1509_v39  ;;  %v1504_v39 = vld [vmem:[#allocation3 + $0x118] sm:$0xff]  ;;  %1232 = vst [vmem:[#allocation2 + $0x19] sm:$0x1] %v2719_v38  ;;  %v2559_v36 = vld [vmem:[%s4612_s0 + $0x350] sm:$0xff] }
 0x15c   :  { %1637 = vmatpush.msrb.mxu1 %v1626_v4  ;;  %v1502_v4 = vld [vmem:[#allocation3 + $0x108] sm:$0xff]  ;;  %1233 = vst [vmem:[#allocation2 + $0x29] sm:$0x1] %v2719_v38 }
 0x15d   :  { %1525 = vmatpush.msrb.mxu0 %v1508_v58  ;;  %v1503_v58 = vld [vmem:[#allocation3 + $0x110] sm:$0xff]  ;;  %1234 = vst [vmem:[#allocation2 + $0x39] sm:$0x1] %v2719_v38 }
 0x15e   :  { %938 = vmatmul.f32.gmra.mxu3 %v2555_v8  ;;  %1052 = vmatmul.f32.gmra.mxu0 %v2587_v49  ;;  %v1505_v8 = vld [vmem:[#allocation3 + $0x120] sm:$0xff]  ;;  %v4043_v49 = vpop.f32.mrf.mxu2  ;;  %1235 = vst [vmem:[#allocation2 + $0x49] sm:$0x1] %v2719_v38 }
 0x15f   :  { %1526 = vmatpush.msrb.mxu0 %v1507_v59  ;;  %1638 = vmatpush.msrb.mxu1 %v1625_v9  ;;  %v1623_v59 = vld [vmem:[#allocation3 + $0x1b8] sm:$0xff]  ;;  %1236 = vst [vmem:[#allocation2 + $0x59] sm:$0x1] %v2719_v38 }
 0x160   :  { %v4023_v60 = vpop.f32.mrf.mxu1  ;;  %1237 = vst [vmem:[#allocation2 + $0x69] sm:$0x1] %v2719_v38 }
 0x161   :  { %v477_v53 = vpop.f32.mrf.mxu3  ;;  %1527 = vmatpush.msrb.mxu0 %v1506_v2  ;;  %1639 = vmatpush.msrb.mxu1 %v1624_v12  ;;  %v1501_v2 = vld [vmem:[#allocation3 + $0x100] sm:$0xff]  ;;  %1238 = vst [vmem:[#allocation2 + $0x79] sm:$0x1] %v2719_v38 }
 0x162   :  { %v4027_v52 = vadd.f32 %v477_v53, %v387_v47  ;;  %v1388_v47 = vld [vmem:[#allocation3 + $0x88] sm:$0xff]  ;;  %1239 = vst [vmem:[#allocation2 + $0x89] sm:$0x1] %v2719_v38 }
 0x163   :  { %v4033_v30 = vpop.f32.mrf.mxu0  ;;  %1169 = vmatmul.f32.gmra.mxu1 %v3719_v22  ;;  %v1389_v22 = vld [vmem:[#allocation3 + $0x90] sm:$0xff]  ;;  %1528 = vmatpush.msrb.mxu0 %v1505_v8  ;;  %v2589_v53 = vld [vmem:[%s4612_s0 + $0x2a1] sm:$0xff]  ;;  %1242 = vst [vmem:[#allocation2 + $0xb9] sm:$0x1] %v2719_v38 }
 0x164   :  { %1416 = vmatpush.msrb.mxu3 %v1389_v22  ;;  %1640 = vmatpush.msrb.mxu1 %v1623_v59  ;;  %v1621_v8 = vld [vmem:[#allocation3 + $0x1a8] sm:$0xff]  ;;  %1243 = vst [vmem:[#allocation2 + $0xc9] sm:$0x1] %v2719_v38 }
 0x165   :  { %1529 = vmatpush.msrb.mxu0 %v1504_v39  ;;  %v1745_v39 = vld [vmem:[#allocation3 + $0x278] sm:$0xff]  ;;  %v1617_v59 = vld [vmem:[#allocation3 + $0x188] sm:$0xff]  ;;  %1244 = vst [vmem:[#allocation2 + $0xd9] sm:$0x1] %v2719_v38 }
 0x166   :  { %941 = vmatmul.f32.gmra.mxu3 %v2556_v5  ;;  %1055 = vmatmul.f32.gmra.mxu0 %v2588_v15  ;;  %v1622_v5 = vld [vmem:[#allocation3 + $0x1b0] sm:$0xff]  ;;  %v4074_v50 = vpop.f32.mrf.mxu2  ;;  %1245 = vst [vmem:[#allocation2 + $0xe9] sm:$0x1] %v2719_v38 }
 0x167   :  { %1417 = vmatpush.msrb.mxu3 %v1388_v47  ;;  %1530 = vmatpush.msrb.mxu0 %v1503_v58  ;;  %v1618_v58 = vld [vmem:[#allocation3 + $0x190] sm:$0xff]  ;;  %1246 = vst [vmem:[#allocation2 + $0xf9] sm:$0x1] %v2719_v38 }
 0x168   :  { %v4048_v37 = vpop.f32.mrf.mxu1  ;;  %1641 = vmatpush.msrb.mxu1 %v1622_v5  ;;  %1746 = vmatpush.msrb.mxu2 %v1745_v39  ;;  %v1616_v5 = vld [vmem:[#allocation3 + $0x180] sm:$0xff]  ;;  %1247 = vst [vmem:[#allocation2 + $0x109] sm:$0x1] %v2719_v38  ;;  %v723_v39 = vadd.f32 %v3873_v25, %v3878_v46 }
 0x169   :  { %v480_v48 = vpop.f32.mrf.mxu3  ;;  %1418 = vmatpush.msrb.mxu3 %v1387_v57  ;;  %1531 = vmatpush.msrb.mxu0 %v1502_v4  ;;  %v1744_v57 = vld [vmem:[#allocation3 + $0x270] sm:$0xff]  ;;  %1248 = vst [vmem:[#allocation2 + $0x119] sm:$0x1] %v2719_v38 }
 0x16a   :  { %v4052_v61 = vadd.f32 %v480_v48, %v388_v54  ;;  %v2590_v54 = vld [vmem:[%s4612_s0 + $0x2b1] sm:$0xff]  ;;  %1642 = vmatpush.msrb.mxu1 %v1621_v8  ;;  %1747 = vmatpush.msrb.mxu2 %v1744_v57  ;;  %v1370_v8 = vld [vmem:[#allocation2 + $0x1] sm:$0xff]  ;;  %1249 = vst [vmem:[#allocation2 + $0x129] sm:$0x1] %v2719_v38  ;;  %v724_v57 = vadd.f32 %v3884_v24, %v3897_v42 }
 0x16b   :  { %v4058_v43 = vpop.f32.mrf.mxu0  ;;  %1172 = vmatmul.f32.gmra.mxu1 %v3752_v51  ;;  %v389_v51 = vadd.f32 %v3976_v19, %v3811_v32  ;;  %v2558_v32 = vld [vmem:[%s4612_s0 + $0x340] sm:$0xff]  ;;  %1532 = vmatpush.msrb.mxu0 %v1501_v2  ;;  %v1619_v48 = vld [vmem:[#allocation3 + $0x198] sm:$0xff]  ;;  %1220 = vst [vmem:[#allocation2 + $0x90] sm:$0x1] %v2719_v38 }
 0x16c   :  { %1643 = vmatpush.msrb.mxu1 %v1620_v3  ;;  %1221 = vst [vmem:[#allocation2 + $0xa0] sm:$0x1] %v2719_v38 }
 0x16d   :  { %1230 = vst [vmem:[#allocation2 + $0x130] sm:$0x1] %v2719_v38 }
 0x16e   :  { %944 = vmatmul.f32.gmra.mxu3 %v2557_v14  ;;  %1058 = vmatmul.f32.gmra.mxu0 %v2589_v53  ;;  %v4103_v53 = vpop.f32.mrf.mxu2  ;;  %1231 = vst [vmem:[#allocation2 + $0x9] sm:$0x1] %v2719_v38 }
 0x16f   :  { %1644 = vmatpush.msrb.mxu1 %v1619_v48  ;;  %1240 = vst [vmem:[#allocation2 + $0x99] sm:$0x1] %v2719_v38 }
 0x170   :  { %v4071_v15 = vpop.f32.mrf.mxu1  ;;  %1241 = vst [vmem:[#allocation2 + $0xa9] sm:$0x1] %v2719_v38 }
 0x171   :  { %v483_v9 = vpop.f32.mrf.mxu3  ;;  %1645 = vmatpush.msrb.mxu1 %v1618_v58  ;;  %1250 = vst [vmem:[#allocation2 + $0x139] sm:$0x1] %v2719_v38  ;;  %v839_v58 = vadd.f32 %v4074_v50, %v723_v39 }
 0x172   :  { %v4077_v22 = vadd.f32 %v483_v9, %v389_v51 }
 0x173   :  { %v4083_v19 = vpop.f32.mrf.mxu0  ;;  %1175 = vmatmul.f32.gmra.mxu1 %v3782_v62  ;;  %v390_v62 = vadd.f32 %v4002_v11, %v3838_v44  ;;  %v2591_v11 = vld [vmem:[%s4612_s0 + $0x2c1] sm:$0xff] }
 0x174   :  { %1646 = vmatpush.msrb.mxu1 %v1617_v59 }
 0x176   :  { %947 = vmatmul.f32.gmra.mxu3 %v2558_v32  ;;  %1061 = vmatmul.f32.gmra.mxu0 %v2590_v54  ;;  %v799_v32 = vpop.f32.mrf.mxu2 }
 0x177   :  { %1647 = vmatpush.msrb.mxu1 %v1616_v5 }
 0x178   :  { %v4096_v12 = vpop.f32.mrf.mxu1 }
 0x179   :  { %v486_v47 = vpop.f32.mrf.mxu3 }
 0x17a   :  { %v4100_v14 = vadd.f32 %v486_v47, %v390_v62 }
 0x17b   :  { %v4108_v44 = vpop.f32.mrf.mxu0  ;;  %1178 = vmatmul.f32.gmra.mxu1 %v3809_v56  ;;  %v391_v56 = vadd.f32 %v4019_v28, %v3856_v26  ;;  %v722_v26 = vadd.f32 %v3862_v63, %v3867_v13  ;;  %v1743_v28 = vld [vmem:[#allocation3 + $0x268] sm:$0xff] }
 0x17c   :  { %1748 = vmatpush.msrb.mxu2 %v1743_v28 }
 0x17d   :  { %v838_v54 = vadd.f32 %v4043_v49, %v722_v26  ;;  %v1742_v49 = vld [vmem:[#allocation3 + $0x260] sm:$0xff] }
 0x17e   :  { %950 = vmatmul.f32.gmra.mxu3 %v2559_v36  ;;  %1064 = vmatmul.f32.gmra.mxu0 %v2591_v11  ;;  %v802_v47 = vpop.f32.mrf.mxu2  ;;  %v1484_v11 = vld [vmem:[#allocation2 + $0x2] sm:$0xff] }
 0x17f   :  { %1749 = vmatpush.msrb.mxu2 %v1742_v49 }
 0x180   :  { %v4121_v51 = vpop.f32.mrf.mxu1 }
 0x181   :  { %v489_v4 = vpop.f32.mrf.mxu3 }
 0x182   :  { %v4125_v2 = vadd.f32 %v489_v4, %v391_v56  ;;  %v1741_v56 = vld [vmem:[#allocation3 + $0x258] sm:$0xff]  ;;  %v840_v4 = vadd.f32 %v4103_v53, %v724_v57 }
 0x183   :  { %v1020_v9 = vpop.f32.mrf.mxu0  ;;  %1181 = vmatmul.f32.gmra.mxu1 %v3836_v10  ;;  %1750 = vmatpush.msrb.mxu2 %v1741_v56 }
 0x186   :  { %1419 = vmatmul.f32.vlgmr.msrb.gmra.mxu3 %v1370_v8  ;;  %1533 = vmatmul.f32.vlgmr.msrb.gmra.mxu0 %v1484_v11  ;;  %v805_v8 = vpop.f32.mrf.mxu2  ;;  %v1739_v11 = vld [vmem:[#allocation3 + $0x248] sm:$0xff] }
 0x188   :  { %v4138_v10 = vpop.f32.mrf.mxu1 }
 0x189   :  { %v906_v3 = vpop.f32.mrf.mxu3 }
 0x18a   :  { %v954_v63 = vadd.f32 %v906_v3, %v838_v54  ;;  %v725_v54 = vadd.f32 %v3901_v21, %v3912_v20  ;;  %v1740_v3 = vld [vmem:[#allocation3 + $0x250] sm:$0xff] }
 0x18b   :  { %v1023_v13 = vpop.f32.mrf.mxu0  ;;  %1751 = vmatpush.msrb.mxu2 %v1740_v3 }
 0x18c   :  { %v1068_v48 = vadd.f32 %v1020_v9, %v954_v63  ;;  %v841_v39 = vadd.f32 %v799_v32, %v725_v54 }
 0x18d   :  { %1752 = vmatpush.msrb.mxu2 %v1739_v11 }
 0x18e   :  { %v4147_v62 = vmax.f32 %v1068_v48, 0.0 }
 0x190   :  { %1186 = vst [vmem:[#allocation2 + $0x11] sm:$0xff] %v4147_v62  ;;  %1422 = vmatmul.f32.gmra.mxu3 %v4147_v62  ;;  %v4154_v25 = vpop.f32.mrf.mxu1 }
 0x191   :  { %v909_v46 = vpop.f32.mrf.mxu3 }
 0x192   :  { %v955_v36 = vadd.f32 %v909_v46, %v839_v58  ;;  %v808_v58 = vpop.f32.mrf.mxu2 }
 0x193   :  { %v1026_v59 = vpop.f32.mrf.mxu0 }
 0x194   :  { %v1069_v5 = vadd.f32 %v1023_v13, %v955_v36  ;;  %v726_v36 = vadd.f32 %v3914_v55, %v3924_v16 }
 0x196   :  { %v4158_v38 = vmax.f32 %v1069_v5, 0.0  ;;  %v842_v5 = vadd.f32 %v802_v47, %v726_v36  ;;  %v1737_v36 = vld [vmem:[#allocation3 + $0x238] sm:$0xff] }
 0x197   :  { %v1257_v50 = vld [vmem:[#allocation2 + $0x10] sm:$0xff] }
 0x198   :  { %1187 = vst [vmem:[#allocation2 + $0x21] sm:$0xff] %v4158_v38  ;;  %1308 = vmatmul.f32.gmra.mxu2 %v1257_v50  ;;  %1648 = vmatmul.f32.vlgmr.msrb.gmra.mxu1 %v1257_v50  ;;  %v4162_v9 = vpop.f32.mrf.mxu1  ;;  %v4164_v26 = vld [vmem:[#allocation2 + $0x12] sm:$0xff] }
 0x199   :  { %v912_v28 = vpop.f32.mrf.mxu3  ;;  %1425 = vmatmul.f32.gmra.mxu3 %v4158_v38  ;;  %1536 = vmatmul.f32.gmra.mxu0 %v4164_v26 }
 0x19a   :  { %v956_v24 = vadd.f32 %v912_v28, %v840_v4  ;;  %v727_v28 = vadd.f32 %v3928_v17, %v3938_v34 }
 0x19b   :  { %v1029_v42 = vpop.f32.mrf.mxu0 }
 0x19c   :  { %v1070_v53 = vadd.f32 %v1026_v59, %v956_v24  ;;  %v1738_v24 = vld [vmem:[#allocation3 + $0x240] sm:$0xff]  ;;  %v843_v3 = vadd.f32 %v805_v8, %v727_v28 }
 0x19d   :  { %1753 = vmatpush.msrb.mxu2 %v1738_v24  ;;  %v1736_v24 = vld [vmem:[#allocation3 + $0x230] sm:$0xff] }
 0x19e   :  { %v4170_v63 = vmax.f32 %v1070_v53, 0.0 }
 0x19f   :  { %v4172_v13 = vld [vmem:[#allocation2 + $0x20] sm:$0xff]  ;;  %1754 = vmatpush.msrb.mxu2 %v1737_v36 }
 0x1a0   :  { %1188 = vst [vmem:[#allocation2 + $0x31] sm:$0xff] %v4170_v63  ;;  %1311 = vmatmul.f32.gmra.mxu2 %v4172_v13  ;;  %1651 = vmatmul.f32.gmra.mxu1 %v4172_v13  ;;  %v4177_v48 = vpop.f32.mrf.mxu1  ;;  %v4179_v49 = vld [vmem:[#allocation2 + $0x22] sm:$0xff] }
 0x1a1   :  { %v915_v21 = vpop.f32.mrf.mxu3  ;;  %1428 = vmatmul.f32.gmra.mxu3 %v4170_v63  ;;  %1539 = vmatmul.f32.gmra.mxu0 %v4179_v49 }
 0x1a2   :  { %v957_v20 = vadd.f32 %v915_v21, %v841_v39  ;;  %1755 = vmatpush.msrb.mxu2 %v1736_v24  ;;  %v617_v24 = vadd.f32 %v3981_v41, %v3991_v33  ;;  %v1734_v33 = vld [vmem:[#allocation3 + $0x220] sm:$0xff] }
 0x1a3   :  { %v1032_v46 = vpop.f32.mrf.mxu0 }
 0x1a4   :  { %v1071_v32 = vadd.f32 %v1029_v42, %v957_v20  ;;  %v811_v42 = vpop.f32.mrf.mxu2 }
 0x1a6   :  { %v4185_v59 = vmax.f32 %v1071_v32, 0.0 }
 0x1a7   :  { %v4187_v57 = vld [vmem:[#allocation2 + $0x30] sm:$0xff] }
 0x1a8   :  { %1189 = vst [vmem:[#allocation2 + $0x41] sm:$0xff] %v4185_v59  ;;  %1314 = vmatmul.f32.gmra.mxu2 %v4187_v57  ;;  %1654 = vmatmul.f32.gmra.mxu1 %v4187_v57  ;;  %v4192_v56 = vpop.f32.mrf.mxu1  ;;  %v4194_v50 = vld [vmem:[#allocation2 + $0x32] sm:$0xff] }
 0x1a9   :  { %v918_v55 = vpop.f32.mrf.mxu3  ;;  %1431 = vmatmul.f32.gmra.mxu3 %v4185_v59  ;;  %1542 = vmatmul.f32.gmra.mxu0 %v4194_v50 }
 0x1aa   :  { %v958_v16 = vadd.f32 %v918_v55, %v842_v5 }
 0x1ab   :  { %v1035_v4 = vpop.f32.mrf.mxu0 }
 0x1ac   :  { %v1072_v47 = vadd.f32 %v1032_v46, %v958_v16  ;;  %v728_v46 = vadd.f32 %v3942_v29, %v3952_v45  ;;  %v814_v11 = vpop.f32.mrf.mxu2 }
 0x1ae   :  { %v4200_v54 = vmax.f32 %v1072_v47, 0.0  ;;  %v844_v55 = vadd.f32 %v808_v58, %v728_v46  ;;  %v729_v47 = vadd.f32 %v3954_v40, %v3968_v6  ;;  %v616_v46 = vadd.f32 %v3962_v7, %v3974_v23  ;;  %v1735_v23 = vld [vmem:[#allocation3 + $0x228] sm:$0xff] }
 0x1af   :  { %v4202_v53 = vld [vmem:[#allocation2 + $0x40] sm:$0xff]  ;;  %1756 = vmatpush.msrb.mxu2 %v1735_v23 }
 0x1b0   :  { %1190 = vst [vmem:[#allocation2 + $0x51] sm:$0xff] %v4200_v54  ;;  %1317 = vmatmul.f32.gmra.mxu2 %v4202_v53  ;;  %1657 = vmatmul.f32.gmra.mxu1 %v4202_v53  ;;  %v4207_v39 = vpop.f32.mrf.mxu1  ;;  %v4209_v17 = vld [vmem:[#allocation2 + $0x42] sm:$0xff] }
 0x1b1   :  { %4620 = vst [vmem:[#allocation9_spill] sm:$0xff] %v4207_v39  ;;  %v921_v34 = vpop.f32.mrf.mxu3  ;;  %1434 = vmatmul.f32.gmra.mxu3 %v4200_v54  ;;  %1545 = vmatmul.f32.gmra.mxu0 %v4209_v17  ;;  %v2085_v39 = vld [vmem:[#allocation3 + $0x3d8] sm:$0xff] }
 0x1b2   :  { %v959_v21 = vadd.f32 %v921_v34, %v843_v3  ;;  %1757 = vmatpush.msrb.mxu2 %v1734_v33  ;;  %v1855_v33 = vld [vmem:[#allocation3 + $0x2d8] sm:$0xff] }
 0x1b3   :  { %v1038_v20 = vpop.f32.mrf.mxu0 }
 0x1b4   :  { %v1073_v8 = vadd.f32 %v1035_v4, %v959_v21  ;;  %v845_v21 = vadd.f32 %v811_v42, %v729_v47  ;;  %v817_v6 = vpop.f32.mrf.mxu2  ;;  %v730_v42 = vadd.f32 %v3972_v31, %v616_v46 }
 0x1b6   :  { %v4215_v32 = vmax.f32 %v1073_v8, 0.0 }
 0x1b7   :  { %v4217_v5 = vld [vmem:[#allocation2 + $0x50] sm:$0xff] }
 0x1b8   :  { %1191 = vst [vmem:[#allocation2 + $0x61] sm:$0xff] %v4215_v32  ;;  %1320 = vmatmul.f32.gmra.mxu2 %v4217_v5  ;;  %1660 = vmatmul.f32.gmra.mxu1 %v4217_v5  ;;  %v4222_v16 = vpop.f32.mrf.mxu1  ;;  %v4224_v29 = vld [vmem:[#allocation2 + $0x52] sm:$0xff] }
 0x1b9   :  { %4621 = vst [vmem:[#allocation10_spill] sm:$0xff] %v4222_v16  ;;  %v924_v45 = vpop.f32.mrf.mxu3  ;;  %1437 = vmatmul.f32.gmra.mxu3 %v4215_v32  ;;  %1548 = vmatmul.f32.gmra.mxu0 %v4224_v29 }
 0x1ba   :  { %v960_v4 = vadd.f32 %v924_v45, %v844_v55 }
 0x1bb   :  { %v1041_v28 = vpop.f32.mrf.mxu0 }
 0x1bc   :  { %v1074_v58 = vadd.f32 %v1038_v20, %v960_v4  ;;  %v1378_v4 = vld [vmem:[#allocation2 + $0xa1] sm:$0xff] }
 0x1be   :  { %v4230_v3 = vmax.f32 %v1074_v58, 0.0  ;;  %v846_v58 = vadd.f32 %v814_v11, %v730_v42  ;;  %v731_v11 = vadd.f32 %v3989_v35, %v617_v24  ;;  %v1859_v42 = vld [vmem:[#allocation3 + $0x2f8] sm:$0xff]  ;;  %v1492_v24 = vld [vmem:[#allocation2 + $0xa2] sm:$0xff] }
 0x1bf   :  { %v4232_v34 = vld [vmem:[#allocation2 + $0x60] sm:$0xff]  ;;  %1860 = vmatpush.msra.mxu3 %v1859_v42 }
 0x1c0   :  { %1192 = vst [vmem:[#allocation2 + $0x71] sm:$0xff] %v4230_v3  ;;  %1323 = vmatmul.f32.gmra.mxu2 %v4232_v34  ;;  %1663 = vmatmul.f32.gmra.mxu1 %v4232_v34  ;;  %v4239_v40 = vpop.f32.mrf.mxu1  ;;  %v4241_v20 = vld [vmem:[#allocation2 + $0x62] sm:$0xff] }
 0x1c1   :  { %4622 = vst [vmem:[#allocation11_spill] sm:$0xff] %v4239_v40  ;;  %v927_v8 = vpop.f32.mrf.mxu3  ;;  %1440 = vmatmul.f32.gmra.mxu3 %v4230_v3  ;;  %1551 = vmatmul.f32.gmra.mxu0 %v4241_v20 }
 0x1c2   :  { %v961_v36 = vadd.f32 %v927_v8, %v845_v21  ;;  %v820_v8 = vpop.f32.mrf.mxu2 }
 0x1c3   :  { %v1044_v55 = vpop.f32.mrf.mxu0 }
 0x1c4   :  { %v1075_v7 = vadd.f32 %v1041_v28, %v961_v36 }
 0x1c6   :  { %v4246_v45 = vmax.f32 %v1075_v7, 0.0  ;;  %v1265_v7 = vld [vmem:[#allocation2 + $0xa0] sm:$0xff] }
 0x1c7   :  { %v4248_v47 = vld [vmem:[#allocation2 + $0x70] sm:$0xff] }
 0x1c8   :  { %1193 = vst [vmem:[#allocation2 + $0x81] sm:$0xff] %v4246_v45  ;;  %1326 = vmatmul.f32.gmra.mxu2 %v4248_v47  ;;  %1666 = vmatmul.f32.gmra.mxu1 %v4248_v47  ;;  %v4255_v31 = vpop.f32.mrf.mxu1  ;;  %v4257_v28 = vld [vmem:[#allocation2 + $0x72] sm:$0xff] }
 0x1c9   :  { %4623 = vst [vmem:[#allocation12_spill] sm:$0xff] %v4255_v31  ;;  %v930_v21 = vpop.f32.mrf.mxu3  ;;  %1443 = vmatmul.f32.gmra.mxu3 %v1378_v4  ;;  %1554 = vmatmul.f32.gmra.mxu0 %v4257_v28  ;;  %v1858_v31 = vld [vmem:[#allocation3 + $0x2f0] sm:$0xff]  ;;  %v847_v4 = vadd.f32 %v817_v6, %v731_v11  ;;  %v1975_v11 = vld [vmem:[#allocation3 + $0x378] sm:$0xff] }
 0x1ca   :  { %v962_v46 = vadd.f32 %v930_v21, %v846_v58  ;;  %1861 = vmatpush.msra.mxu3 %v1858_v31  ;;  %v618_v58 = vadd.f32 %v3996_v18, %v4008_v1  ;;  %v1733_v1 = vld [vmem:[#allocation3 + $0x218] sm:$0xff]  ;;  %v823_v42 = vpop.f32.mrf.mxu2  ;;  %1976 = vmatpush.msra.mxu0 %v1975_v11 }
 0x1cb   :  { %v1047_v36 = vpop.f32.mrf.mxu0  ;;  %1758 = vmatpush.msrb.mxu2 %v1733_v1  ;;  %v2089_v1 = vld [vmem:[#allocation3 + $0x3f8] sm:$0xff] }
 0x1cc   :  { %v1076_v41 = vadd.f32 %v1044_v55, %v962_v46  ;;  %v1857_v55 = vld [vmem:[#allocation3 + $0x2e8] sm:$0xff]  ;;  %v732_v6 = vadd.f32 %v4006_v0, %v618_v58  ;;  %v619_v0 = vadd.f32 %v4013_v27, %v4027_v52  ;;  %v1852_v27 = vld [vmem:[#allocation3 + $0x2c0] sm:$0xff]  ;;  %2090 = vmatpush.msra.mxu1 %v2089_v1 }
 0x1cd   :  { %1862 = vmatpush.msra.mxu3 %v1857_v55  ;;  %v1973_v58 = vld [vmem:[#allocation3 + $0x368] sm:$0xff] }
 0x1ce   :  { %v4261_v23 = vmax.f32 %v1076_v41, 0.0  ;;  %v1856_v41 = vld [vmem:[#allocation3 + $0x2e0] sm:$0xff]  ;;  %v848_v55 = vadd.f32 %v820_v8, %v732_v6  ;;  %v733_v52 = vadd.f32 %v4023_v60, %v619_v0  ;;  %v1732_v6 = vld [vmem:[#allocation3 + $0x210] sm:$0xff]  ;;  %v1851_v60 = vld [vmem:[#allocation3 + $0x2b8] sm:$0xff] }
 0x1cf   :  { %v4263_v40 = vld [vmem:[#allocation2 + $0x80] sm:$0xff]  ;;  %1863 = vmatpush.msra.mxu3 %v1856_v41  ;;  %1759 = vmatpush.msrb.mxu2 %v1732_v6  ;;  %v1849_v6 = vld [vmem:[#allocation3 + $0x2a8] sm:$0xff] }
 0x1d0   :  { %1194 = vst [vmem:[#allocation2 + $0xb1] sm:$0xff] %v4261_v23  ;;  %1329 = vmatmul.f32.gmra.mxu2 %v1265_v7  ;;  %1669 = vmatmul.f32.gmra.mxu1 %v4263_v40  ;;  %v4269_v35 = vpop.f32.mrf.mxu1  ;;  %v849_v0 = vadd.f32 %v823_v42, %v733_v52 }
 0x1d1   :  { %4624 = vst [vmem:[#allocation13_spill] sm:$0xff] %v4269_v35  ;;  %v933_v21 = vpop.f32.mrf.mxu3  ;;  %1446 = vmatmul.f32.gmra.mxu3 %v4261_v23  ;;  %1557 = vmatmul.f32.gmra.mxu0 %v1492_v24  ;;  %v1974_v35 = vld [vmem:[#allocation3 + $0x370] sm:$0xff]  ;;  %v1972_v24 = vld [vmem:[#allocation3 + $0x360] sm:$0xff] }
 0x1d2   :  { %v963_v46 = vadd.f32 %v933_v21, %v847_v4  ;;  %1864 = vmatpush.msra.mxu3 %v1855_v33  ;;  %1977 = vmatpush.msra.mxu0 %v1974_v35  ;;  %v1854_v4 = vld [vmem:[#allocation3 + $0x2d0] sm:$0xff]  ;;  %v1853_v35 = vld [vmem:[#allocation3 + $0x2c8] sm:$0xff] }
 0x1d3   :  { %v1050_v31 = vpop.f32.mrf.mxu0  ;;  %v1970_v33 = vld [vmem:[#allocation3 + $0x350] sm:$0xff] }
 0x1d4   :  { %v1077_v18 = vadd.f32 %v1047_v36, %v963_v46  ;;  %1978 = vmatpush.msra.mxu0 %v1973_v58  ;;  %1865 = vmatpush.msra.mxu3 %v1854_v4  ;;  %v826_v4 = vpop.f32.mrf.mxu2 }
 0x1d6   :  { %v4273_v7 = vmax.f32 %v1077_v18, 0.0  ;;  %1979 = vmatpush.msra.mxu0 %v1972_v24  ;;  %v1971_v18 = vld [vmem:[#allocation3 + $0x358] sm:$0xff]  ;;  %1866 = vmatpush.msra.mxu3 %v1853_v35  ;;  %v1969_v24 = vld [vmem:[#allocation3 + $0x348] sm:$0xff] }
 0x1d7   :  { %v1266_v16 = vld [vmem:[#allocation2 + $0xb0] sm:$0xff] }
 0x1d8   :  { %1195 = vst [vmem:[#allocation2 + $0xc1] sm:$0xff] %v4273_v7  ;;  %1332 = vmatmul.f32.gmra.mxu2 %v1266_v16  ;;  %1672 = vmatmul.f32.gmra.mxu1 %v1266_v16  ;;  %v4278_v36 = vpop.f32.mrf.mxu1  ;;  %v4280_v21 = vld [vmem:[#allocation2 + $0xb2] sm:$0xff] }
 0x1d9   :  { %4625 = vst [vmem:[#allocation14_spill] sm:$0xff] %v4278_v36  ;;  %v936_v46 = vpop.f32.mrf.mxu3  ;;  %1449 = vmatmul.f32.gmra.mxu3 %v4273_v7  ;;  %1560 = vmatmul.f32.gmra.mxu0 %v4280_v21  ;;  %v1967_v36 = vld [vmem:[#allocation3 + $0x338] sm:$0xff] }
 0x1da   :  { %v964_v41 = vadd.f32 %v936_v46, %v848_v55  ;;  %1980 = vmatpush.msra.mxu0 %v1971_v18  ;;  %v2088_v55 = vld [vmem:[#allocation3 + $0x3f0] sm:$0xff]  ;;  %1867 = vmatpush.msra.mxu3 %v1852_v27  ;;  %v2087_v46 = vld [vmem:[#allocation3 + $0x3e8] sm:$0xff] }
 0x1db   :  { %v1053_v8 = vpop.f32.mrf.mxu0  ;;  %2091 = vmatpush.msra.mxu1 %v2088_v55  ;;  %v1850_v27 = vld [vmem:[#allocation3 + $0x2b0] sm:$0xff] }
 0x1dc   :  { %v1078_v16 = vadd.f32 %v1050_v31, %v964_v41  ;;  %1981 = vmatpush.msra.mxu0 %v1970_v33  ;;  %v620_v31 = vadd.f32 %v4033_v30, %v4052_v61  ;;  %v1968_v30 = vld [vmem:[#allocation3 + $0x340] sm:$0xff]  ;;  %1868 = vmatpush.msra.mxu3 %v1851_v60  ;;  %v1731_v33 = vld [vmem:[#allocation3 + $0x208] sm:$0xff] }
 0x1dd   :  { %v2086_v61 = vld [vmem:[#allocation3 + $0x3e0] sm:$0xff]  ;;  %2092 = vmatpush.msra.mxu1 %v2087_v46  ;;  %1760 = vmatpush.msrb.mxu2 %v1731_v33  ;;  %v1965_v46 = vld [vmem:[#allocation3 + $0x328] sm:$0xff] }
 0x1de   :  { %v4285_v11 = vmax.f32 %v1078_v16, 0.0  ;;  %1982 = vmatpush.msra.mxu0 %v1969_v24  ;;  %v734_v18 = vadd.f32 %v4048_v37, %v620_v31  ;;  %1869 = vmatpush.msra.mxu3 %v1850_v27  ;;  %v2084_v24 = vld [vmem:[#allocation3 + $0x3d0] sm:$0xff]  ;;  %v1848_v37 = vld [vmem:[#allocation3 + $0x2a0] sm:$0xff] }
 0x1df   :  { %v4287_v58 = vld [vmem:[#allocation2 + $0xc0] sm:$0xff]  ;;  %2093 = vmatpush.msra.mxu1 %v2086_v61 }
 0x1e0   :  { %1196 = vst [vmem:[#allocation2 + $0xd1] sm:$0xff] %v4285_v11  ;;  %1335 = vmatmul.f32.gmra.mxu2 %v4287_v58  ;;  %1675 = vmatmul.f32.gmra.mxu1 %v4287_v58  ;;  %v4294_v35 = vld [vmem:[#allocation2 + $0xc2] sm:$0xff]  ;;  %v4297_v42 = vpop.f32.mrf.mxu1  ;;  %v850_v31 = vadd.f32 %v826_v4, %v734_v18 }
 0x1e1   :  { %v939_v41 = vpop.f32.mrf.mxu3  ;;  %1452 = vmatmul.f32.gmra.mxu3 %v4285_v11  ;;  %1563 = vmatmul.f32.gmra.mxu0 %v4294_v35  ;;  %v1964_v4 = vld [vmem:[#allocation3 + $0x320] sm:$0xff] }
 0x1e2   :  { %v965_v16 = vadd.f32 %v939_v41, %v849_v0  ;;  %1983 = vmatpush.msra.mxu0 %v1968_v30  ;;  %v1966_v0 = vld [vmem:[#allocation3 + $0x330] sm:$0xff]  ;;  %1870 = vmatpush.msra.mxu3 %v1849_v6  ;;  %v829_v41 = vpop.f32.mrf.mxu2  ;;  %v1730_v18 = vld [vmem:[#allocation3 + $0x200] sm:$0xff] }
 0x1e3   :  { %v1056_v52 = vpop.f32.mrf.mxu0  ;;  %2094 = vmatpush.msra.mxu1 %v2085_v39  ;;  %v2083_v39 = vld [vmem:[#allocation3 + $0x3c8] sm:$0xff]  ;;  %1761 = vmatpush.msrb.mxu2 %v1730_v18  ;;  %v2078_v18 = vld [vmem:[#allocation3 + $0x3a0] sm:$0xff] }
 0x1e4   :  { %v1079_v1 = vadd.f32 %v1053_v8, %v965_v16  ;;  %1984 = vmatpush.msra.mxu0 %v1967_v36  ;;  %v621_v8 = vadd.f32 %v4058_v43, %v4077_v22  ;;  %1871 = vmatpush.msra.mxu3 %v1848_v37  ;;  %v2082_v43 = vld [vmem:[#allocation3 + $0x3c0] sm:$0xff]  ;;  %v1847_v22 = vld [vmem:[#allocation3 + $0x298] sm:$0xff] }
 0x1e5   :  { %2095 = vmatpush.msra.mxu1 %v2084_v24  ;;  %v2081_v24 = vld [vmem:[#allocation3 + $0x3b8] sm:$0xff] }
 0x1e6   :  { %v4301_v55 = vmax.f32 %v1079_v1, 0.0  ;;  %1985 = vmatpush.msra.mxu0 %v1966_v0  ;;  %v735_v30 = vadd.f32 %v4071_v15, %v621_v8  ;;  %v1963_v1 = vld [vmem:[#allocation3 + $0x318] sm:$0xff]  ;;  %1872 = vmatpush.msra.mxu3 %v1847_v22  ;;  %v1846_v15 = vld [vmem:[#allocation3 + $0x290] sm:$0xff] }
 0x1e7   :  { %v4303_v60 = vld [vmem:[#allocation2 + $0xd0] sm:$0xff]  ;;  %2096 = vmatpush.msra.mxu1 %v2083_v39 }
 0x1e8   :  { %1197 = vst [vmem:[#allocation2 + $0xe1] sm:$0xff] %v4301_v55  ;;  %1338 = vmatmul.f32.gmra.mxu2 %v4303_v60  ;;  %1678 = vmatmul.f32.gmra.mxu1 %v4303_v60  ;;  %v4310_v27 = vld [vmem:[#allocation2 + $0xd2] sm:$0xff]  ;;  %v4315_v6 = vpop.f32.mrf.mxu1  ;;  %v851_v8 = vadd.f32 %v829_v41, %v735_v30  ;;  %v1961_v41 = vld [vmem:[#allocation3 + $0x308] sm:$0xff] }
 0x1e9   :  { %v942_v16 = vpop.f32.mrf.mxu3  ;;  %1455 = vmatmul.f32.gmra.mxu3 %v4301_v55  ;;  %1986 = vmatpush.msra.mxu0 %v1965_v46  ;;  %v2080_v46 = vld [vmem:[#allocation3 + $0x3b0] sm:$0xff] }
 0x1ea   :  { %v966_v36 = vadd.f32 %v942_v16, %v850_v31  ;;  %1566 = vmatmul.f32.gmra.mxu0 %v4310_v27  ;;  %2097 = vmatpush.msra.mxu1 %v2082_v43  ;;  %v1962_v31 = vld [vmem:[#allocation3 + $0x310] sm:$0xff]  ;;  %v2079_v43 = vld [vmem:[#allocation3 + $0x3a8] sm:$0xff] }
 0x1eb   :  { %v1059_v33 = vpop.f32.mrf.mxu0  ;;  %1987 = vmatpush.msra.mxu0 %v1964_v4  ;;  %1873 = vmatpush.msra.mxu3 %v1846_v15 }
 0x1ec   :  { %v1080_v61 = vadd.f32 %v1056_v52, %v966_v36  ;;  %v622_v52 = vadd.f32 %v4083_v19, %v4100_v14  ;;  %2098 = vmatpush.msra.mxu1 %v2081_v24  ;;  %v1845_v36 = vld [vmem:[#allocation3 + $0x288] sm:$0xff]  ;;  %v832_v19 = vpop.f32.mrf.mxu2  ;;  %v1844_v14 = vld [vmem:[#allocation3 + $0x280] sm:$0xff] }
 0x1ed   :  { %1988 = vmatpush.msra.mxu0 %v1963_v1  ;;  %1874 = vmatpush.msra.mxu3 %v1845_v36  ;;  %v2203_v1 = vld [vmem:[#allocation3 + $0x478] sm:$0xff] }
 0x1ee   :  { %v4317_v0 = vmax.f32 %v1080_v61, 0.0  ;;  %2099 = vmatpush.msra.mxu1 %v2080_v46  ;;  %v736_v22 = vadd.f32 %v4096_v12, %v622_v52  ;;  %v1960_v61 = vld [vmem:[#allocation3 + $0x300] sm:$0xff]  ;;  %2204 = vmatpush.msra.mxu2 %v2203_v1  ;;  %v2076_v52 = vld [vmem:[#allocation3 + $0x390] sm:$0xff] }
 0x1ef   :  { %v4319_v37 = vld [vmem:[#allocation2 + $0xe0] sm:$0xff]  ;;  %1989 = vmatpush.msra.mxu0 %v1962_v31  ;;  %1875 = vmatpush.msra.mxu3 %v1844_v14  ;;  %v2077_v31 = vld [vmem:[#allocation3 + $0x398] sm:$0xff] }
 0x1f0   :  { %1198 = vst [vmem:[#allocation2 + $0xf1] sm:$0xff] %v4317_v0  ;;  %1341 = vmatmul.f32.gmra.mxu2 %v4319_v37  ;;  %1681 = vmatmul.f32.gmra.mxu1 %v4319_v37  ;;  %v4326_v16 = vld [vmem:[#allocation2 + $0xe2] sm:$0xff]  ;;  %v4333_v15 = vpop.f32.mrf.mxu1  ;;  %v852_v12 = vadd.f32 %v832_v19, %v736_v22  ;;  %v2202_v19 = vld [vmem:[#allocation3 + $0x470] sm:$0xff] }
 0x1f1   :  { %v945_v39 = vpop.f32.mrf.mxu3  ;;  %1458 = vmatmul.f32.gmra.mxu3 %v4317_v0  ;;  %1990 = vmatpush.msra.mxu0 %v1961_v41  ;;  %4626 = vst [vmem:[#allocation15_spill] sm:$0xff] %v4333_v15  ;;  %v2075_v41 = vld [vmem:[#allocation3 + $0x388] sm:$0xff] }
 0x1f2   :  { %v967_v4 = vadd.f32 %v945_v39, %v851_v8  ;;  %1569 = vmatmul.f32.gmra.mxu0 %v4326_v16  ;;  %2100 = vmatpush.msra.mxu1 %v2079_v43 }
 0x1f3   :  { %v1062_v46 = vpop.f32.mrf.mxu0  ;;  %1991 = vmatpush.msra.mxu0 %v1960_v61  ;;  %2205 = vmatpush.msra.mxu2 %v2202_v19 }
 0x1f4   :  { %v1081_v30 = vadd.f32 %v1059_v33, %v967_v4  ;;  %2101 = vmatpush.msra.mxu1 %v2078_v18  ;;  %v623_v33 = vadd.f32 %v4108_v44, %v4125_v2  ;;  %v2074_v2 = vld [vmem:[#allocation3 + $0x380] sm:$0xff]  ;;  %v835_v14 = vpop.f32.mrf.mxu2 }
 0x1f6   :  { %v4331_v24 = vmax.f32 %v1081_v30, 0.0  ;;  %2102 = vmatpush.msra.mxu1 %v2077_v31  ;;  %v737_v43 = vadd.f32 %v4121_v51, %v623_v33  ;;  %v2201_v33 = vld [vmem:[#allocation3 + $0x468] sm:$0xff] }
 0x1f7   :  { %v4335_v8 = vld [vmem:[#allocation2 + $0xf0] sm:$0xff]  ;;  %2206 = vmatpush.msra.mxu2 %v2201_v33 }
 0x1f8   :  { %1199 = vst [vmem:[#allocation2 + $0x101] sm:$0xff] %v4331_v24  ;;  %1344 = vmatmul.f32.gmra.mxu2 %v4335_v8  ;;  %1684 = vmatmul.f32.gmra.mxu1 %v4335_v8  ;;  %v4342_v39 = vld [vmem:[#allocation2 + $0xf2] sm:$0xff]  ;;  %v853_v61 = vadd.f32 %v835_v14, %v737_v43  ;;  %v4354_v51 = vpop.f32.mrf.mxu1 }
 0x1f9   :  { %v948_v36 = vpop.f32.mrf.mxu3  ;;  %1461 = vmatmul.f32.gmra.mxu3 %v4331_v24  ;;  %2103 = vmatpush.msra.mxu1 %v2076_v52  ;;  %4627 = vst [vmem:[#allocation16_spill] sm:$0xff] %v4354_v51  ;;  %v2197_v51 = vld [vmem:[#allocation3 + $0x448] sm:$0xff] }
 0x1fa   :  { %v968_v4 = vadd.f32 %v948_v36, %v852_v12  ;;  %1572 = vmatmul.f32.gmra.mxu0 %v4342_v39 }
 0x1fb   :  { %2104 = vmatpush.msra.mxu1 %v2075_v41  ;;  %v1065_v31 = vpop.f32.mrf.mxu0 }
 0x1fc   :  { %v1082_v44 = vadd.f32 %v1062_v46, %v968_v4  ;;  %v4382_v14 = vpop.f32.mrf.mxu2 }
 0x1fd   :  { %2105 = vmatpush.msra.mxu1 %v2074_v2 }
 0x1fe   :  { %v4347_v22 = vmax.f32 %v1082_v44, 0.0  ;;  %v2200_v44 = vld [vmem:[#allocation3 + $0x460] sm:$0xff] }
 0x1ff   :  { %v4349_v30 = vld [vmem:[#allocation2 + $0x100] sm:$0xff]  ;;  %2207 = vmatpush.msra.mxu2 %v2200_v44 }
 0x200   :  { %1200 = vst [vmem:[#allocation2 + $0x111] sm:$0xff] %v4347_v22  ;;  %1347 = vmatmul.f32.gmra.mxu2 %v4349_v30  ;;  %1687 = vmatmul.f32.gmra.mxu1 %v4349_v30  ;;  %v4356_v18 = vld [vmem:[#allocation2 + $0x102] sm:$0xff]  ;;  %v4372_v43 = vpop.f32.mrf.mxu1 }
 0x201   :  { %v951_v1 = vpop.f32.mrf.mxu3  ;;  %1464 = vmatmul.f32.gmra.mxu3 %v4347_v22  ;;  %4628 = vst [vmem:[#allocation17_spill] sm:$0xff] %v4372_v43 }
 0x202   :  { %v969_v46 = vadd.f32 %v951_v1, %v853_v61  ;;  %1575 = vmatmul.f32.gmra.mxu0 %v4356_v18  ;;  %v2199_v61 = vld [vmem:[#allocation3 + $0x458] sm:$0xff] }
 0x203   :  { %v4379_v19 = vpop.f32.mrf.mxu0  ;;  %2208 = vmatpush.msra.mxu2 %v2199_v61 }
 0x204   :  { %v1083_v12 = vadd.f32 %v1065_v31, %v969_v46 }
 0x206   :  { %v4360_v52 = vmax.f32 %v1083_v12, 0.0  ;;  %v2198_v12 = vld [vmem:[#allocation3 + $0x450] sm:$0xff] }
 0x207   :  { %v4362_v36 = vld [vmem:[#allocation2 + $0x110] sm:$0xff]  ;;  %2209 = vmatpush.msra.mxu2 %v2198_v12  ;;  %v2196_v12 = vld [vmem:[#allocation3 + $0x440] sm:$0xff] }
 0x208   :  { %1201 = vst [vmem:[#allocation2 + $0x121] sm:$0xff] %v4360_v52  ;;  %1350 = vmatmul.f32.gmra.mxu2 %v4362_v36  ;;  %1690 = vmatmul.f32.gmra.mxu1 %v4362_v36  ;;  %v4367_v4 = vld [vmem:[#allocation2 + $0x112] sm:$0xff] }
 0x209   :  { %1876 = vmatmul.f32.vlgmr.msra.gmra.mxu3 %v4164_v26  ;;  %v4370_v41 = vpop.f32.mrf.mxu3  ;;  %2210 = vmatpush.msra.mxu2 %v2197_v51 }
 0x20a   :  { %1578 = vmatmul.f32.gmra.mxu0 %v4367_v4 }
 0x20b   :  { %2211 = vmatpush.msra.mxu2 %v2196_v12 }
 0x20f   :  { %v4375_v2 = vld [vmem:[#allocation2 + $0x120] sm:$0xff] }
 0x210   :  { %1693 = vmatmul.f32.gmra.mxu1 %v4375_v2  ;;  %1762 = vmatmul.f32.vlgmr.msrb.gmra.mxu2 %v4147_v62  ;;  %v4393_v62 = vld [vmem:[%s4616_s4] ss:$0 sm:$0xff] }
 0x211   :  { %1879 = vmatmul.f32.gmra.mxu3 %v4179_v49 }
 0x212   :  { %1992 = vmatmul.f32.vlgmr.msra.gmra.mxu0 %v4172_v13 }
 0x213   :  { %v1423_v26 = vpop.f32.mrf.mxu3 }
 0x215   :  { %v4385_v1 = vpop.f32.mrf.mxu1 }
 0x216   :  { %v1537_v31 = vpop.f32.mrf.mxu0 }
 0x218   :  { %1765 = vmatmul.f32.gmra.mxu2 %v4158_v38  ;;  %2106 = vmatmul.f32.vlgmr.msra.gmra.mxu1 %v4158_v38 }
 0x219   :  { %1882 = vmatmul.f32.gmra.mxu3 %v4194_v50 }
 0x21a   :  { %1995 = vmatmul.f32.gmra.mxu0 %v4187_v57 }
 0x21b   :  { %v1309_v49 = vpop.f32.mrf.mxu2 }
 0x21c   :  { %v1355_v13 = vadd.f32 %v4393_v62, %v1309_v49  ;;  %v1426_v46 = vpop.f32.mrf.mxu3 }
 0x21d   :  { %v1652_v33 = vpop.f32.mrf.mxu1 }
 0x21e   :  { %v1469_v44 = vadd.f32 %v1423_v26, %v1355_v13  ;;  %v1540_v38 = vpop.f32.mrf.mxu0 }
 0x220   :  { %v1583_v61 = vadd.f32 %v1537_v31, %v1469_v44  ;;  %1768 = vmatmul.f32.gmra.mxu2 %v4170_v63  ;;  %2109 = vmatmul.f32.gmra.mxu1 %v4170_v63 }
 0x221   :  { %1885 = vmatmul.f32.gmra.mxu3 %v4209_v17 }
 0x222   :  { %v4400_v50 = vadd.f32 %v1652_v33, %v1583_v61  ;;  %1998 = vmatmul.f32.gmra.mxu0 %v4202_v53  ;;  %v2195_v61 = vld [vmem:[#allocation3 + $0x438] sm:$0xff] }
 0x223   :  { %v1312_v43 = vpop.f32.mrf.mxu2  ;;  %2212 = vmatpush.msra.mxu2 %v2195_v61 }
 0x224   :  { %v1356_v57 = vadd.f32 %v4393_v62, %v1312_v43  ;;  %v1429_v49 = vpop.f32.mrf.mxu3 }
 0x225   :  { %v1655_v15 = vpop.f32.mrf.mxu1 }
 0x226   :  { %v1470_v26 = vadd.f32 %v1426_v46, %v1356_v57  ;;  %v1543_v63 = vpop.f32.mrf.mxu0 }
 0x228   :  { %v1584_v31 = vadd.f32 %v1540_v38, %v1470_v26  ;;  %1771 = vmatmul.f32.gmra.mxu2 %v4185_v59  ;;  %2112 = vmatmul.f32.gmra.mxu1 %v4185_v59 }
 0x229   :  { %1888 = vmatmul.f32.gmra.mxu3 %v4224_v29 }
 0x22a   :  { %v4407_v17 = vadd.f32 %v1655_v15, %v1584_v31  ;;  %2001 = vmatmul.f32.gmra.mxu0 %v4217_v5 }
 0x22b   :  { %v1315_v13 = vpop.f32.mrf.mxu2 }
 0x22c   :  { %v1357_v53 = vadd.f32 %v4393_v62, %v1315_v13  ;;  %v1432_v43 = vpop.f32.mrf.mxu3 }
 0x22d   :  { %v1658_v33 = vpop.f32.mrf.mxu1 }
 0x22e   :  { %v1471_v51 = vadd.f32 %v1429_v49, %v1357_v53  ;;  %v1546_v59 = vpop.f32.mrf.mxu0 }
 0x230   :  { %v1585_v46 = vadd.f32 %v1543_v63, %v1471_v51  ;;  %1774 = vmatmul.f32.gmra.mxu2 %v4200_v54  ;;  %2115 = vmatmul.f32.gmra.mxu1 %v4200_v54  ;;  %v2194_v63 = vld [vmem:[#allocation3 + $0x430] sm:$0xff] }
 0x231   :  { %1891 = vmatmul.f32.gmra.mxu3 %v4241_v20  ;;  %2213 = vmatpush.msra.mxu2 %v2194_v63 }
 0x232   :  { %v4414_v29 = vadd.f32 %v1658_v33, %v1585_v46  ;;  %2004 = vmatmul.f32.gmra.mxu0 %v4232_v34  ;;  %v2193_v46 = vld [vmem:[#allocation3 + $0x428] sm:$0xff] }
 0x233   :  { %v1318_v15 = vpop.f32.mrf.mxu2  ;;  %2214 = vmatpush.msra.mxu2 %v2193_v46 }
 0x234   :  { %v1358_v5 = vadd.f32 %v4393_v62, %v1318_v15  ;;  %v1435_v44 = vpop.f32.mrf.mxu3 }
 0x235   :  { %v1661_v38 = vpop.f32.mrf.mxu1 }
 0x236   :  { %v1472_v57 = vadd.f32 %v1432_v43, %v1358_v5  ;;  %v1549_v54 = vpop.f32.mrf.mxu0 }
 0x238   :  { %v1586_v49 = vadd.f32 %v1546_v59, %v1472_v57  ;;  %1777 = vmatmul.f32.gmra.mxu2 %v4215_v32  ;;  %2118 = vmatmul.f32.gmra.mxu1 %v4215_v32  ;;  %v4427_v32 = vld [vmem:[#allocation2 + $0x82] sm:$0xff] }
 0x239   :  { %1894 = vmatmul.f32.gmra.mxu3 %v4257_v28 }
 0x23a   :  { %v4421_v20 = vadd.f32 %v1661_v38, %v1586_v49  ;;  %2007 = vmatmul.f32.gmra.mxu0 %v4248_v47  ;;  %v2192_v49 = vld [vmem:[#allocation3 + $0x420] sm:$0xff] }
 0x23b   :  { %v1321_v26 = vpop.f32.mrf.mxu2  ;;  %2215 = vmatpush.msra.mxu2 %v2192_v49 }
 0x23c   :  { %v1359_v34 = vadd.f32 %v4393_v62, %v1321_v26  ;;  %v1438_v31 = vpop.f32.mrf.mxu3  ;;  %v2064_v26 = vld [vmem:[#allocation2 + $0x91] sm:$0xff] }
 0x23d   :  { %v1664_v13 = vpop.f32.mrf.mxu1 }
 0x23e   :  { %v1473_v53 = vadd.f32 %v1435_v44, %v1359_v34  ;;  %v1552_v28 = vpop.f32.mrf.mxu0  ;;  %v1949_v44 = vld [vmem:[#allocation2 + $0x90] sm:$0xff] }
 0x240   :  { %v1587_v43 = vadd.f32 %v1549_v54, %v1473_v53  ;;  %1780 = vmatmul.f32.gmra.mxu2 %v4230_v3  ;;  %2121 = vmatmul.f32.gmra.mxu1 %v4230_v3 }
 0x241   :  { %1897 = vmatmul.f32.gmra.mxu3 %v4427_v32 }
 0x242   :  { %v4430_v12 = vadd.f32 %v1664_v13, %v1587_v43  ;;  %2010 = vmatmul.f32.gmra.mxu0 %v4263_v40  ;;  %v2191_v43 = vld [vmem:[#allocation3 + $0x418] sm:$0xff] }
 0x243   :  { %v1324_v47 = vpop.f32.mrf.mxu2  ;;  %2216 = vmatpush.msra.mxu2 %v2191_v43 }
 0x244   :  { %v1360_v33 = vadd.f32 %v4393_v62, %v1324_v47  ;;  %v1441_v51 = vpop.f32.mrf.mxu3 }
 0x245   :  { %v1667_v59 = vpop.f32.mrf.mxu1 }
 0x246   :  { %v1474_v15 = vadd.f32 %v1438_v31, %v1360_v33  ;;  %v1555_v3 = vpop.f32.mrf.mxu0 }
 0x248   :  { %v1588_v5 = vadd.f32 %v1552_v28, %v1474_v15  ;;  %1783 = vmatmul.f32.gmra.mxu2 %v4246_v45  ;;  %2124 = vmatmul.f32.gmra.mxu1 %v4246_v45 }
 0x249   :  { %1900 = vmatmul.f32.gmra.mxu3 %v4280_v21 }
 0x24a   :  { %v4437_v61 = vadd.f32 %v1667_v59, %v1588_v5  ;;  %2013 = vmatmul.f32.gmra.mxu0 %v1949_v44  ;;  %v2190_v59 = vld [vmem:[#allocation3 + $0x410] sm:$0xff] }
 0x24b   :  { %v1327_v38 = vpop.f32.mrf.mxu2  ;;  %2217 = vmatpush.msra.mxu2 %v2190_v59 }
 0x24c   :  { %v1361_v40 = vadd.f32 %v4393_v62, %v1327_v38  ;;  %v1444_v57 = vpop.f32.mrf.mxu3  ;;  %v2189_v38 = vld [vmem:[#allocation3 + $0x408] sm:$0xff] }
 0x24d   :  { %v1670_v54 = vpop.f32.mrf.mxu1  ;;  %2218 = vmatpush.msra.mxu2 %v2189_v38 }
 0x24e   :  { %v1475_v34 = vadd.f32 %v1441_v51, %v1361_v40  ;;  %v1558_v45 = vpop.f32.mrf.mxu0 }
 0x250   :  { %v1589_v31 = vadd.f32 %v1555_v3, %v1475_v34  ;;  %1786 = vmatmul.f32.gmra.mxu2 %v4261_v23  ;;  %2127 = vmatmul.f32.gmra.mxu1 %v2064_v26  ;;  %v2188_v26 = vld [vmem:[#allocation3 + $0x400] sm:$0xff] }
 0x251   :  { %1903 = vmatmul.f32.gmra.mxu3 %v4294_v35  ;;  %2219 = vmatpush.msra.mxu2 %v2188_v26  ;;  %v2072_v26 = vld [vmem:[#allocation2 + $0x131] sm:$0xff] }
 0x252   :  { %v4442_v21 = vadd.f32 %v1670_v54, %v1589_v31  ;;  %2016 = vmatmul.f32.gmra.mxu0 %v4287_v58 }
 0x253   :  { %v1330_v63 = vpop.f32.mrf.mxu2 }
 0x254   :  { %v1362_v13 = vadd.f32 %v4393_v62, %v1330_v63  ;;  %v1447_v53 = vpop.f32.mrf.mxu3 }
 0x255   :  { %v1673_v28 = vpop.f32.mrf.mxu1 }
 0x256   :  { %v1476_v47 = vadd.f32 %v1444_v57, %v1362_v13  ;;  %v1561_v23 = vpop.f32.mrf.mxu0 }
 0x258   :  { %v1590_v33 = vadd.f32 %v1558_v45, %v1476_v47  ;;  %1789 = vmatmul.f32.gmra.mxu2 %v4273_v7  ;;  %2130 = vmatmul.f32.gmra.mxu1 %v4273_v7 }
 0x259   :  { %1906 = vmatmul.f32.gmra.mxu3 %v4310_v27 }
 0x25a   :  { %v4449_v35 = vadd.f32 %v1673_v28, %v1590_v33  ;;  %2019 = vmatmul.f32.gmra.mxu0 %v4303_v60 }
 0x25b   :  { %v1333_v51 = vpop.f32.mrf.mxu2 }
 0x25c   :  { %v1363_v58 = vadd.f32 %v4393_v62, %v1333_v51  ;;  %v1450_v46 = vpop.f32.mrf.mxu3 }
 0x25d   :  { %v1676_v15 = vpop.f32.mrf.mxu1 }
 0x25e   :  { %v1477_v5 = vadd.f32 %v1447_v53, %v1363_v58  ;;  %v1564_v7 = vpop.f32.mrf.mxu0 }
 0x260   :  { %v1591_v3 = vadd.f32 %v1561_v23, %v1477_v5  ;;  %1792 = vmatmul.f32.gmra.mxu2 %v4285_v11  ;;  %2133 = vmatmul.f32.gmra.mxu1 %v4285_v11 }
 0x261   :  { %1909 = vmatmul.f32.gmra.mxu3 %v4326_v16 }
 0x262   :  { %v4456_v27 = vadd.f32 %v1676_v15, %v1591_v3  ;;  %2022 = vmatmul.f32.gmra.mxu0 %v4319_v37  ;;  %v4483_v15 = vld [vmem:[#allocation2 + $0x122] sm:$0xff] }
 0x263   :  { %v1336_v44 = vpop.f32.mrf.mxu2 }
 0x264   :  { %v1364_v60 = vadd.f32 %v4393_v62, %v1336_v44  ;;  %v1453_v57 = vpop.f32.mrf.mxu3  ;;  %v1354_v44 = vadd.f32 %v4393_v62, %v4382_v14 }
 0x265   :  { %v1679_v40 = vpop.f32.mrf.mxu1 }
 0x266   :  { %v1478_v49 = vadd.f32 %v1450_v46, %v1364_v60 }
 0x267   :  { %v1567_v11 = vpop.f32.mrf.mxu0 }
 0x268   :  { %v1592_v54 = vadd.f32 %v1564_v7, %v1478_v49  ;;  %1795 = vmatmul.f32.gmra.mxu2 %v4301_v55  ;;  %2136 = vmatmul.f32.gmra.mxu1 %v4301_v55 }
 0x269   :  { %1912 = vmatmul.f32.gmra.mxu3 %v4342_v39 }
 0x26a   :  { %v4463_v16 = vadd.f32 %v1679_v40, %v1592_v54  ;;  %2025 = vmatmul.f32.gmra.mxu0 %v4335_v8 }
 0x26b   :  { %v1339_v34 = vpop.f32.mrf.mxu2 }
 0x26c   :  { %v1365_v37 = vadd.f32 %v4393_v62, %v1339_v34  ;;  %v1456_v63 = vpop.f32.mrf.mxu3 }
 0x26d   :  { %v1682_v31 = vpop.f32.mrf.mxu1 }
 0x26e   :  { %v1479_v45 = vadd.f32 %v1453_v57, %v1365_v37  ;;  %v1468_v57 = vadd.f32 %v4370_v41, %v1354_v44 }
 0x26f   :  { %v1570_v55 = vpop.f32.mrf.mxu0 }
 0x270   :  { %v1593_v13 = vadd.f32 %v1567_v11, %v1479_v45  ;;  %1798 = vmatmul.f32.gmra.mxu2 %v4317_v0  ;;  %2139 = vmatmul.f32.gmra.mxu1 %v4317_v0  ;;  %v1582_v14 = vadd.f32 %v4379_v19, %v1468_v57  ;;  %v2173_v19 = vld [vmem:[#allocation2 + $0x42] sm:$0xff] }
 0x271   :  { %1915 = vmatmul.f32.gmra.mxu3 %v4356_v18 }
 0x272   :  { %v4470_v39 = vadd.f32 %v1682_v31, %v1593_v13  ;;  %2028 = vmatmul.f32.gmra.mxu0 %v4349_v30  ;;  %v2171_v31 = vld [vmem:[#allocation2 + $0x22] sm:$0xff] }
 0x273   :  { %v1342_v53 = vpop.f32.mrf.mxu2 }
 0x274   :  { %v1366_v8 = vadd.f32 %v4393_v62, %v1342_v53  ;;  %v1459_v33 = vpop.f32.mrf.mxu3 }
 0x275   :  { %v1685_v43 = vpop.f32.mrf.mxu1 }
 0x276   :  { %v1480_v28 = vadd.f32 %v1456_v63, %v1366_v8  ;;  %v1697_v63 = vadd.f32 %v4385_v1, %v1582_v14 }
 0x277   :  { %v1573_v23 = vpop.f32.mrf.mxu0 }
 0x278   :  { %v1594_v47 = vadd.f32 %v1570_v55, %v1480_v28  ;;  %1801 = vmatmul.f32.gmra.mxu2 %v4331_v24  ;;  %2142 = vmatmul.f32.gmra.mxu1 %v4331_v24 }
 0x279   :  { %1918 = vmatmul.f32.gmra.mxu3 %v4367_v4 }
 0x27a   :  { %v4477_v0 = vadd.f32 %v1685_v43, %v1594_v47  ;;  %2031 = vmatmul.f32.gmra.mxu0 %v4362_v36  ;;  %v2174_v47 = vld [vmem:[#allocation2 + $0x52] sm:$0xff] }
 0x27b   :  { %v1345_v51 = vpop.f32.mrf.mxu2 }
 0x27c   :  { %v1367_v30 = vadd.f32 %v4393_v62, %v1345_v51  ;;  %v1462_v3 = vpop.f32.mrf.mxu3 }
 0x27d   :  { %v1688_v58 = vpop.f32.mrf.mxu1 }
 0x27e   :  { %v1481_v46 = vadd.f32 %v1459_v33, %v1367_v30 }
 0x27f   :  { %v1576_v7 = vpop.f32.mrf.mxu0 }
 0x280   :  { %v1595_v59 = vadd.f32 %v1573_v23, %v1481_v46  ;;  %1804 = vmatmul.f32.gmra.mxu2 %v4347_v22  ;;  %2145 = vmatmul.f32.gmra.mxu1 %v4347_v22  ;;  %v1958_v22 = vld [vmem:[#allocation2 + $0x130] sm:$0xff]  ;;  %v2175_v23 = vld [vmem:[#allocation2 + $0x62] sm:$0xff] }
 0x281   :  { %1921 = vmatmul.f32.gmra.mxu3 %v4483_v15 }
 0x282   :  { %v4486_v24 = vadd.f32 %v1688_v58, %v1595_v59  ;;  %2034 = vmatmul.f32.gmra.mxu0 %v4375_v2 }
 0x283   :  { %v1348_v5 = vpop.f32.mrf.mxu2 }
 0x284   :  { %v1368_v36 = vadd.f32 %v4393_v62, %v1348_v5  ;;  %v1465_v11 = vpop.f32.mrf.mxu3 }
 0x285   :  { %v1691_v38 = vpop.f32.mrf.mxu1 }
 0x286   :  { %v1482_v60 = vadd.f32 %v1462_v3, %v1368_v36 }
 0x287   :  { %v1579_v37 = vpop.f32.mrf.mxu0 }
 0x288   :  { %v1596_v40 = vadd.f32 %v1576_v7, %v1482_v60  ;;  %1807 = vmatmul.f32.gmra.mxu2 %v4360_v52  ;;  %2148 = vmatmul.f32.gmra.mxu1 %v4360_v52 }
 0x28a   :  { %v4495_v49 = vadd.f32 %v1691_v38, %v1596_v40  ;;  %2037 = vmatmul.f32.gmra.mxu0 %v1958_v22 }
 0x28b   :  { %v1351_v54 = vpop.f32.mrf.mxu2 }
 0x28c   :  { %v1369_v2 = vadd.f32 %v4393_v62, %v1351_v54  ;;  %v2172_v62 = vld [vmem:[#allocation2 + $0x32] sm:$0xff]  ;;  %v1877_v40 = vpop.f32.mrf.mxu3 }
 0x28d   :  { %v1694_v52 = vpop.f32.mrf.mxu1 }
 0x28e   :  { %v1483_v34 = vadd.f32 %v1465_v11, %v1369_v2 }
 0x290   :  { %v1597_v45 = vadd.f32 %v1579_v37, %v1483_v34  ;;  %2220 = vmatmul.f32.vlgmr.msra.gmra.mxu2 %v2171_v31  ;;  %2151 = vmatmul.f32.gmra.mxu1 %v2072_v26 }
 0x292   :  { %v4500_v41 = vadd.f32 %v1694_v52, %v1597_v45  ;;  %v2186_v45 = vld [vmem:[#allocation2 + $0x132] sm:$0xff] }
 0x293   :  { %v1763_v13 = vpop.f32.mrf.mxu2 }
 0x294   :  { %v4502_v55 = vadd.f32 %v1763_v13, %v1697_v63  ;;  %v1880_v11 = vpop.f32.mrf.mxu3 }
 0x295   :  { %v2107_v54 = vpop.f32.mrf.mxu1 }
 0x298   :  { %2223 = vmatmul.f32.gmra.mxu2 %v2172_v62 }
 0x29b   :  { %v1766_v53 = vpop.f32.mrf.mxu2 }
 0x29c   :  { %v4505_v8 = vadd.f32 %v1766_v53, %v4400_v50  ;;  %v2176_v50 = vld [vmem:[#allocation2 + $0x72] sm:$0xff]  ;;  %v1883_v37 = vpop.f32.mrf.mxu3 }
 0x29d   :  { %v2110_v34 = vpop.f32.mrf.mxu1 }
 0x2a0   :  { %2226 = vmatmul.f32.gmra.mxu2 %v2173_v19  ;;  %v1926_v19 = vadd.f32 %v1880_v11, %v4505_v8 }
 0x2a3   :  { %v1769_v43 = vpop.f32.mrf.mxu2 }
 0x2a4   :  { %v4508_v28 = vadd.f32 %v1769_v43, %v4407_v17  ;;  %v1886_v52 = vpop.f32.mrf.mxu3 }
 0x2a8   :  { %2229 = vmatmul.f32.gmra.mxu2 %v2174_v47 }
 0x2ab   :  { %v1772_v1 = vpop.f32.mrf.mxu2 }
 0x2ac   :  { %v4511_v33 = vadd.f32 %v1772_v1, %v4414_v29  ;;  %v2178_v29 = vld [vmem:[#allocation2 + $0x92] sm:$0xff]  ;;  %v1889_v43 = vpop.f32.mrf.mxu3 }
 0x2b0   :  { %2232 = vmatmul.f32.gmra.mxu2 %v2175_v23 }
 0x2b3   :  { %v1775_v51 = vpop.f32.mrf.mxu2 }
 0x2b4   :  { %v4514_v30 = vadd.f32 %v1775_v51, %v4421_v20  ;;  %v2179_v20 = vld [vmem:[#allocation2 + $0xc2] sm:$0xff] }
 0x2b8   :  { %2235 = vmatmul.f32.gmra.mxu2 %v2176_v50 }
 0x2bb   :  { %v1778_v58 = vpop.f32.mrf.mxu2 }
 0x2bc   :  { %v4517_v46 = vadd.f32 %v1778_v58, %v4430_v12  ;;  %v2180_v12 = vld [vmem:[#allocation2 + $0xd2] sm:$0xff] }
 0x2c0   :  { %2238 = vmatmul.f32.gmra.mxu2 %v4427_v32 }
 0x2c3   :  { %v1781_v17 = vpop.f32.mrf.mxu2 }
 0x2c4   :  { %v4521_v59 = vadd.f32 %v1781_v17, %v4437_v61  ;;  %v2181_v61 = vld [vmem:[#allocation2 + $0xe2] sm:$0xff]  ;;  %v1927_v17 = vadd.f32 %v1883_v37, %v4508_v28 }
 0x2c8   :  { %2241 = vmatmul.f32.gmra.mxu2 %v2178_v29 }
 0x2cb   :  { %v1784_v5 = vpop.f32.mrf.mxu2 }
 0x2cc   :  { %v4524_v3 = vadd.f32 %v1784_v5, %v4442_v21  ;;  %v2182_v21 = vld [vmem:[#allocation2 + $0xf2] sm:$0xff] }
 0x2d0   :  { %2244 = vmatmul.f32.gmra.mxu2 %v2179_v20 }
 0x2d3   :  { %v1787_v36 = vpop.f32.mrf.mxu2 }
 0x2d4   :  { %v4527_v7 = vadd.f32 %v1787_v36, %v4449_v35  ;;  %v1993_v35 = vpop.f32.mrf.mxu0  ;;  %v1892_v36 = vpop.f32.mrf.mxu3 }
 0x2d8   :  { %2247 = vmatmul.f32.gmra.mxu2 %v2180_v12 }
 0x2db   :  { %v1790_v44 = vpop.f32.mrf.mxu2 }
 0x2dc   :  { %v4530_v32 = vadd.f32 %v1790_v44, %v4456_v27  ;;  %v1895_v11 = vpop.f32.mrf.mxu3 }
 0x2e0   :  { %2250 = vmatmul.f32.gmra.mxu2 %v2181_v61 }
 0x2e3   :  { %v1793_v60 = vpop.f32.mrf.mxu2 }
 0x2e4   :  { %v4533_v38 = vadd.f32 %v1793_v60, %v4463_v16  ;;  %v1996_v16 = vpop.f32.mrf.mxu0 }
 0x2e5   :  { %v2042_v23 = vadd.f32 %v1996_v16, %v1926_v19 }
 0x2e7   :  { %v2156_v58 = vadd.f32 %v2110_v34, %v2042_v23 }
 0x2e8   :  { %2253 = vmatmul.f32.gmra.mxu2 %v2182_v21  ;;  %v1928_v21 = vadd.f32 %v1886_v52, %v4511_v33  ;;  %v1898_v52 = vpop.f32.mrf.mxu3 }
 0x2eb   :  { %v1796_v22 = vpop.f32.mrf.mxu2 }
 0x2ec   :  { %v4536_v57 = vadd.f32 %v1796_v22, %v4470_v39  ;;  %v1999_v39 = vpop.f32.mrf.mxu0 }
 0x2ed   :  { %v2043_v12 = vadd.f32 %v1999_v39, %v1927_v17 }
 0x2f0   :  { %2256 = vmatmul.f32.gmra.mxu2 %v4356_v18 }
 0x2f3   :  { %v1799_v2 = vpop.f32.mrf.mxu2 }
 0x2f4   :  { %v4540_v27 = vadd.f32 %v1799_v2, %v4477_v0  ;;  %v2113_v0 = vpop.f32.mrf.mxu1 }
 0x2f5   :  { %v2157_v60 = vadd.f32 %v2113_v0, %v2043_v12 }
 0x2f8   :  { %2259 = vmatmul.f32.gmra.mxu2 %v4367_v4  ;;  %v1925_v4 = vadd.f32 %v1877_v40, %v4502_v55 }
 0x2fa   :  { %v2041_v62 = vadd.f32 %v1993_v35, %v1925_v4 }
 0x2fb   :  { %v1802_v26 = vpop.f32.mrf.mxu2 }
 0x2fc   :  { %v4544_v14 = vadd.f32 %v1802_v26, %v4486_v24  ;;  %v2002_v24 = vpop.f32.mrf.mxu0  ;;  %v2116_v53 = vpop.f32.mrf.mxu1  ;;  %v1929_v26 = vadd.f32 %v1889_v43, %v4514_v30 }
 0x300   :  { %2262 = vmatmul.f32.gmra.mxu2 %v4483_v15  ;;  %v4557_v15 = vld [vmem:[%s4618_s6] ss:$0 sm:$0xff]  ;;  %s2720_s6 = smov [#allocation6]  }
 0x301   :  { %v1138_v55 = vadd.f32 %v4557_v15, %v4138_v10  ;;  %v1141_v20 = vadd.f32 %v4557_v15, %v4154_v25  ;;  %v1144_v28 = vadd.f32 %v4557_v15, %v4162_v9  ;;  %v1147_v33 = vadd.f32 %v4557_v15, %v4177_v48  ;;  %s2337_s14 = sshll.u32 %s2720_s6, 4  ;;  %s2338_s14 = int_to_ptr.vmem [resolvable:$true] %s2337_s14 }
 0x302   :  { %v1150_v30 = vadd.f32 %v4557_v15, %v4192_v56 }
 0x303   :  { %v1805_v31 = vpop.f32.mrf.mxu2 }
 0x304   :  { %v4548_v18 = vadd.f32 %v1805_v31, %v4495_v49  ;;  %v2155_v49 = vadd.f32 %v2107_v54, %v2041_v62  ;;  %v2005_v51 = vpop.f32.mrf.mxu0  ;;  %v2119_v29 = vpop.f32.mrf.mxu1  ;;  %v2044_v54 = vadd.f32 %v2002_v24, %v1928_v21 }
 0x305   :  { %v2045_v31 = vadd.f32 %v2005_v51, %v1929_v26 }
 0x306   :  { %v2158_v16 = vadd.f32 %v2116_v53, %v2044_v54 }
 0x307   :  { %v2159_v4 = vadd.f32 %v2119_v29, %v2045_v31  ;;  %v4632_v31 = vld [vmem:[#allocation12_spill] sm:$0xff] }
 0x308   :  { %2265 = vmatmul.f32.gmra.mxu2 %v2186_v45 }
 0x30b   :  { %v1808_v63 = vpop.f32.mrf.mxu2 }
 0x30c   :  { %v4552_v13 = vadd.f32 %v1808_v63, %v4500_v41  ;;  %v2008_v10 = vpop.f32.mrf.mxu0  ;;  %v2122_v35 = vpop.f32.mrf.mxu1  ;;  %v1930_v63 = vadd.f32 %v1892_v36, %v4517_v46  ;;  %v4630_v36 = vld [vmem:[#allocation10_spill] sm:$0xff] }
 0x313   :  { %v2221_v47 = vpop.f32.mrf.mxu2 }
 0x314   :  { %v2269_v1 = vadd.f32 %v2221_v47, %v2155_v49  ;;  %v2011_v34 = vpop.f32.mrf.mxu0  ;;  %v2125_v0 = vpop.f32.mrf.mxu1  ;;  %v2046_v49 = vadd.f32 %v2008_v10, %v1930_v63 }
 0x316   :  { %v2285_v41 = vadd.f32 %v2269_v1, %v1138_v55  ;;  %v2160_v47 = vadd.f32 %v2122_v35, %v2046_v49  ;;  %v1931_v55 = vadd.f32 %v1895_v11, %v4521_v59  ;;  %v1901_v1 = vpop.f32.mrf.mxu3  ;;  %v1156_v59 = vadd.f32 %v4557_v15, %v4630_v36  ;;  %v4631_v35 = vld [vmem:[#allocation11_spill] sm:$0xff] }
 0x318   :  { %v2301_v50 = vmax.f32 %v2285_v41, 0.0  ;;  %v4629_v41 = vld [vmem:[#allocation9_spill] sm:$0xff] }
 0x319   :  { %v1153_v46 = vadd.f32 %v4557_v15, %v4629_v41 }
 0x31a   :  { %2317 = vst [vmem:[#allocation6] sm:$0xff] %v2301_v50  ;;  %v2047_v50 = vadd.f32 %v2011_v34, %v1931_v55 }
 0x31b   :  { %v2224_v5 = vpop.f32.mrf.mxu2 }
 0x31c   :  { %v2270_v8 = vadd.f32 %v2224_v5, %v2156_v58  ;;  %v2014_v53 = vpop.f32.mrf.mxu0  ;;  %v2128_v48 = vpop.f32.mrf.mxu1  ;;  %v2161_v29 = vadd.f32 %v2125_v0, %v2047_v50  ;;  %v1932_v5 = vadd.f32 %v1898_v52, %v4524_v3  ;;  %v1159_v3 = vadd.f32 %v4557_v15, %v4631_v35 }
 0x31e   :  { %v2286_v44 = vadd.f32 %v2270_v8, %v1141_v20 }
 0x320   :  { %v2302_v61 = vmax.f32 %v2286_v44, 0.0  ;;  %v1904_v44 = vpop.f32.mrf.mxu3 }
 0x322   :  { %2318 = vst [vmem:[#allocation6 + $0x8] sm:$0xff] %v2302_v61  ;;  %v2048_v61 = vadd.f32 %v2014_v53, %v1932_v5  ;;  %v4633_v53 = vld [vmem:[#allocation13_spill] sm:$0xff] }
 0x323   :  { %v2227_v40 = vpop.f32.mrf.mxu2 }
 0x324   :  { %v2271_v22 = vadd.f32 %v2227_v40, %v2157_v60  ;;  %v2017_v17 = vpop.f32.mrf.mxu0  ;;  %v2131_v20 = vpop.f32.mrf.mxu1  ;;  %v2162_v40 = vadd.f32 %v2128_v48, %v2048_v61 }
 0x326   :  { %v2287_v2 = vadd.f32 %v2271_v22, %v1144_v28  ;;  %v1933_v28 = vadd.f32 %v1901_v1, %v4527_v7  ;;  %v1162_v7 = vadd.f32 %v4557_v15, %v4632_v31 }
 0x328   :  { %v2303_v25 = vmax.f32 %v2287_v2, 0.0  ;;  %v2049_v11 = vadd.f32 %v2017_v17, %v1933_v28 }
 0x32a   :  { %2319 = vst [vmem:[#allocation6 + $0x10] sm:$0xff] %v2303_v25  ;;  %v2163_v34 = vadd.f32 %v2131_v20, %v2049_v11 }
 0x32b   :  { %v2230_v37 = vpop.f32.mrf.mxu2 }
 0x32c   :  { %v2272_v39 = vadd.f32 %v2230_v37, %v2158_v16  ;;  %v2020_v21 = vpop.f32.mrf.mxu0  ;;  %v2134_v2 = vpop.f32.mrf.mxu1  ;;  %v1934_v37 = vadd.f32 %v1904_v44, %v4530_v32  ;;  %v1165_v32 = vadd.f32 %v4557_v15, %v4633_v53 }
 0x32d   :  { %v1907_v16 = vpop.f32.mrf.mxu3 }
 0x32e   :  { %v2288_v45 = vadd.f32 %v2272_v39, %v1147_v33  ;;  %v2050_v0 = vadd.f32 %v2020_v21, %v1934_v37 }
 0x330   :  { %v2304_v9 = vmax.f32 %v2288_v45, 0.0 }
 0x332   :  { %2320 = vst [vmem:[#allocation6 + $0x18] sm:$0xff] %v2304_v9 }
 0x333   :  { %v2233_v24 = vpop.f32.mrf.mxu2 }
 0x334   :  { %v2273_v62 = vadd.f32 %v2233_v24, %v2159_v4  ;;  %v2023_v33 = vpop.f32.mrf.mxu0  ;;  %v2137_v52 = vpop.f32.mrf.mxu1  ;;  %v2164_v24 = vadd.f32 %v2134_v2, %v2050_v0 }
 0x335   :  { %v1910_v63 = vpop.f32.mrf.mxu3 }
 0x336   :  { %v2289_v19 = vadd.f32 %v2273_v62, %v1150_v30  ;;  %v1935_v30 = vadd.f32 %v1907_v16, %v4533_v38 }
 0x338   :  { %v2305_v43 = vmax.f32 %v2289_v19, 0.0 }
 0x33a   :  { %2321 = vst [vmem:[#allocation6 + $0x20] sm:$0xff] %v2305_v43  ;;  %v2051_v43 = vadd.f32 %v2023_v33, %v1935_v30 }
 0x33b   :  { %v2236_v23 = vpop.f32.mrf.mxu2 }
 0x33c   :  { %v2274_v51 = vadd.f32 %v2236_v23, %v2160_v47  ;;  %v2026_v19 = vpop.f32.mrf.mxu0  ;;  %v2140_v55 = vpop.f32.mrf.mxu1  ;;  %v2165_v1 = vadd.f32 %v2137_v52, %v2051_v43  ;;  %v1936_v23 = vadd.f32 %v1910_v63, %v4536_v57  ;;  %v1171_v57 = vadd.f32 %v4557_v15, %v4297_v42 }
 0x33d   :  { %v1913_v41 = vpop.f32.mrf.mxu3 }
 0x33e   :  { %v2290_v58 = vadd.f32 %v2274_v51, %v1153_v46  ;;  %v4634_v51 = vld [vmem:[#allocation14_spill] sm:$0xff]  ;;  %v1937_v20 = vadd.f32 %v1913_v41, %v4540_v27  ;;  %v1174_v27 = vadd.f32 %v4557_v15, %v4315_v6 }
 0x33f   :  { %v1168_v38 = vadd.f32 %v4557_v15, %v4634_v51 }
 0x340   :  { %v2306_v56 = vmax.f32 %v2290_v58, 0.0  ;;  %v2052_v58 = vadd.f32 %v2026_v19, %v1936_v23  ;;  %v4637_v19 = vld [vmem:[#allocation17_spill] sm:$0xff] }
 0x341   :  { %v1183_v43 = vadd.f32 %v4557_v15, %v4637_v19 }
 0x342   :  { %2322 = vst [vmem:[#allocation6 + $0x28] sm:$0xff] %v2306_v56  ;;  %v2166_v5 = vadd.f32 %v2140_v55, %v2052_v58 }
 0x343   :  { %v2239_v8 = vpop.f32.mrf.mxu2 }
 0x344   :  { %v2275_v12 = vadd.f32 %v2239_v8, %v2161_v29  ;;  %v2029_v56 = vpop.f32.mrf.mxu0  ;;  %v2143_v8 = vpop.f32.mrf.mxu1 }
 0x345   :  { %v2053_v44 = vadd.f32 %v2029_v56, %v1937_v20 }
 0x346   :  { %v2291_v10 = vadd.f32 %v2275_v12, %v1156_v59  ;;  %v1916_v12 = vpop.f32.mrf.mxu3 }
 0x347   :  { %v2167_v21 = vadd.f32 %v2143_v8, %v2053_v44 }
 0x348   :  { %v2307_v60 = vmax.f32 %v2291_v10, 0.0 }
 0x34a   :  { %2323 = vst [vmem:[#allocation6 + $0x30] sm:$0xff] %v2307_v60 }
 0x34b   :  { %v2242_v22 = vpop.f32.mrf.mxu2 }
 0x34c   :  { %v2276_v54 = vadd.f32 %v2242_v22, %v2162_v40  ;;  %v2032_v60 = vpop.f32.mrf.mxu0  ;;  %v1938_v40 = vadd.f32 %v1916_v12, %v4544_v14  ;;  %v2146_v35 = vpop.f32.mrf.mxu1 }
 0x34e   :  { %v2292_v25 = vadd.f32 %v2276_v54, %v1159_v3  ;;  %v2054_v3 = vadd.f32 %v2032_v60, %v1938_v40  ;;  %v1919_v2 = vpop.f32.mrf.mxu3 }
 0x350   :  { %v2308_v26 = vmax.f32 %v2292_v25, 0.0  ;;  %v2168_v11 = vadd.f32 %v2146_v35, %v2054_v3  ;;  %v1939_v25 = vadd.f32 %v1919_v2, %v4548_v18 }
 0x352   :  { %2324 = vst [vmem:[#allocation6 + $0x38] sm:$0xff] %v2308_v26 }
 0x353   :  { %v2245_v39 = vpop.f32.mrf.mxu2 }
 0x354   :  { %v2277_v45 = vadd.f32 %v2245_v39, %v2163_v34  ;;  %v2035_v16 = vpop.f32.mrf.mxu0  ;;  %v4635_v34 = vld [vmem:[#allocation15_spill] sm:$0xff]  ;;  %v2149_v31 = vpop.f32.mrf.mxu1 }
 0x355   :  { %v1177_v14 = vadd.f32 %v4557_v15, %v4635_v34  ;;  %v2055_v33 = vadd.f32 %v2035_v16, %v1939_v25 }
 0x356   :  { %v2293_v9 = vadd.f32 %v2277_v45, %v1162_v7  ;;  %v1922_v7 = vpop.f32.mrf.mxu3 }
 0x357   :  { %v2169_v45 = vadd.f32 %v2149_v31, %v2055_v33  ;;  %v1940_v0 = vadd.f32 %v1922_v7, %v4552_v13 }
 0x358   :  { %v2309_v4 = vmax.f32 %v2293_v9, 0.0 }
 0x35a   :  { %2325 = vst [vmem:[#allocation6 + $0x40] sm:$0xff] %v2309_v4  ;;  %v4636_v4 = vld [vmem:[#allocation16_spill] sm:$0xff] }
 0x35b   :  { %v2248_v62 = vpop.f32.mrf.mxu2  ;;  %v1180_v18 = vadd.f32 %v4557_v15, %v4636_v4 }
 0x35c   :  { %v2278_v49 = vadd.f32 %v2248_v62, %v2164_v24  ;;  %v2038_v9 = vpop.f32.mrf.mxu0  ;;  %v2152_v62 = vpop.f32.mrf.mxu1 }
 0x35d   :  { %v2056_v24 = vadd.f32 %v2038_v9, %v1940_v0 }
 0x35e   :  { %v2294_v48 = vadd.f32 %v2278_v49, %v1165_v32 }
 0x35f   :  { %v2170_v32 = vadd.f32 %v2152_v62, %v2056_v24 }
 0x360   :  { %v2310_v47 = vmax.f32 %v2294_v48, 0.0 }
 0x362   :  { %2326 = vst [vmem:[#allocation6 + $0x48] sm:$0xff] %v2310_v47 }
 0x363   :  { %v2251_v46 = vpop.f32.mrf.mxu2 }
 0x364   :  { %v2279_v50 = vadd.f32 %v2251_v46, %v2165_v1 }
 0x366   :  { %v2295_v17 = vadd.f32 %v2279_v50, %v1168_v38 }
 0x368   :  { %v2311_v29 = vmax.f32 %v2295_v17, 0.0 }
 0x36a   :  { %2327 = vst [vmem:[#allocation6 + $0x50] sm:$0xff] %v2311_v29 }
 0x36b   :  { %v2254_v36 = vpop.f32.mrf.mxu2 }
 0x36c   :  { %v2280_v59 = vadd.f32 %v2254_v36, %v2166_v5 }
 0x36e   :  { %v2296_v61 = vadd.f32 %v2280_v59, %v1171_v57 }
 0x370   :  { %v2312_v10 = vmax.f32 %v2296_v61, 0.0 }
 0x372   :  { %2328 = vst [vmem:[#allocation6 + $0x58] sm:$0xff] %v2312_v10 }
 0x373   :  { %v2257_v28 = vpop.f32.mrf.mxu2 }
 0x374   :  { %v2281_v22 = vadd.f32 %v2257_v28, %v2167_v21 }
 0x376   :  { %v2297_v54 = vadd.f32 %v2281_v22, %v1174_v27 }
 0x378   :  { %v2313_v42 = vmax.f32 %v2297_v54, 0.0 }
 0x37a   :  { %2329 = vst [vmem:[#allocation6 + $0x60] sm:$0xff] %v2313_v42 }
 0x37b   :  { %v2260_v26 = vpop.f32.mrf.mxu2 }
 0x37c   :  { %v2282_v37 = vadd.f32 %v2260_v26, %v2168_v11 }
 0x37e   :  { %v2298_v39 = vadd.f32 %v2282_v37, %v1177_v14 }
 0x380   :  { %v2314_v6 = vmax.f32 %v2298_v39, 0.0 }
 0x382   :  { %2330 = vst [vmem:[#allocation6 + $0x68] sm:$0xff] %v2314_v6 }
 0x383   :  { %v2263_v52 = vpop.f32.mrf.mxu2 }
 0x384   :  { %v2283_v63 = vadd.f32 %v2263_v52, %v2169_v45 }
 0x386   :  { %v2299_v30 = vadd.f32 %v2283_v63, %v1180_v18 }
 0x388   :  { %v2315_v53 = vmax.f32 %v2299_v30, 0.0 }
 0x38a   :  { %2331 = vst [vmem:[#allocation6 + $0x70] sm:$0xff] %v2315_v53 }
 0x38b   :  { %v2266_v49 = vpop.f32.mrf.mxu2 }
 0x38c   :  { %v2284_v48 = vadd.f32 %v2266_v49, %v2170_v32 }
 0x38e   :  { %v2300_v13 = vadd.f32 %v2284_v48, %v1183_v43 }
 0x390   :  { %v2316_v47 = vmax.f32 %v2300_v13, 0.0 }
 0x392   :  { %2332 = vst [vmem:[#allocation6 + $0x78] sm:$0xff] %v2316_v47 }
 0x393   :  { %2345 = dma.vmem_to_hbm [thread:$0]  %s2338_s14, 2048, %s2340_s17, [#allocation5], %s2717_s29, %s2717_s29, %s2718_s30  }
 0x394   :  { %2714 = dma.done.wait [#allocation5], 2048  }
 0x395   :  { %2715 = vsyncadd [#allocation5], 4294965248 }
 0x396   :  { %2350 = vsyncpa [#allocation4], 1 }
 0x397   :  { %2351 = vsyncpa [#allocation5], 1 }

</bundles_post_ra>
